<compile_context>
chip_gen: v6e
topology: v6e:2x2x1
jax: 0.10.0
libtpu: 0.0.40
codegen_flags: <defaults>
</compile_context>

<pallas_src>
import math

import jax
import jax.numpy as jnp
from jax.experimental import pallas as pl
from jax.experimental.pallas import tpu as pltpu


# ----------------------------------------------------------------------------
# Module-config helpers (mirror the PyTorch __init__ logic)
# ----------------------------------------------------------------------------
def safe_groupnorm_groups(ch: int, desired_groups: int = 32) -> int:
    groups = desired_groups
    while ch % groups != 0 and groups > 1:
        groups -= 1
    if ch % groups != 0:
        groups = 1
    return groups


def spatial_attention_config(ch: int, num_heads: int = 8, head_dim=None):
    calculated_head_dim = ch // num_heads
    hd = head_dim or (calculated_head_dim if calculated_head_dim > 0 else 1)
    nh = num_heads
    inner = hd * nh
    if inner > ch:
        hd = ch // nh
        if hd == 0:
            nh = ch
            hd = 1
        inner = hd * nh
    groups = safe_groupnorm_groups(ch)
    return nh, hd, inner, groups


# ----------------------------------------------------------------------------
# Pallas kernel
# ----------------------------------------------------------------------------
def _make_kernel(num_heads: int, head_dim: int, eps: float, bf16_softmax: bool):
    inner = num_heads * head_dim
    attn_scale = float(head_dim) ** (-0.5)

    def kernel(x_ref, gamma_ref, beta_ref, gsum_ref, gexp_ref,
               wq_ref, wkv_ref, wout_ref, o_ref,
               scale_scr, shift_scr, kv_scr):
        qt = pl.program_id(1)
        tq = o_ref.shape[2]

        # --------------------------------------------------------------
        # Once per batch element (first q-tile): GroupNorm statistics
        # (two-pass variance) and the stacked, head-fused K/V projection
        # for the full spatial extent, cached in VMEM for all q-tiles.
        # TODO(synk): for very large C*S on v7x, stream x in S-chunks here
        # (memory_space=pl.ANY + pltpu.make_async_copy) instead of keeping
        # the full f32 (C,S) block resident.
        # --------------------------------------------------------------
        @pl.when(qt == 0)
        def _():
            x = x_ref[0].astype(jnp.float32)                      # (C, S)
            ch_sum = jnp.sum(x, axis=1, keepdims=True)            # (C, 1)
            g_mean = jnp.dot(gsum_ref[...], ch_sum,
                             preferred_element_type=jnp.float32)  # (G, 1)
            mean_c = jnp.dot(gexp_ref[...], g_mean,
                             preferred_element_type=jnp.float32)  # (C, 1)
            xc = x - mean_c
            ch_sq = jnp.sum(xc * xc, axis=1, keepdims=True)       # (C, 1)
            g_var = jnp.dot(gsum_ref[...], ch_sq,
                            preferred_element_type=jnp.float32)   # (G, 1)
            var_c = jnp.dot(gexp_ref[...], g_var,
                            preferred_element_type=jnp.float32)   # (C, 1)
            rstd = jax.lax.rsqrt(var_c + eps)
            scl = gamma_ref[...] * rstd
            sft = beta_ref[...] - mean_c * scl
            scale_scr[...] = scl
            shift_scr[...] = sft
            xn = (x * scl + sft).astype(jnp.bfloat16)             # (C, S)
            # Single full-width MXU matmul producing K and V for every head.
            kv_scr[...] = jnp.dot(wkv_ref[...], xn,
                                  preferred_element_type=jnp.float32
                                  ).astype(jnp.bfloat16)          # (2*inner, S)

        # --------------------------------------------------------------
        # Per q-tile: slice the tile straight out of the resident x block
        # (also reused as the residual), one fused Q projection, per-head
        # attention with deferred softmax normalization, one fused output
        # projection.
        # --------------------------------------------------------------
        start = pl.multiple_of(qt * tq, tq)
        xq = x_ref[0, :, pl.ds(start, tq)].astype(jnp.float32)    # (C, Tq)
        xqn = (xq * scale_scr[...] + shift_scr[...]).astype(jnp.bfloat16)

        q_all = jnp.dot(wq_ref[...], xqn,
                        preferred_element_type=jnp.float32)       # (inner, Tq)
        q_all = (q_all * attn_scale).astype(jnp.bfloat16)         # scale folded in

        # Heads are unrolled (static slices); num_heads is small and per-head
        # work is only sim + attn@v.
        # TODO(synk): for very large S, add an inner flash-style K-tile loop
        # so the (S,Tq) slab is never fully materialized.
        head_outs = []
        for h in range(num_heads):
            r0 = h * head_dim
            qh = q_all[r0:r0 + head_dim, :]                       # (d, Tq) bf16
            kh = kv_scr[r0:r0 + head_dim, :]                      # (d, S)  bf16
            vh = kv_scr[inner + r0:inner + r0 + head_dim, :]      # (d, S)  bf16
            sim = jax.lax.dot_general(kh, qh, (((0,), (0,)), ((), ())),
                                      preferred_element_type=jnp.float32)  # (S, Tq)
            m = jnp.max(sim, axis=0, keepdims=True)               # (1, Tq)
            z = sim - m
            if bf16_softmax:
                p = jnp.exp(z.astype(jnp.bfloat16))               # (S, Tq) bf16
                denom = jnp.sum(p.astype(jnp.float32), axis=0, keepdims=True)
            else:
                p32 = jnp.exp(z)
                denom = jnp.sum(p32, axis=0, keepdims=True)
                p = p32.astype(jnp.bfloat16)
            # Unnormalized attention @ V: canonical (d,S)@(S,Tq) MXU matmul.
            oh = jnp.dot(vh, p, preferred_element_type=jnp.float32)  # (d, Tq)
            # Deferred softmax normalization: d*Tq multiplies per head.
            inv = pl.reciprocal(denom, approx=True)               # (1, Tq)
            head_outs.append((oh * inv).astype(jnp.bfloat16))

        oh_all = jnp.concatenate(head_outs, axis=0)               # (inner, Tq)
        out = jnp.dot(wout_ref[...], oh_all,
                      preferred_element_type=jnp.float32)         # (C, Tq)
        o_ref[0] = (xq + out).astype(o_ref.dtype)                 # residual add

    return kernel


# ----------------------------------------------------------------------------
# Wrapper
# ----------------------------------------------------------------------------
def spatial_attention_pallas(x_nchw, gamma, beta, w_qkv, w_out,
                             num_heads, head_dim, groups, eps=1e-5,
                             bf16_softmax=True, q_tile=None):
    """x_nchw: (B, C, H, W) f32.  w_qkv: (3*inner, C), w_out: (C, inner)."""
    B, C, H, W = x_nchw.shape
    S = H * W
    inner = num_heads * head_dim
    G = groups
    cg = C // G

    # Channel-major layout straight from NCHW; spatial positions on lanes.
    x3 = x_nchw.reshape(B, C, S).astype(jnp.float32)

    # Small group-reduce / group-broadcast matrices (replaces the (C,C) gmat);
    # gsum folds the 1/(group_size * S) normalization.
    gid = jnp.arange(C) // cg
    gsum = (jnp.arange(G)[:, None] == gid[None, :]).astype(jnp.float32) \
        / float(cg * S)                                                 # (G, C)
    gexp = (gid[:, None] == jnp.arange(G)[None, :]).astype(jnp.float32)  # (C, G)

    # Head-fused projection weights (bf16 MXU operands).
    w_qkv = jnp.asarray(w_qkv, jnp.float32)
    wq = w_qkv[:inner].astype(jnp.bfloat16)                       # (inner, C)
    wkv = w_qkv[inner:].astype(jnp.bfloat16)                      # (2*inner, C): K rows then V rows
    wo = jnp.asarray(w_out, jnp.float32).astype(jnp.bfloat16)     # (C, inner)

    gamma2 = jnp.asarray(gamma, jnp.float32).reshape(C, 1)
    beta2 = jnp.asarray(beta, jnp.float32).reshape(C, 1)

    # ---- VMEM-aware tile selection ---------------------------------------
    f32b, bf16b = 4, 2

    def vmem_estimate(tq):
        fixed = (2 * C * S * f32b                       # double-buffered x block
                 + 2 * C * tq * f32b                    # double-buffered out block
                 + 2 * (2 * G * C + 2 * C) * f32b       # gsum/gexp + gamma/beta
                 + 2 * 4 * inner * C * bf16b            # wq + wkv + wout
                 + 2 * C * f32b                         # cached affine scratch
                 + 2 * inner * S * bf16b)               # K/V scratch
        prologue = (C * S * (f32b + bf16b)              # centered x + bf16 xn
                    + 2 * inner * S * f32b)             # f32 K/V matmul result
        per_tile = (2 * S * tq * f32b + S * tq * bf16b  # sim / softmax slabs
                    + 4 * C * tq * f32b                 # xq / xqn / out / store
                    + 3 * inner * tq * f32b)            # q_all / head outputs
        return fixed + max(prologue, per_tile)

    try:
        vmem_cap = int(pltpu.get_tpu_info().vmem_capacity_bytes)   # 128 MiB v5e/v6e, 64 MiB v7x
    except Exception:
        vmem_cap = 64 * 1024 * 1024                                # conservative fallback
    budget = int(vmem_cap * 0.9)

    if q_tile is not None:
        assert S % q_tile == 0 and (q_tile == S or q_tile % 128 == 0)
        Tq = int(q_tile)
    else:
        candidates = ([S] if S <= 1024 else []) + \
            [t for t in (1024, 512, 256, 128) if t < S and S % t == 0]
        if not candidates:
            candidates = [S]
        Tq = candidates[-1]                      # smallest as a fallback
        for t in candidates:                     # prefer the largest that fits
            if vmem_estimate(t) <= budget:
                Tq = t
                break
    n_qt = S // Tq

    vmem_limit = int(min(max(int(vmem_estimate(Tq) * 1.25),
                             32 * 1024 * 1024), vmem_cap))

    out = pl.pallas_call(
        _make_kernel(num_heads, head_dim, eps, bf16_softmax),
        out_shape=jax.ShapeDtypeStruct((B, C, S), jnp.float32),
        grid_spec=pltpu.PrefetchScalarGridSpec(
            num_scalar_prefetch=0,
            grid=(B, n_qt),
            in_specs=[
                pl.BlockSpec((1, C, S), lambda b, q: (b, 0, 0)),    # x (stats, K/V, q-tiles, residual)
                pl.BlockSpec((C, 1), lambda b, q: (0, 0)),          # gamma
                pl.BlockSpec((C, 1), lambda b, q: (0, 0)),          # beta
                pl.BlockSpec((G, C), lambda b, q: (0, 0)),          # group-reduce matrix
                pl.BlockSpec((C, G), lambda b, q: (0, 0)),          # group-broadcast matrix
                pl.BlockSpec((inner, C), lambda b, q: (0, 0)),      # wq   (head-fused)
                pl.BlockSpec((2 * inner, C), lambda b, q: (0, 0)),  # wk|wv (head-fused)
                pl.BlockSpec((C, inner), lambda b, q: (0, 0)),      # wout (head-fused)
            ],
            out_specs=pl.BlockSpec((1, C, Tq), lambda b, q: (b, 0, q)),
            scratch_shapes=[
                pltpu.VMEM((C, 1), jnp.float32),                    # cached GN scale
                pltpu.VMEM((C, 1), jnp.float32),                    # cached GN shift
                pltpu.VMEM((2 * inner, S), jnp.bfloat16),           # flat K/V cache
            ],
        ),
        compiler_params=pltpu.CompilerParams(
            dimension_semantics=("parallel", "arbitrary"),
            vmem_limit_bytes=vmem_limit),
    )(x3, gamma2, beta2, gsum, gexp, wq, wkv, wo)

    return out.reshape(B, C, H, W)


# ----------------------------------------------------------------------------
# Pure-JAX reference (mirrors the PyTorch forward) for correctness checking
# ----------------------------------------------------------------------------
def spatial_attention_ref(x, gamma, beta, w_qkv, w_out,
                          num_heads, head_dim, groups, eps=1e-5):
    B, C, H, W = x.shape
    S = H * W
    inner = num_heads * head_dim
    xg = x.reshape(B, groups, (C // groups) * S)
    mean = xg.mean(-1, keepdims=True)
    var = xg.var(-1, keepdims=True)
    xn = ((xg - mean) / jnp.sqrt(var + eps)).reshape(B, C, H, W)
    xn = xn * gamma[None, :, None, None] + beta[None, :, None, None]
    qkv = jnp.einsum('oc,bchw->bohw', w_qkv, xn).reshape(B, 3, num_heads,
                                                         head_dim, S)
    q, k, v = (jnp.transpose(qkv[:, i], (0, 1, 3, 2)) for i in range(3))  # (B,h,S,d)
    sim = jnp.einsum('bhid,bhjd->bhij', q, k) * (head_dim ** (-0.5))
    attn = jax.nn.softmax(sim, axis=-1)
    out = jnp.einsum('bhij,bhjd->bhid', attn, v)               # (B, h, S, d)
    out = jnp.transpose(out, (0, 1, 3, 2)).reshape(B, inner, H, W)
    out = jnp.einsum('oc,bchw->bohw', w_out, out)
    return x + out


# ----------------------------------------------------------------------------
if __name__ == "__main__":
    B, CH, H, W = 2, 32, 16, 16
    num_heads, head_dim, inner, groups = spatial_attention_config(CH, num_heads=8)

    key = jax.random.PRNGKey(0)
    kx, kq, kt = jax.random.split(key, 3)

    x = jax.random.normal(kx, (B, CH, H, W), dtype=jnp.float32)

    # Deterministic parameter init mirroring the module's __init__:
    #   GroupNorm affine: gamma=1, beta=0
    #   to_qkv: kaiming-uniform-style 1x1 conv weight (bias=False)
    #   to_out: zero-initialized (nn.init.zeros_)
    gamma = jnp.ones((CH,), jnp.float32)
    beta = jnp.zeros((CH,), jnp.float32)
    bound = 1.0 / math.sqrt(CH)
    w_qkv = jax.random.uniform(kq, (3 * inner, CH), jnp.float32, -bound, bound)
    w_out = jnp.zeros((CH, inner), jnp.float32)

    # 1) Faithful-module run (zero to_out weight, as in __init__).
    y = spatial_attention_pallas(x, gamma, beta, w_qkv, w_out,
                                 num_heads, head_dim, groups)
    jax.block_until_ready(y)
    y_ref0 = spatial_attention_ref(x, gamma, beta, w_qkv, w_out,
                                   num_heads, head_dim, groups)
    assert jnp.allclose(y, y_ref0, atol=1e-5, rtol=1e-5), \
        float(jnp.max(jnp.abs(y - y_ref0)))

    # 2) Full-path check with a non-zero output projection (zero to_out would
    #    trivially hide attention bugs behind the residual).  Matmuls run in
    #    bf16 on the MXU, so compare with a correspondingly loose tolerance.
    w_out_chk = jax.random.uniform(kt, (CH, inner), jnp.float32, -bound, bound)
    y_k = spatial_attention_pallas(x, gamma, beta, w_qkv, w_out_chk,
                                   num_heads, head_dim, groups)
    y_r = spatial_attention_ref(x, gamma, beta, w_qkv, w_out_chk,
                                num_heads, head_dim, groups)
    jax.block_until_ready((y_k, y_r))
    err = float(jnp.max(jnp.abs(y_k - y_r)))
    assert err < 3e-2, err

    # 3) Same check with forced q-tiling (exercises the multi-tile pipeline
    #    and the cached GroupNorm-affine / K-V scratch reuse across q-tiles).
    y_t = spatial_attention_pallas(x, gamma, beta, w_qkv, w_out_chk,
                                   num_heads, head_dim, groups, q_tile=128)
    jax.block_until_ready(y_t)
    err_t = float(jnp.max(jnp.abs(y_t - y_r)))
    assert err_t < 3e-2, err_t

    print("KERNEL_OK")
</pallas_src>

<mosaic_0001>
module attributes {stable_mosaic.version = 11 : i64} {
  func.func @kernel(%arg0: i32, %arg1: i32, %arg2: memref<1x32x256xf32, #tpu.memory_space<vmem>>, %arg3: memref<32x1xf32, #tpu.memory_space<vmem>>, %arg4: memref<32x1xf32, #tpu.memory_space<vmem>>, %arg5: memref<32x32xf32, #tpu.memory_space<vmem>>, %arg6: memref<32x32xf32, #tpu.memory_space<vmem>>, %arg7: memref<32x32xbf16, #tpu.memory_space<vmem>>, %arg8: memref<64x32xbf16, #tpu.memory_space<vmem>>, %arg9: memref<32x32xbf16, #tpu.memory_space<vmem>>, %arg10: memref<1x32x256xf32, #tpu.memory_space<vmem>>, %arg11: memref<32x1xf32, #tpu.memory_space<vmem>>, %arg12: memref<32x1xf32, #tpu.memory_space<vmem>>, %arg13: memref<64x256xbf16, #tpu.memory_space<vmem>>) attributes {dimension_semantics = [#tpu.dimension_semantics<parallel>, #tpu.dimension_semantics<arbitrary>], iteration_bounds = array<i64: 2, 1>, scalar_prefetch = 0 : i64, scratch_operands = 3 : i64, tpu.core_type = #tpu.core_type<tc>, window_params = [{transform_indices = @transform_0, window_bounds = array<i64: 1, 32, 256>}, {pipeline_mode = #tpu.pipeline_mode<synchronous>, transform_indices = @transform_1, window_bounds = array<i64: 32, 1>}, {pipeline_mode = #tpu.pipeline_mode<synchronous>, transform_indices = @transform_2, window_bounds = array<i64: 32, 1>}, {pipeline_mode = #tpu.pipeline_mode<synchronous>, transform_indices = @transform_3, window_bounds = array<i64: 32, 32>}, {pipeline_mode = #tpu.pipeline_mode<synchronous>, transform_indices = @transform_4, window_bounds = array<i64: 32, 32>}, {pipeline_mode = #tpu.pipeline_mode<synchronous>, transform_indices = @transform_5, window_bounds = array<i64: 32, 32>}, {pipeline_mode = #tpu.pipeline_mode<synchronous>, transform_indices = @transform_6, window_bounds = array<i64: 64, 32>}, {pipeline_mode = #tpu.pipeline_mode<synchronous>, transform_indices = @transform_7, window_bounds = array<i64: 32, 32>}, {transform_indices = @transform_8, window_bounds = array<i64: 1, 32, 256>}]} {
    %c0_i32 = arith.constant 0 : i32
    %0 = arith.cmpi eq, %arg1, %c0_i32 : i32
    %1 = arith.extui %0 : i1 to i32
    %c0_i32_0 = arith.constant 0 : i32
    %2 = arith.cmpi ne, %1, %c0_i32_0 : i32
    scf.if %2 {
      %c0_64 = arith.constant 0 : index
      %c0_65 = arith.constant 0 : index
      %c0_66 = arith.constant 0 : index
      %171 = vector.load %arg2[%c0_64, %c0_65, %c0_66] : memref<1x32x256xf32, #tpu.memory_space<vmem>>, vector<1x32x256xf32>
      %172 = vector.shape_cast %171 : vector<1x32x256xf32> to vector<32x256xf32>
      %cst_67 = arith.constant dense<0.000000e+00> : vector<32xf32>
      %173 = vector.multi_reduction <add>, %172, %cst_67 [1] : vector<32x256xf32> to vector<32xf32>
      %174 = vector.shape_cast %173 : vector<32xf32> to vector<32x1xf32>
      %c0_68 = arith.constant 0 : index
      %c0_69 = arith.constant 0 : index
      %175 = vector.load %arg5[%c0_68, %c0_69] : memref<32x32xf32, #tpu.memory_space<vmem>>, vector<32x32xf32>
      %cst_70 = arith.constant dense<0.000000e+00> : vector<32x1xf32>
      %176 = tpu.matmul %175, %174, %cst_70 {dimension_numbers = #tpu.dot_dimension_numbers<[1], [0], [0], [1], [0, 0, 1, 1], [], []>} : vector<32x32xf32>, vector<32x1xf32>, vector<32x1xf32> -> vector<32x1xf32>
      %c0_71 = arith.constant 0 : index
      %c0_72 = arith.constant 0 : index
      %177 = vector.load %arg6[%c0_71, %c0_72] : memref<32x32xf32, #tpu.memory_space<vmem>>, vector<32x32xf32>
      %cst_73 = arith.constant dense<0.000000e+00> : vector<32x1xf32>
      %178 = tpu.matmul %177, %176, %cst_73 {dimension_numbers = #tpu.dot_dimension_numbers<[1], [0], [0], [1], [0, 0, 1, 1], [], []>} : vector<32x32xf32>, vector<32x1xf32>, vector<32x1xf32> -> vector<32x1xf32>
      %179 = vector.broadcast %178 : vector<32x1xf32> to vector<32x256xf32>
      %180 = arith.subf %172, %179 : vector<32x256xf32>
      %181 = arith.mulf %180, %180 : vector<32x256xf32>
      %cst_74 = arith.constant dense<0.000000e+00> : vector<32xf32>
      %182 = vector.multi_reduction <add>, %181, %cst_74 [1] : vector<32x256xf32> to vector<32xf32>
      %183 = vector.shape_cast %182 : vector<32xf32> to vector<32x1xf32>
      %c0_75 = arith.constant 0 : index
      %c0_76 = arith.constant 0 : index
      %184 = vector.load %arg5[%c0_75, %c0_76] : memref<32x32xf32, #tpu.memory_space<vmem>>, vector<32x32xf32>
      %cst_77 = arith.constant dense<0.000000e+00> : vector<32x1xf32>
      %185 = tpu.matmul %184, %183, %cst_77 {dimension_numbers = #tpu.dot_dimension_numbers<[1], [0], [0], [1], [0, 0, 1, 1], [], []>} : vector<32x32xf32>, vector<32x1xf32>, vector<32x1xf32> -> vector<32x1xf32>
      %c0_78 = arith.constant 0 : index
      %c0_79 = arith.constant 0 : index
      %186 = vector.load %arg6[%c0_78, %c0_79] : memref<32x32xf32, #tpu.memory_space<vmem>>, vector<32x32xf32>
      %cst_80 = arith.constant dense<0.000000e+00> : vector<32x1xf32>
      %187 = tpu.matmul %186, %185, %cst_80 {dimension_numbers = #tpu.dot_dimension_numbers<[1], [0], [0], [1], [0, 0, 1, 1], [], []>} : vector<32x32xf32>, vector<32x1xf32>, vector<32x1xf32> -> vector<32x1xf32>
      %cst_81 = arith.constant 9.99999974E-6 : f32
      %188 = vector.broadcast %cst_81 : f32 to vector<32x1xf32>
      %189 = arith.addf %187, %188 : vector<32x1xf32>
      %190 = math.rsqrt %189 : vector<32x1xf32>
      %c0_82 = arith.constant 0 : index
      %c0_83 = arith.constant 0 : index
      %191 = vector.load %arg3[%c0_82, %c0_83] : memref<32x1xf32, #tpu.memory_space<vmem>>, vector<32x1xf32>
      %192 = arith.mulf %191, %190 : vector<32x1xf32>
      %c0_84 = arith.constant 0 : index
      %c0_85 = arith.constant 0 : index
      %193 = vector.load %arg4[%c0_84, %c0_85] : memref<32x1xf32, #tpu.memory_space<vmem>>, vector<32x1xf32>
      %194 = arith.mulf %178, %192 : vector<32x1xf32>
      %195 = arith.subf %193, %194 : vector<32x1xf32>
      %c0_86 = arith.constant 0 : index
      %c0_87 = arith.constant 0 : index
      %196 = vector.load %arg11[%c0_86, %c0_87] : memref<32x1xf32, #tpu.memory_space<vmem>>, vector<32x1xf32>
      tpu.vector_store %arg11[%c0_86, %c0_87], %192 {strides = array<i32>} : memref<32x1xf32, #tpu.memory_space<vmem>>, vector<32x1xf32>,
      %c0_88 = arith.constant 0 : index
      %c0_89 = arith.constant 0 : index
      %197 = vector.load %arg12[%c0_88, %c0_89] : memref<32x1xf32, #tpu.memory_space<vmem>>, vector<32x1xf32>
      tpu.vector_store %arg12[%c0_88, %c0_89], %195 {strides = array<i32>} : memref<32x1xf32, #tpu.memory_space<vmem>>, vector<32x1xf32>,
      %198 = vector.broadcast %192 : vector<32x1xf32> to vector<32x256xf32>
      %199 = arith.mulf %172, %198 : vector<32x256xf32>
      %200 = vector.broadcast %195 : vector<32x1xf32> to vector<32x256xf32>
      %201 = arith.addf %199, %200 : vector<32x256xf32>
      %202 = arith.truncf %201 : vector<32x256xf32> to vector<32x256xbf16>
      %c0_90 = arith.constant 0 : index
      %c0_91 = arith.constant 0 : index
      %203 = vector.load %arg8[%c0_90, %c0_91] : memref<64x32xbf16, #tpu.memory_space<vmem>>, vector<64x32xbf16>
      %cst_92 = arith.constant dense<0.000000e+00> : vector<64x256xf32>
      %204 = tpu.matmul %203, %202, %cst_92 {dimension_numbers = #tpu.dot_dimension_numbers<[1], [0], [0], [1], [0, 0, 1, 1], [], []>} : vector<64x32xbf16>, vector<32x256xbf16>, vector<64x256xf32> -> vector<64x256xf32>
      %205 = arith.truncf %204 : vector<64x256xf32> to vector<64x256xbf16>
      %c0_93 = arith.constant 0 : index
      %c0_94 = arith.constant 0 : index
      %206 = vector.load %arg13[%c0_93, %c0_94] : memref<64x256xbf16, #tpu.memory_space<vmem>>, vector<64x256xbf16>
      tpu.vector_store %arg13[%c0_93, %c0_94], %205 {strides = array<i32>} : memref<64x256xbf16, #tpu.memory_space<vmem>>, vector<64x256xbf16>,
    } else {
    }
    %c256_i32 = arith.constant 256 : i32
    %3 = arith.muli %arg1, %c256_i32 : i32
    %4 = tpu.assume_multiple %3, 256 : i32
    %c0 = arith.constant 0 : index
    %c0_1 = arith.constant 0 : index
    %5 = arith.index_cast %4 : i32 to index
    %6 = vector.load %arg2[%c0, %c0_1, %5] : memref<1x32x256xf32, #tpu.memory_space<vmem>>, vector<1x32x256xf32>
    %7 = vector.shape_cast %6 : vector<1x32x256xf32> to vector<32x256xf32>
    %c0_2 = arith.constant 0 : index
    %c0_3 = arith.constant 0 : index
    %8 = vector.load %arg11[%c0_2, %c0_3] : memref<32x1xf32, #tpu.memory_space<vmem>>, vector<32x1xf32>
    %9 = vector.broadcast %8 : vector<32x1xf32> to vector<32x256xf32>
    %10 = arith.mulf %7, %9 : vector<32x256xf32>
    %c0_4 = arith.constant 0 : index
    %c0_5 = arith.constant 0 : index
    %11 = vector.load %arg12[%c0_4, %c0_5] : memref<32x1xf32, #tpu.memory_space<vmem>>, vector<32x1xf32>
    %12 = vector.broadcast %11 : vector<32x1xf32> to vector<32x256xf32>
    %13 = arith.addf %10, %12 : vector<32x256xf32>
    %14 = arith.truncf %13 : vector<32x256xf32> to vector<32x256xbf16>
    %c0_6 = arith.constant 0 : index
    %c0_7 = arith.constant 0 : index
    %15 = vector.load %arg7[%c0_6, %c0_7] : memref<32x32xbf16, #tpu.memory_space<vmem>>, vector<32x32xbf16>
    %cst = arith.constant dense<0.000000e+00> : vector<32x256xf32>
    %16 = tpu.matmul %15, %14, %cst {dimension_numbers = #tpu.dot_dimension_numbers<[1], [0], [0], [1], [0, 0, 1, 1], [], []>} : vector<32x32xbf16>, vector<32x256xbf16>, vector<32x256xf32> -> vector<32x256xf32>
    %cst_8 = arith.constant 5.000000e-01 : f32
    %17 = vector.broadcast %cst_8 : f32 to vector<32x256xf32>
    %18 = arith.mulf %16, %17 : vector<32x256xf32>
    %19 = arith.truncf %18 : vector<32x256xf32> to vector<32x256xbf16>
    %20 = vector.extract_strided_slice %19 {offsets = [0, 0], sizes = [4, 256], strides = [1, 1]} : vector<32x256xbf16> to vector<4x256xbf16>
    %c0_9 = arith.constant 0 : index
    %c0_10 = arith.constant 0 : index
    %21 = vector.load %arg13[%c0_9, %c0_10] : memref<64x256xbf16, #tpu.memory_space<vmem>>, vector<4x256xbf16>
    %c32 = arith.constant 32 : index
    %c0_11 = arith.constant 0 : index
    %22 = vector.load %arg13[%c32, %c0_11] : memref<64x256xbf16, #tpu.memory_space<vmem>>, vector<4x256xbf16>
    %cst_12 = arith.constant dense<0.000000e+00> : vector<256x256xf32>
    %23 = tpu.matmul %21, %20, %cst_12 {dimension_numbers = #tpu.dot_dimension_numbers<[0], [0], [1], [1], [0, 1, 1, 1], [], []>} : vector<4x256xbf16>, vector<4x256xbf16>, vector<256x256xf32> -> vector<256x256xf32>
    %cst_13 = arith.constant dense<0xFF800000> : vector<256xf32>
    %24 = vector.multi_reduction <maximumf>, %23, %cst_13 [0] : vector<256x256xf32> to vector<256xf32>
    %25 = vector.shape_cast %24 : vector<256xf32> to vector<1x256xf32>
    %26 = vector.broadcast %25 : vector<1x256xf32> to vector<256x256xf32>
    %27 = arith.subf %23, %26 : vector<256x256xf32>
    %28 = arith.truncf %27 : vector<256x256xf32> to vector<256x256xbf16>
    %29 = math.exp %28 : vector<256x256xbf16>
    %30 = arith.extf %29 : vector<256x256xbf16> to vector<256x256xf32>
    %cst_14 = arith.constant dense<0.000000e+00> : vector<256xf32>
    %31 = vector.multi_reduction <add>, %30, %cst_14 [0] : vector<256x256xf32> to vector<256xf32>
    %32 = vector.shape_cast %31 : vector<256xf32> to vector<1x256xf32>
    %cst_15 = arith.constant dense<0.000000e+00> : vector<4x256xf32>
    %33 = tpu.matmul %22, %29, %cst_15 {dimension_numbers = #tpu.dot_dimension_numbers<[1], [0], [0], [1], [0, 0, 1, 1], [], []>} : vector<4x256xbf16>, vector<256x256xbf16>, vector<4x256xf32> -> vector<4x256xf32>
    %34 = tpu.reciprocal %32 {approx = true} : vector<1x256xf32> -> vector<1x256xf32>
    %35 = vector.broadcast %34 : vector<1x256xf32> to vector<4x256xf32>
    %36 = arith.mulf %33, %35 : vector<4x256xf32>
    %37 = arith.truncf %36 : vector<4x256xf32> to vector<4x256xbf16>
    %38 = vector.extract_strided_slice %19 {offsets = [4, 0], sizes = [4, 256], strides = [1, 1]} : vector<32x256xbf16> to vector<4x256xbf16>
    %c4 = arith.constant 4 : index
    %c0_16 = arith.constant 0 : index
    %39 = vector.load %arg13[%c4, %c0_16] : memref<64x256xbf16, #tpu.memory_space<vmem>>, vector<4x256xbf16>
    %c36 = arith.constant 36 : index
    %c0_17 = arith.constant 0 : index
    %40 = vector.load %arg13[%c36, %c0_17] : memref<64x256xbf16, #tpu.memory_space<vmem>>, vector<4x256xbf16>
    %cst_18 = arith.constant dense<0.000000e+00> : vector<256x256xf32>
    %41 = tpu.matmul %39, %38, %cst_18 {dimension_numbers = #tpu.dot_dimension_numbers<[0], [0], [1], [1], [0, 1, 1, 1], [], []>} : vector<4x256xbf16>, vector<4x256xbf16>, vector<256x256xf32> -> vector<256x256xf32>
    %cst_19 = arith.constant dense<0xFF800000> : vector<256xf32>
    %42 = vector.multi_reduction <maximumf>, %41, %cst_19 [0] : vector<256x256xf32> to vector<256xf32>
    %43 = vector.shape_cast %42 : vector<256xf32> to vector<1x256xf32>
    %44 = vector.broadcast %43 : vector<1x256xf32> to vector<256x256xf32>
    %45 = arith.subf %41, %44 : vector<256x256xf32>
    %46 = arith.truncf %45 : vector<256x256xf32> to vector<256x256xbf16>
    %47 = math.exp %46 : vector<256x256xbf16>
    %48 = arith.extf %47 : vector<256x256xbf16> to vector<256x256xf32>
    %cst_20 = arith.constant dense<0.000000e+00> : vector<256xf32>
    %49 = vector.multi_reduction <add>, %48, %cst_20 [0] : vector<256x256xf32> to vector<256xf32>
    %50 = vector.shape_cast %49 : vector<256xf32> to vector<1x256xf32>
    %cst_21 = arith.constant dense<0.000000e+00> : vector<4x256xf32>
    %51 = tpu.matmul %40, %47, %cst_21 {dimension_numbers = #tpu.dot_dimension_numbers<[1], [0], [0], [1], [0, 0, 1, 1], [], []>} : vector<4x256xbf16>, vector<256x256xbf16>, vector<4x256xf32> -> vector<4x256xf32>
    %52 = tpu.reciprocal %50 {approx = true} : vector<1x256xf32> -> vector<1x256xf32>
    %53 = vector.broadcast %52 : vector<1x256xf32> to vector<4x256xf32>
    %54 = arith.mulf %51, %53 : vector<4x256xf32>
    %55 = arith.truncf %54 : vector<4x256xf32> to vector<4x256xbf16>
    %56 = vector.extract_strided_slice %19 {offsets = [8, 0], sizes = [4, 256], strides = [1, 1]} : vector<32x256xbf16> to vector<4x256xbf16>
    %c8 = arith.constant 8 : index
    %c0_22 = arith.constant 0 : index
    %57 = vector.load %arg13[%c8, %c0_22] : memref<64x256xbf16, #tpu.memory_space<vmem>>, vector<4x256xbf16>
    %c40 = arith.constant 40 : index
    %c0_23 = arith.constant 0 : index
    %58 = vector.load %arg13[%c40, %c0_23] : memref<64x256xbf16, #tpu.memory_space<vmem>>, vector<4x256xbf16>
    %cst_24 = arith.constant dense<0.000000e+00> : vector<256x256xf32>
    %59 = tpu.matmul %57, %56, %cst_24 {dimension_numbers = #tpu.dot_dimension_numbers<[0], [0], [1], [1], [0, 1, 1, 1], [], []>} : vector<4x256xbf16>, vector<4x256xbf16>, vector<256x256xf32> -> vector<256x256xf32>
    %cst_25 = arith.constant dense<0xFF800000> : vector<256xf32>
    %60 = vector.multi_reduction <maximumf>, %59, %cst_25 [0] : vector<256x256xf32> to vector<256xf32>
    %61 = vector.shape_cast %60 : vector<256xf32> to vector<1x256xf32>
    %62 = vector.broadcast %61 : vector<1x256xf32> to vector<256x256xf32>
    %63 = arith.subf %59, %62 : vector<256x256xf32>
    %64 = arith.truncf %63 : vector<256x256xf32> to vector<256x256xbf16>
    %65 = math.exp %64 : vector<256x256xbf16>
    %66 = arith.extf %65 : vector<256x256xbf16> to vector<256x256xf32>
    %cst_26 = arith.constant dense<0.000000e+00> : vector<256xf32>
    %67 = vector.multi_reduction <add>, %66, %cst_26 [0] : vector<256x256xf32> to vector<256xf32>
    %68 = vector.shape_cast %67 : vector<256xf32> to vector<1x256xf32>
    %cst_27 = arith.constant dense<0.000000e+00> : vector<4x256xf32>
    %69 = tpu.matmul %58, %65, %cst_27 {dimension_numbers = #tpu.dot_dimension_numbers<[1], [0], [0], [1], [0, 0, 1, 1], [], []>} : vector<4x256xbf16>, vector<256x256xbf16>, vector<4x256xf32> -> vector<4x256xf32>
    %70 = tpu.reciprocal %68 {approx = true} : vector<1x256xf32> -> vector<1x256xf32>
    %71 = vector.broadcast %70 : vector<1x256xf32> to vector<4x256xf32>
    %72 = arith.mulf %69, %71 : vector<4x256xf32>
    %73 = arith.truncf %72 : vector<4x256xf32> to vector<4x256xbf16>
    %74 = vector.extract_strided_slice %19 {offsets = [12, 0], sizes = [4, 256], strides = [1, 1]} : vector<32x256xbf16> to vector<4x256xbf16>
    %c12 = arith.constant 12 : index
    %c0_28 = arith.constant 0 : index
    %75 = vector.load %arg13[%c12, %c0_28] : memref<64x256xbf16, #tpu.memory_space<vmem>>, vector<4x256xbf16>
    %c44 = arith.constant 44 : index
    %c0_29 = arith.constant 0 : index
    %76 = vector.load %arg13[%c44, %c0_29] : memref<64x256xbf16, #tpu.memory_space<vmem>>, vector<4x256xbf16>
    %cst_30 = arith.constant dense<0.000000e+00> : vector<256x256xf32>
    %77 = tpu.matmul %75, %74, %cst_30 {dimension_numbers = #tpu.dot_dimension_numbers<[0], [0], [1], [1], [0, 1, 1, 1], [], []>} : vector<4x256xbf16>, vector<4x256xbf16>, vector<256x256xf32> -> vector<256x256xf32>
    %cst_31 = arith.constant dense<0xFF800000> : vector<256xf32>
    %78 = vector.multi_reduction <maximumf>, %77, %cst_31 [0] : vector<256x256xf32> to vector<256xf32>
    %79 = vector.shape_cast %78 : vector<256xf32> to vector<1x256xf32>
    %80 = vector.broadcast %79 : vector<1x256xf32> to vector<256x256xf32>
    %81 = arith.subf %77, %80 : vector<256x256xf32>
    %82 = arith.truncf %81 : vector<256x256xf32> to vector<256x256xbf16>
    %83 = math.exp %82 : vector<256x256xbf16>
    %84 = arith.extf %83 : vector<256x256xbf16> to vector<256x256xf32>
    %cst_32 = arith.constant dense<0.000000e+00> : vector<256xf32>
    %85 = vector.multi_reduction <add>, %84, %cst_32 [0] : vector<256x256xf32> to vector<256xf32>
    %86 = vector.shape_cast %85 : vector<256xf32> to vector<1x256xf32>
    %cst_33 = arith.constant dense<0.000000e+00> : vector<4x256xf32>
    %87 = tpu.matmul %76, %83, %cst_33 {dimension_numbers = #tpu.dot_dimension_numbers<[1], [0], [0], [1], [0, 0, 1, 1], [], []>} : vector<4x256xbf16>, vector<256x256xbf16>, vector<4x256xf32> -> vector<4x256xf32>
    %88 = tpu.reciprocal %86 {approx = true} : vector<1x256xf32> -> vector<1x256xf32>
    %89 = vector.broadcast %88 : vector<1x256xf32> to vector<4x256xf32>
    %90 = arith.mulf %87, %89 : vector<4x256xf32>
    %91 = arith.truncf %90 : vector<4x256xf32> to vector<4x256xbf16>
    %92 = vector.extract_strided_slice %19 {offsets = [16, 0], sizes = [4, 256], strides = [1, 1]} : vector<32x256xbf16> to vector<4x256xbf16>
    %c16 = arith.constant 16 : index
    %c0_34 = arith.constant 0 : index
    %93 = vector.load %arg13[%c16, %c0_34] : memref<64x256xbf16, #tpu.memory_space<vmem>>, vector<4x256xbf16>
    %c48 = arith.constant 48 : index
    %c0_35 = arith.constant 0 : index
    %94 = vector.load %arg13[%c48, %c0_35] : memref<64x256xbf16, #tpu.memory_space<vmem>>, vector<4x256xbf16>
    %cst_36 = arith.constant dense<0.000000e+00> : vector<256x256xf32>
    %95 = tpu.matmul %93, %92, %cst_36 {dimension_numbers = #tpu.dot_dimension_numbers<[0], [0], [1], [1], [0, 1, 1, 1], [], []>} : vector<4x256xbf16>, vector<4x256xbf16>, vector<256x256xf32> -> vector<256x256xf32>
    %cst_37 = arith.constant dense<0xFF800000> : vector<256xf32>
    %96 = vector.multi_reduction <maximumf>, %95, %cst_37 [0] : vector<256x256xf32> to vector<256xf32>
    %97 = vector.shape_cast %96 : vector<256xf32> to vector<1x256xf32>
    %98 = vector.broadcast %97 : vector<1x256xf32> to vector<256x256xf32>
    %99 = arith.subf %95, %98 : vector<256x256xf32>
    %100 = arith.truncf %99 : vector<256x256xf32> to vector<256x256xbf16>
    %101 = math.exp %100 : vector<256x256xbf16>
    %102 = arith.extf %101 : vector<256x256xbf16> to vector<256x256xf32>
    %cst_38 = arith.constant dense<0.000000e+00> : vector<256xf32>
    %103 = vector.multi_reduction <add>, %102, %cst_38 [0] : vector<256x256xf32> to vector<256xf32>
    %104 = vector.shape_cast %103 : vector<256xf32> to vector<1x256xf32>
    %cst_39 = arith.constant dense<0.000000e+00> : vector<4x256xf32>
    %105 = tpu.matmul %94, %101, %cst_39 {dimension_numbers = #tpu.dot_dimension_numbers<[1], [0], [0], [1], [0, 0, 1, 1], [], []>} : vector<4x256xbf16>, vector<256x256xbf16>, vector<4x256xf32> -> vector<4x256xf32>
    %106 = tpu.reciprocal %104 {approx = true} : vector<1x256xf32> -> vector<1x256xf32>
    %107 = vector.broadcast %106 : vector<1x256xf32> to vector<4x256xf32>
    %108 = arith.mulf %105, %107 : vector<4x256xf32>
    %109 = arith.truncf %108 : vector<4x256xf32> to vector<4x256xbf16>
    %110 = vector.extract_strided_slice %19 {offsets = [20, 0], sizes = [4, 256], strides = [1, 1]} : vector<32x256xbf16> to vector<4x256xbf16>
    %c20 = arith.constant 20 : index
    %c0_40 = arith.constant 0 : index
    %111 = vector.load %arg13[%c20, %c0_40] : memref<64x256xbf16, #tpu.memory_space<vmem>>, vector<4x256xbf16>
    %c52 = arith.constant 52 : index
    %c0_41 = arith.constant 0 : index
    %112 = vector.load %arg13[%c52, %c0_41] : memref<64x256xbf16, #tpu.memory_space<vmem>>, vector<4x256xbf16>
    %cst_42 = arith.constant dense<0.000000e+00> : vector<256x256xf32>
    %113 = tpu.matmul %111, %110, %cst_42 {dimension_numbers = #tpu.dot_dimension_numbers<[0], [0], [1], [1], [0, 1, 1, 1], [], []>} : vector<4x256xbf16>, vector<4x256xbf16>, vector<256x256xf32> -> vector<256x256xf32>
    %cst_43 = arith.constant dense<0xFF800000> : vector<256xf32>
    %114 = vector.multi_reduction <maximumf>, %113, %cst_43 [0] : vector<256x256xf32> to vector<256xf32>
    %115 = vector.shape_cast %114 : vector<256xf32> to vector<1x256xf32>
    %116 = vector.broadcast %115 : vector<1x256xf32> to vector<256x256xf32>
    %117 = arith.subf %113, %116 : vector<256x256xf32>
    %118 = arith.truncf %117 : vector<256x256xf32> to vector<256x256xbf16>
    %119 = math.exp %118 : vector<256x256xbf16>
    %120 = arith.extf %119 : vector<256x256xbf16> to vector<256x256xf32>
    %cst_44 = arith.constant dense<0.000000e+00> : vector<256xf32>
    %121 = vector.multi_reduction <add>, %120, %cst_44 [0] : vector<256x256xf32> to vector<256xf32>
    %122 = vector.shape_cast %121 : vector<256xf32> to vector<1x256xf32>
    %cst_45 = arith.constant dense<0.000000e+00> : vector<4x256xf32>
    %123 = tpu.matmul %112, %119, %cst_45 {dimension_numbers = #tpu.dot_dimension_numbers<[1], [0], [0], [1], [0, 0, 1, 1], [], []>} : vector<4x256xbf16>, vector<256x256xbf16>, vector<4x256xf32> -> vector<4x256xf32>
    %124 = tpu.reciprocal %122 {approx = true} : vector<1x256xf32> -> vector<1x256xf32>
    %125 = vector.broadcast %124 : vector<1x256xf32> to vector<4x256xf32>
    %126 = arith.mulf %123, %125 : vector<4x256xf32>
    %127 = arith.truncf %126 : vector<4x256xf32> to vector<4x256xbf16>
    %128 = vector.extract_strided_slice %19 {offsets = [24, 0], sizes = [4, 256], strides = [1, 1]} : vector<32x256xbf16> to vector<4x256xbf16>
    %c24 = arith.constant 24 : index
    %c0_46 = arith.constant 0 : index
    %129 = vector.load %arg13[%c24, %c0_46] : memref<64x256xbf16, #tpu.memory_space<vmem>>, vector<4x256xbf16>
    %c56 = arith.constant 56 : index
    %c0_47 = arith.constant 0 : index
    %130 = vector.load %arg13[%c56, %c0_47] : memref<64x256xbf16, #tpu.memory_space<vmem>>, vector<4x256xbf16>
    %cst_48 = arith.constant dense<0.000000e+00> : vector<256x256xf32>
    %131 = tpu.matmul %129, %128, %cst_48 {dimension_numbers = #tpu.dot_dimension_numbers<[0], [0], [1], [1], [0, 1, 1, 1], [], []>} : vector<4x256xbf16>, vector<4x256xbf16>, vector<256x256xf32> -> vector<256x256xf32>
    %cst_49 = arith.constant dense<0xFF800000> : vector<256xf32>
    %132 = vector.multi_reduction <maximumf>, %131, %cst_49 [0] : vector<256x256xf32> to vector<256xf32>
    %133 = vector.shape_cast %132 : vector<256xf32> to vector<1x256xf32>
    %134 = vector.broadcast %133 : vector<1x256xf32> to vector<256x256xf32>
    %135 = arith.subf %131, %134 : vector<256x256xf32>
    %136 = arith.truncf %135 : vector<256x256xf32> to vector<256x256xbf16>
    %137 = math.exp %136 : vector<256x256xbf16>
    %138 = arith.extf %137 : vector<256x256xbf16> to vector<256x256xf32>
    %cst_50 = arith.constant dense<0.000000e+00> : vector<256xf32>
    %139 = vector.multi_reduction <add>, %138, %cst_50 [0] : vector<256x256xf32> to vector<256xf32>
    %140 = vector.shape_cast %139 : vector<256xf32> to vector<1x256xf32>
    %cst_51 = arith.constant dense<0.000000e+00> : vector<4x256xf32>
    %141 = tpu.matmul %130, %137, %cst_51 {dimension_numbers = #tpu.dot_dimension_numbers<[1], [0], [0], [1], [0, 0, 1, 1], [], []>} : vector<4x256xbf16>, vector<256x256xbf16>, vector<4x256xf32> -> vector<4x256xf32>
    %142 = tpu.reciprocal %140 {approx = true} : vector<1x256xf32> -> vector<1x256xf32>
    %143 = vector.broadcast %142 : vector<1x256xf32> to vector<4x256xf32>
    %144 = arith.mulf %141, %143 : vector<4x256xf32>
    %145 = arith.truncf %144 : vector<4x256xf32> to vector<4x256xbf16>
    %146 = vector.extract_strided_slice %19 {offsets = [28, 0], sizes = [4, 256], strides = [1, 1]} : vector<32x256xbf16> to vector<4x256xbf16>
    %c28 = arith.constant 28 : index
    %c0_52 = arith.constant 0 : index
    %147 = vector.load %arg13[%c28, %c0_52] : memref<64x256xbf16, #tpu.memory_space<vmem>>, vector<4x256xbf16>
    %c60 = arith.constant 60 : index
    %c0_53 = arith.constant 0 : index
    %148 = vector.load %arg13[%c60, %c0_53] : memref<64x256xbf16, #tpu.memory_space<vmem>>, vector<4x256xbf16>
    %cst_54 = arith.constant dense<0.000000e+00> : vector<256x256xf32>
    %149 = tpu.matmul %147, %146, %cst_54 {dimension_numbers = #tpu.dot_dimension_numbers<[0], [0], [1], [1], [0, 1, 1, 1], [], []>} : vector<4x256xbf16>, vector<4x256xbf16>, vector<256x256xf32> -> vector<256x256xf32>
    %cst_55 = arith.constant dense<0xFF800000> : vector<256xf32>
    %150 = vector.multi_reduction <maximumf>, %149, %cst_55 [0] : vector<256x256xf32> to vector<256xf32>
    %151 = vector.shape_cast %150 : vector<256xf32> to vector<1x256xf32>
    %152 = vector.broadcast %151 : vector<1x256xf32> to vector<256x256xf32>
    %153 = arith.subf %149, %152 : vector<256x256xf32>
    %154 = arith.truncf %153 : vector<256x256xf32> to vector<256x256xbf16>
    %155 = math.exp %154 : vector<256x256xbf16>
    %156 = arith.extf %155 : vector<256x256xbf16> to vector<256x256xf32>
    %cst_56 = arith.constant dense<0.000000e+00> : vector<256xf32>
    %157 = vector.multi_reduction <add>, %156, %cst_56 [0] : vector<256x256xf32> to vector<256xf32>
    %158 = vector.shape_cast %157 : vector<256xf32> to vector<1x256xf32>
    %cst_57 = arith.constant dense<0.000000e+00> : vector<4x256xf32>
    %159 = tpu.matmul %148, %155, %cst_57 {dimension_numbers = #tpu.dot_dimension_numbers<[1], [0], [0], [1], [0, 0, 1, 1], [], []>} : vector<4x256xbf16>, vector<256x256xbf16>, vector<4x256xf32> -> vector<4x256xf32>
    %160 = tpu.reciprocal %158 {approx = true} : vector<1x256xf32> -> vector<1x256xf32>
    %161 = vector.broadcast %160 : vector<1x256xf32> to vector<4x256xf32>
    %162 = arith.mulf %159, %161 : vector<4x256xf32>
    %163 = arith.truncf %162 : vector<4x256xf32> to vector<4x256xbf16>
    %164 = tpu.concatenate %37, %55, %73, %91, %109, %127, %145, %163 in 0 : vector<4x256xbf16>, vector<4x256xbf16>, vector<4x256xbf16>, vector<4x256xbf16>, vector<4x256xbf16>, vector<4x256xbf16>, vector<4x256xbf16>, vector<4x256xbf16> -> vector<32x256xbf16>
    %c0_58 = arith.constant 0 : index
    %c0_59 = arith.constant 0 : index
    %165 = vector.load %arg9[%c0_58, %c0_59] : memref<32x32xbf16, #tpu.memory_space<vmem>>, vector<32x32xbf16>
    %cst_60 = arith.constant dense<0.000000e+00> : vector<32x256xf32>
    %166 = tpu.matmul %165, %164, %cst_60 {dimension_numbers = #tpu.dot_dimension_numbers<[1], [0], [0], [1], [0, 0, 1, 1], [], []>} : vector<32x32xbf16>, vector<32x256xbf16>, vector<32x256xf32> -> vector<32x256xf32>
    %167 = arith.addf %7, %166 : vector<32x256xf32>
    %c0_61 = arith.constant 0 : index
    %c0_62 = arith.constant 0 : index
    %c0_63 = arith.constant 0 : index
    %168 = vector.load %arg10[%c0_61, %c0_62, %c0_63] : memref<1x32x256xf32, #tpu.memory_space<vmem>>, vector<1x32x256xf32>
    %169 = vector.shape_cast %168 : vector<1x32x256xf32> to vector<32x256xf32>
    %170 = vector.shape_cast %167 : vector<32x256xf32> to vector<1x32x256xf32>
    tpu.vector_store %arg10[%c0_61, %c0_62, %c0_63], %170 {strides = array<i32>} : memref<1x32x256xf32, #tpu.memory_space<vmem>>, vector<1x32x256xf32>,
    return
  }
  func.func @transform_0(%arg0: i32, %arg1: i32) -> (i32, i32, i32) {
    %c0_i32 = arith.constant 0 : i32
    %c0_i32_0 = arith.constant 0 : i32
    %c0_i32_1 = arith.constant 0 : i32
    return %arg0, %c0_i32, %c0_i32_0 : i32, i32, i32
  }
  func.func @transform_1(%arg0: i32, %arg1: i32) -> (i32, i32) {
    %c0_i32 = arith.constant 0 : i32
    %c0_i32_0 = arith.constant 0 : i32
    %c0_i32_1 = arith.constant 0 : i32
    return %c0_i32, %c0_i32_0 : i32, i32
  }
  func.func @transform_2(%arg0: i32, %arg1: i32) -> (i32, i32) {
    %c0_i32 = arith.constant 0 : i32
    %c0_i32_0 = arith.constant 0 : i32
    %c0_i32_1 = arith.constant 0 : i32
    return %c0_i32, %c0_i32_0 : i32, i32
  }
  func.func @transform_3(%arg0: i32, %arg1: i32) -> (i32, i32) {
    %c0_i32 = arith.constant 0 : i32
    %c0_i32_0 = arith.constant 0 : i32
    %c0_i32_1 = arith.constant 0 : i32
    return %c0_i32, %c0_i32_0 : i32, i32
  }
  func.func @transform_4(%arg0: i32, %arg1: i32) -> (i32, i32) {
    %c0_i32 = arith.constant 0 : i32
    %c0_i32_0 = arith.constant 0 : i32
    %c0_i32_1 = arith.constant 0 : i32
    return %c0_i32, %c0_i32_0 : i32, i32
  }
  func.func @transform_5(%arg0: i32, %arg1: i32) -> (i32, i32) {
    %c0_i32 = arith.constant 0 : i32
    %c0_i32_0 = arith.constant 0 : i32
    %c0_i32_1 = arith.constant 0 : i32
    return %c0_i32, %c0_i32_0 : i32, i32
  }
  func.func @transform_6(%arg0: i32, %arg1: i32) -> (i32, i32) {
    %c0_i32 = arith.constant 0 : i32
    %c0_i32_0 = arith.constant 0 : i32
    %c0_i32_1 = arith.constant 0 : i32
    return %c0_i32, %c0_i32_0 : i32, i32
  }
  func.func @transform_7(%arg0: i32, %arg1: i32) -> (i32, i32) {
    %c0_i32 = arith.constant 0 : i32
    %c0_i32_0 = arith.constant 0 : i32
    %c0_i32_1 = arith.constant 0 : i32
    return %c0_i32, %c0_i32_0 : i32, i32
  }
  func.func @transform_8(%arg0: i32, %arg1: i32) -> (i32, i32, i32) {
    %c0_i32 = arith.constant 0 : i32
    %c0_i32_0 = arith.constant 0 : i32
    return %arg0, %c0_i32, %arg1 : i32, i32, i32
  }
}

</mosaic_0001>

<bundles_post_ra>
// kernel: tpu_custom_call.1
= control target key start
LH: loop header
LB: loop body
LE: loop exit
PB: predicated region body
PF: predicated region fallthrough
CT: control target
= control target key end

     0   :  { %13 = vsyncpa [#allocation6], 0  ;;  %s13031_s0 = inlined_call_operand.hbm [shape: f32[2,32,256], index: 0, kind: input, shape index: {}]   ;;  %s13032_s1 = inlined_call_operand.vmem [shape: f32[32,1], index: 1, kind: input, shape index: {}]   ;;  %s13033_s2 = inlined_call_operand.vmem [shape: f32[32,1], index: 2, kind: input, shape index: {}]   ;;  %s13034_s3 = inlined_call_operand.vmem [shape: f32[32,32], index: 3, kind: input, shape index: {}]   ;;  %s13035_s4 = inlined_call_operand.vmem [shape: f32[32,32], index: 4, kind: input, shape index: {}]   ;;  %s13036_s5 = inlined_call_operand.vmem [shape: bf16[32,32], index: 5, kind: input, shape index: {}]   ;;  %s13037_s6 = inlined_call_operand.vmem [shape: bf16[64,32], index: 6, kind: input, shape index: {}]   ;;  %s13038_s7 = inlined_call_operand.vmem [shape: bf16[32,32], index: 7, kind: input, shape index: {}]   ;;  %s13039_s8 = inlined_call_operand.hbm [shape: f32[2,32,256], index: 8, kind: output, shape index: {}]  }
   0x1   :  { %15 = vsyncpa [#allocation6 + $0x1], 0 }
   0x2   :  { %16 = vsyncpa [#allocation7], 0 }
   0x3   :  { %18 = vsyncpa [#allocation7 + $0x1], 0  ;;  %s8624_s27 = smov 0   ;;  %s8626_s28 = smov 0  }
   0x4   :  { %s8628_s29 = smov 0   ;;  %s8630_s30 = smov 0  }
   0x5   :  { %s8632_s9 = smov 0   ;;  %s8634_s10 = smov 0  }
   0x6 LB: > { %13216 = sst [smem:[#allocation11_spill]] %s8566_s9  ;;  %s7465_s11 = sadd.s32 4294967295, %s8570_s10   ;;  %s8570_s10 = sphi %s8634_s10, %s24_s10   ;;  %s8566_s9 = sphi %s8632_s9, %s13626_s9   ;;  %s8562_s30 = sphi %s8630_s30, %s13625_s30   ;;  %s8558_s29 = sphi %s8628_s29, %s13629_s29   ;;  %s8554_s28 = sphi %s8626_s28, %s13628_s28   ;;  %s8550_s27 = sphi %s8624_s27, %s13627_s27  }
   0x7   : > { %s7466_s12 = sadd.s32 4294967294, %s8570_s10   ;;  %s36_s13 = sadd.s32 1, %s8566_s9 }
   0x8   : > { %s43_s14 = sadd.s32 1, %s8558_s29  ;;  %p38_p0 = scmp.ge.s32.totalorder %s36_s13, 2 }
   0x9   : > { %p50_p1 = scmp.ne.s32.totalorder %s8558_s29, %s8554_s28  ;;  %p51_p2 = scmp.eq.s32.totalorder %s8570_s10, 0 }
   0xa   : > { %p56_p3 = scmp.ne.s32.totalorder %s8554_s28, %s8550_s27  ;;  %s13631_s13 = smov (%p38_p0, %s36_s13), 0 }
   0xb   : > { %13217 = sst [smem:[#allocation12_spill]] %s13631_s13  ;;  %p8665_p4 = por %p51_p2, %p50_p1 }
   0xc   : > { %p57_p5 = scmp.eq.s32.totalorder %s7465_s11, 0  ;;  %s40_s16 = ssub.s32 %s8566_s9, %s13631_s13 }
   0xd   : > { %p229_p6 = scmp.eq.s32.totalorder %s7465_s11, 1  ;;  %p41_p7 = scmp.eq.s32.totalorder %s40_s16, 0 }
   0xe   : > { %p8671_p8 = por %p57_p5, %p56_p3  ;;  %p235_p10 = scmp.eq.s32.totalorder %s7466_s12, 1 }
   0xf   : > { %p8675_p9 = por %p229_p6, %p50_p1  ;;  %p7798_p13 = scmp.lt.s32.totalorder %s8570_s10, 2 }
  0x10   : > { %s8680_s19 = scalar_select %p41_p7, %s8558_s29, %s43_s14  }
  0x11   : > { %p8682_p11 = por %p235_p10, %p56_p3  ;;  %s276_s21 = sand.u32 1, %s8558_s29  }
  0x12   : > { %s7469_s22 = sshll.u32 %s276_s21, 6  ;;  %s7688_s23 = sshll.u32 %s8566_s9, 10 }
  0x13   : > { %s286_s26 = scalar_lea.hbm %s13031_s0, %s7688_s23  ;;  %s280_s11 = scalar_lea.vmem [#allocation5], %s7469_s22 }
  0x14   : > { %s287_s16 = sshll.u32 %s280_s11, 4  ;;  %p8695_p0 = pnand %p7798_p13, %p8665_p4  ;;  %s288_s16 = int_to_ptr.vmem [resolvable:$true] %s287_s16 }
  0x15   : > { %p7472_p1 = scmp.ge.s32.totalorder %s8570_s10, 1  ;;  %s277_s14 = scalar_lea.sflag [#allocation6], %s276_s21 }
  0x16   : > { %p8464_p2 = pneg %p8695_p0  ;;  %s8475_s13 = scalar_lea.vmem %s288_s16, 1024 }
  0x17   : > { %p8476_p3 = scmp.ne.s32.totalorder %s288_s16, %s8475_s13  ;;  %s8572_s9 = smov [#allocation5]  }
  0x18   : > { %s8480_s24 = sshll.u32 %s8572_s9, 4  ;;  %s8481_s24 = int_to_ptr.vmem [resolvable:$false] %s8480_s24 }
  0x19   : > { %p8478_p5 = pnand %p8476_p3, %p8464_p2  ;;  %s8482_s22 = scalar_lea.vmem %s8481_s24, 2048 }
  0x1a   : > { %p8483_p7 = scmp.lt.s32.totalorder %s288_s16, %s8481_s24  ;;  %p8484_p10 = scmp.lt.s32.totalorder %s8482_s22, %s8475_s13 }
  0x1b   : > { %p8479_p6 = pneg %p8478_p5 }
  0x1c   : > { %p8485_p12 = por %p8484_p10, %p8483_p7 }
  0x1e   : > { %p8486_p4 = pnand %p8485_p12, %p8479_p6 }
  0x20   : > { %8489 = shalt.err (!%p8486_p4)
}
  0x21   : > { %s8573_s15 = smov 256   ;;  %s8574_s21 = smov 16  }
  0x22   : > { %7793 = dma.hbm_to_vmem [thread:$0]  (!%p8695_p0), %s286_s26, 1024, %s288_s16, %s277_s14, %s8573_s15, %s8573_s15, %s8574_s21  }
  0x23   : > { %p295_p13 = scmp.lt.s32.totalorder %s8570_s10, 3 }
  0x25   : > { %p296_p2 = pnand %p7472_p1, %p295_p13 }
  0x27   : > { %299 = sbr.rel (%p296_p2) target bundleno = 5734 (0x1666), region = 52 }
  0x2c   : > { %s8708_s9 = sand.u32 1, %s8554_s28  }
  0x2d   : > { %s7473_s13 = sshll.u32 %s8708_s9, 6  ;;  %s302_s23 = scalar_lea.sflag [#allocation6], %s8708_s9 }
  0x2e   : > { %s8714_s25 = scalar_lea.vmem [#allocation5], %s7473_s13 }
  0x2f   : > { %8541 = dma.done.wait (%p8671_p8), %s302_s23, 1024  }
  0x30   : > { %8543 = vsyncadd (%p8671_p8), %s302_s23, 4294966272  ;;  %v8721_v0 = vld [vmem:[%s8714_s25 + $0x30] sm:$0xff]  ;;  %v8724_v1 = vld [vmem:[%s8714_s25 + $0x38] sm:$0xff]  ;;  %vm368_vm0 = vcmask 261120   ;;  %v13042_v21 = vmov 0   ;;  %vm809_vm1 = vcmask 7168  }
  0x31   : > { %v8727_v2 = vld [vmem:[%s8714_s25 + $0x20] sm:$0xff]  ;;  %v361_v3 = vadd.f32 %v8724_v1, %v8721_v0  ;;  %v8732_v4 = vld [vmem:[%s8714_s25 + $0x28] sm:$0xff]  ;;  %v8735_v5 = vld [vmem:[%s8714_s25 + $0x10] sm:$0xff]  ;;  %7854 = vset.pattern.permute.xlu1 %v13042_v21  ;;  %7853 = vset.pattern.permute.xlu0 %v13042_v21  ;;  %vm1304_vm2 = vcmask 1041408   ;;  %vm1255_vm3 = vcmask 31744   ;;  %vm7246_vm4 = vcmask 1043456  }
  0x32   : > { %v8738_v6 = vld [vmem:[%s8714_s25 + $0x18] sm:$0xff]  ;;  %v8743_v8 = vld [vmem:[%s8714_s25] sm:$0xff]  ;;  %v8746_v9 = vld [vmem:[%s8714_s25 + $0x8] sm:$0xff]  ;;  %v358_v10 = vadd.f32 %v8732_v4, %v8727_v2  ;;  %950 = vmatprep.mubr.bf16.mxu0 %v13042_v21  ;;  %vm7251_vm5 = vcmask 1045504   ;;  %s12959_s12 = scalar_lea.vmem [#allocation8], %s7473_s13  ;;  %s7697_s14 = sshll.u32 %s8562_s30, 10 }
  0x33   : > { %v355_v7 = vadd.f32 %v8738_v6, %v8735_v5  ;;  %362 = vadd.xlane.f32.xlu0 %v361_v3  ;;  %v352_v11 = vadd.f32 %v8746_v9, %v8743_v8  ;;  %v364_v12 = vld [vmem:[%s13034_s3] sm:$0xff]  ;;  %v8759_v17 = vld [vmem:[%s13034_s3 + $0x8] sm:$0xff]  ;;  %v8764_v18 = vld [vmem:[%s13034_s3 + $0x10] sm:$0xff]  ;;  %s7379_s13 = sshll.u32 %s12959_s12, 4  ;;  %s12980_s15 = scalar_lea.hbm %s13039_s8, %s7697_s14  ;;  %s12973_s13 = int_to_ptr.vmem [resolvable:$true] %s7379_s13 }
  0x34   : > { %7738 = vmatprep.mubr.msk.f32.mxu1 %vm368_vm0, %v364_v12  ;;  %v8773_v19 = vld [vmem:[%s13034_s3 + $0x18] sm:$0xff]  ;;  %v8780_v20 = vld [vmem:[%s13035_s4] sm:$0xff]  ;;  %v8790_v26 = vld [vmem:[%s13035_s4 + $0x8] sm:$0xff]  ;;  %s7364_s30 = scalar_lea.sflag [#allocation7], %s8708_s9  ;;  %s8490_s21 = scalar_lea.vmem %s12973_s13, 1024 }
  0x35   : > { %356 = vadd.xlane.f32.xlu1 %v355_v7  ;;  %v8795_v27 = vld [vmem:[%s13035_s4 + $0x10] sm:$0xff]  ;;  %v8804_v28 = vld [vmem:[%s13035_s4 + $0x18] sm:$0xff]  ;;  %p8491_p8 = scmp.ne.s32.totalorder %s12973_s13, %s8490_s21  ;;  %s8576_s23 = smov [#allocation8]  }
  0x36   : > { %s8494_s17 = sshll.u32 %s8576_s23, 4  ;;  %s8495_s17 = int_to_ptr.vmem [resolvable:$false] %s8494_s17 }
  0x37   : > { %359 = vadd.xlane.f32.xlu0 %v358_v10  ;;  %p8492_p12 = pnand %p8491_p8, %p8675_p9  ;;  %s8496_s26 = scalar_lea.vmem %s8495_s17, 2048 }
  0x38   : > { %p8497_p1 = scmp.lt.s32.totalorder %s12973_s13, %s8495_s17  ;;  %p8498_p3 = scmp.lt.s32.totalorder %s8496_s26, %s8490_s21 }
  0x39   : > { %353 = vadd.xlane.f32.xlu1 %v352_v11  ;;  %p8493_p0 = pneg %p8492_p12 }
  0x3a   : > { %p8499_p5 = por %p8498_p3, %p8497_p1 }
  0x3c   : > { %p8500_p6 = pnand %p8499_p5, %p8493_p0 }
  0xbc   : > { %v363_v13 = vpop.xlane.xlu0 %362 }
  0xbd   : > { %7730 = vmatprep.subr.mxu1 %v363_v13 }
  0xbe   : > { %v357_v14 = vpop.xlane.xlu1 %356  ;;  %7731 = vmatpush3.msra.mxu1 %v363_v13 }
  0xc0   : > { %v360_v15 = vpop.xlane.xlu0 %359 }
  0xc1   : > { %7732 = vmatprep.subr.mxu1 %v360_v15 }
  0xc2   : > { %7733 = vmatpush3.msra.mxu1 %v360_v15  ;;  %v354_v16 = vpop.xlane.xlu1 %353 }
  0xc3   : > { %7734 = vmatprep.subr.mxu1 %v357_v14 }
  0xc4   : > { %7735 = vmatpush3.msra.mxu1 %v357_v14 }
  0xc5   : > { %7736 = vmatprep.subr.mxu1 %v354_v16 }
  0xc6   : > { %7737 = vmatpush3.msra.mxu1 %v354_v16 }
  0xc7   : > { %7739 = vmatmul.mubr.msk.f32.vlgmr.msra.gmra.mxu1 %vm368_vm0, %v8759_v17 }
  0xc8   : > { %7741 = vmatprep.mubr.msk.f32.mxu1 %vm368_vm0, %v8764_v18 }
  0xcb   : > { %7742 = vmatmul.mubr.msk.f32.gmra.mxu1 %vm368_vm0, %v8773_v19 }
  0xcc   : > { %7752 = vmatprep.mubr.msk.f32.mxu1 %vm368_vm0, %v8780_v20 }
 0x187   : > { %v7740_v22 = vpop.f32.mrf.mxu1 }
 0x189   : > { %v447_v23 = vpop.f32.mrf.mxu1 }
 0x18b   : > { %v7743_v24 = vpop.f32.mrf.mxu1 }
 0x18c   : > { %7744 = vmatprep.subr.mxu1 %v7743_v24 }
 0x18d   : > { %v457_v25 = vpop.f32.mrf.mxu1  ;;  %7745 = vmatpush3.msra.mxu1 %v7743_v24  ;;  %v798_v24 = vld [vmem:[%s13033_s2 + $0x8] sm:$0xff] }
 0x18e   : > { %7746 = vmatprep.subr.mxu1 %v457_v25 }
 0x18f   : > { %7747 = vmatpush3.msra.mxu1 %v457_v25 }
 0x190   : > { %7748 = vmatprep.subr.mxu1 %v7740_v22 }
 0x191   : > { %7749 = vmatpush3.msra.mxu1 %v7740_v22 }
 0x192   : > { %7750 = vmatprep.subr.mxu1 %v447_v23 }
 0x193   : > { %7751 = vmatpush3.msra.mxu1 %v447_v23  ;;  %v792_v23 = vld [vmem:[%s13032_s1 + $0x18] sm:$0xff] }
 0x194   : > { %7753 = vmatmul.mubr.msk.f32.vlgmr.msra.gmra.mxu1 %vm368_vm0, %v8790_v26 }
 0x195   : > { %7755 = vmatprep.mubr.msk.f32.mxu1 %vm368_vm0, %v8795_v27 }
 0x198   : > { %7756 = vmatmul.mubr.msk.f32.gmra.mxu1 %vm368_vm0, %v8804_v28 }
 0x199   : > { %7766 = vmatprep.mubr.msk.f32.mxu1 %vm368_vm0, %v364_v12 }
 0x254   : > { %v8809_v29 = vpop.f32.mrf.mxu1 }
 0x255   : > { %574 = vperm.xlu1 %7854, %v8809_v29  }
 0x256   : > { %v8812_v30 = vpop.f32.mrf.mxu1 }
 0x258   : > { %v8814_v31 = vpop.f32.mrf.mxu1 }
 0x259   : > { %584 = vperm.xlu0 %7853, %v8814_v31  }
 0x25a   : > { %v8817_v32 = vpop.f32.mrf.mxu1 }
 0x25b   : > { %579 = vperm.xlu1 %7854, %v8817_v32  }
 0x25f   : > { %569 = vperm.xlu1 %7854, %v8812_v30  }
 0x2d0   : > { %v575_v33 = vpop.permute.xlu1 %574 }
 0x2d1   : > { %v589_v34 = vsub.f32 %v8735_v5, %v575_v33  ;;  %v590_v36 = vsub.f32 %v8738_v6, %v575_v33  ;;  %v797_v33 = vld [vmem:[%s13033_s2] sm:$0xff] }
 0x2d3   : > { %v597_v44 = vmul.f32 %v589_v34, %v589_v34  ;;  %v598_v45 = vmul.f32 %v590_v36, %v590_v36 }
 0x2d4   : > { %v585_v35 = vpop.permute.xlu0 %584 }
 0x2d5   : > { %v593_v37 = vsub.f32 %v8721_v0, %v585_v35  ;;  %v594_v38 = vsub.f32 %v8724_v1, %v585_v35  ;;  %v606_v55 = vadd.f32 %v598_v45, %v597_v44 }
 0x2d6   : > { %v580_v39 = vpop.permute.xlu1 %579 }
 0x2d7   : > { %v601_v40 = vmul.f32 %v593_v37, %v593_v37  ;;  %v602_v41 = vmul.f32 %v594_v38, %v594_v38  ;;  %v591_v42 = vsub.f32 %v8727_v2, %v580_v39  ;;  %v592_v43 = vsub.f32 %v8732_v4, %v580_v39 }
 0x2d9   : > { %v599_v46 = vmul.f32 %v591_v42, %v591_v42  ;;  %v600_v47 = vmul.f32 %v592_v43, %v592_v43  ;;  %v612_v48 = vadd.f32 %v602_v41, %v601_v40  ;;  %v799_v41 = vld [vmem:[%s13033_s2 + $0x10] sm:$0xff] }
 0x2da   : > { %v570_v49 = vpop.permute.xlu1 %569 }
 0x2db   : > { %v587_v50 = vsub.f32 %v8743_v8, %v570_v49  ;;  %v588_v51 = vsub.f32 %v8746_v9, %v570_v49  ;;  %613 = vadd.xlane.f32.xlu1 %v612_v48  ;;  %v609_v52 = vadd.f32 %v600_v47, %v599_v46 }
 0x2dd   : > { %v595_v53 = vmul.f32 %v587_v50, %v587_v50  ;;  %v596_v54 = vmul.f32 %v588_v51, %v588_v51  ;;  %610 = vadd.xlane.f32.xlu0 %v609_v52 }
 0x2df   : > { %607 = vadd.xlane.f32.xlu1 %v606_v55  ;;  %v603_v56 = vadd.f32 %v596_v54, %v595_v53 }
 0x2e3   : > { %604 = vadd.xlane.f32.xlu1 %v603_v56 }
 0x364   : > { %v614_v57 = vpop.xlane.xlu1 %613 }
 0x365   : > { %7758 = vmatprep.subr.mxu1 %v614_v57 }
 0x366   : > { %v611_v58 = vpop.xlane.xlu0 %610  ;;  %7759 = vmatpush3.msra.mxu1 %v614_v57 }
 0x367   : > { %7760 = vmatprep.subr.mxu1 %v611_v58 }
 0x368   : > { %7761 = vmatpush3.msra.mxu1 %v611_v58  ;;  %v608_v59 = vpop.xlane.xlu1 %607 }
 0x369   : > { %7762 = vmatprep.subr.mxu1 %v608_v59 }
 0x36a   : > { %7763 = vmatpush3.msra.mxu1 %v608_v59 }
 0x36c   : > { %v605_v60 = vpop.xlane.xlu1 %604 }
 0x36d   : > { %7764 = vmatprep.subr.mxu1 %v605_v60 }
 0x36e   : > { %7765 = vmatpush3.msra.mxu1 %v605_v60 }
 0x36f   : > { %7767 = vmatmul.mubr.msk.f32.vlgmr.msra.gmra.mxu1 %vm368_vm0, %v8759_v17  ;;  %v790_v17 = vld [vmem:[%s13032_s1 + $0x8] sm:$0xff] }
 0x370   : > { %7769 = vmatprep.mubr.msk.f32.mxu1 %vm368_vm0, %v8764_v18 }
 0x373   : > { %7770 = vmatmul.mubr.msk.f32.gmra.mxu1 %vm368_vm0, %v8773_v19  ;;  %v789_v19 = vld [vmem:[%s13032_s1] sm:$0xff] }
 0x374   : > { %7780 = vmatprep.mubr.msk.f32.mxu1 %vm368_vm0, %v8780_v20 }
 0x42f   : > { %v7768_v61 = vpop.f32.mrf.mxu1 }
 0x431   : > { %v681_v62 = vpop.f32.mrf.mxu1 }
 0x433   : > { %v7771_v63 = vpop.f32.mrf.mxu1 }
 0x434   : > { %7772 = vmatprep.subr.mxu1 %v7771_v63 }
 0x435   : > { %v691_v3 = vpop.f32.mrf.mxu1  ;;  %7773 = vmatpush3.msra.mxu1 %v7771_v63 }
 0x436   : > { %7774 = vmatprep.subr.mxu1 %v691_v3 }
 0x437   : > { %7775 = vmatpush3.msra.mxu1 %v691_v3 }
 0x438   : > { %7776 = vmatprep.subr.mxu1 %v7768_v61 }
 0x439   : > { %7777 = vmatpush3.msra.mxu1 %v7768_v61 }
 0x43a   : > { %7778 = vmatprep.subr.mxu1 %v681_v62 }
 0x43b   : > { %7779 = vmatpush3.msra.mxu1 %v681_v62 }
 0x43c   : > { %7781 = vmatmul.mubr.msk.f32.vlgmr.msra.gmra.mxu1 %vm368_vm0, %v8790_v26 }
 0x43d   : > { %7783 = vmatprep.mubr.msk.f32.mxu1 %vm368_vm0, %v8795_v27 }
 0x440   : > { %7784 = vmatmul.mubr.msk.f32.gmra.mxu1 %vm368_vm0, %v8804_v28  ;;  %v791_v28 = vld [vmem:[%s13032_s1 + $0x10] sm:$0xff] }
 0x441   : > { %1181 = vmatprep.mubr.bf16.mxu1 %v13042_v21 }
 0x4fc   : > { %v7782_v7 = vpop.f32.mrf.mxu1 }
 0x4fd   : > { %v772_v10 = vadd.f32 1e-05, %v7782_v7 }
 0x4fe   : > { %v766_v11 = vpop.f32.mrf.mxu1 }
 0x4ff   : > { %7895 = vrsqrt.f32 %v772_v10  ;;  %v767_v12 = vadd.f32 1e-05, %v766_v11 }
 0x500   : > { %v7785_v13 = vpop.f32.mrf.mxu1 }
 0x501   : > { %7897 = vrsqrt.f32 %v767_v12  ;;  %v782_v14 = vadd.f32 1e-05, %v7785_v13 }
 0x502   : > { %v776_v15 = vpop.f32.mrf.mxu1 }
 0x503   : > { %7899 = vrsqrt.f32 %v782_v14  ;;  %v777_v16 = vadd.f32 1e-05, %v776_v15 }
 0x505   : > { %7901 = vrsqrt.f32 %v777_v16 }
 0x50c   : > { %v7896_v18 = vpop.eup %7895 }
 0x50d   : > { %v794_v20 = vmul.f32 %v7896_v18, %v790_v17 }
 0x50e   : > { %v7898_v22 = vpop.eup %7897 }
 0x50f   : > { %v793_v25 = vmul.f32 %v7898_v22, %v789_v19  ;;  %811 = vst.msk [vmem:[#allocation2 + $0x8] sm:$0xff] %vm809_vm1, %v794_v20  ;;  %v802_v26 = vmul.f32 %v8809_v29, %v794_v20  ;;  %v800_v29 = vld [vmem:[%s13033_s2 + $0x18] sm:$0xff] }
 0x510   : > { %v7900_v27 = vpop.eup %7899 }
 0x511   : > { %820 = vperm.xlu1 %7854, %v793_v25   ;;  %810 = vst.msk [vmem:[#allocation2] sm:$0xff] %vm809_vm1, %v793_v25  ;;  %v796_v34 = vmul.f32 %v7900_v27, %v792_v23  ;;  %v806_v35 = vsub.f32 %v798_v24, %v802_v26  ;;  %v801_v36 = vmul.f32 %v793_v25, %v8812_v30  ;;  %v7855_v26 = vld [vmem:[%s13037_s6] sm:$0xff]  }
 0x512   : > { %v7902_v37 = vpop.eup %7901 }
 0x513   : > { %835 = vperm.xlu0 %7853, %v796_v34   ;;  %813 = vst.msk [vmem:[#allocation2 + $0x18] sm:$0xff] %vm809_vm1, %v796_v34  ;;  %v795_v38 = vmul.f32 %v7902_v37, %v791_v28  ;;  %v804_v39 = vmul.f32 %v8814_v31, %v796_v34  ;;  %815 = vst.msk [vmem:[#allocation3 + $0x8] sm:$0xff] %vm809_vm1, %v806_v35  ;;  %v805_v40 = vsub.f32 %v797_v33, %v801_v36 }
 0x515   : > { %812 = vst.msk [vmem:[#allocation2 + $0x10] sm:$0xff] %vm809_vm1, %v795_v38  ;;  %830 = vperm.xlu1 %7854, %v795_v38   ;;  %v808_v30 = vsub.f32 %v800_v29, %v804_v39  ;;  %v803_v42 = vmul.f32 %v795_v38, %v8817_v32  ;;  %814 = vst.msk [vmem:[#allocation3] sm:$0xff] %vm809_vm1, %v805_v40 }
 0x516   : > { %v1061_v31 = vld [vmem:[#allocation2 + $0x8] sm:$0xff] }
 0x517   : > { %825 = vperm.xlu0 %7853, %v794_v20   ;;  %817 = vst.msk [vmem:[#allocation3 + $0x18] sm:$0xff] %vm809_vm1, %v808_v30  ;;  %v807_v43 = vsub.f32 %v799_v41, %v803_v42 }
 0x518   : > { %v1060_v45 = vld [vmem:[#allocation2] sm:$0xff] }
 0x519   : > { %863 = vperm.xlu1 %7854, %v808_v30   ;;  %816 = vst.msk [vmem:[#allocation3 + $0x10] sm:$0xff] %vm809_vm1, %v807_v43 }
 0x51a   : > { %v1063_v44 = vld [vmem:[#allocation2 + $0x18] sm:$0xff]  ;;  %v1093_v47 = vld [vmem:[#allocation3 + $0x8] sm:$0xff] }
 0x51b   : > { %853 = vperm.xlu0 %7853, %v806_v35  }
 0x51c   : > { %v1062_v32 = vld [vmem:[#allocation2 + $0x10] sm:$0xff]  ;;  %v1092_v49 = vld [vmem:[#allocation3] sm:$0xff] }
 0x51d   : > { %858 = vperm.xlu1 %7854, %v807_v43  }
 0x51e   : > { %v1095_v46 = vld [vmem:[#allocation3 + $0x18] sm:$0xff] }
 0x51f   : > { %1071 = vperm.xlu0 %7853, %v1061_v31  }
 0x520   : > { %v1094_v48 = vld [vmem:[#allocation3 + $0x10] sm:$0xff] }
 0x521   : > { %848 = vperm.xlu1 %7854, %v805_v40  }
 0x523   : > { %1081 = vperm.xlu0 %7853, %v1063_v44  }
 0x525   : > { %1066 = vperm.xlu1 %7854, %v1060_v45  }
 0x527   : > { %1113 = vperm.xlu0 %7853, %v1095_v46  }
 0x529   : > { %1076 = vperm.xlu1 %7854, %v1062_v32  }
 0x52b   : > { %1103 = vperm.xlu0 %7853, %v1093_v47  }
 0x52d   : > { %1108 = vperm.xlu1 %7854, %v1094_v48  }
 0x531   : > { %1098 = vperm.xlu1 %7854, %v1092_v49  }
 0x58c   : > { %v821_v50 = vpop.permute.xlu1 %820 }
 0x58d   : > { %v838_v7 = vmul.f32 %v821_v50, %v8743_v8  ;;  %v839_v10 = vmul.f32 %v821_v50, %v8746_v9 }
 0x58e   : > { %v836_v51 = vpop.permute.xlu0 %835 }
 0x58f   : > { %v844_v56 = vmul.f32 %v836_v51, %v8721_v0  ;;  %v845_v57 = vmul.f32 %v836_v51, %v8724_v1 }
 0x590   : > { %v831_v52 = vpop.permute.xlu1 %830 }
 0x591   : > { %v842_v58 = vmul.f32 %v831_v52, %v8727_v2  ;;  %v843_v59 = vmul.f32 %v831_v52, %v8732_v4 }
 0x592   : > { %v826_v53 = vpop.permute.xlu0 %825 }
 0x593   : > { %v840_v12 = vmul.f32 %v826_v53, %v8735_v5  ;;  %v841_v13 = vmul.f32 %v826_v53, %v8738_v6 }
 0x594   : > { %v864_v54 = vpop.permute.xlu1 %863 }
 0x595   : > { %v872_v61 = vadd.f32 %v864_v54, %v844_v56  ;;  %v873_v62 = vadd.f32 %v864_v54, %v845_v57 }
 0x596   : > { %v854_v55 = vpop.permute.xlu0 %853 }
 0x597   : > { %v868_v17 = vadd.f32 %v854_v55, %v840_v12  ;;  %v869_v18 = vadd.f32 %v854_v55, %v841_v13 }
 0x598   : > { %v859_v60 = vpop.permute.xlu1 %858 }
 0x599   : > { %v870_v63 = vadd.f32 %v859_v60, %v842_v58  ;;  %v871_v3 = vadd.f32 %v859_v60, %v843_v59 }
 0x59a   : > { %v1072_v11 = vpop.permute.xlu0 %1071 }
 0x59b   : > { %v877_v14 = vpack.c.bf16 %v873_v62, %v871_v3  ;;  %v876_v15 = vpack.c.bf16 %v872_v61, %v870_v63  ;;  %v1086_v41 = vmul.f32 %v1072_v11, %v8735_v5  ;;  %v1087_v30 = vmul.f32 %v1072_v11, %v8738_v6  ;;  %v7856_v5 = vld [vmem:[%s13036_s5] sm:$0xff]   ;;  %v7863_v6 = vld [vmem:[%s13036_s5 + $0x8] sm:$0xff]  }
 0x59c   : > { %v849_v16 = vpop.permute.xlu1 %848 }
 0x59d   : > { %v866_v19 = vadd.f32 %v849_v16, %v838_v7  ;;  %v867_v20 = vadd.f32 %v849_v16, %v839_v10  ;;  %930 = vmatprep.subr.bf16.mxu0 %v877_v14 }
 0x59e   : > { %v1082_v22 = vpop.permute.xlu0 %1081  ;;  %931 = vmatpush1.bf16.msra.mxu0 %v876_v15 }
 0x59f   : > { %v874_v23 = vpack.c.bf16 %v868_v17, %v866_v19  ;;  %v875_v24 = vpack.c.bf16 %v869_v18, %v867_v20  ;;  %v1090_v33 = vmul.f32 %v1082_v22, %v8721_v0  ;;  %v1091_v34 = vmul.f32 %v1082_v22, %v8724_v1  ;;  %v7866_v22 = vld [vmem:[%s13037_s6 + $0x8] sm:$0xff]  }
 0x5a0   : > { %v1067_v25 = vpop.permute.xlu1 %1066 }
 0x5a1   : > { %932 = vmatprep.subr.bf16.mxu0 %v875_v24  ;;  %v1084_v43 = vmul.f32 %v1067_v25, %v8743_v8  ;;  %v1085_v0 = vmul.f32 %v1067_v25, %v8746_v9 }
 0x5a2   : > { %933 = vmatpush1.bf16.msra.mxu0 %v874_v23  ;;  %v1114_v27 = vpop.permute.xlu0 %1113 }
 0x5a3   : > { %v1122_v29 = vadd.f32 %v1114_v27, %v1090_v33  ;;  %v1123_v38 = vadd.f32 %v1114_v27, %v1091_v34 }
 0x5a4   : > { %v1077_v28 = vpop.permute.xlu1 %1076 }
 0x5a5   : > { %7495 = vmatmul.mubr.msk.bf16.vlgmr.msra.gmra.mxu0 %vm368_vm0, %v7855_v26  ;;  %v1088_v35 = vmul.f32 %v1077_v28, %v8727_v2  ;;  %v1089_v36 = vmul.f32 %v1077_v28, %v8732_v4 }
 0x5a6   : > { %960 = vmatprep.mubr.bf16.mxu0 %v13042_v21  ;;  %v1104_v42 = vpop.permute.xlu0 %1103 }
 0x5a7   : > { %v1118_v2 = vadd.f32 %v1104_v42, %v1086_v41  ;;  %v1119_v45 = vadd.f32 %v1104_v42, %v1087_v30 }
 0x5a8   : > { %v1109_v37 = vpop.permute.xlu1 %1108 }
 0x5a9   : > { %v1120_v39 = vadd.f32 %v1109_v37, %v1088_v35  ;;  %v1121_v40 = vadd.f32 %v1109_v37, %v1089_v36 }
 0x5ab   : > { %v1126_v31 = vpack.c.bf16 %v1122_v29, %v1120_v39  ;;  %v1127_v1 = vpack.c.bf16 %v1123_v38, %v1121_v40 }
 0x5ac   : > { %v1099_v44 = vpop.permute.xlu1 %1098 }
 0x5ad   : > { %v1116_v4 = vadd.f32 %v1099_v44, %v1084_v43  ;;  %v1117_v46 = vadd.f32 %v1099_v44, %v1085_v0  ;;  %1161 = vmatprep.subr.bf16.mxu1 %v1127_v1  ;;  %7496 = vmatmul.mubr.msk.bf16.gmra.mxu0 %vm368_vm0, %v7866_v22  ;;  %v7867_v0 = vld [vmem:[%s13037_s6 + $0x10] sm:$0xff]  }
 0x5ae   : > { %1162 = vmatpush1.bf16.msra.mxu1 %v1126_v31  ;;  %970 = vmatprep.mubr.bf16.mxu0 %v13042_v21 }
 0x5af   : > { %v1124_v32 = vpack.c.bf16 %v1118_v2, %v1116_v4  ;;  %v1125_v47 = vpack.c.bf16 %v1119_v45, %v1117_v46 }
 0x5b1   : > { %1163 = vmatprep.subr.bf16.mxu1 %v1125_v47 }
 0x5b2   : > { %1164 = vmatpush1.bf16.msra.mxu1 %v1124_v32 }
 0x5b5   : > { %7509 = vmatmul.mubr.msk.bf16.vlgmr.msra.gmra.mxu1 %vm368_vm0, %v7856_v5  ;;  %7497 = vmatmul.mubr.msk.bf16.gmra.mxu0 %vm368_vm0, %v7867_v0 }
 0x5b6   : > { %1191 = vmatprep.mubr.bf16.mxu1 %v13042_v21  ;;  %980 = vmatprep.mubr.bf16.mxu0 %v13042_v21 }
 0x5bd   : > { %7510 = vmatmul.mubr.msk.bf16.gmra.mxu1 %vm368_vm0, %v7863_v6 }
 0x5be   : > { %1343 = vmatprep.mubr.bf16.mxu1 %v13042_v21 }
 0x665   : > { %v952_v8 = vpop.f32.mrf.mxu0 }
 0x667   : > { %v954_v9 = vpop.f32.mrf.mxu0 }
 0x668   : > { %v7689_v48 = vpack.c.bf16 %v954_v9, %v952_v8 }
 0x669   : > { %v956_v49 = vpop.f32.mrf.mxu0 }
 0x66a   : > { %1039 = vst [vmem:[#allocation4 + $0x30] sm:$0xff] %v7689_v48 }
 0x66b   : > { %v958_v50 = vpop.f32.mrf.mxu0 }
 0x66c   : > { %v7690_v51 = vpack.c.bf16 %v958_v50, %v956_v49 }
 0x66d   : > { %v962_v4 = vpop.f32.mrf.mxu0 }
 0x66e   : > { %1040 = vst [vmem:[#allocation4] sm:$0xff] %v7690_v51 }
 0x66f   : > { %v964_v46 = vpop.f32.mrf.mxu0 }
 0x670   : > { %v7691_v32 = vpack.c.bf16 %v964_v46, %v962_v4 }
 0x671   : > { %v1214_v52 = vld [vmem:[#allocation4 + $0x30] sm:$0x33]  ;;  %v1962_v10 = vld [vmem:[#allocation4 + $0x30] sm:$0xcc]  ;;  %v966_v46 = vpop.f32.mrf.mxu0 }
 0x672   : > { %v7512_v53 = vcombine.high %v1214_v52, %v1214_v52  ;;  %v7511_v54 = vcombine.low %v1214_v52, %v1214_v52  ;;  %v7532_v11 = vcombine.low %v1962_v10, %v1962_v10  ;;  %v7533_v12 = vcombine.high %v1962_v10, %v1962_v10  ;;  %1041 = vst [vmem:[#allocation4 + $0x18] sm:$0xff] %v7691_v32 }
 0x674   : > { %1239 = vxpose.xlu0.c.b16.start.end [1/1] (short) %v7512_v53, 128  ;;  %1223 = vxpose.xlu1.c.b16.start.end [1/1] (short) %v7511_v54, 128  ;;  %v1969_v13 = vrot.slane %v7532_v11, 2  ;;  %v1970_v14 = vrot.slane %v7533_v12, 2 }
 0x675   : > { %v1183_v55 = vpop.f32.mrf.mxu1  ;;  %v2716_v15 = vld [vmem:[#allocation4] sm:$0x33]  ;;  %v3464_v18 = vld [vmem:[#allocation4] sm:$0xcc] }
 0x676   : > { %v1202_v57 = vmul.f32 0.5, %v1183_v55  ;;  %v7553_v16 = vcombine.low %v2716_v15, %v2716_v15  ;;  %v7554_v17 = vcombine.high %v2716_v15, %v2716_v15  ;;  %v7574_v19 = vcombine.low %v3464_v18, %v3464_v18 }
 0x677   : > { %v1185_v56 = vpop.f32.mrf.mxu1  ;;  %v7575_v20 = vcombine.high %v3464_v18, %v3464_v18 }
 0x678   : > { %v1203_v59 = vmul.f32 0.5, %v1185_v56  ;;  %v3471_v23 = vrot.slane %v7574_v19, 2 }
 0x679   : > { %v1187_v58 = vpop.f32.mrf.mxu1  ;;  %v3472_v24 = vrot.slane %v7575_v20, 2  ;;  %v4216_v55 = vld [vmem:[#allocation4 + $0x18] sm:$0x33]  ;;  %v4962_v22 = vld [vmem:[#allocation4 + $0x18] sm:$0xcc] }
 0x67a   : > { %v1204_v60 = vmul.f32 0.5, %v1187_v58  ;;  %v7595_v56 = vcombine.low %v4216_v55, %v4216_v55 }
 0x67b   : > { %v1189_v61 = vpop.f32.mrf.mxu1 }
 0x67c   : > { %v8911_v62 = vpack.c.bf16 %v1204_v60, %v1202_v57  ;;  %v1205_v63 = vmul.f32 0.5, %v1189_v61  ;;  %v7596_v60 = vcombine.high %v4216_v55, %v4216_v55 }
 0x67d   : > { %v1193_v33 = vpop.f32.mrf.mxu1 }
 0x67e   : > { %13223 = vst [vmem:[#allocation13_spill] sm:$0xff] %v8911_v62  ;;  %v8913_v3 = vpack.c.bf16 %v1205_v63, %v1203_v59  ;;  %v1306_v7 = vsel %vm1304_vm2, %v8911_v62, 0  ;;  %v1206_v36 = vmul.f32 0.5, %v1193_v33 }
 0x67f   : > { %v8932_v34 = vpop.f32.mrf.mxu1 }
 0x680   : > { %13224 = vst [vmem:[#allocation14_spill] sm:$0xff] %v8913_v3  ;;  %7513 = vmatprep.subr.msk.bf16.mxu1 %vm1304_vm2, %v8913_v3  ;;  %13225 = vst [vmem:[#allocation15_spill] sm:$0xff] %v8932_v34 }
 0x681   : > { %1326 = vmatpush1.bf16.msra.mxu1 %v1306_v7  ;;  %v1197_v37 = vpop.f32.mrf.mxu1 }
 0x682   : > { %v1208_v29 = vmul.f32 0.5, %v1197_v37  ;;  %v7617_v37 = vcombine.high %v4962_v22, %v4962_v22 }
 0x683   : > { %v8964_v47 = vpop.f32.mrf.mxu1 }
 0x684   : > { %v8936_v38 = vpack.c.bf16 %v1208_v29, %v1206_v36  ;;  %13227 = vst [vmem:[#allocation17_spill] sm:$0xff] %v8964_v47 }
 0x686   : > { %13226 = vst [vmem:[#allocation16_spill] sm:$0xff] %v8936_v38 }
 0x691   : > { %1973 = vxpose.xlu0.c.b16.start.end [1/1] (short) %v1969_v13, 128  ;;  %1989 = vxpose.xlu1.c.b16.start.end [1/1] (short) %v1970_v14, 128 }
 0x6ae   : > { %2725 = vxpose.xlu0.c.b16.start.end [1/1] (short) %v7553_v16, 128  ;;  %2741 = vxpose.xlu1.c.b16.start.end [1/1] (short) %v7554_v17, 128 }
 0x6cb   : > { %3475 = vxpose.xlu0.c.b16.start.end [1/1] (short) %v3471_v23, 128  ;;  %3491 = vxpose.xlu1.c.b16.start.end [1/1] (short) %v3472_v24, 128  ;;  %v7616_v23 = vcombine.low %v4962_v22, %v4962_v22 }
 0x6d6   : > { %v1231_v25 = vpop.trf.xlu1  ;;  %v1247_v30 = vpop.trf.xlu0 }
 0x6d7   : > { %7514 = vmatmul.mubr.msk.bf16.vlgmr.msra.gmra.mxu1 %vm1255_vm3, %v1231_v25  ;;  %v4969_v25 = vrot.slane %v7616_v23, 2 }
 0x6d8   : > { %1353 = vmatprep.mubr.bf16.mxu1 %v13042_v21 }
 0x6da   : > { %v1232_v26 = vpop.trf.xlu1  ;;  %v1248_v42 = vpop.trf.xlu0 }
 0x6de   : > { %v1233_v27 = vpop.trf.xlu1  ;;  %v1249_v43 = vpop.trf.xlu0 }
 0x6df   : > { %7515 = vmatmul.mubr.msk.bf16.gmra.mxu1 %vm1255_vm3, %v1232_v26 }
 0x6e0   : > { %1363 = vmatprep.mubr.bf16.mxu1 %v13042_v21 }
 0x6e2   : > { %v1234_v28 = vpop.trf.xlu1  ;;  %v1250_v31 = vpop.trf.xlu0 }
 0x6e6   : > { %v1235_v35 = vpop.trf.xlu1  ;;  %v1251_v1 = vpop.trf.xlu0 }
 0x6e7   : > { %7516 = vmatmul.mubr.msk.bf16.gmra.mxu1 %vm1255_vm3, %v1233_v27 }
 0x6e8   : > { %1373 = vmatprep.mubr.bf16.mxu1 %v13042_v21  ;;  %4225 = vxpose.xlu0.c.b16.start.end [1/1] (short) %v7595_v56, 128  ;;  %v968_v56 = vpop.f32.mrf.mxu0 }
 0x6e9   : > { %4241 = vxpose.xlu1.c.b16.start.end [1/1] (short) %v7596_v60, 128  ;;  %v7692_v23 = vpack.c.bf16 %v968_v56, %v966_v46 }
 0x6ea   : > { %v1236_v39 = vpop.trf.xlu1  ;;  %v1252_v44 = vpop.trf.xlu0 }
 0x6eb   : > { %1042 = vst [vmem:[#allocation4 + $0x10] sm:$0xff] %v7692_v23 }
 0x6ee   : > { %v1237_v40 = vpop.trf.xlu1  ;;  %v1253_v2 = vpop.trf.xlu0 }
 0x6ef   : > { %7517 = vmatmul.mubr.msk.bf16.gmra.mxu1 %vm1255_vm3, %v1234_v28 }
 0x6f0   : > { %1383 = vmatprep.mubr.bf16.mxu1 %v13042_v21 }
 0x6f2   : > { %v1238_v41 = vpop.trf.xlu1  ;;  %v1254_v45 = vpop.trf.xlu0  ;;  %v5716_v23 = vld [vmem:[#allocation4 + $0x10] sm:$0x33] }
 0x6f7   : > { %7518 = vmatmul.mubr.msk.bf16.gmra.mxu1 %vm1255_vm3, %v1235_v35 }
 0x6f8   : > { %1393 = vmatprep.mubr.bf16.mxu1 %v13042_v21 }
 0x6ff   : > { %7519 = vmatmul.mubr.msk.bf16.gmra.mxu1 %vm1255_vm3, %v1236_v39  ;;  %v4970_v39 = vrot.slane %v7617_v37, 2 }
 0x700   : > { %1403 = vmatprep.mubr.bf16.mxu1 %v13042_v21 }
 0x705   : > { %4973 = vxpose.xlu0.c.b16.start.end [1/1] (short) %v4969_v25, 128 }
 0x706   : > { %4989 = vxpose.xlu1.c.b16.start.end [1/1] (short) %v4970_v39, 128 }
 0x707   : > { %7520 = vmatmul.mubr.msk.bf16.gmra.mxu1 %vm1255_vm3, %v1237_v40 }
 0x708   : > { %1413 = vmatprep.mubr.bf16.mxu1 %v13042_v21 }
 0x70f   : > { %7521 = vmatmul.mubr.msk.bf16.gmra.mxu1 %vm1255_vm3, %v1238_v41 }
 0x710   : > { %1423 = vmatprep.mubr.bf16.mxu1 %v13042_v21 }
 0x717   : > { %7522 = vmatmul.mubr.msk.bf16.gmra.mxu1 %vm1255_vm3, %v1247_v30 }
 0x718   : > { %1433 = vmatprep.mubr.bf16.mxu1 %v13042_v21 }
 0x71f   : > { %7523 = vmatmul.mubr.msk.bf16.gmra.mxu1 %vm1255_vm3, %v1248_v42 }
 0x720   : > { %1443 = vmatprep.mubr.bf16.mxu1 %v13042_v21 }
 0x727   : > { %7524 = vmatmul.mubr.msk.bf16.gmra.mxu1 %vm1255_vm3, %v1249_v43 }
 0x728   : > { %1453 = vmatprep.mubr.bf16.mxu1 %v13042_v21 }
 0x72f   : > { %7525 = vmatmul.mubr.msk.bf16.gmra.mxu1 %vm1255_vm3, %v1250_v31 }
 0x730   : > { %1463 = vmatprep.mubr.bf16.mxu1 %v13042_v21 }
 0x737   : > { %7526 = vmatmul.mubr.msk.bf16.gmra.mxu1 %vm1255_vm3, %v1251_v1 }
 0x738   : > { %1473 = vmatprep.mubr.bf16.mxu1 %v13042_v21 }
 0x73f   : > { %7527 = vmatmul.mubr.msk.bf16.gmra.mxu1 %vm1255_vm3, %v1252_v44 }
 0x740   : > { %1483 = vmatprep.mubr.bf16.mxu1 %v13042_v21 }
 0x747   : > { %7528 = vmatmul.mubr.msk.bf16.gmra.mxu1 %vm1255_vm3, %v1253_v2 }
 0x748   : > { %1493 = vmatprep.mubr.bf16.mxu1 %v13042_v21 }
 0x74f   : > { %7529 = vmatmul.mubr.msk.bf16.gmra.mxu1 %vm1255_vm3, %v1254_v45 }
 0x797   : > { %v8966_v5 = vpop.f32.mrf.mxu1 }
 0x799   : > { %v8968_v6 = vpop.f32.mrf.mxu1 }
 0x79b   : > { %v8970_v8 = vpop.f32.mrf.mxu1 }
 0x79d   : > { %v8972_v9 = vpop.f32.mrf.mxu1 }
 0x79f   : > { %v8974_v48 = vpop.f32.mrf.mxu1 }
 0x7a0   : > { %v1504_v60 = vmax.f32 %v8966_v5, %v8974_v48 }
 0x7a1   : > { %v8976_v49 = vpop.f32.mrf.mxu1 }
 0x7a3   : > { %v8978_v50 = vpop.f32.mrf.mxu1 }
 0x7a4   : > { %v1505_v55 = vmax.f32 %v8970_v8, %v8978_v50 }
 0x7a5   : > { %v8980_v51 = vpop.f32.mrf.mxu1 }
 0x7a7   : > { %v8982_v52 = vpop.f32.mrf.mxu1 }
 0x7a8   : > { %v1506_v37 = vmax.f32 %v1504_v60, %v8982_v52 }
 0x7a9   : > { %v8984_v53 = vpop.f32.mrf.mxu1 }
 0x7ab   : > { %v8986_v54 = vpop.f32.mrf.mxu1 }
 0x7ac   : > { %v1507_v25 = vmax.f32 %v1505_v55, %v8986_v54 }
 0x7ad   : > { %v8988_v57 = vpop.f32.mrf.mxu1 }
 0x7af   : > { %v8990_v58 = vpop.f32.mrf.mxu1 }
 0x7b0   : > { %13228 = vst [vmem:[#allocation18_spill] sm:$0xff] %v8990_v58  ;;  %v1508_v38 = vmax.f32 %v1506_v37, %v8990_v58  ;;  %v7638_v58 = vcombine.high %v5716_v23, %v5716_v23 }
 0x7b1   : > { %v8992_v59 = vpop.f32.mrf.mxu1 }
 0x7b2   : > { %5741 = vxpose.xlu1.c.b16.start.end [1/1] (short) %v7638_v58, 128 }
 0x7b3   : > { %v8994_v61 = vpop.f32.mrf.mxu1 }
 0x7b4   : > { %13229 = vst [vmem:[#allocation19_spill] sm:$0xff] %v8994_v61  ;;  %v1509_v21 = vmax.f32 %v1507_v25, %v8994_v61  ;;  %v7637_v61 = vcombine.low %v5716_v23, %v5716_v23 }
 0x7b5   : > { %v8996_v63 = vpop.f32.mrf.mxu1 }
 0x7b6   : > { %5725 = vxpose.xlu0.c.b16.start.end [1/1] (short) %v7637_v61, 128 }
 0x7b7   : > { %v8998_v7 = vpop.f32.mrf.mxu1 }
 0x7b8   : > { %v1510_v62 = vmax.f32 %v1508_v38, %v8998_v7 }
 0x7b9   : > { %v9000_v10 = vpop.f32.mrf.mxu1 }
 0x7bb   : > { %v9002_v11 = vpop.f32.mrf.mxu1 }
 0x7bc   : > { %13230 = vst [vmem:[#allocation20_spill] sm:$0xff] %v9002_v11  ;;  %v1511_v34 = vmax.f32 %v1509_v21, %v9002_v11 }
 0x7bd   : > { %v9004_v12 = vpop.f32.mrf.mxu1 }
 0x7be   : > { %13231 = vst [vmem:[#allocation21_spill] sm:$0xff] %v9004_v12 }
 0x7bf   : > { %v9006_v13 = vpop.f32.mrf.mxu1 }
 0x7c0   : > { %v1512_v55 = vmax.f32 %v1510_v62, %v9006_v13  ;;  %v9094_v62 = vpop.trf.xlu0 }
 0x7c1   : > { %v9008_v14 = vpop.f32.mrf.mxu1  ;;  %13246 = vst [vmem:[#allocation36_spill] sm:$0xff] %v9094_v62 }
 0x7c2   : > { %13232 = vst [vmem:[#allocation22_spill] sm:$0xff] %v9008_v14 }
 0x7c3   : > { %v9010_v15 = vpop.f32.mrf.mxu1 }
 0x7c4   : > { %v1513_v46 = vmax.f32 %v1511_v34, %v9010_v15  ;;  %v1542_v34 = vmax.f32 %v8972_v9, %v8980_v51 }
 0x7c5   : > { %v9012_v16 = vpop.f32.mrf.mxu1 }
 0x7c6   : > { %13233 = vst [vmem:[#allocation23_spill] sm:$0xff] %v9012_v16 }
 0x7c7   : > { %v9014_v17 = vpop.f32.mrf.mxu1 }
 0x7c8   : > { %v1514_v25 = vmax.f32 %v1512_v55, %v9014_v17  ;;  %v9099_v55 = vpop.trf.xlu1 }
 0x7c9   : > { %v9016_v18 = vpop.f32.mrf.mxu1  ;;  %13247 = vst [vmem:[#allocation37_spill] sm:$0xff] %v9099_v55 }
 0x7cb   : > { %v9018_v19 = vpop.f32.mrf.mxu1 }
 0x7cc   : > { %13234 = vst [vmem:[#allocation24_spill] sm:$0xff] %v9018_v19  ;;  %v1515_v60 = vmax.f32 %v1513_v46, %v9018_v19 }
 0x7cd   : > { %v9020_v20 = vpop.f32.mrf.mxu1 }
 0x7cf   : > { %v9022_v24 = vpop.f32.mrf.mxu1 }
 0x7d0   : > { %13235 = vst [vmem:[#allocation25_spill] sm:$0xff] %v9022_v24  ;;  %v1516_v38 = vmax.f32 %v1514_v25, %v9022_v24  ;;  %v1544_v25 = vmax.f32 %v1542_v34, %v8988_v57 }
 0x7d1   : > { %v9024_v26 = vpop.f32.mrf.mxu1 }
 0x7d2   : > { %v1546_v55 = vmax.f32 %v1544_v25, %v8996_v63 }
 0x7d3   : > { %v9026_v27 = vpop.f32.mrf.mxu1 }
 0x7d4   : > { %13236 = vst [vmem:[#allocation26_spill] sm:$0xff] %v9026_v27  ;;  %v1517_v21 = vmax.f32 %v1515_v60, %v9026_v27  ;;  %v1541_v60 = vmax.f32 %v8968_v6, %v8976_v49  ;;  %v9111_v27 = vpop.trf.xlu0 }
 0x7d5   : > { %v9028_v28 = vpop.f32.mrf.mxu1  ;;  %13248 = vst [vmem:[#allocation38_spill] sm:$0xff] %v9111_v27 }
 0x7d7   : > { %v9030_v33 = vpop.f32.mrf.mxu1 }
 0x7d8   : > { %13237 = vst [vmem:[#allocation27_spill] sm:$0xff] %v9030_v33  ;;  %v1518_v19 = vmax.f32 %v1516_v38, %v9030_v33 }
 0x7d9   : > { %v9032_v35 = vpop.f32.mrf.mxu1 }
 0x7db   : > { %v9034_v36 = vpop.f32.mrf.mxu1 }
 0x7dc   : > { %13238 = vst [vmem:[#allocation28_spill] sm:$0xff] %v9034_v36  ;;  %v1519_v46 = vmax.f32 %v1517_v21, %v9034_v36  ;;  %v1543_v21 = vmax.f32 %v1541_v60, %v8984_v53  ;;  %v9116_v36 = vpop.trf.xlu1  ;;  %v9127_v60 = vpop.trf.xlu0 }
 0x7dd   : > { %v9036_v29 = vpop.f32.mrf.mxu1  ;;  %13249 = vst [vmem:[#allocation39_spill] sm:$0xff] %v9116_v36  ;;  %13250 = vst [vmem:[#allocation40_spill] sm:$0xff] %v9127_v60 }
 0x7de   : > { %v1545_v34 = vmax.f32 %v1543_v21, %v8992_v59 }
 0x7df   : > { %v9038_v40 = vpop.f32.mrf.mxu1 }
 0x7e0   : > { %13239 = vst [vmem:[#allocation29_spill] sm:$0xff] %v9038_v40  ;;  %v1520_v61 = vmax.f32 %v1518_v19, %v9038_v40  ;;  %v1548_v19 = vmax.f32 %v1546_v55, %v9004_v12  ;;  %v1547_v25 = vmax.f32 %v1545_v34, %v9000_v10  ;;  %v9132_v36 = vpop.trf.xlu1 }
 0x7e1   : > { %v9040_v41 = vpop.f32.mrf.mxu1  ;;  %13251 = vst [vmem:[#allocation41_spill] sm:$0xff] %v9132_v36 }
 0x7e3   : > { %v9042_v30 = vpop.f32.mrf.mxu1 }
 0x7e4   : > { %13240 = vst [vmem:[#allocation30_spill] sm:$0xff] %v9042_v30  ;;  %v1521_v58 = vmax.f32 %v1519_v46, %v9042_v30  ;;  %v9148_v12 = vpop.trf.xlu1 }
 0x7e5   : > { %v9044_v42 = vpop.f32.mrf.mxu1  ;;  %13253 = vst [vmem:[#allocation43_spill] sm:$0xff] %v9148_v12  ;;  %v7874_v12 = vld [vmem:[%s13037_s6 + $0x18] sm:$0xff]  }
 0x7e6   : > { %13241 = vst [vmem:[#allocation31_spill] sm:$0xff] %v9044_v42  ;;  %7498 = vmatmul.mubr.msk.bf16.gmra.mxu0 %vm368_vm0, %v7874_v12 }
 0x7e7   : > { %v9046_v43 = vpop.f32.mrf.mxu1 }
 0x7e8   : > { %13242 = vst [vmem:[#allocation32_spill] sm:$0xff] %v9046_v43  ;;  %v1522_v33 = vmax.f32 %v1520_v61, %v9046_v43 }
 0x7e9   : > { %v9048_v0 = vpop.f32.mrf.mxu1 }
 0x7eb   : > { %v9050_v31 = vpop.f32.mrf.mxu1 }
 0x7ec   : > { %13243 = vst [vmem:[#allocation33_spill] sm:$0xff] %v9050_v31  ;;  %v1523_v38 = vmax.f32 %v1521_v58, %v9050_v31  ;;  %v1550_v58 = vmax.f32 %v1548_v19, %v9012_v16  ;;  %v972_v31 = vpop.f32.mrf.mxu0  ;;  %v9143_v19 = vpop.trf.xlu0 }
 0x7ed   : > { %v9052_v1 = vpop.f32.mrf.mxu1  ;;  %13252 = vst [vmem:[#allocation42_spill] sm:$0xff] %v9143_v19  ;;  %v9164_v19 = vpop.trf.xlu1 }
 0x7ee   : > { %v974_v60 = vpop.f32.mrf.mxu0  ;;  %13255 = vst [vmem:[#allocation45_spill] sm:$0xff] %v9164_v19 }
 0x7ef   : > { %v9054_v44 = vpop.f32.mrf.mxu1 }
 0x7f0   : > { %v1524_v27 = vmax.f32 %v1522_v33, %v9054_v44  ;;  %v1552_v33 = vmax.f32 %v1550_v58, %v9020_v20 }
 0x7f1   : > { %v9056_v2 = vpop.f32.mrf.mxu1 }
 0x7f3   : > { %v9058_v45 = vpop.f32.mrf.mxu1 }
 0x7f4   : > { %v1525_v46 = vmax.f32 %v1523_v38, %v9058_v45  ;;  %v1549_v38 = vmax.f32 %v1547_v25, %v9008_v14  ;;  %v976_v25 = vpop.f32.mrf.mxu0 }
 0x7f5   : > { %v9060_v4 = vpop.f32.mrf.mxu1 }
 0x7f6   : > { %13244 = vst [vmem:[#allocation34_spill] sm:$0xff] %v9060_v4  ;;  %v1551_v36 = vmax.f32 %v1549_v38, %v9016_v18 }
 0x7f7   : > { %v9062_v32 = vpop.f32.mrf.mxu1 }
 0x7f8   : > { %v1526_v21 = vmax.f32 %v1524_v27, %v9062_v32  ;;  %v1554_v27 = vmax.f32 %v1552_v33, %v9028_v28  ;;  %v9157_v33 = vpop.trf.xlu0 }
 0x7f9   : > { %v9068_v22 = vpop.f32.mrf.mxu1  ;;  %13254 = vst [vmem:[#allocation44_spill] sm:$0xff] %v9157_v33  ;;  %v9173_v33 = vpop.trf.xlu1 }
 0x7fa   : > { %v1556_v14 = vmax.f32 %v1554_v27, %v9036_v29  ;;  %13257 = vst [vmem:[#allocation47_spill] sm:$0xff] %v9173_v33 }
 0x7fb   : > { %v9072_v39 = vpop.f32.mrf.mxu1 }
 0x7fc   : > { %v1527_v61 = vmax.f32 %v1525_v46, %v9072_v39  ;;  %v7693_v46 = vpack.c.bf16 %v974_v60, %v972_v31  ;;  %v978_v60 = vpop.f32.mrf.mxu0 }
 0x7fd   : > { %v9076_v47 = vpop.f32.mrf.mxu1 }
 0x7fe   : > { %1043 = vst [vmem:[#allocation4 + $0x8] sm:$0xff] %v7693_v46  ;;  %v1558_v46 = vmax.f32 %v1556_v14, %v9044_v42 }
 0x7ff   : > { %v9080_v3 = vpop.f32.mrf.mxu1 }
 0x800   : > { %v1528_v34 = vmax.f32 %v1526_v21, %v9080_v3  ;;  %v1553_v21 = vmax.f32 %v1551_v36, %v9024_v26  ;;  %v1560_v27 = vmax.f32 %v1558_v46, %v9052_v1 }
 0x801   : > { %v9084_v56 = vpop.f32.mrf.mxu1 }
 0x803   : > { %v9088_v37 = vpop.f32.mrf.mxu1 }
 0x804   : > { %v1529_v43 = vmax.f32 %v1527_v61, %v9088_v37 }
 0x805   : > { %v9092_v11 = vpop.f32.mrf.mxu1 }
 0x806   : > { %13245 = vst [vmem:[#allocation35_spill] sm:$0xff] %v9092_v11 }
 0x807   : > { %v9102_v23 = vpop.f32.mrf.mxu1 }
 0x808   : > { %v1530_v58 = vmax.f32 %v1528_v34, %v9102_v23  ;;  %v1555_v34 = vmax.f32 %v1553_v21, %v9032_v35  ;;  %v6464_v21 = vld [vmem:[#allocation4 + $0x10] sm:$0xcc] }
 0x809   : > { %v9109_v62 = vpop.f32.mrf.mxu1  ;;  %v7658_v42 = vcombine.low %v6464_v21, %v6464_v21  ;;  %v7659_v19 = vcombine.high %v6464_v21, %v6464_v21  ;;  %v9185_v21 = vpop.trf.xlu1 }
 0x80a   : > { %13259 = vst [vmem:[#allocation49_spill] sm:$0xff] %v9185_v21 }
 0x80b   : > { %v9119_v24 = vpop.f32.mrf.mxu1  ;;  %v6472_v46 = vrot.slane %v7659_v19, 2 }
 0x80c   : > { %v1531_v16 = vmax.f32 %v1529_v43, %v9119_v24  ;;  %v7694_v43 = vpack.c.bf16 %v978_v60, %v976_v25  ;;  %v9171_v60 = vpop.trf.xlu0 }
 0x80d   : > { %v9125_v30 = vpop.f32.mrf.mxu1  ;;  %13256 = vst [vmem:[#allocation46_spill] sm:$0xff] %v9171_v60  ;;  %6491 = vxpose.xlu1.c.b16.start.end [1/1] (short) %v6472_v46, 128 }
 0x80e   : > { %1044 = vst [vmem:[#allocation4 + $0x20] sm:$0xff] %v7694_v43 }
 0x80f   : > { %v9135_v55 = vpop.f32.mrf.mxu1 }
 0x810   : > { %v1532_v38 = vmax.f32 %v1530_v58, %v9135_v55  ;;  %v1562_v58 = vmax.f32 %v1560_v27, %v9060_v4  ;;  %v9183_v4 = vpop.trf.xlu0 }
 0x811   : > { %v9141_v40 = vpop.f32.mrf.mxu1  ;;  %13258 = vst [vmem:[#allocation48_spill] sm:$0xff] %v9183_v4 }
 0x812   : > { %v1564_v12 = vmax.f32 %v1562_v58, %v9076_v47 }
 0x813   : > { %v9151_v61 = vpop.f32.mrf.mxu1 }
 0x814   : > { %v1533_v31 = vmax.f32 %v1531_v16, %v9151_v61  ;;  %v1557_v16 = vmax.f32 %v1555_v34, %v9040_v41  ;;  %v1566_v43 = vmax.f32 %v1564_v12, %v9092_v11  ;;  %v6471_v34 = vrot.slane %v7658_v42, 2 }
 0x815   : > { %v9179_v27 = vpop.f32.mrf.mxu1 }
 0x816   : > { %v1534_v36 = vmax.f32 %v1532_v38, %v1533_v31  ;;  %v1559_v25 = vmax.f32 %v1557_v16, %v9048_v0  ;;  %v1568_v33 = vmax.f32 %v1566_v43, %v9125_v30  ;;  %6475 = vxpose.xlu0.c.b16.start.end [1/1] (short) %v6471_v34, 128 }
 0x818   : > { %v1535_v14 = vrot.slane %v1534_v36, 4  ;;  %v1561_v31 = vmax.f32 %v1559_v25, %v9056_v2  ;;  %v9187_v25 = vld [vmem:[#allocation4 + $0x8] sm:$0x33] }
 0x819   : > { %v7531_v42 = vcombine.high %v9187_v25, %v9187_v25 }
 0x81a   : > { %v1563_v38 = vmax.f32 %v1561_v31, %v9068_v22  ;;  %v1536_v16 = vmax.f32 %v1534_v36, %v1535_v14  ;;  %v1570_v31 = vmax.f32 %v1568_v33, %v9179_v27 }
 0x81b   : > { %1947 = vmatprep.mubr.bf16.mxu0 %v7531_v42 }
 0x81c   : > { %v1565_v60 = vmax.f32 %v1563_v38, %v9084_v56  ;;  %v1537_v19 = vrot.slane %v1536_v16, 2 }
 0x81e   : > { %v1567_v58 = vmax.f32 %v1565_v60, %v9109_v62  ;;  %v1538_v12 = vmax.f32 %v1536_v16, %v1537_v19 }
 0x820   : > { %v1569_v36 = vmax.f32 %v1567_v58, %v9141_v40  ;;  %v1539_v43 = vrot.slane %v1538_v12, 1 }
 0x822   : > { %v1571_v14 = vmax.f32 %v1569_v36, %v1570_v31  ;;  %v9194_v4 = vmax.f32 %v1538_v12, %v1539_v43 }
 0x824   : > { %v1572_v38 = vrot.slane %v1571_v14, 4  ;;  %v1578_v33 = vsub.f32 %v8966_v5, %v9194_v4  ;;  %v1580_v60 = vsub.f32 %v8970_v8, %v9194_v4  ;;  %v1622_v34 = vsub.f32 %v9054_v44, %v9194_v4 }
 0x825   : > { %v1624_v46 = vsub.f32 %v9058_v45, %v9194_v4  ;;  %v1626_v16 = vsub.f32 %v9062_v32, %v9194_v4  ;;  %v1628_v58 = vsub.f32 %v9072_v39, %v9194_v4  ;;  %v1582_v31 = vsub.f32 %v8974_v48, %v9194_v4 }
 0x826   : > { %v1573_v21 = vmax.f32 %v1571_v14, %v1572_v38  ;;  %v1584_v5 = vsub.f32 %v8978_v50, %v9194_v4  ;;  %v1630_v8 = vsub.f32 %v9080_v3, %v9194_v4  ;;  %v1632_v44 = vsub.f32 %v9088_v37, %v9194_v4  ;;  %v13260_v3 = vld [vmem:[#allocation18_spill] sm:$0xff] }
 0x827   : > { %v1586_v45 = vsub.f32 %v8982_v52, %v9194_v4  ;;  %v1588_v32 = vsub.f32 %v8986_v54, %v9194_v4  ;;  %v9220_v39 = vpack.c.bf16 %v1624_v46, %v1622_v34  ;;  %v9222_v19 = vpack.c.bf16 %v1628_v58, %v1626_v16  ;;  %v1963_v16 = vld [vmem:[#allocation4 + $0x8] sm:$0xcc] }
 0x828   : > { %v1574_v11 = vrot.slane %v1573_v21, 2  ;;  %v1642_v48 = vpack.c.bf16 %v1580_v60, %v1578_v33  ;;  %v1644_v36 = vpack.c.bf16 %v1584_v5, %v1582_v31  ;;  %v9224_v50 = vpack.c.bf16 %v1632_v44, %v1630_v8  ;;  %v13262_v33 = vld [vmem:[#allocation20_spill] sm:$0xff] }
 0x829   : > { %v1590_v12 = vsub.f32 %v13260_v3, %v9194_v4  ;;  %v1594_v54 = vsub.f32 %v8998_v7, %v9194_v4  ;;  %v1596_v60 = vsub.f32 %v13262_v33, %v9194_v4  ;;  %v1598_v58 = vsub.f32 %v9006_v13, %v9194_v4 }
 0x82a   : > { %v1575_v42 = vmax.f32 %v1573_v21, %v1574_v11  ;;  %v13261_v11 = vld [vmem:[#allocation19_spill] sm:$0xff]  ;;  %v1646_v21 = vpack.c.bf16 %v1588_v32, %v1586_v45  ;;  %v1675_v52 = vmul.bf16 1069105081, %v1642_v48  ;;  %v1681_v38 = vmul.bf16 1069105081, %v1644_v36  ;;  %v13263_v48 = vld [vmem:[#allocation24_spill] sm:$0xff] }
 0x82b   : > { %v1592_v37 = vsub.f32 %v13261_v11, %v9194_v4  ;;  %v1600_v31 = vsub.f32 %v9010_v15, %v9194_v4  ;;  %v7552_v44 = vcombine.high %v1963_v16, %v1963_v16  ;;  %v1650_v45 = vpack.c.bf16 %v1596_v60, %v1594_v54  ;;  %v13266_v54 = vld [vmem:[#allocation27_spill] sm:$0xff] }
 0x82c   : > { %v1576_v14 = vrot.slane %v1575_v42, 1  ;;  %v1687_v46 = vmul.bf16 1069105081, %v1646_v21  ;;  %7903 = vpow.bf16 %v1675_v52  ;;  %v1602_v13 = vsub.f32 %v9014_v17, %v9194_v4  ;;  %v13265_v17 = vld [vmem:[#allocation26_spill] sm:$0xff] }
 0x82d   : > { %v1648_v34 = vpack.c.bf16 %v1592_v37, %v1590_v12  ;;  %7905 = vpow.bf16 %v1681_v38  ;;  %v1652_v15 = vpack.c.bf16 %v1600_v31, %v1598_v58  ;;  %v1699_v3 = vmul.bf16 1069105081, %v1650_v45  ;;  %v13264_v12 = vld [vmem:[#allocation25_spill] sm:$0xff] }
 0x82e   : > { %v9232_v43 = vmax.f32 %v1575_v42, %v1576_v14  ;;  %7907 = vpow.bf16 %v1687_v46  ;;  %v1606_v11 = vsub.f32 %v13264_v12, %v9194_v4  ;;  %v1608_v37 = vsub.f32 %v13265_v17, %v9194_v4  ;;  %v13268_v31 = vld [vmem:[#allocation21_spill] sm:$0xff] }
 0x82f   : > { %v1693_v32 = vmul.bf16 1069105081, %v1648_v34  ;;  %v1705_v38 = vmul.bf16 1069105081, %v1652_v15  ;;  %v1610_v33 = vsub.f32 %v13266_v54, %v9194_v4  ;;  %v13270_v15 = vld [vmem:[#allocation23_spill] sm:$0xff] }
 0x830   : > { %v1579_v5 = vsub.f32 %v8968_v6, %v9232_v43  ;;  %v1581_v7 = vsub.f32 %v8972_v9, %v9232_v43  ;;  %v1583_v8 = vsub.f32 %v8976_v49, %v9232_v43  ;;  %v1585_v42 = vsub.f32 %v8980_v51, %v9232_v43 }
 0x831   : > { %v1604_v6 = vsub.f32 %v13263_v48, %v9194_v4  ;;  %v1587_v9 = vsub.f32 %v8984_v53, %v9232_v43  ;;  %v1589_v49 = vsub.f32 %v8988_v57, %v9232_v43  ;;  %7909 = vpow.bf16 %v1693_v32 }
 0x832   : > { %v1643_v36 = vpack.c.bf16 %v1581_v7, %v1579_v5  ;;  %v1645_v14 = vpack.c.bf16 %v1585_v42, %v1583_v8  ;;  %v2666_v51 = vrot.slane %v7552_v44, 2  ;;  %v1591_v21 = vsub.f32 %v8992_v59, %v9232_v43 }
 0x833   : > { %v1593_v53 = vsub.f32 %v8996_v63, %v9232_v43  ;;  %v1607_v57 = vsub.f32 %v9024_v26, %v9232_v43  ;;  %v1609_v52 = vsub.f32 %v9028_v28, %v9232_v43  ;;  %v1603_v60 = vsub.f32 %v9016_v18, %v9232_v43  ;;  %v13267_v26 = vld [vmem:[#allocation28_spill] sm:$0xff]  ;;  %v13269_v18 = vld [vmem:[#allocation22_spill] sm:$0xff] }
 0x834   : > { %2701 = vmatprep.mubr.bf16.mxu1 %v2666_v51  ;;  %v1647_v34 = vpack.c.bf16 %v1589_v49, %v1587_v9  ;;  %v1678_v46 = vmul.bf16 1069105081, %v1643_v36  ;;  %v1605_v59 = vsub.f32 %v9020_v20, %v9232_v43  ;;  %v1654_v63 = vpack.c.bf16 %v1604_v6, %v1602_v13  ;;  %v13271_v51 = vld [vmem:[#allocation29_spill] sm:$0xff] }
 0x835   : > { %v1684_v16 = vmul.bf16 1069105081, %v1645_v14  ;;  %7911 = vpow.bf16 %v1699_v3  ;;  %v1612_v58 = vsub.f32 %v13267_v26, %v9194_v4  ;;  %v1595_v28 = vsub.f32 %v9000_v10, %v9232_v43 }
 0x836   : > { %v1597_v5 = vsub.f32 %v13268_v31, %v9232_v43  ;;  %v1656_v7 = vpack.c.bf16 %v1608_v37, %v1606_v11  ;;  %v1599_v44 = vsub.f32 %v13269_v18, %v9232_v43  ;;  %v1649_v42 = vpack.c.bf16 %v1593_v53, %v1591_v21 }
 0x837   : > { %v1657_v20 = vpack.c.bf16 %v1609_v52, %v1607_v57  ;;  %7913 = vpow.bf16 %v1705_v38  ;;  %v1690_v32 = vmul.bf16 1069105081, %v1647_v34  ;;  %v1601_v48 = vsub.f32 %v13270_v15, %v9232_v43  ;;  %v13272_v52 = vld [vmem:[#allocation30_spill] sm:$0xff] }
 0x838   : > { %7915 = vpow.bf16 %v1678_v46  ;;  %v1655_v6 = vpack.c.bf16 %v1605_v59, %v1603_v60  ;;  %v1711_v9 = vmul.bf16 1069105081, %v1654_v63  ;;  %v1717_v49 = vmul.bf16 1069105081, %v1656_v7 }
 0x839   : > { %7917 = vpow.bf16 %v1684_v16  ;;  %v1614_v12 = vsub.f32 %v13271_v51, %v9194_v4  ;;  %v1658_v11 = vpack.c.bf16 %v1612_v58, %v1610_v33  ;;  %v1651_v17 = vpack.c.bf16 %v1597_v5, %v1595_v28  ;;  %v13273_v16 = vld [vmem:[#allocation32_spill] sm:$0xff] }
 0x83a   : > { %v9280_v8 = vpop.eup %7903  ;;  %v1720_v37 = vmul.bf16 1069105081, %v1657_v20  ;;  %v1696_v21 = vmul.bf16 1069105081, %v1649_v42  ;;  %7919 = vpow.bf16 %v1690_v32  ;;  %v1616_v38 = vsub.f32 %v13272_v52, %v9194_v4 }
 0x83b   : > { %v9284_v45 = vpop.eup %7905  ;;  %v1770_v13 = vunpack.c.l.bf16 %v9280_v8  ;;  %v1772_v10 = vunpack.c.h.bf16 %v9280_v8  ;;  %v1653_v54 = vpack.c.bf16 %v1601_v48, %v1599_v44  ;;  %7921 = vpow.bf16 %v1711_v9 }
 0x83c   : > { %v1774_v36 = vunpack.c.l.bf16 %v9284_v45  ;;  %v9291_v3 = vpop.eup %7907  ;;  %v1776_v53 = vunpack.c.h.bf16 %v9284_v45  ;;  %v1714_v60 = vmul.bf16 1069105081, %v1655_v6  ;;  %v1638_v34 = vsub.f32 %v9135_v55, %v9194_v4  ;;  %v13274_v55 = vld [vmem:[#allocation33_spill] sm:$0xff] }
 0x83d   : > { %v1834_v14 = vadd.f32 %v1772_v10, %v1770_v13  ;;  %7923 = vpow.bf16 %v1717_v49  ;;  %v1778_v46 = vunpack.c.l.bf16 %v9291_v3  ;;  %v1640_v63 = vsub.f32 %v9151_v61, %v9194_v4 }
 0x83e   : > { %v1618_v26 = vsub.f32 %v13273_v16, %v9194_v4  ;;  %v1723_v58 = vmul.bf16 1069105081, %v1658_v11  ;;  %7925 = vpow.bf16 %v1720_v37  ;;  %v1702_v28 = vmul.bf16 1069105081, %v1651_v17 }
 0x83f   : > { %v1835_v57 = vadd.f32 %v1834_v14, %v1774_v36  ;;  %v9301_v59 = vpop.eup %7909  ;;  %7927 = vpow.bf16 %v1696_v21  ;;  %v1780_v31 = vunpack.c.h.bf16 %v9291_v3  ;;  %v1620_v7 = vsub.f32 %v13274_v55, %v9194_v4 }
 0x840   : > { %v1660_v18 = vpack.c.bf16 %v1616_v38, %v1614_v12  ;;  %v1708_v44 = vmul.bf16 1069105081, %v1653_v54  ;;  %7929 = vpow.bf16 %v1714_v60  ;;  %v1639_v42 = vsub.f32 %v9141_v40, %v9232_v43 }
 0x841   : > { %v1836_v33 = vadd.f32 %v1835_v57, %v1776_v53  ;;  %v1641_v61 = vsub.f32 %v9179_v27, %v9232_v43  ;;  %v1782_v20 = vunpack.c.l.bf16 %v9301_v59  ;;  %7931 = vpow.bf16 %v1723_v58 }
 0x842   : > { %7933 = vpow.bf16 %v1702_v28  ;;  %v1784_v10 = vunpack.c.h.bf16 %v9301_v59  ;;  %v1662_v6 = vpack.c.bf16 %v1620_v7, %v1618_v26  ;;  %v1729_v9 = vmul.bf16 1069105081, %v1660_v18 }
 0x843   : > { %v1837_v5 = vadd.f32 %v1836_v33, %v1778_v46  ;;  %v9315_v13 = vpop.eup %7911  ;;  %7935 = vpow.bf16 %v1708_v44  ;;  %v9322_v40 = vpack.c.bf16 %v1640_v63, %v1638_v34  ;;  %v9324_v27 = vpack.c.bf16 %v1641_v61, %v1639_v42  ;;  %v13276_v61 = vld [vmem:[#allocation34_spill] sm:$0xff] }
 0x844   : > { %v1786_v36 = vunpack.c.l.bf16 %v9315_v13  ;;  %v1634_v12 = vsub.f32 %v9102_v23, %v9194_v4  ;;  %v1636_v11 = vsub.f32 %v9119_v24, %v9194_v4  ;;  %v1611_v21 = vsub.f32 %v9032_v35, %v9232_v43 }
 0x845   : > { %v1838_v32 = vadd.f32 %v1837_v5, %v1780_v31  ;;  %v9318_v48 = vpop.eup %7913  ;;  %v1613_v53 = vsub.f32 %v9036_v29, %v9232_v43  ;;  %v1788_v57 = vunpack.c.h.bf16 %v9315_v13  ;;  %v1735_v38 = vmul.bf16 1069105081, %v1662_v6  ;;  %v13275_v29 = vld [vmem:[#allocation31_spill] sm:$0xff] }
 0x846   : > { %v9320_v49 = vpop.eup %7915  ;;  %7937 = vpow.bf16 %v1729_v9  ;;  %v1768_v24 = vmul.bf16 1069105081, %v9324_v27  ;;  %v1615_v4 = vsub.f32 %v9040_v41, %v9232_v43  ;;  %v1790_v35 = vunpack.c.l.bf16 %v9318_v48 }
 0x847   : > { %v1839_v15 = vadd.f32 %v1838_v32, %v1782_v20  ;;  %v9327_v51 = vpop.eup %7917  ;;  %v1771_v17 = vunpack.c.l.bf16 %v9320_v49  ;;  %v1773_v37 = vunpack.c.h.bf16 %v9320_v49  ;;  %v1617_v33 = vsub.f32 %v13275_v29, %v9232_v43 }
 0x848   : > { %v1775_v23 = vunpack.c.l.bf16 %v9327_v51  ;;  %v9341_v60 = vpop.eup %7919  ;;  %v1619_v63 = vsub.f32 %v9048_v0, %v9232_v43  ;;  %v1777_v16 = vunpack.c.h.bf16 %v9327_v51  ;;  %v1621_v28 = vsub.f32 %v9052_v1, %v9232_v43 }
 0x849   : > { %v1840_v14 = vadd.f32 %v1839_v15, %v1784_v10  ;;  %v1871_v54 = vadd.f32 %v1773_v37, %v1771_v17  ;;  %v7922_v46 = vpop.eup %7921  ;;  %v1659_v31 = vpack.c.bf16 %v1613_v53, %v1611_v21  ;;  %v1792_v41 = vunpack.c.h.bf16 %v9318_v48 }
 0x84a   : > { %v1741_v7 = vmul.bf16 1069105081, %v9220_v39  ;;  %7939 = vpow.bf16 %v1735_v38  ;;  %v1779_v18 = vunpack.c.l.bf16 %v9341_v60  ;;  %v1623_v42 = vsub.f32 %v9056_v2, %v9232_v43 }
 0x84b   : > { %v1841_v52 = vadd.f32 %v1840_v14, %v1786_v36  ;;  %v1872_v26 = vadd.f32 %v1871_v54, %v1775_v23  ;;  %v7924_v58 = vpop.eup %7923  ;;  %v1625_v1 = vsub.f32 %v13276_v61, %v9232_v43  ;;  %v1794_v20 = vunpack.c.l.bf16 %v7922_v46 }
 0x84c   : > { %v9355_v55 = vpop.eup %7925  ;;  %v1627_v39 = vsub.f32 %v9068_v22, %v9232_v43  ;;  %v1629_v15 = vsub.f32 %v9076_v47, %v9232_v43  ;;  %v1781_v6 = vunpack.c.h.bf16 %v9341_v60  ;;  %v1661_v2 = vpack.c.bf16 %v1617_v33, %v1615_v4 }
 0x84d   : > { %v1842_v34 = vadd.f32 %v1841_v52, %v1788_v57  ;;  %v1873_v44 = vadd.f32 %v1872_v26, %v1777_v16  ;;  %v9359_v0 = vpop.eup %7927  ;;  %1915 = vmatprep.subr.bf16.mxu0 %v9355_v55  ;;  %v1726_v36 = vmul.bf16 1069105081, %v1659_v31  ;;  %v1796_v14 = vunpack.c.h.bf16 %v7922_v46 }
 0x84e   : > { %v9366_v10 = vpop.eup %7929  ;;  %1916 = vmatpush1.bf16.msra.mxu0 %v7924_v58  ;;  %v1747_v21 = vmul.bf16 1069105081, %v9222_v19  ;;  %7941 = vpow.bf16 %v1741_v7  ;;  %v1783_v22 = vunpack.c.l.bf16 %v9359_v0  ;;  %v1635_v47 = vsub.f32 %v9109_v62, %v9232_v43 }
 0x84f   : > { %v1843_v5 = vadd.f32 %v1842_v34, %v1790_v35  ;;  %v1874_v9 = vadd.f32 %v1873_v44, %v1779_v18  ;;  %1917 = vmatprep.subr.bf16.mxu0 %v9366_v10  ;;  %v9374_v37 = vpop.eup %7931  ;;  %v1637_v52 = vsub.f32 %v9125_v30, %v9232_v43  ;;  %v1798_v38 = vunpack.c.l.bf16 %v7924_v58 }
 0x850   : > { %v7934_v57 = vpop.eup %7933  ;;  %v1670_v4 = vpack.c.bf16 %v1636_v11, %v1634_v12  ;;  %v1663_v35 = vpack.c.bf16 %v1621_v28, %v1619_v63  ;;  %v1785_v34 = vunpack.c.h.bf16 %v9359_v0  ;;  %v1732_v19 = vmul.bf16 1069105081, %v1661_v2  ;;  %v13277_v12 = vld [vmem:[#allocation35_spill] sm:$0xff] }
 0x851   : > { %v1844_v32 = vadd.f32 %v1843_v5, %v1792_v41  ;;  %v1875_v53 = vadd.f32 %v1874_v9, %v1781_v6  ;;  %v7936_v54 = vpop.eup %7935  ;;  %7943 = vpow.bf16 %v1726_v36  ;;  %v1800_v33 = vunpack.c.h.bf16 %v7924_v58 }
 0x852   : > { %1918 = vmatpush1.bf16.msra.mxu0 %v7922_v46  ;;  %v1753_v26 = vmul.bf16 1069105081, %v9224_v50  ;;  %7945 = vpow.bf16 %v1747_v21  ;;  %v1787_v62 = vunpack.c.l.bf16 %v7934_v57  ;;  %v1631_v30 = vsub.f32 %v9084_v56, %v9232_v43 }
 0x853   : > { %v1845_v17 = vadd.f32 %v1844_v32, %v1794_v20  ;;  %v1876_v29 = vadd.f32 %v1875_v53, %v1783_v22  ;;  %1919 = vmatprep.subr.bf16.mxu0 %v7936_v54  ;;  %v1633_v11 = vsub.f32 %v13277_v12, %v9232_v43  ;;  %v1802_v63 = vunpack.c.l.bf16 %v9374_v37 }
 0x854   : > { %v9389_v46 = vpop.eup %7937  ;;  %v1665_v41 = vpack.c.bf16 %v1625_v1, %v1623_v42  ;;  %v1671_v58 = vpack.c.bf16 %v1637_v52, %v1635_v47  ;;  %v1789_v5 = vunpack.c.h.bf16 %v7934_v57  ;;  %v1738_v50 = vmul.bf16 1069105081, %v1663_v35 }
 0x855   : > { %v1846_v23 = vadd.f32 %v1845_v17, %v1796_v14  ;;  %v1877_v31 = vadd.f32 %v1876_v29, %v1785_v34  ;;  %7947 = vpow.bf16 %v1732_v19  ;;  %v1804_v18 = vunpack.c.h.bf16 %v9374_v37 }
 0x856   : > { %1920 = vmatpush1.bf16.msra.mxu0 %v9318_v48  ;;  %v1759_v56 = vmul.bf16 1069105081, %v1670_v4  ;;  %7949 = vpow.bf16 %v1753_v26  ;;  %v1791_v43 = vunpack.c.l.bf16 %v7936_v54  ;;  %v1765_v20 = vmul.bf16 1069105081, %v9322_v40 }
 0x857   : > { %v1847_v16 = vadd.f32 %v1846_v23, %v1798_v38  ;;  %v1878_v7 = vadd.f32 %v1877_v31, %v1787_v62  ;;  %1921 = vmatprep.subr.bf16.mxu0 %v7934_v57  ;;  %7951 = vpow.bf16 %v1768_v24  ;;  %v1806_v42 = vunpack.c.l.bf16 %v9389_v46 }
 0x858   : > { %v9397_v32 = vpop.eup %7939  ;;  %v1667_v48 = vpack.c.bf16 %v1629_v15, %v1627_v39  ;;  %v1669_v6 = vpack.c.bf16 %v1633_v11, %v1631_v30  ;;  %v1793_v9 = vunpack.c.h.bf16 %v7936_v54  ;;  %v1744_v36 = vmul.bf16 1069105081, %v1665_v41 }
 0x859   : > { %v1848_v28 = vadd.f32 %v1847_v16, %v1800_v33  ;;  %v1879_v61 = vadd.f32 %v1878_v7, %v1789_v5  ;;  %7953 = vpow.bf16 %v1738_v50  ;;  %v1808_v14 = vunpack.c.h.bf16 %v9389_v46 }
 0x85a   : > { %1922 = vmatpush1.bf16.msra.mxu0 %v9315_v13  ;;  %7955 = vpow.bf16 %v1759_v56  ;;  %v1762_v40 = vmul.bf16 1069105081, %v1671_v58  ;;  %v1795_v27 = vunpack.c.l.bf16 %v9366_v10  ;;  %v1810_v21 = vunpack.c.l.bf16 %v9397_v32 }
 0x85b   : > { %v1849_v44 = vadd.f32 %v1848_v28, %v1802_v63  ;;  %v1880_v2 = vadd.f32 %v1879_v61, %v1791_v43  ;;  %1923 = vmatprep.subr.bf16.mxu0 %v9359_v0  ;;  %7957 = vpow.bf16 %v1765_v20  ;;  %v1797_v13 = vunpack.c.h.bf16 %v9366_v10 }
 0x85c   : > { %v9404_v15 = vpop.eup %7941  ;;  %v1750_v53 = vmul.bf16 1069105081, %v1667_v48  ;;  %7959 = vpow.bf16 %v1744_v36  ;;  %v1812_v0 = vunpack.c.h.bf16 %v9397_v32  ;;  %v1756_v47 = vmul.bf16 1069105081, %v1669_v6 }
 0x85d   : > { %v1850_v1 = vadd.f32 %v1849_v44, %v1804_v18  ;;  %v1881_v24 = vadd.f32 %v1880_v2, %v1793_v9  ;;  %7961 = vpow.bf16 %v1762_v40  ;;  %v1799_v52 = vunpack.c.l.bf16 %v9355_v55 }
 0x85e   : > { %1924 = vmatpush1.bf16.msra.mxu0 %v9301_v59  ;;  %v1814_v54 = vunpack.c.l.bf16 %v9404_v15  ;;  %v1801_v59 = vunpack.c.h.bf16 %v9355_v55  ;;  %7963 = vpow.bf16 %v1750_v53 }
 0x85f   : > { %v1851_v17 = vadd.f32 %v1850_v1, %v1806_v42  ;;  %v1882_v22 = vadd.f32 %v1881_v24, %v1795_v27  ;;  %1925 = vmatprep.subr.bf16.mxu0 %v9341_v60  ;;  %v9411_v23 = vpop.eup %7943  ;;  %v1816_v60 = vunpack.c.h.bf16 %v9404_v15  ;;  %7965 = vpow.bf16 %v1756_v47 }
 0x860   : > { %v9414_v4 = vpop.eup %7945  ;;  %v1803_v29 = vunpack.c.l.bf16 %v9411_v23  ;;  %v1805_v55 = vunpack.c.h.bf16 %v9411_v23 }
 0x861   : > { %v1852_v39 = vadd.f32 %v1851_v17, %v1808_v14  ;;  %v1883_v38 = vadd.f32 %v1882_v22, %v1797_v13  ;;  %v1818_v16 = vunpack.c.l.bf16 %v9414_v4 }
 0x862   : > { %1926 = vmatpush1.bf16.msra.mxu0 %v9291_v3 }
 0x863   : > { %v1853_v57 = vadd.f32 %v1852_v39, %v1810_v21  ;;  %v1884_v35 = vadd.f32 %v1883_v38, %v1799_v52  ;;  %1927 = vmatprep.subr.bf16.mxu0 %v9327_v51  ;;  %v9421_v33 = vpop.eup %7947  ;;  %v1820_v51 = vunpack.c.h.bf16 %v9414_v4 }
 0x864   : > { %v7950_v62 = vpop.eup %7949  ;;  %v1807_v12 = vunpack.c.l.bf16 %v9421_v33  ;;  %v1809_v5 = vunpack.c.h.bf16 %v9421_v33 }
 0x865   : > { %v1854_v10 = vadd.f32 %v1853_v57, %v1812_v0  ;;  %v1885_v19 = vadd.f32 %v1884_v35, %v1801_v59  ;;  %v9426_v3 = vpop.eup %7951  ;;  %v1822_v28 = vunpack.c.l.bf16 %v7950_v62 }
 0x866   : > { %1928 = vmatpush1.bf16.msra.mxu0 %v9284_v45  ;;  %v1824_v45 = vunpack.c.h.bf16 %v7950_v62 }
 0x867   : > { %v1855_v34 = vadd.f32 %v1854_v10, %v1814_v54  ;;  %v1886_v31 = vadd.f32 %v1885_v19, %v1803_v29  ;;  %1929 = vmatprep.subr.bf16.mxu0 %v9320_v49  ;;  %v7954_v63 = vpop.eup %7953  ;;  %v1833_v29 = vunpack.c.h.bf16 %v9426_v3 }
 0x868   : > { %v7956_v58 = vpop.eup %7955  ;;  %v1811_v18 = vunpack.c.l.bf16 %v7954_v63  ;;  %v1813_v42 = vunpack.c.h.bf16 %v7954_v63 }
 0x869   : > { %v1856_v26 = vadd.f32 %v1855_v34, %v1816_v60  ;;  %v1887_v11 = vadd.f32 %v1886_v31, %v1805_v55  ;;  %v7958_v49 = vpop.eup %7957  ;;  %v1826_v43 = vunpack.c.l.bf16 %v7956_v58  ;;  %v1828_v48 = vunpack.c.h.bf16 %v7956_v58  ;;  %v13285_v31 = vld [vmem:[#allocation44_spill] sm:$0xff] }
 0x86a   : > { %1930 = vmatpush1.bf16.msra.mxu0 %v9280_v8  ;;  %v7960_v56 = vpop.eup %7959  ;;  %v1830_v36 = vunpack.c.l.bf16 %v7958_v49  ;;  %v1832_v24 = vunpack.c.h.bf16 %v7958_v49  ;;  %v1831_v60 = vunpack.c.l.bf16 %v9426_v3  ;;  %v7530_v55 = vcombine.low %v9187_v25, %v9187_v25  ;;  %v13284_v25 = vld [vmem:[#allocation42_spill] sm:$0xff] }
 0x86b   : > { %v1857_v30 = vadd.f32 %v1856_v26, %v1818_v16  ;;  %v1888_v7 = vadd.f32 %v1887_v11, %v1807_v12  ;;  %1931 = vmatprep.subr.bf16.mxu0 %v9426_v3  ;;  %v7962_v20 = vpop.eup %7961  ;;  %v1815_v9 = vunpack.c.l.bf16 %v7960_v56  ;;  %v1817_v40 = vunpack.c.h.bf16 %v7960_v56  ;;  %v13278_v16 = vld [vmem:[#allocation14_spill] sm:$0xff]  ;;  %v13279_v26 = vld [vmem:[#allocation13_spill] sm:$0xff] }
 0x86c   : > { %v7964_v8 = vpop.eup %7963  ;;  %v1827_v54 = vunpack.c.l.bf16 %v7962_v20  ;;  %v1829_v59 = vunpack.c.h.bf16 %v7962_v20  ;;  %v13286_v3 = vld [vmem:[#allocation46_spill] sm:$0xff] }
 0x86d   : > { %v1858_v41 = vadd.f32 %v1857_v30, %v1820_v51  ;;  %v1889_v44 = vadd.f32 %v1888_v7, %v1809_v5  ;;  %v7966_v17 = vpop.eup %7965  ;;  %v1819_v39 = vunpack.c.l.bf16 %v7964_v8  ;;  %v1821_v53 = vunpack.c.h.bf16 %v7964_v8  ;;  %v13288_v5 = vld [vmem:[#allocation37_spill] sm:$0xff]  ;;  %v13289_v7 = vld [vmem:[#allocation39_spill] sm:$0xff] }
 0x86e   : > { %1932 = vmatpush2.bf16.msra.mxu0 %v7958_v49  ;;  %v1823_v57 = vunpack.c.l.bf16 %v7966_v17  ;;  %v1825_v52 = vunpack.c.h.bf16 %v7966_v17  ;;  %v13292_v49 = vld [vmem:[#allocation45_spill] sm:$0xff] }
 0x86f   : > { %v1859_v50 = vadd.f32 %v1858_v41, %v1822_v28  ;;  %v1890_v1 = vadd.f32 %v1889_v44, %v1811_v18  ;;  %1933 = vmatprep.subr.bf16.mxu0 %v7962_v20  ;;  %v13293_v18 = vld [vmem:[#allocation47_spill] sm:$0xff]  ;;  %v13294_v44 = vld [vmem:[#allocation49_spill] sm:$0xff] }
 0x871   : > { %v1860_v61 = vadd.f32 %v1859_v50, %v1824_v45  ;;  %v1891_v2 = vadd.f32 %v1890_v1, %v1813_v42  ;;  %v13290_v45 = vld [vmem:[#allocation41_spill] sm:$0xff]  ;;  %v13291_v50 = vld [vmem:[#allocation43_spill] sm:$0xff] }
 0x872   : > { %1934 = vmatpush2.bf16.msra.mxu0 %v7956_v58  ;;  %v1988_v58 = vpop.trf.xlu0 }
 0x873   : > { %v1861_v6 = vadd.f32 %v1860_v61, %v1826_v43  ;;  %v1892_v27 = vadd.f32 %v1891_v2, %v1815_v9  ;;  %1935 = vmatprep.subr.bf16.mxu0 %v7966_v17  ;;  %v2004_v43 = vpop.trf.xlu1 }
 0x875   : > { %v1862_v14 = vadd.f32 %v1861_v6, %v1828_v48  ;;  %v1893_v13 = vadd.f32 %v1892_v27, %v1817_v40 }
 0x876   : > { %1936 = vmatpush2.bf16.msra.mxu0 %v7950_v62  ;;  %v2007_v62 = vrot.slane %v13279_v26, 2 }
 0x877   : > { %v1863_v21 = vadd.f32 %v1862_v14, %v1830_v36  ;;  %v1894_v0 = vadd.f32 %v1893_v13, %v1819_v39  ;;  %1937 = vmatprep.subr.bf16.mxu0 %v7964_v8 }
 0x879   : > { %v9434_v22 = vadd.f32 %v1863_v21, %v1832_v24  ;;  %v1895_v47 = vadd.f32 %v1894_v0, %v1821_v53 }
 0x87a   : > { %1938 = vmatpush2.bf16.msra.mxu0 %v9414_v4 }
 0x87b   : > { %v1896_v38 = vadd.f32 %v1895_v47, %v1823_v57  ;;  %1939 = vmatprep.subr.bf16.mxu0 %v7960_v56  ;;  %v2717_v56 = vld [vmem:[#allocation4 + $0x20] sm:$0x33]  ;;  %v1865_v20 = vrot.slane %v9434_v22, 4 }
 0x87c   : > { %v7573_v61 = vcombine.high %v2717_v56, %v2717_v56 }
 0x87d   : > { %v1897_v10 = vadd.f32 %v1896_v38, %v1825_v52  ;;  %v1866_v1 = vadd.f32 %v1865_v20, %v9434_v22 }
 0x87e   : > { %1940 = vmatpush2.bf16.msra.mxu0 %v9404_v15  ;;  %v2008_v15 = vrot.slane %v13278_v16, 2 }
 0x87f   : > { %v1898_v35 = vadd.f32 %v1897_v10, %v1827_v54  ;;  %1941 = vmatprep.subr.bf16.mxu0 %v7954_v63  ;;  %v13287_v63 = vld [vmem:[#allocation48_spill] sm:$0xff]  ;;  %v1867_v6 = vrot.slane %v1866_v1, 2 }
 0x881   : > { %v1899_v34 = vadd.f32 %v1898_v35, %v1829_v59  ;;  %v1868_v2 = vadd.f32 %v1867_v6, %v1866_v1 }
 0x882   : > { %1942 = vmatpush2.bf16.msra.mxu0 %v9397_v32  ;;  %v2058_v32 = vsel %vm1304_vm2, %v2007_v62, 0 }
 0x883   : > { %v1900_v19 = vadd.f32 %v1899_v34, %v1831_v60  ;;  %1943 = vmatprep.subr.bf16.mxu0 %v9421_v33  ;;  %v13280_v33 = vmov 0   ;;  %v1869_v36 = vrot.slane %v1868_v2, 1 }
 0x885   : > { %v1901_v4 = vadd.f32 %v1900_v19, %v1833_v29  ;;  %v1870_v17 = vadd.f32 %v1869_v36, %v1868_v2 }
 0x886   : > { %1944 = vmatpush2.bf16.msra.mxu0 %v9389_v46  ;;  %v13281_v46 = vld [vmem:[#allocation36_spill] sm:$0xff] }
 0x887   : > { %1945 = vmatprep.subr.bf16.mxu0 %v9411_v23  ;;  %v13282_v23 = vld [vmem:[#allocation38_spill] sm:$0xff]  ;;  %v1902_v42 = vrot.slane %v1901_v4, 4  ;;  %7967 = vrcp.f32 %v1870_v17 }
 0x889   : > { %v1903_v48 = vadd.f32 %v1902_v42, %v1901_v4 }
 0x88a   : > { %1946 = vmatpush2.bf16.msra.mxu0 %v9374_v37  ;;  %v13283_v37 = vld [vmem:[#allocation40_spill] sm:$0xff] }
 0x88b   : > { %7534 = vmatprep.subr.msk.bf16.mxu0 %vm1304_vm2, %v2008_v15  ;;  %v1904_v9 = vrot.slane %v1903_v48, 2 }
 0x88d   : > { %1948 = vmatmul.mubr.bf16.vlgmr.msra.gmra.mxu0 %v7530_v55  ;;  %v1905_v8 = vadd.f32 %v1904_v9, %v1903_v48 }
 0x88e   : > { %2078 = vmatpush1.bf16.msra.mxu0 %v2058_v32  ;;  %2095 = vmatprep.mubr.bf16.mxu0 %v13280_v33 }
 0x88f   : > { %v1906_v14 = vrot.slane %v1905_v8, 1 }
 0x891   : > { %v1907_v40 = vadd.f32 %v1906_v14, %v1905_v8 }
 0x893   : > { %7969 = vrcp.f32 %v1907_v40 }
 0x894   : > { %v7968_v27 = vpop.eup %7967 }
 0x895   : > { %7535 = vmatmul.mubr.msk.bf16.vlgmr.msra.gmra.mxu0 %vm1255_vm3, %v13281_v46 }
 0x896   : > { %2105 = vmatprep.mubr.bf16.mxu0 %v13280_v33 }
 0x89d   : > { %7536 = vmatmul.mubr.msk.bf16.gmra.mxu0 %vm1255_vm3, %v13282_v23 }
 0x89e   : > { %2115 = vmatprep.mubr.bf16.mxu0 %v13280_v33 }
 0x8a0   : > { %v7970_v39 = vpop.eup %7969 }
 0x8a5   : > { %7537 = vmatmul.mubr.msk.bf16.gmra.mxu0 %vm1255_vm3, %v13283_v37 }
 0x8a6   : > { %2125 = vmatprep.mubr.bf16.mxu0 %v13280_v33  ;;  %v982_v51 = vpop.f32.mrf.mxu0 }
 0x8a8   : > { %v984_v30 = vpop.f32.mrf.mxu0 }
 0x8a9   : > { %v7695_v12 = vpack.c.bf16 %v984_v30, %v982_v51 }
 0x8aa   : > { %v986_v11 = vpop.f32.mrf.mxu0 }
 0x8ab   : > { %1045 = vst [vmem:[#allocation4 + $0x28] sm:$0xff] %v7695_v12 }
 0x8ac   : > { %v988_v28 = vpop.f32.mrf.mxu0 }
 0x8ad   : > { %7538 = vmatmul.mubr.msk.bf16.gmra.mxu0 %vm1255_vm3, %v13284_v25  ;;  %v7696_v41 = vpack.c.bf16 %v988_v28, %v986_v11 }
 0x8ae   : > { %2135 = vmatprep.mubr.bf16.mxu0 %v13280_v33 }
 0x8af   : > { %1046 = vst [vmem:[#allocation4 + $0x38] sm:$0xff] %v7696_v41 }
 0x8b5   : > { %7539 = vmatmul.mubr.msk.bf16.gmra.mxu0 %vm1255_vm3, %v13285_v31 }
 0x8b6   : > { %2145 = vmatprep.mubr.bf16.mxu0 %v13280_v33 }
 0x8bd   : > { %7540 = vmatmul.mubr.msk.bf16.gmra.mxu0 %vm1255_vm3, %v13286_v3 }
 0x8be   : > { %2155 = vmatprep.mubr.bf16.mxu0 %v13280_v33 }
 0x8c5   : > { %7541 = vmatmul.mubr.msk.bf16.gmra.mxu0 %vm1255_vm3, %v13287_v63 }
 0x8c6   : > { %2165 = vmatprep.mubr.bf16.mxu0 %v13280_v33 }
 0x8cd   : > { %7542 = vmatmul.mubr.msk.bf16.gmra.mxu0 %vm1255_vm3, %v1988_v58 }
 0x8ce   : > { %2175 = vmatprep.mubr.bf16.mxu0 %v13280_v33 }
 0x8d5   : > { %7543 = vmatmul.mubr.msk.bf16.gmra.mxu0 %vm1255_vm3, %v13288_v5 }
 0x8d6   : > { %2185 = vmatprep.mubr.bf16.mxu0 %v13280_v33 }
 0x8dd   : > { %7544 = vmatmul.mubr.msk.bf16.gmra.mxu0 %vm1255_vm3, %v13289_v7 }
 0x8de   : > { %2195 = vmatprep.mubr.bf16.mxu0 %v13280_v33 }
 0x8e5   : > { %7545 = vmatmul.mubr.msk.bf16.gmra.mxu0 %vm1255_vm3, %v13290_v45 }
 0x8e6   : > { %2205 = vmatprep.mubr.bf16.mxu0 %v13280_v33 }
 0x8ed   : > { %7546 = vmatmul.mubr.msk.bf16.gmra.mxu0 %vm1255_vm3, %v13291_v50 }
 0x8ee   : > { %2215 = vmatprep.mubr.bf16.mxu0 %v13280_v33 }
 0x8f5   : > { %7547 = vmatmul.mubr.msk.bf16.gmra.mxu0 %vm1255_vm3, %v13292_v49 }
 0x8f6   : > { %2225 = vmatprep.mubr.bf16.mxu0 %v13280_v33 }
 0x8fd   : > { %7548 = vmatmul.mubr.msk.bf16.gmra.mxu0 %vm1255_vm3, %v13293_v18 }
 0x8fe   : > { %2235 = vmatprep.mubr.bf16.mxu0 %v13280_v33 }
 0x905   : > { %7549 = vmatmul.mubr.msk.bf16.gmra.mxu0 %vm1255_vm3, %v13294_v44 }
 0x906   : > { %2245 = vmatprep.mubr.bf16.mxu0 %v13280_v33 }
 0x90d   : > { %7550 = vmatmul.mubr.msk.bf16.gmra.mxu0 %vm1255_vm3, %v2004_v43 }
 0x90e   : > { %3449 = vmatprep.mubr.bf16.mxu0 %v7573_v61 }
 0x94d   : > { %v1949_v24 = vpop.f32.mrf.mxu0 }
 0x94e   : > { %v9499_v21 = vmul.f32 %v7968_v27, %v1949_v24 }
 0x94f   : > { %v1951_v13 = vpop.f32.mrf.mxu0 }
 0x950   : > { %13295 = vst [vmem:[#allocation18_spill] sm:$0xff] %v9499_v21  ;;  %v9501_v53 = vmul.f32 %v7970_v39, %v1951_v13 }
 0x951   : > { %v1953_v22 = vpop.f32.mrf.mxu0 }
 0x952   : > { %13296 = vst [vmem:[#allocation19_spill] sm:$0xff] %v9501_v53 }
 0x953   : > { %v1954_v0 = vpop.f32.mrf.mxu0 }
 0x955   : > { %v9503_v57 = vpop.f32.mrf.mxu0 }
 0x957   : > { %v9505_v47 = vpop.f32.mrf.mxu0 }
 0x959   : > { %v9507_v52 = vpop.f32.mrf.mxu0 }
 0x95b   : > { %v9509_v38 = vpop.f32.mrf.mxu0 }
 0x95d   : > { %v9511_v54 = vpop.f32.mrf.mxu0 }
 0x95e   : > { %v2256_v14 = vmax.f32 %v9503_v57, %v9511_v54 }
 0x95f   : > { %v9513_v10 = vpop.f32.mrf.mxu0 }
 0x960   : > { %v2293_v24 = vmax.f32 %v9505_v47, %v9513_v10 }
 0x961   : > { %v9515_v59 = vpop.f32.mrf.mxu0 }
 0x962   : > { %v2257_v36 = vmax.f32 %v9507_v52, %v9515_v59 }
 0x963   : > { %v9517_v35 = vpop.f32.mrf.mxu0 }
 0x964   : > { %v2294_v40 = vmax.f32 %v9509_v38, %v9517_v35 }
 0x965   : > { %v9519_v60 = vpop.f32.mrf.mxu0 }
 0x966   : > { %v2258_v39 = vmax.f32 %v2256_v14, %v9519_v60 }
 0x967   : > { %v9521_v34 = vpop.f32.mrf.mxu0 }
 0x968   : > { %v2295_v53 = vmax.f32 %v2293_v24, %v9521_v34 }
 0x969   : > { %v9523_v29 = vpop.f32.mrf.mxu0 }
 0x96a   : > { %13297 = vst [vmem:[#allocation20_spill] sm:$0xff] %v9523_v29  ;;  %v2259_v27 = vmax.f32 %v2257_v36, %v9523_v29 }
 0x96b   : > { %v9525_v19 = vpop.f32.mrf.mxu0 }
 0x96c   : > { %v2296_v22 = vmax.f32 %v2294_v40, %v9525_v19 }
 0x96d   : > { %v9527_v4 = vpop.f32.mrf.mxu0 }
 0x96e   : > { %v2260_v21 = vmax.f32 %v2258_v39, %v9527_v4 }
 0x96f   : > { %v9529_v15 = vpop.f32.mrf.mxu0 }
 0x970   : > { %v2297_v16 = vmax.f32 %v2295_v53, %v9529_v15 }
 0x971   : > { %v9531_v62 = vpop.f32.mrf.mxu0 }
 0x972   : > { %13298 = vst [vmem:[#allocation24_spill] sm:$0xff] %v9531_v62  ;;  %v2261_v0 = vmax.f32 %v2259_v27, %v9531_v62 }
 0x973   : > { %v9533_v55 = vpop.f32.mrf.mxu0 }
 0x974   : > { %v2298_v26 = vmax.f32 %v2296_v22, %v9533_v55 }
 0x975   : > { %v9535_v32 = vpop.f32.mrf.mxu0 }
 0x976   : > { %v2262_v14 = vmax.f32 %v2260_v21, %v9535_v32 }
 0x977   : > { %v9537_v46 = vpop.f32.mrf.mxu0 }
 0x978   : > { %v2299_v24 = vmax.f32 %v2297_v16, %v9537_v46 }
 0x979   : > { %v9539_v23 = vpop.f32.mrf.mxu0 }
 0x97a   : > { %13299 = vst [vmem:[#allocation25_spill] sm:$0xff] %v9539_v23  ;;  %v2263_v36 = vmax.f32 %v2261_v0, %v9539_v23 }
 0x97b   : > { %v9541_v37 = vpop.f32.mrf.mxu0 }
 0x97c   : > { %13300 = vst [vmem:[#allocation26_spill] sm:$0xff] %v9541_v37  ;;  %v2300_v40 = vmax.f32 %v2298_v26, %v9541_v37 }
 0x97d   : > { %v9543_v25 = vpop.f32.mrf.mxu0 }
 0x97e   : > { %v2264_v39 = vmax.f32 %v2262_v14, %v9543_v25 }
 0x97f   : > { %v9545_v31 = vpop.f32.mrf.mxu0 }
 0x980   : > { %v2301_v53 = vmax.f32 %v2299_v24, %v9545_v31 }
 0x981   : > { %v9547_v3 = vpop.f32.mrf.mxu0 }
 0x982   : > { %v2265_v27 = vmax.f32 %v2263_v36, %v9547_v3 }
 0x983   : > { %v9549_v51 = vpop.f32.mrf.mxu0 }
 0x984   : > { %v2302_v22 = vmax.f32 %v2300_v40, %v9549_v51 }
 0x985   : > { %v9551_v30 = vpop.f32.mrf.mxu0 }
 0x986   : > { %13301 = vst [vmem:[#allocation27_spill] sm:$0xff] %v9551_v30  ;;  %v2266_v21 = vmax.f32 %v2264_v39, %v9551_v30 }
 0x987   : > { %v9553_v12 = vpop.f32.mrf.mxu0 }
 0x988   : > { %v2303_v16 = vmax.f32 %v2301_v53, %v9553_v12 }
 0x989   : > { %v9555_v11 = vpop.f32.mrf.mxu0 }
 0x98a   : > { %13302 = vst [vmem:[#allocation28_spill] sm:$0xff] %v9555_v11  ;;  %v2267_v0 = vmax.f32 %v2265_v27, %v9555_v11 }
 0x98b   : > { %v9557_v63 = vpop.f32.mrf.mxu0 }
 0x98c   : > { %v2304_v26 = vmax.f32 %v2302_v22, %v9557_v63 }
 0x98d   : > { %v9559_v28 = vpop.f32.mrf.mxu0 }
 0x98e   : > { %v2268_v14 = vmax.f32 %v2266_v21, %v9559_v28 }
 0x98f   : > { %v9561_v41 = vpop.f32.mrf.mxu0 }
 0x990   : > { %v2305_v24 = vmax.f32 %v2303_v16, %v9561_v41 }
 0x991   : > { %v9563_v58 = vpop.f32.mrf.mxu0 }
 0x992   : > { %v2269_v36 = vmax.f32 %v2267_v0, %v9563_v58 }
 0x993   : > { %v9565_v5 = vpop.f32.mrf.mxu0 }
 0x994   : > { %v2306_v40 = vmax.f32 %v2304_v26, %v9565_v5 }
 0x995   : > { %v9567_v7 = vpop.f32.mrf.mxu0 }
 0x996   : > { %v2270_v39 = vmax.f32 %v2268_v14, %v9567_v7 }
 0x997   : > { %v9569_v45 = vpop.f32.mrf.mxu0 }
 0x998   : > { %v2307_v53 = vmax.f32 %v2305_v24, %v9569_v45 }
 0x999   : > { %v9571_v50 = vpop.f32.mrf.mxu0 }
 0x99a   : > { %13303 = vst [vmem:[#allocation21_spill] sm:$0xff] %v9571_v50  ;;  %v2271_v27 = vmax.f32 %v2269_v36, %v9571_v50 }
 0x99b   : > { %v9573_v49 = vpop.f32.mrf.mxu0 }
 0x99c   : > { %13304 = vst [vmem:[#allocation22_spill] sm:$0xff] %v9573_v49  ;;  %v2308_v22 = vmax.f32 %v2306_v40, %v9573_v49 }
 0x99d   : > { %v9575_v18 = vpop.f32.mrf.mxu0 }
 0x99e   : > { %v2272_v21 = vmax.f32 %v2270_v39, %v9575_v18 }
 0x99f   : > { %v9577_v44 = vpop.f32.mrf.mxu0 }
 0x9a0   : > { %v2309_v16 = vmax.f32 %v2307_v53, %v9577_v44 }
 0x9a1   : > { %v9579_v56 = vpop.f32.mrf.mxu0 }
 0x9a2   : > { %v2273_v0 = vmax.f32 %v2271_v27, %v9579_v56 }
 0x9a3   : > { %v9581_v43 = vpop.f32.mrf.mxu0 }
 0x9a4   : > { %13305 = vst [vmem:[#allocation23_spill] sm:$0xff] %v9581_v43  ;;  %v2310_v26 = vmax.f32 %v2308_v22, %v9581_v43 }
 0x9a5   : > { %v9583_v61 = vpop.f32.mrf.mxu0 }
 0x9a6   : > { %v2274_v14 = vmax.f32 %v2272_v21, %v9583_v61 }
 0x9a7   : > { %v9585_v20 = vpop.f32.mrf.mxu0 }
 0x9a8   : > { %13306 = vst [vmem:[#allocation29_spill] sm:$0xff] %v9585_v20  ;;  %v2311_v24 = vmax.f32 %v2309_v16, %v9585_v20 }
 0x9a9   : > { %v9587_v42 = vpop.f32.mrf.mxu0 }
 0x9aa   : > { %v2275_v36 = vmax.f32 %v2273_v0, %v9587_v42 }
 0x9ab   : > { %v9589_v1 = vpop.f32.mrf.mxu0 }
 0x9ac   : > { %13307 = vst [vmem:[#allocation30_spill] sm:$0xff] %v9589_v1  ;;  %v2312_v40 = vmax.f32 %v2310_v26, %v9589_v1 }
 0x9ad   : > { %v9591_v48 = vpop.f32.mrf.mxu0 }
 0x9ae   : > { %v2276_v39 = vmax.f32 %v2274_v14, %v9591_v48 }
 0x9af   : > { %v9593_v6 = vpop.f32.mrf.mxu0 }
 0x9b0   : > { %13308 = vst [vmem:[#allocation32_spill] sm:$0xff] %v9593_v6  ;;  %v2313_v53 = vmax.f32 %v2311_v24, %v9593_v6 }
 0x9b1   : > { %v9595_v9 = vpop.f32.mrf.mxu0 }
 0x9b2   : > { %v2277_v27 = vmax.f32 %v2275_v36, %v9595_v9 }
 0x9b3   : > { %v9597_v2 = vpop.f32.mrf.mxu0 }
 0x9b4   : > { %13309 = vst [vmem:[#allocation33_spill] sm:$0xff] %v9597_v2  ;;  %v2314_v22 = vmax.f32 %v2312_v40, %v9597_v2 }
 0x9b5   : > { %v9599_v8 = vpop.f32.mrf.mxu0 }
 0x9b6   : > { %v2278_v21 = vmax.f32 %v2276_v39, %v9599_v8 }
 0x9b7   : > { %v9605_v17 = vpop.f32.mrf.mxu0 }
 0x9b8   : > { %13310 = vst [vmem:[#allocation31_spill] sm:$0xff] %v9605_v17  ;;  %v2315_v16 = vmax.f32 %v2313_v53, %v9605_v17 }
 0x9b9   : > { %v9613_v13 = vpop.f32.mrf.mxu0 }
 0x9ba   : > { %v2279_v0 = vmax.f32 %v2277_v27, %v9613_v13 }
 0x9bb   : > { %v9619_v33 = vpop.f32.mrf.mxu0 }
 0x9bc   : > { %13311 = vst [vmem:[#allocation34_spill] sm:$0xff] %v9619_v33  ;;  %v2316_v26 = vmax.f32 %v2314_v22, %v9619_v33 }
 0x9bd   : > { %v9625_v29 = vpop.f32.mrf.mxu0 }
 0x9be   : > { %v2280_v14 = vmax.f32 %v2278_v21, %v9625_v29 }
 0x9bf   : > { %v9631_v62 = vpop.f32.mrf.mxu0 }
 0x9c0   : > { %13312 = vst [vmem:[#allocation35_spill] sm:$0xff] %v9631_v62  ;;  %v2317_v24 = vmax.f32 %v2315_v16, %v9631_v62 }
 0x9c1   : > { %v9637_v23 = vpop.f32.mrf.mxu0 }
 0x9c2   : > { %v2281_v36 = vmax.f32 %v2279_v0, %v9637_v23 }
 0x9c3   : > { %v9643_v37 = vpop.f32.mrf.mxu0 }
 0x9c4   : > { %13313 = vst [vmem:[#allocation36_spill] sm:$0xff] %v9643_v37  ;;  %v2318_v40 = vmax.f32 %v2316_v26, %v9643_v37 }
 0x9c5   : > { %v9649_v11 = vpop.f32.mrf.mxu0 }
 0x9c6   : > { %v2282_v39 = vmax.f32 %v2280_v14, %v9649_v11 }
 0x9c7   : > { %v9655_v30 = vpop.f32.mrf.mxu0 }
 0x9c8   : > { %13314 = vst [vmem:[#allocation38_spill] sm:$0xff] %v9655_v30  ;;  %v2319_v53 = vmax.f32 %v2317_v24, %v9655_v30 }
 0x9c9   : > { %v9661_v50 = vpop.f32.mrf.mxu0 }
 0x9ca   : > { %13315 = vst [vmem:[#allocation40_spill] sm:$0xff] %v9661_v50  ;;  %v2283_v27 = vmax.f32 %v2281_v36, %v9661_v50 }
 0x9cb   : > { %v9667_v49 = vpop.f32.mrf.mxu0 }
 0x9cc   : > { %13316 = vst [vmem:[#allocation42_spill] sm:$0xff] %v9667_v49  ;;  %v2320_v22 = vmax.f32 %v2318_v40, %v9667_v49 }
 0x9cd   : > { %v9673_v43 = vpop.f32.mrf.mxu0 }
 0x9ce   : > { %v2284_v21 = vmax.f32 %v2282_v39, %v9673_v43 }
 0x9cf   : > { %v9679_v1 = vpop.f32.mrf.mxu0 }
 0x9d0   : > { %v2321_v36 = vmax.f32 %v2319_v53, %v9679_v1 }
 0x9d1   : > { %v9685_v2 = vpop.f32.mrf.mxu0 }
 0x9d2   : > { %v2285_v0 = vmax.f32 %v2283_v27, %v9685_v2 }
 0x9d3   : > { %v9691_v33 = vpop.f32.mrf.mxu0 }
 0x9d4   : > { %v2322_v26 = vmax.f32 %v2320_v22, %v9691_v33  ;;  %v2286_v50 = vmax.f32 %v2284_v21, %v2285_v0 }
 0x9d6   : > { %v2323_v16 = vmax.f32 %v2321_v36, %v2322_v26  ;;  %v2287_v37 = vrot.slane %v2286_v50, 4  ;;  %v13318_v26 = vld [vmem:[#allocation24_spill] sm:$0xff] }
 0x9d8   : > { %v2324_v14 = vrot.slane %v2323_v16, 4  ;;  %v2288_v62 = vmax.f32 %v2286_v50, %v2287_v37 }
 0x9da   : > { %v2325_v17 = vmax.f32 %v2323_v16, %v2324_v14  ;;  %v2289_v6 = vrot.slane %v2288_v62, 2 }
 0x9dc   : > { %v2326_v40 = vrot.slane %v2325_v17, 2  ;;  %v2290_v49 = vmax.f32 %v2288_v62, %v2289_v6 }
 0x9de   : > { %v2327_v27 = vmax.f32 %v2325_v17, %v2326_v40  ;;  %v2291_v20 = vrot.slane %v2290_v49, 1 }
 0x9e0   : > { %v2328_v24 = vrot.slane %v2327_v27, 1  ;;  %v9695_v30 = vmax.f32 %v2290_v49, %v2291_v20 }
 0x9e2   : > { %v9697_v39 = vmax.f32 %v2327_v27, %v2328_v24  ;;  %v2330_v22 = vsub.f32 %v9503_v57, %v9695_v30  ;;  %v2332_v0 = vsub.f32 %v9507_v52, %v9695_v30  ;;  %v2334_v37 = vsub.f32 %v9511_v54, %v9695_v30  ;;  %v13319_v24 = vld [vmem:[#allocation25_spill] sm:$0xff] }
 0x9e3   : > { %v2336_v50 = vsub.f32 %v9515_v59, %v9695_v30  ;;  %v2374_v62 = vsub.f32 %v9591_v48, %v9695_v30  ;;  %v2376_v49 = vsub.f32 %v9595_v9, %v9695_v30  ;;  %v2378_v20 = vsub.f32 %v9599_v8, %v9695_v30 }
 0x9e4   : > { %v2380_v57 = vsub.f32 %v9613_v13, %v9695_v30  ;;  %v2382_v52 = vsub.f32 %v9625_v29, %v9695_v30  ;;  %v2384_v54 = vsub.f32 %v9637_v23, %v9695_v30  ;;  %v2331_v59 = vsub.f32 %v9505_v47, %v9697_v39  ;;  %v13317_v29 = vld [vmem:[#allocation20_spill] sm:$0xff] }
 0x9e5   : > { %v2333_v48 = vsub.f32 %v9509_v38, %v9697_v39  ;;  %v2335_v6 = vsub.f32 %v9513_v10, %v9697_v39  ;;  %v2337_v9 = vsub.f32 %v9517_v35, %v9697_v39  ;;  %v2338_v8 = vsub.f32 %v9519_v60, %v9695_v30 }
 0x9e6   : > { %v2340_v17 = vsub.f32 %v13317_v29, %v9695_v30  ;;  %v2339_v23 = vsub.f32 %v9521_v34, %v9697_v39  ;;  %v2341_v47 = vsub.f32 %v9525_v19, %v9697_v39  ;;  %v9735_v13 = vpack.c.bf16 %v2376_v49, %v2374_v62 }
 0x9e7   : > { %v9737_v38 = vpack.c.bf16 %v2380_v57, %v2378_v20  ;;  %v2394_v10 = vpack.c.bf16 %v2332_v0, %v2330_v22  ;;  %v2396_v53 = vpack.c.bf16 %v2336_v50, %v2334_v37  ;;  %v9739_v21 = vpack.c.bf16 %v2384_v54, %v2382_v52 }
 0x9e8   : > { %v2395_v35 = vpack.c.bf16 %v2333_v48, %v2331_v59  ;;  %v2342_v60 = vsub.f32 %v9527_v4, %v9695_v30  ;;  %v2344_v36 = vsub.f32 %v13318_v26, %v9695_v30  ;;  %v2397_v16 = vpack.c.bf16 %v2337_v9, %v2335_v6 }
 0x9e9   : > { %v2398_v34 = vpack.c.bf16 %v2340_v17, %v2338_v8  ;;  %v2346_v19 = vsub.f32 %v9535_v32, %v9695_v30  ;;  %v2343_v14 = vsub.f32 %v9529_v15, %v9697_v39  ;;  %v2345_v40 = vsub.f32 %v9533_v55, %v9697_v39  ;;  %v13320_v55 = vld [vmem:[#allocation26_spill] sm:$0xff] }
 0x9ea   : > { %v2399_v27 = vpack.c.bf16 %v2341_v47, %v2339_v23  ;;  %v2348_v22 = vsub.f32 %v13319_v24, %v9695_v30  ;;  %v2427_v0 = vmul.bf16 1069105081, %v2394_v10  ;;  %v2430_v4 = vmul.bf16 1069105081, %v2395_v35  ;;  %v13321_v23 = vld [vmem:[#allocation27_spill] sm:$0xff] }
 0x9eb   : > { %v2433_v37 = vmul.bf16 1069105081, %v2396_v53  ;;  %v2350_v50 = vsub.f32 %v9543_v25, %v9695_v30  ;;  %v2352_v62 = vsub.f32 %v9547_v3, %v9695_v30  ;;  %v2400_v32 = vpack.c.bf16 %v2344_v36, %v2342_v60  ;;  %v13322_v53 = vld [vmem:[#allocation28_spill] sm:$0xff] }
 0x9ec   : > { %v2436_v49 = vmul.bf16 1069105081, %v2397_v16  ;;  %v2347_v15 = vsub.f32 %v9537_v46, %v9697_v39  ;;  %v2349_v20 = vsub.f32 %v13320_v55, %v9697_v39  ;;  %7971 = vpow.bf16 %v2427_v0  ;;  %v13324_v55 = vld [vmem:[#allocation22_spill] sm:$0xff] }
 0x9ed   : > { %v2439_v57 = vmul.bf16 1069105081, %v2398_v34  ;;  %v2358_v52 = vsub.f32 %v9559_v28, %v9695_v30  ;;  %v2401_v54 = vpack.c.bf16 %v2345_v40, %v2343_v14  ;;  %7973 = vpow.bf16 %v2430_v4  ;;  %v13323_v40 = vld [vmem:[#allocation21_spill] sm:$0xff] }
 0x9ee   : > { %v2442_v59 = vmul.bf16 1069105081, %v2399_v27  ;;  %v2360_v25 = vsub.f32 %v9563_v58, %v9695_v30  ;;  %v2351_v3 = vsub.f32 %v9545_v31, %v9697_v39  ;;  %v2353_v46 = vsub.f32 %v9549_v51, %v9697_v39 }
 0x9ef   : > { %7975 = vpow.bf16 %v2433_v37  ;;  %v2359_v48 = vsub.f32 %v9561_v41, %v9697_v39  ;;  %v2361_v6 = vsub.f32 %v9565_v5, %v9697_v39  ;;  %v2402_v28 = vpack.c.bf16 %v2348_v22, %v2346_v19 }
 0x9f0   : > { %7977 = vpow.bf16 %v2436_v49  ;;  %v2355_v9 = vsub.f32 %v9553_v12, %v9697_v39  ;;  %v2403_v8 = vpack.c.bf16 %v2349_v20, %v2347_v15  ;;  %v2445_v58 = vmul.bf16 1069105081, %v2400_v32 }
 0x9f1   : > { %7979 = vpow.bf16 %v2439_v57  ;;  %v2357_v31 = vsub.f32 %v9557_v63, %v9697_v39  ;;  %v2404_v29 = vpack.c.bf16 %v2352_v62, %v2350_v50  ;;  %v2448_v51 = vmul.bf16 1069105081, %v2401_v54 }
 0x9f2   : > { %7981 = vpow.bf16 %v2442_v59  ;;  %v2390_v41 = vsub.f32 %v9673_v43, %v9695_v30  ;;  %v2405_v17 = vpack.c.bf16 %v2353_v46, %v2351_v3  ;;  %v2392_v5 = vsub.f32 %v9685_v2, %v9695_v30 }
 0x9f3   : > { %v2354_v47 = vsub.f32 %v13321_v23, %v9695_v30  ;;  %v2409_v12 = vpack.c.bf16 %v2361_v6, %v2359_v48  ;;  %v2451_v10 = vmul.bf16 1069105081, %v2402_v28  ;;  %v2356_v35 = vsub.f32 %v13322_v53, %v9695_v30  ;;  %v13327_v53 = vld [vmem:[#allocation30_spill] sm:$0xff] }
 0x9f4   : > { %v2408_v60 = vpack.c.bf16 %v2360_v25, %v2358_v52  ;;  %7983 = vpow.bf16 %v2445_v58  ;;  %v2454_v63 = vmul.bf16 1069105081, %v2403_v8  ;;  %v2407_v26 = vpack.c.bf16 %v2357_v31, %v2355_v9 }
 0x9f5   : > { %7985 = vpow.bf16 %v2448_v51  ;;  %v2457_v36 = vmul.bf16 1069105081, %v2404_v29  ;;  %v2460_v16 = vmul.bf16 1069105081, %v2405_v17  ;;  %v2472_v43 = vmul.bf16 1069105081, %v2409_v12 }
 0x9f6   : > { %7987 = vpow.bf16 %v2451_v10  ;;  %v9785_v34 = vpack.c.bf16 %v2392_v5, %v2390_v41  ;;  %v2406_v2 = vpack.c.bf16 %v2356_v35, %v2354_v47  ;;  %v2469_v19 = vmul.bf16 1069105081, %v2408_v60  ;;  %v13326_v12 = vld [vmem:[#allocation29_spill] sm:$0xff] }
 0x9f7   : > { %7989 = vpow.bf16 %v2454_v63  ;;  %v2362_v14 = vsub.f32 %v9567_v7, %v9695_v30  ;;  %v2364_v27 = vsub.f32 %v13323_v40, %v9695_v30  ;;  %v2466_v24 = vmul.bf16 1069105081, %v2407_v26 }
 0x9f8   : > { %7991 = vpow.bf16 %v2457_v36  ;;  %v2366_v0 = vsub.f32 %v9575_v18, %v9695_v30  ;;  %v2368_v4 = vsub.f32 %v9579_v56, %v9695_v30  ;;  %v2370_v37 = vsub.f32 %v9583_v61, %v9695_v30 }
 0x9f9   : > { %7993 = vpow.bf16 %v2460_v16  ;;  %v2363_v7 = vsub.f32 %v9569_v45, %v9697_v39  ;;  %v2463_v18 = vmul.bf16 1069105081, %v2406_v2  ;;  %v2365_v20 = vsub.f32 %v13324_v55, %v9697_v39 }
 0x9fa   : > { %v9791_v22 = vpop.eup %7971  ;;  %7995 = vpow.bf16 %v2472_v43  ;;  %v2391_v54 = vsub.f32 %v9679_v1, %v9697_v39  ;;  %v2393_v59 = vsub.f32 %v9691_v33, %v9697_v39  ;;  %v2372_v48 = vsub.f32 %v9587_v42, %v9695_v30  ;;  %v13325_v33 = vld [vmem:[#allocation23_spill] sm:$0xff] }
 0x9fb   : > { %v9799_v50 = vpop.eup %7973  ;;  %v2522_v62 = vunpack.c.l.bf16 %v9791_v22  ;;  %v2524_v32 = vunpack.c.h.bf16 %v9791_v22  ;;  %7997 = vpow.bf16 %v2469_v19  ;;  %v2367_v6 = vsub.f32 %v9577_v44, %v9697_v39 }
 0x9fc   : > { %v2523_v56 = vunpack.c.l.bf16 %v9799_v50  ;;  %v2525_v15 = vunpack.c.h.bf16 %v9799_v50  ;;  %7999 = vpow.bf16 %v2466_v24  ;;  %v2410_v8 = vpack.c.bf16 %v2364_v27, %v2362_v14 }
 0x9fd   : > { %v9805_v49 = vpop.eup %7975  ;;  %v2586_v57 = vadd.f32 %v2524_v32, %v2522_v62  ;;  %8001 = vpow.bf16 %v2463_v18  ;;  %v2369_v31 = vsub.f32 %v13325_v33, %v9697_v39  ;;  %v2411_v29 = vpack.c.bf16 %v2365_v20, %v2363_v7  ;;  %v13328_v7 = vld [vmem:[#allocation32_spill] sm:$0xff]  ;;  %v13329_v32 = vld [vmem:[#allocation33_spill] sm:$0xff] }
 0x9fe   : > { %v9809_v61 = vpop.eup %7977  ;;  %v2526_v45 = vunpack.c.l.bf16 %v9805_v49  ;;  %v2623_v3 = vadd.f32 %v2525_v15, %v2523_v56  ;;  %v2528_v28 = vunpack.c.h.bf16 %v9805_v49  ;;  %v2386_v44 = vsub.f32 %v9649_v11, %v9695_v30 }
 0x9ff   : > { %v9814_v52 = vpop.eup %7979  ;;  %v2527_v25 = vunpack.c.l.bf16 %v9809_v61  ;;  %v2529_v1 = vunpack.c.h.bf16 %v9809_v61  ;;  %v9836_v42 = vpack.c.bf16 %v2393_v59, %v2391_v54  ;;  %v2371_v10 = vsub.f32 %v13326_v12, %v9697_v39 }
 0xa00   : > { %v9821_v46 = vpop.eup %7981  ;;  %v2587_v9 = vadd.f32 %v2586_v57, %v2526_v45  ;;  %v2530_v51 = vunpack.c.l.bf16 %v9814_v52  ;;  %v2373_v35 = vsub.f32 %v13327_v53, %v9697_v39  ;;  %v2532_v60 = vunpack.c.h.bf16 %v9814_v52 }
 0xa01   : > { %v2624_v58 = vadd.f32 %v2623_v3, %v2527_v25  ;;  %v2531_v5 = vunpack.c.l.bf16 %v9821_v46  ;;  %v2412_v26 = vpack.c.bf16 %v2368_v4, %v2366_v0  ;;  %v2475_v36 = vmul.bf16 1069105081, %v2410_v8 }
 0xa02   : > { %v2588_v41 = vadd.f32 %v2587_v9, %v2528_v28  ;;  %v9832_v17 = vpop.eup %7983  ;;  %v2533_v16 = vunpack.c.h.bf16 %v9821_v46  ;;  %v2413_v19 = vpack.c.bf16 %v2369_v31, %v2367_v6  ;;  %v2478_v14 = vmul.bf16 1069105081, %v2411_v29 }
 0xa03   : > { %v2625_v23 = vadd.f32 %v2624_v58, %v2529_v1  ;;  %v9839_v47 = vpop.eup %7985  ;;  %v2534_v40 = vunpack.c.l.bf16 %v9832_v17  ;;  %v2375_v62 = vsub.f32 %v13328_v7, %v9697_v39  ;;  %v2377_v18 = vsub.f32 %v13329_v32, %v9697_v39  ;;  %v13331_v1 = vld [vmem:[#allocation34_spill] sm:$0xff] }
 0xa04   : > { %v2589_v63 = vadd.f32 %v2588_v41, %v2530_v51  ;;  %v9847_v2 = vpop.eup %7987  ;;  %v2535_v0 = vunpack.c.l.bf16 %v9839_v47  ;;  %v2414_v15 = vpack.c.bf16 %v2372_v48, %v2370_v37  ;;  %v2415_v55 = vpack.c.bf16 %v2373_v35, %v2371_v10  ;;  %v13330_v37 = vld [vmem:[#allocation31_spill] sm:$0xff]  ;;  %v13335_v7 = vld [vmem:[#allocation42_spill] sm:$0xff] }
 0xa05   : > { %v2626_v43 = vadd.f32 %v2625_v23, %v2531_v5  ;;  %v9850_v24 = vpop.eup %7989  ;;  %v2536_v20 = vunpack.c.h.bf16 %v9832_v17  ;;  %8003 = vpow.bf16 %v2475_v36  ;;  %v2481_v54 = vmul.bf16 1069105081, %v2412_v26  ;;  %v13332_v51 = vld [vmem:[#allocation35_spill] sm:$0xff] }
 0xa06   : > { %v2590_v27 = vadd.f32 %v2589_v63, %v2532_v60  ;;  %v9857_v56 = vpop.eup %7991  ;;  %v2537_v59 = vunpack.c.h.bf16 %v9839_v47  ;;  %8005 = vpow.bf16 %v2478_v14  ;;  %v2484_v6 = vmul.bf16 1069105081, %v2413_v19  ;;  %v13334_v19 = vld [vmem:[#allocation38_spill] sm:$0xff] }
 0xa07   : > { %v2627_v4 = vadd.f32 %v2626_v43, %v2533_v16  ;;  %v7994_v57 = vpop.eup %7993  ;;  %v2538_v28 = vunpack.c.l.bf16 %v9847_v2  ;;  %v2379_v48 = vsub.f32 %v13330_v37, %v9697_v39  ;;  %v2381_v58 = vsub.f32 %v13331_v1, %v9697_v39  ;;  %v13333_v16 = vld [vmem:[#allocation36_spill] sm:$0xff] }
 0xa08   : > { %v2591_v45 = vadd.f32 %v2590_v27, %v2534_v40  ;;  %v9861_v3 = vpop.eup %7995  ;;  %v2539_v33 = vunpack.c.l.bf16 %v9850_v24  ;;  %v2383_v41 = vsub.f32 %v13332_v51, %v9697_v39  ;;  %v2417_v5 = vpack.c.bf16 %v2377_v18, %v2375_v62 }
 0xa09   : > { %v2628_v25 = vadd.f32 %v2627_v4, %v2535_v0  ;;  %v9864_v8 = vpop.eup %7997  ;;  %2669 = vmatprep.subr.bf16.mxu1 %v9861_v3  ;;  %v2540_v23 = vunpack.c.h.bf16 %v9847_v2  ;;  %8007 = vpow.bf16 %v2481_v54  ;;  %v2487_v10 = vmul.bf16 1069105081, %v2414_v15 }
 0xa0a   : > { %v2592_v9 = vadd.f32 %v2591_v45, %v2536_v20  ;;  %v8000_v29 = vpop.eup %7999  ;;  %2670 = vmatpush1.bf16.msra.mxu1 %v9864_v8  ;;  %v2541_v53 = vunpack.c.h.bf16 %v9850_v24  ;;  %8009 = vpow.bf16 %v2484_v6  ;;  %v2490_v60 = vmul.bf16 1069105081, %v2415_v55 }
 0xa0b   : > { %v2629_v31 = vadd.f32 %v2628_v25, %v2537_v59  ;;  %2671 = vmatprep.subr.bf16.mxu1 %v8000_v29  ;;  %v2542_v63 = vunpack.c.l.bf16 %v9857_v56  ;;  %v8002_v36 = vpop.eup %8001  ;;  %v2385_v43 = vsub.f32 %v13333_v16, %v9697_v39  ;;  %v2387_v14 = vsub.f32 %v13334_v19, %v9697_v39  ;;  %v13336_v59 = vld [vmem:[#allocation40_spill] sm:$0xff] }
 0xa0c   : > { %v2593_v12 = vadd.f32 %v2592_v9, %v2538_v28  ;;  %v2543_v40 = vunpack.c.l.bf16 %v7994_v57  ;;  %v2389_v62 = vsub.f32 %v13335_v7, %v9697_v39  ;;  %v2419_v32 = vpack.c.bf16 %v2381_v58, %v2379_v48 }
 0xa0d   : > { %v2630_v35 = vadd.f32 %v2629_v31, %v2539_v33  ;;  %v2544_v18 = vunpack.c.h.bf16 %v9857_v56  ;;  %8011 = vpow.bf16 %v2487_v10  ;;  %v2493_v4 = vmul.bf16 1069105081, %v9735_v13 }
 0xa0e   : > { %v2594_v26 = vadd.f32 %v2593_v12, %v2540_v23  ;;  %2672 = vmatpush1.bf16.msra.mxu1 %v8002_v36  ;;  %v2545_v15 = vunpack.c.h.bf16 %v7994_v57  ;;  %8013 = vpow.bf16 %v2490_v60  ;;  %v2496_v20 = vmul.bf16 1069105081, %v2417_v5 }
 0xa0f   : > { %v2631_v27 = vadd.f32 %v2630_v35, %v2541_v53  ;;  %2673 = vmatprep.subr.bf16.mxu1 %v7994_v57  ;;  %v2546_v45 = vunpack.c.l.bf16 %v8002_v36  ;;  %v2388_v25 = vsub.f32 %v13336_v59, %v9695_v30  ;;  %v2520_v39 = vmul.bf16 1069105081, %v9836_v42 }
 0xa10   : > { %v2595_v0 = vadd.f32 %v2594_v26, %v2542_v63  ;;  %v2547_v6 = vunpack.c.l.bf16 %v8000_v29  ;;  %v2421_v9 = vpack.c.bf16 %v2385_v43, %v2383_v41  ;;  %v2423_v37 = vpack.c.bf16 %v2389_v62, %v2387_v14 }
 0xa11   : > { %v2632_v55 = vadd.f32 %v2631_v27, %v2543_v40  ;;  %v2548_v48 = vunpack.c.h.bf16 %v8002_v36  ;;  %8015 = vpow.bf16 %v2493_v4  ;;  %v2499_v13 = vmul.bf16 1069105081, %v9737_v38 }
 0xa12   : > { %v2596_v54 = vadd.f32 %v2595_v0, %v2544_v18  ;;  %2674 = vmatpush1.bf16.msra.mxu1 %v9857_v56  ;;  %v2549_v57 = vunpack.c.h.bf16 %v8000_v29  ;;  %8017 = vpow.bf16 %v2496_v20  ;;  %v2502_v33 = vmul.bf16 1069105081, %v2419_v32 }
 0xa13   : > { %v2633_v28 = vadd.f32 %v2632_v55, %v2545_v15  ;;  %2675 = vmatprep.subr.bf16.mxu1 %v9850_v24  ;;  %v2550_v31 = vunpack.c.l.bf16 %v9864_v8  ;;  %v9893_v51 = vpop.eup %8003  ;;  %v2517_v41 = vmul.bf16 1069105081, %v9785_v34  ;;  %8019 = vpow.bf16 %v2520_v39 }
 0xa14   : > { %v2597_v1 = vadd.f32 %v2596_v54, %v2546_v45  ;;  %v2551_v5 = vunpack.c.l.bf16 %v9861_v3  ;;  %v9897_v23 = vpop.eup %8005  ;;  %v2422_v38 = vpack.c.bf16 %v2388_v25, %v2386_v44  ;;  %v2505_v24 = vmul.bf16 1069105081, %v9739_v21 }
 0xa15   : > { %v2634_v58 = vadd.f32 %v2633_v28, %v2547_v6  ;;  %v2552_v29 = vunpack.c.h.bf16 %v9864_v8  ;;  %8021 = vpow.bf16 %v2499_v13  ;;  %v2508_v10 = vmul.bf16 1069105081, %v2421_v9 }
 0xa16   : > { %v2598_v42 = vadd.f32 %v2597_v1, %v2548_v48  ;;  %2676 = vmatpush1.bf16.msra.mxu1 %v9847_v2  ;;  %v2553_v34 = vunpack.c.h.bf16 %v9861_v3  ;;  %8023 = vpow.bf16 %v2502_v33  ;;  %v2514_v35 = vmul.bf16 1069105081, %v2423_v37 }
 0xa17   : > { %v2635_v56 = vadd.f32 %v2634_v58, %v2549_v57  ;;  %2677 = vmatprep.subr.bf16.mxu1 %v9839_v47  ;;  %v2554_v60 = vunpack.c.l.bf16 %v9893_v51  ;;  %v9908_v11 = vpop.eup %8007  ;;  %8025 = vpow.bf16 %v2517_v41  ;;  %v2555_v21 = vunpack.c.l.bf16 %v9897_v23 }
 0xa18   : > { %v2599_v12 = vadd.f32 %v2598_v42, %v2550_v31  ;;  %v9911_v8 = vpop.eup %8009  ;;  %8027 = vpow.bf16 %v2505_v24  ;;  %v2556_v2 = vunpack.c.h.bf16 %v9893_v51  ;;  %v2511_v47 = vmul.bf16 1069105081, %v2422_v38 }
 0xa19   : > { %v2636_v53 = vadd.f32 %v2635_v56, %v2551_v5  ;;  %8029 = vpow.bf16 %v2508_v10  ;;  %v2557_v63 = vunpack.c.h.bf16 %v9897_v23  ;;  %v2558_v36 = vunpack.c.l.bf16 %v9908_v11 }
 0xa1a   : > { %v2600_v30 = vadd.f32 %v2599_v12, %v2552_v29  ;;  %2678 = vmatpush1.bf16.msra.mxu1 %v9832_v17  ;;  %8031 = vpow.bf16 %v2514_v35  ;;  %v2559_v19 = vunpack.c.l.bf16 %v9911_v8  ;;  %v2560_v17 = vunpack.c.h.bf16 %v9908_v11 }
 0xa1b   : > { %v2637_v44 = vadd.f32 %v2636_v53, %v2553_v34  ;;  %2679 = vmatprep.subr.bf16.mxu1 %v9821_v46  ;;  %v9918_v43 = vpop.eup %8011  ;;  %8033 = vpow.bf16 %v2511_v47  ;;  %v2561_v7 = vunpack.c.h.bf16 %v9911_v8 }
 0xa1c   : > { %v2601_v3 = vadd.f32 %v2600_v30, %v2554_v60  ;;  %v9921_v40 = vpop.eup %8013  ;;  %v2562_v62 = vunpack.c.l.bf16 %v9918_v43  ;;  %v2564_v55 = vunpack.c.h.bf16 %v9918_v43 }
 0xa1d   : > { %v2638_v26 = vadd.f32 %v2637_v44, %v2555_v21  ;;  %v2563_v0 = vunpack.c.l.bf16 %v9921_v40  ;;  %v2565_v45 = vunpack.c.h.bf16 %v9921_v40 }
 0xa1e   : > { %v2602_v16 = vadd.f32 %v2601_v3, %v2556_v2  ;;  %2680 = vmatpush1.bf16.msra.mxu1 %v9814_v52 }
 0xa1f   : > { %v2639_v14 = vadd.f32 %v2638_v26, %v2557_v63  ;;  %2681 = vmatprep.subr.bf16.mxu1 %v9809_v61  ;;  %v9928_v18 = vpop.eup %8015 }
 0xa20   : > { %v2603_v27 = vadd.f32 %v2602_v16, %v2558_v36  ;;  %v8018_v15 = vpop.eup %8017  ;;  %v2566_v61 = vunpack.c.l.bf16 %v9928_v18  ;;  %v2568_v9 = vunpack.c.h.bf16 %v9928_v18 }
 0xa21   : > { %v2640_v46 = vadd.f32 %v2639_v14, %v2559_v19  ;;  %v9933_v52 = vpop.eup %8019  ;;  %v2567_v39 = vunpack.c.l.bf16 %v8018_v15  ;;  %v2569_v48 = vunpack.c.h.bf16 %v8018_v15 }
 0xa22   : > { %v2604_v32 = vadd.f32 %v2603_v27, %v2560_v17  ;;  %2682 = vmatpush1.bf16.msra.mxu1 %v9805_v49  ;;  %v2583_v19 = vunpack.c.l.bf16 %v9933_v52 }
 0xa23   : > { %v2641_v4 = vadd.f32 %v2640_v46, %v2561_v7  ;;  %2683 = vmatprep.subr.bf16.mxu1 %v9799_v50  ;;  %v8022_v25 = vpop.eup %8021  ;;  %v2585_v7 = vunpack.c.h.bf16 %v9933_v52 }
 0xa24   : > { %v2605_v20 = vadd.f32 %v2604_v32, %v2562_v62  ;;  %v8024_v28 = vpop.eup %8023  ;;  %v2570_v57 = vunpack.c.l.bf16 %v8022_v25  ;;  %v2572_v41 = vunpack.c.h.bf16 %v8022_v25 }
 0xa25   : > { %v2642_v54 = vadd.f32 %v2641_v4, %v2563_v0  ;;  %v8026_v49 = vpop.eup %8025  ;;  %v2571_v33 = vunpack.c.l.bf16 %v8024_v28  ;;  %v2573_v56 = vunpack.c.h.bf16 %v8024_v28  ;;  %v8447_v0 = vld [vmem:[#allocation4 + $0x8] sm:$0xcc] }
 0xa26   : > { %v2606_v59 = vadd.f32 %v2605_v20, %v2564_v55  ;;  %2684 = vmatpush1.bf16.msra.mxu1 %v9791_v22  ;;  %v8028_v13 = vpop.eup %8027  ;;  %v2582_v36 = vunpack.c.l.bf16 %v8026_v49  ;;  %v2584_v17 = vunpack.c.h.bf16 %v8026_v49  ;;  %v7551_v4 = vcombine.low %v8447_v0, %v8447_v0  ;;  %v13338_v20 = vld [vmem:[#allocation13_spill] sm:$0xff] }
 0xa27   : > { %v2643_v6 = vadd.f32 %v2642_v54, %v2565_v45  ;;  %2685 = vmatprep.subr.bf16.mxu1 %v9933_v52  ;;  %v8030_v58 = vpop.eup %8029  ;;  %v2574_v22 = vunpack.c.l.bf16 %v8028_v13  ;;  %v2576_v34 = vunpack.c.h.bf16 %v8028_v13  ;;  %v2757_v52 = vrot.slane %v13338_v20, 4 }
 0xa28   : > { %v2607_v37 = vadd.f32 %v2606_v59, %v2566_v61  ;;  %v8032_v42 = vpop.eup %8031  ;;  %v2575_v12 = vunpack.c.l.bf16 %v8030_v58  ;;  %v2577_v35 = vunpack.c.h.bf16 %v8030_v58  ;;  %v2665_v45 = vrot.slane %v7551_v4, 2 }
 0xa29   : > { %v2644_v1 = vadd.f32 %v2643_v6, %v2567_v39  ;;  %v8034_v29 = vpop.eup %8033  ;;  %v2579_v44 = vunpack.c.l.bf16 %v8032_v42  ;;  %v2581_v63 = vunpack.c.h.bf16 %v8032_v42 }
 0xa2a   : > { %v2608_v50 = vadd.f32 %v2607_v37, %v2568_v9  ;;  %2686 = vmatpush2.bf16.msra.mxu1 %v8026_v49  ;;  %v2578_v30 = vunpack.c.l.bf16 %v8034_v29  ;;  %v2580_v3 = vunpack.c.h.bf16 %v8034_v29 }
 0xa2b   : > { %v2645_v31 = vadd.f32 %v2644_v1, %v2569_v48  ;;  %2687 = vmatprep.subr.bf16.mxu1 %v8032_v42  ;;  %v3465_v48 = vld [vmem:[#allocation4 + $0x20] sm:$0xcc] }
 0xa2c   : > { %v2609_v5 = vadd.f32 %v2608_v50, %v2570_v57  ;;  %v7594_v1 = vcombine.high %v3465_v48, %v3465_v48 }
 0xa2d   : > { %v2646_v38 = vadd.f32 %v2645_v31, %v2571_v33 }
 0xa2e   : > { %v2610_v24 = vadd.f32 %v2609_v5, %v2572_v41  ;;  %2688 = vmatpush2.bf16.msra.mxu1 %v8034_v29  ;;  %v4166_v57 = vrot.slane %v7594_v1, 2 }
 0xa2f   : > { %v2647_v10 = vadd.f32 %v2646_v38, %v2573_v56  ;;  %2689 = vmatprep.subr.bf16.mxu1 %v8030_v58 }
 0xa30   : > { %v2611_v53 = vadd.f32 %v2610_v24, %v2574_v22 }
 0xa31   : > { %v2648_v60 = vadd.f32 %v2647_v10, %v2575_v12 }
 0xa32   : > { %v2612_v21 = vadd.f32 %v2611_v53, %v2576_v34  ;;  %2690 = vmatpush2.bf16.msra.mxu1 %v8028_v13 }
 0xa33   : > { %v2649_v2 = vadd.f32 %v2648_v60, %v2577_v35  ;;  %2691 = vmatprep.subr.bf16.mxu1 %v8024_v28 }
 0xa34   : > { %v2613_v47 = vadd.f32 %v2612_v21, %v2578_v30 }
 0xa35   : > { %v2650_v26 = vadd.f32 %v2649_v2, %v2579_v44  ;;  %v13340_v44 = vld [vmem:[#allocation18_spill] sm:$0xff] }
 0xa36   : > { %v2614_v16 = vadd.f32 %v2613_v47, %v2580_v3  ;;  %2692 = vmatpush2.bf16.msra.mxu1 %v8022_v25  ;;  %v2749_v25 = vpop.trf.xlu1  ;;  %v1960_v2 = vpack.c.bf16 %v13340_v44, %v13340_v44 }
 0xa37   : > { %v2651_v14 = vadd.f32 %v2650_v26, %v2581_v63  ;;  %2693 = vmatprep.subr.bf16.mxu1 %v8018_v15  ;;  %v13337_v15 = vld [vmem:[#allocation14_spill] sm:$0xff]  ;;  %v13341_v26 = vld [vmem:[#allocation19_spill] sm:$0xff] }
 0xa38   : > { %v2615_v27 = vadd.f32 %v2614_v16, %v2582_v36  ;;  %v2758_v55 = vrot.slane %v13337_v15, 4  ;;  %v1961_v36 = vpack.c.bf16 %v13341_v26, %v13341_v26 }
 0xa39   : > { %v2652_v46 = vadd.f32 %v2651_v14, %v2583_v19 }
 0xa3a   : > { %v9943_v62 = vadd.f32 %v2615_v27, %v2584_v17  ;;  %2694 = vmatpush2.bf16.msra.mxu1 %v9928_v18  ;;  %v2750_v39 = vpop.trf.xlu1 }
 0xa3b   : > { %v9945_v32 = vadd.f32 %v2652_v46, %v2585_v7  ;;  %2695 = vmatprep.subr.bf16.mxu1 %v9921_v40 }
 0xa3c   : > { %v2617_v50 = vrot.slane %v9943_v62, 4 }
 0xa3d   : > { %v2654_v58 = vrot.slane %v9945_v32, 4 }
 0xa3e   : > { %2696 = vmatpush2.bf16.msra.mxu1 %v9918_v43  ;;  %v2808_v43 = vsel %vm1304_vm2, %v2757_v52, 0  ;;  %v2751_v6 = vpop.trf.xlu1  ;;  %v2618_v33 = vadd.f32 %v2617_v50, %v9943_v62 }
 0xa3f   : > { %2697 = vmatprep.subr.bf16.mxu1 %v9911_v8  ;;  %v13339_v8 = vmov 0   ;;  %v2655_v31 = vadd.f32 %v2654_v58, %v9945_v32 }
 0xa40   : > { %v2619_v42 = vrot.slane %v2618_v33, 2 }
 0xa41   : > { %v2656_v41 = vrot.slane %v2655_v31, 2 }
 0xa42   : > { %2698 = vmatpush2.bf16.msra.mxu1 %v9908_v11  ;;  %v2733_v11 = vpop.trf.xlu0  ;;  %v2752_v28 = vpop.trf.xlu1  ;;  %v2620_v5 = vadd.f32 %v2619_v42, %v2618_v33 }
 0xa43   : > { %2699 = vmatprep.subr.bf16.mxu1 %v9897_v23  ;;  %v2657_v56 = vadd.f32 %v2656_v41, %v2655_v31 }
 0xa44   : > { %v2621_v38 = vrot.slane %v2620_v5, 1 }
 0xa45   : > { %v2658_v22 = vrot.slane %v2657_v56, 1 }
 0xa46   : > { %2700 = vmatpush2.bf16.msra.mxu1 %v9893_v51  ;;  %v2734_v23 = vpop.trf.xlu0  ;;  %v2753_v9 = vpop.trf.xlu1  ;;  %v2622_v24 = vadd.f32 %v2621_v38, %v2620_v5 }
 0xa47   : > { %7555 = vmatprep.subr.msk.bf16.mxu1 %vm1304_vm2, %v2758_v55  ;;  %v2659_v29 = vadd.f32 %v2658_v22, %v2657_v56 }
 0xa48   : > { %8035 = vrcp.f32 %v2622_v24 }
 0xa49   : > { %2702 = vmatmul.mubr.bf16.vlgmr.msra.gmra.mxu1 %v2665_v45  ;;  %8037 = vrcp.f32 %v2659_v29 }
 0xa4a   : > { %2828 = vmatpush1.bf16.msra.mxu1 %v2808_v43  ;;  %2845 = vmatprep.mubr.bf16.mxu1 %v13339_v8  ;;  %v2735_v51 = vpop.trf.xlu0  ;;  %v2754_v37 = vpop.trf.xlu1 }
 0xa4e   : > { %v2736_v40 = vpop.trf.xlu0  ;;  %v2755_v49 = vpop.trf.xlu1 }
 0xa51   : > { %7556 = vmatmul.mubr.msk.bf16.vlgmr.msra.gmra.mxu1 %vm1255_vm3, %v2733_v11 }
 0xa52   : > { %2855 = vmatprep.mubr.bf16.mxu1 %v13339_v8  ;;  %v2737_v18 = vpop.trf.xlu0  ;;  %v2756_v13 = vpop.trf.xlu1 }
 0xa55   : > { %v8036_v12 = vpop.eup %8035 }
 0xa56   : > { %v2738_v54 = vpop.trf.xlu0  ;;  %v8038_v53 = vpop.eup %8037 }
 0xa59   : > { %7557 = vmatmul.mubr.msk.bf16.gmra.mxu1 %vm1255_vm3, %v2734_v23 }
 0xa5a   : > { %2865 = vmatprep.mubr.bf16.mxu1 %v13339_v8  ;;  %v2739_v61 = vpop.trf.xlu0 }
 0xa5e   : > { %v2740_v59 = vpop.trf.xlu0 }
 0xa61   : > { %7558 = vmatmul.mubr.msk.bf16.gmra.mxu1 %vm1255_vm3, %v2735_v51 }
 0xa62   : > { %2875 = vmatprep.mubr.bf16.mxu1 %v13339_v8 }
 0xa69   : > { %7559 = vmatmul.mubr.msk.bf16.gmra.mxu1 %vm1255_vm3, %v2736_v40 }
 0xa6a   : > { %2885 = vmatprep.mubr.bf16.mxu1 %v13339_v8 }
 0xa71   : > { %7560 = vmatmul.mubr.msk.bf16.gmra.mxu1 %vm1255_vm3, %v2737_v18 }
 0xa72   : > { %2895 = vmatprep.mubr.bf16.mxu1 %v13339_v8 }
 0xa79   : > { %7561 = vmatmul.mubr.msk.bf16.gmra.mxu1 %vm1255_vm3, %v2738_v54 }
 0xa7a   : > { %2905 = vmatprep.mubr.bf16.mxu1 %v13339_v8 }
 0xa81   : > { %7562 = vmatmul.mubr.msk.bf16.gmra.mxu1 %vm1255_vm3, %v2739_v61 }
 0xa82   : > { %2915 = vmatprep.mubr.bf16.mxu1 %v13339_v8 }
 0xa89   : > { %7563 = vmatmul.mubr.msk.bf16.gmra.mxu1 %vm1255_vm3, %v2740_v59 }
 0xa8a   : > { %2925 = vmatprep.mubr.bf16.mxu1 %v13339_v8 }
 0xa91   : > { %7564 = vmatmul.mubr.msk.bf16.gmra.mxu1 %vm1255_vm3, %v2749_v25 }
 0xa92   : > { %2935 = vmatprep.mubr.bf16.mxu1 %v13339_v8 }
 0xa99   : > { %7565 = vmatmul.mubr.msk.bf16.gmra.mxu1 %vm1255_vm3, %v2750_v39 }
 0xa9a   : > { %2945 = vmatprep.mubr.bf16.mxu1 %v13339_v8 }
 0xaa1   : > { %7566 = vmatmul.mubr.msk.bf16.gmra.mxu1 %vm1255_vm3, %v2751_v6 }
 0xaa2   : > { %2955 = vmatprep.mubr.bf16.mxu1 %v13339_v8 }
 0xaa9   : > { %7567 = vmatmul.mubr.msk.bf16.gmra.mxu1 %vm1255_vm3, %v2752_v28 }
 0xaaa   : > { %2965 = vmatprep.mubr.bf16.mxu1 %v13339_v8 }
 0xab1   : > { %7568 = vmatmul.mubr.msk.bf16.gmra.mxu1 %vm1255_vm3, %v2753_v9 }
 0xab2   : > { %2975 = vmatprep.mubr.bf16.mxu1 %v13339_v8 }
 0xab9   : > { %7569 = vmatmul.mubr.msk.bf16.gmra.mxu1 %vm1255_vm3, %v2754_v37 }
 0xaba   : > { %2985 = vmatprep.mubr.bf16.mxu1 %v13339_v8 }
 0xac1   : > { %7570 = vmatmul.mubr.msk.bf16.gmra.mxu1 %vm1255_vm3, %v2755_v49 }
 0xac2   : > { %2995 = vmatprep.mubr.bf16.mxu1 %v13339_v8 }
 0xac9   : > { %7571 = vmatmul.mubr.msk.bf16.gmra.mxu1 %vm1255_vm3, %v2756_v13 }
 0xaca   : > { %4201 = vmatprep.mubr.bf16.mxu1 %v4166_v57 }
 0xb09   : > { %v2703_v10 = vpop.f32.mrf.mxu1 }
 0xb0a   : > { %v2712_v34 = vmul.f32 %v8036_v12, %v2703_v10 }
 0xb0b   : > { %v2705_v35 = vpop.f32.mrf.mxu1 }
 0xb0c   : > { %v2714_v60 = vpack.c.bf16 %v2712_v34, %v2712_v34  ;;  %v2713_v30 = vmul.f32 %v8038_v53, %v2705_v35 }
 0xb0d   : > { %v2707_v21 = vpop.f32.mrf.mxu1 }
 0xb0e   : > { %v7218_v3 = vrot.slane %v2714_v60, 6  ;;  %v2715_v47 = vpack.c.bf16 %v2713_v30, %v2713_v30 }
 0xb0f   : > { %v2708_v63 = vpop.f32.mrf.mxu1 }
 0xb10   : > { %v9999_v16 = vsel %vm1304_vm2, %v1960_v2, %v7218_v3  ;;  %v7219_v19 = vrot.slane %v2715_v47, 6 }
 0xb11   : > { %13342 = vst [vmem:[#allocation44_spill] sm:$0xff] %v9999_v16  ;;  %v10001_v14 = vpop.f32.mrf.mxu1 }
 0xb12   : > { %v10004_v17 = vsel %vm1304_vm2, %v1961_v36, %v7219_v19 }
 0xb13   : > { %13343 = vst [vmem:[#allocation46_spill] sm:$0xff] %v10004_v17  ;;  %v10006_v27 = vpop.f32.mrf.mxu1 }
 0xb15   : > { %v10008_v7 = vpop.f32.mrf.mxu1 }
 0xb17   : > { %v10010_v46 = vpop.f32.mrf.mxu1 }
 0xb19   : > { %v10012_v62 = vpop.f32.mrf.mxu1 }
 0xb1a   : > { %v3006_v21 = vmax.f32 %v10001_v14, %v10012_v62 }
 0xb1b   : > { %v10014_v32 = vpop.f32.mrf.mxu1 }
 0xb1c   : > { %v3043_v47 = vmax.f32 %v10006_v27, %v10014_v32 }
 0xb1d   : > { %v10016_v0 = vpop.f32.mrf.mxu1 }
 0xb1e   : > { %v3007_v30 = vmax.f32 %v10008_v7, %v10016_v0 }
 0xb1f   : > { %v10018_v4 = vpop.f32.mrf.mxu1 }
 0xb20   : > { %v3044_v2 = vmax.f32 %v10010_v46, %v10018_v4 }
 0xb21   : > { %v10020_v55 = vpop.f32.mrf.mxu1 }
 0xb22   : > { %v3008_v63 = vmax.f32 %v3006_v21, %v10020_v55 }
 0xb23   : > { %v10022_v52 = vpop.f32.mrf.mxu1 }
 0xb24   : > { %v3045_v17 = vmax.f32 %v3043_v47, %v10022_v52 }
 0xb25   : > { %v10024_v45 = vpop.f32.mrf.mxu1 }
 0xb26   : > { %13344 = vst [vmem:[#allocation48_spill] sm:$0xff] %v10024_v45  ;;  %v3009_v3 = vmax.f32 %v3007_v30, %v10024_v45 }
 0xb27   : > { %v10026_v43 = vpop.f32.mrf.mxu1 }
 0xb28   : > { %v3046_v36 = vmax.f32 %v3044_v2, %v10026_v43 }
 0xb29   : > { %v10028_v11 = vpop.f32.mrf.mxu1 }
 0xb2a   : > { %v3010_v16 = vmax.f32 %v3008_v63, %v10028_v11 }
 0xb2b   : > { %v10030_v23 = vpop.f32.mrf.mxu1 }
 0xb2c   : > { %v3047_v15 = vmax.f32 %v3045_v17, %v10030_v23 }
 0xb2d   : > { %v10032_v51 = vpop.f32.mrf.mxu1 }
 0xb2e   : > { %13345 = vst [vmem:[#allocation37_spill] sm:$0xff] %v10032_v51  ;;  %v3011_v19 = vmax.f32 %v3009_v3, %v10032_v51 }
 0xb2f   : > { %v10034_v40 = vpop.f32.mrf.mxu1 }
 0xb30   : > { %v3048_v20 = vmax.f32 %v3046_v36, %v10034_v40 }
 0xb31   : > { %v10036_v18 = vpop.f32.mrf.mxu1 }
 0xb32   : > { %v3012_v21 = vmax.f32 %v3010_v16, %v10036_v18 }
 0xb33   : > { %v10038_v54 = vpop.f32.mrf.mxu1 }
 0xb34   : > { %v3049_v47 = vmax.f32 %v3047_v15, %v10038_v54 }
 0xb35   : > { %v10040_v61 = vpop.f32.mrf.mxu1 }
 0xb36   : > { %13346 = vst [vmem:[#allocation39_spill] sm:$0xff] %v10040_v61  ;;  %v3013_v30 = vmax.f32 %v3011_v19, %v10040_v61 }
 0xb37   : > { %v10042_v59 = vpop.f32.mrf.mxu1 }
 0xb38   : > { %13347 = vst [vmem:[#allocation41_spill] sm:$0xff] %v10042_v59  ;;  %v3050_v2 = vmax.f32 %v3048_v20, %v10042_v59 }
 0xb39   : > { %v10044_v25 = vpop.f32.mrf.mxu1 }
 0xb3a   : > { %v3014_v63 = vmax.f32 %v3012_v21, %v10044_v25 }
 0xb3b   : > { %v10046_v39 = vpop.f32.mrf.mxu1 }
 0xb3c   : > { %v3051_v17 = vmax.f32 %v3049_v47, %v10046_v39 }
 0xb3d   : > { %v10048_v6 = vpop.f32.mrf.mxu1 }
 0xb3e   : > { %v3015_v3 = vmax.f32 %v3013_v30, %v10048_v6 }
 0xb3f   : > { %v10050_v28 = vpop.f32.mrf.mxu1 }
 0xb40   : > { %v3052_v36 = vmax.f32 %v3050_v2, %v10050_v28 }
 0xb41   : > { %v10052_v9 = vpop.f32.mrf.mxu1 }
 0xb42   : > { %13348 = vst [vmem:[#allocation43_spill] sm:$0xff] %v10052_v9  ;;  %v3016_v16 = vmax.f32 %v3014_v63, %v10052_v9 }
 0xb43   : > { %v10054_v37 = vpop.f32.mrf.mxu1 }
 0xb44   : > { %v3053_v15 = vmax.f32 %v3051_v17, %v10054_v37 }
 0xb45   : > { %v10056_v49 = vpop.f32.mrf.mxu1 }
 0xb46   : > { %13349 = vst [vmem:[#allocation45_spill] sm:$0xff] %v10056_v49  ;;  %v3017_v19 = vmax.f32 %v3015_v3, %v10056_v49 }
 0xb47   : > { %v10058_v48 = vpop.f32.mrf.mxu1 }
 0xb48   : > { %v3054_v20 = vmax.f32 %v3052_v36, %v10058_v48 }
 0xb49   : > { %v10060_v1 = vpop.f32.mrf.mxu1 }
 0xb4a   : > { %v3018_v21 = vmax.f32 %v3016_v16, %v10060_v1 }
 0xb4b   : > { %v10062_v13 = vpop.f32.mrf.mxu1 }
 0xb4c   : > { %v3055_v47 = vmax.f32 %v3053_v15, %v10062_v13 }
 0xb4d   : > { %v10064_v57 = vpop.f32.mrf.mxu1 }
 0xb4e   : > { %v3019_v30 = vmax.f32 %v3017_v19, %v10064_v57 }
 0xb4f   : > { %v10066_v50 = vpop.f32.mrf.mxu1 }
 0xb50   : > { %v3056_v2 = vmax.f32 %v3054_v20, %v10066_v50 }
 0xb51   : > { %v10068_v58 = vpop.f32.mrf.mxu1 }
 0xb52   : > { %v3020_v63 = vmax.f32 %v3018_v21, %v10068_v58 }
 0xb53   : > { %v10070_v33 = vpop.f32.mrf.mxu1 }
 0xb54   : > { %v3057_v17 = vmax.f32 %v3055_v47, %v10070_v33 }
 0xb55   : > { %v10072_v31 = vpop.f32.mrf.mxu1 }
 0xb56   : > { %13350 = vst [vmem:[#allocation47_spill] sm:$0xff] %v10072_v31  ;;  %v3021_v3 = vmax.f32 %v3019_v30, %v10072_v31 }
 0xb57   : > { %v10074_v42 = vpop.f32.mrf.mxu1 }
 0xb58   : > { %13351 = vst [vmem:[#allocation49_spill] sm:$0xff] %v10074_v42  ;;  %v3058_v36 = vmax.f32 %v3056_v2, %v10074_v42 }
 0xb59   : > { %v10076_v41 = vpop.f32.mrf.mxu1 }
 0xb5a   : > { %v3022_v16 = vmax.f32 %v3020_v63, %v10076_v41 }
 0xb5b   : > { %v10078_v5 = vpop.f32.mrf.mxu1 }
 0xb5c   : > { %v3059_v15 = vmax.f32 %v3057_v17, %v10078_v5 }
 0xb5d   : > { %v10080_v56 = vpop.f32.mrf.mxu1 }
 0xb5e   : > { %v3023_v19 = vmax.f32 %v3021_v3, %v10080_v56 }
 0xb5f   : > { %v10082_v38 = vpop.f32.mrf.mxu1 }
 0xb60   : > { %13352 = vst [vmem:[#allocation20_spill] sm:$0xff] %v10082_v38  ;;  %v3060_v20 = vmax.f32 %v3058_v36, %v10082_v38 }
 0xb61   : > { %v10084_v22 = vpop.f32.mrf.mxu1 }
 0xb62   : > { %v3024_v21 = vmax.f32 %v3022_v16, %v10084_v22 }
 0xb63   : > { %v10086_v24 = vpop.f32.mrf.mxu1 }
 0xb64   : > { %13353 = vst [vmem:[#allocation24_spill] sm:$0xff] %v10086_v24  ;;  %v3061_v47 = vmax.f32 %v3059_v15, %v10086_v24 }
 0xb65   : > { %v10088_v29 = vpop.f32.mrf.mxu1 }
 0xb66   : > { %v3025_v30 = vmax.f32 %v3023_v19, %v10088_v29 }
 0xb67   : > { %v10090_v12 = vpop.f32.mrf.mxu1 }
 0xb68   : > { %13354 = vst [vmem:[#allocation25_spill] sm:$0xff] %v10090_v12  ;;  %v3062_v2 = vmax.f32 %v3060_v20, %v10090_v12 }
 0xb69   : > { %v10092_v10 = vpop.f32.mrf.mxu1 }
 0xb6a   : > { %v3026_v63 = vmax.f32 %v3024_v21, %v10092_v10 }
 0xb6b   : > { %v10094_v34 = vpop.f32.mrf.mxu1 }
 0xb6c   : > { %13355 = vst [vmem:[#allocation26_spill] sm:$0xff] %v10094_v34  ;;  %v3063_v17 = vmax.f32 %v3061_v47, %v10094_v34 }
 0xb6d   : > { %v10096_v53 = vpop.f32.mrf.mxu1 }
 0xb6e   : > { %v3027_v3 = vmax.f32 %v3025_v30, %v10096_v53 }
 0xb6f   : > { %v10098_v35 = vpop.f32.mrf.mxu1 }
 0xb70   : > { %13356 = vst [vmem:[#allocation27_spill] sm:$0xff] %v10098_v35  ;;  %v3064_v36 = vmax.f32 %v3062_v2, %v10098_v35 }
 0xb71   : > { %v10100_v60 = vpop.f32.mrf.mxu1 }
 0xb72   : > { %v3028_v16 = vmax.f32 %v3026_v63, %v10100_v60 }
 0xb73   : > { %v10106_v44 = vpop.f32.mrf.mxu1 }
 0xb74   : > { %13357 = vst [vmem:[#allocation28_spill] sm:$0xff] %v10106_v44  ;;  %v3065_v15 = vmax.f32 %v3063_v17, %v10106_v44 }
 0xb75   : > { %v10114_v26 = vpop.f32.mrf.mxu1 }
 0xb76   : > { %v3029_v19 = vmax.f32 %v3027_v3, %v10114_v26 }
 0xb77   : > { %v10120_v8 = vpop.f32.mrf.mxu1 }
 0xb78   : > { %13358 = vst [vmem:[#allocation21_spill] sm:$0xff] %v10120_v8  ;;  %v3066_v20 = vmax.f32 %v3064_v36, %v10120_v8 }
 0xb79   : > { %v10126_v45 = vpop.f32.mrf.mxu1 }
 0xb7a   : > { %v3030_v21 = vmax.f32 %v3028_v16, %v10126_v45 }
 0xb7b   : > { %v10132_v51 = vpop.f32.mrf.mxu1 }
 0xb7c   : > { %13359 = vst [vmem:[#allocation22_spill] sm:$0xff] %v10132_v51  ;;  %v3067_v47 = vmax.f32 %v3065_v15, %v10132_v51 }
 0xb7d   : > { %v10138_v61 = vpop.f32.mrf.mxu1 }
 0xb7e   : > { %v3031_v30 = vmax.f32 %v3029_v19, %v10138_v61 }
 0xb7f   : > { %v10144_v59 = vpop.f32.mrf.mxu1 }
 0xb80   : > { %13360 = vst [vmem:[#allocation23_spill] sm:$0xff] %v10144_v59  ;;  %v3068_v2 = vmax.f32 %v3066_v20, %v10144_v59 }
 0xb81   : > { %v10150_v49 = vpop.f32.mrf.mxu1 }
 0xb82   : > { %v3032_v63 = vmax.f32 %v3030_v21, %v10150_v49 }
 0xb83   : > { %v10156_v9 = vpop.f32.mrf.mxu1 }
 0xb84   : > { %13361 = vst [vmem:[#allocation29_spill] sm:$0xff] %v10156_v9  ;;  %v3069_v17 = vmax.f32 %v3067_v47, %v10156_v9 }
 0xb85   : > { %v10162_v31 = vpop.f32.mrf.mxu1 }
 0xb86   : > { %13362 = vst [vmem:[#allocation30_spill] sm:$0xff] %v10162_v31  ;;  %v3033_v3 = vmax.f32 %v3031_v30, %v10162_v31 }
 0xb87   : > { %v10168_v42 = vpop.f32.mrf.mxu1 }
 0xb88   : > { %13363 = vst [vmem:[#allocation32_spill] sm:$0xff] %v10168_v42  ;;  %v3070_v36 = vmax.f32 %v3068_v2, %v10168_v42 }
 0xb89   : > { %v10174_v38 = vpop.f32.mrf.mxu1 }
 0xb8a   : > { %v3034_v16 = vmax.f32 %v3032_v63, %v10174_v38 }
 0xb8b   : > { %v10180_v12 = vpop.f32.mrf.mxu1 }
 0xb8c   : > { %v3071_v30 = vmax.f32 %v3069_v17, %v10180_v12 }
 0xb8d   : > { %v10186_v35 = vpop.f32.mrf.mxu1 }
 0xb8e   : > { %v3035_v19 = vmax.f32 %v3033_v3, %v10186_v35 }
 0xb8f   : > { %v10192_v8 = vpop.f32.mrf.mxu1 }
 0xb90   : > { %v3072_v20 = vmax.f32 %v3070_v36, %v10192_v8  ;;  %v3036_v31 = vmax.f32 %v3034_v16, %v3035_v19 }
 0xb92   : > { %v3073_v15 = vmax.f32 %v3071_v30, %v3072_v20  ;;  %v3037_v59 = vrot.slane %v3036_v31, 4  ;;  %v13365_v20 = vld [vmem:[#allocation37_spill] sm:$0xff] }
 0xb94   : > { %v3074_v21 = vrot.slane %v3073_v15, 4  ;;  %v3038_v51 = vmax.f32 %v3036_v31, %v3037_v59 }
 0xb96   : > { %v3075_v44 = vmax.f32 %v3073_v15, %v3074_v21  ;;  %v3039_v34 = vrot.slane %v3038_v51, 2 }
 0xb98   : > { %v3076_v2 = vrot.slane %v3075_v44, 2  ;;  %v3040_v42 = vmax.f32 %v3038_v51, %v3039_v34 }
 0xb9a   : > { %v3077_v3 = vmax.f32 %v3075_v44, %v3076_v2  ;;  %v3041_v24 = vrot.slane %v3040_v42, 1 }
 0xb9c   : > { %v3078_v47 = vrot.slane %v3077_v3, 1  ;;  %v10196_v9 = vmax.f32 %v3040_v42, %v3041_v24 }
 0xb9e   : > { %v10198_v63 = vmax.f32 %v3077_v3, %v3078_v47  ;;  %v3080_v36 = vsub.f32 %v10001_v14, %v10196_v9  ;;  %v3082_v19 = vsub.f32 %v10008_v7, %v10196_v9  ;;  %v3084_v59 = vsub.f32 %v10012_v62, %v10196_v9  ;;  %v13366_v47 = vld [vmem:[#allocation39_spill] sm:$0xff] }
 0xb9f   : > { %v3086_v31 = vsub.f32 %v10016_v0, %v10196_v9  ;;  %v3124_v51 = vsub.f32 %v10092_v10, %v10196_v9  ;;  %v3126_v42 = vsub.f32 %v10096_v53, %v10196_v9  ;;  %v3128_v24 = vsub.f32 %v10100_v60, %v10196_v9 }
 0xba0   : > { %v3130_v14 = vsub.f32 %v10114_v26, %v10196_v9  ;;  %v3132_v7 = vsub.f32 %v10126_v45, %v10196_v9  ;;  %v3134_v62 = vsub.f32 %v10138_v61, %v10196_v9  ;;  %v3081_v0 = vsub.f32 %v10006_v27, %v10198_v63  ;;  %v13364_v45 = vld [vmem:[#allocation48_spill] sm:$0xff] }
 0xba1   : > { %v3083_v10 = vsub.f32 %v10010_v46, %v10198_v63  ;;  %v3085_v34 = vsub.f32 %v10014_v32, %v10198_v63  ;;  %v3087_v53 = vsub.f32 %v10018_v4, %v10198_v63  ;;  %v3088_v60 = vsub.f32 %v10020_v55, %v10196_v9 }
 0xba2   : > { %v3090_v44 = vsub.f32 %v13364_v45, %v10196_v9  ;;  %v3089_v61 = vsub.f32 %v10022_v52, %v10198_v63  ;;  %v3091_v27 = vsub.f32 %v10026_v43, %v10198_v63  ;;  %v10236_v26 = vpack.c.bf16 %v3126_v42, %v3124_v51 }
 0xba3   : > { %v10238_v46 = vpack.c.bf16 %v3130_v14, %v3128_v24  ;;  %v3144_v32 = vpack.c.bf16 %v3082_v19, %v3080_v36  ;;  %v3146_v17 = vpack.c.bf16 %v3086_v31, %v3084_v59  ;;  %v10240_v16 = vpack.c.bf16 %v3134_v62, %v3132_v7 }
 0xba4   : > { %v3145_v4 = vpack.c.bf16 %v3083_v10, %v3081_v0  ;;  %v3092_v55 = vsub.f32 %v10028_v11, %v10196_v9  ;;  %v3094_v30 = vsub.f32 %v13365_v20, %v10196_v9  ;;  %v3147_v15 = vpack.c.bf16 %v3087_v53, %v3085_v34 }
 0xba5   : > { %v3148_v52 = vpack.c.bf16 %v3090_v44, %v3088_v60  ;;  %v3096_v43 = vsub.f32 %v10036_v18, %v10196_v9  ;;  %v3093_v21 = vsub.f32 %v10030_v23, %v10198_v63  ;;  %v3095_v2 = vsub.f32 %v10034_v40, %v10198_v63  ;;  %v13367_v40 = vld [vmem:[#allocation41_spill] sm:$0xff] }
 0xba6   : > { %v3149_v3 = vpack.c.bf16 %v3091_v27, %v3089_v61  ;;  %v3098_v36 = vsub.f32 %v13366_v47, %v10196_v9  ;;  %v3177_v19 = vmul.bf16 1069105081, %v3144_v32  ;;  %v3180_v11 = vmul.bf16 1069105081, %v3145_v4  ;;  %v13368_v61 = vld [vmem:[#allocation43_spill] sm:$0xff] }
 0xba7   : > { %v3183_v59 = vmul.bf16 1069105081, %v3146_v17  ;;  %v3100_v31 = vsub.f32 %v10044_v25, %v10196_v9  ;;  %v3102_v51 = vsub.f32 %v10048_v6, %v10196_v9  ;;  %v3150_v18 = vpack.c.bf16 %v3094_v30, %v3092_v55  ;;  %v13369_v17 = vld [vmem:[#allocation45_spill] sm:$0xff] }
 0xba8   : > { %v3186_v42 = vmul.bf16 1069105081, %v3147_v15  ;;  %v3097_v23 = vsub.f32 %v10038_v54, %v10198_v63  ;;  %v3099_v24 = vsub.f32 %v13367_v40, %v10198_v63  ;;  %8039 = vpow.bf16 %v3177_v19  ;;  %v13371_v40 = vld [vmem:[#allocation49_spill] sm:$0xff] }
 0xba9   : > { %v3189_v14 = vmul.bf16 1069105081, %v3148_v52  ;;  %v3108_v7 = vsub.f32 %v10060_v1, %v10196_v9  ;;  %v3151_v62 = vpack.c.bf16 %v3095_v2, %v3093_v21  ;;  %8041 = vpow.bf16 %v3180_v11  ;;  %v13370_v2 = vld [vmem:[#allocation47_spill] sm:$0xff] }
 0xbaa   : > { %v3192_v0 = vmul.bf16 1069105081, %v3149_v3  ;;  %v3110_v25 = vsub.f32 %v10064_v57, %v10196_v9  ;;  %v3101_v6 = vsub.f32 %v10046_v39, %v10198_v63  ;;  %v3103_v54 = vsub.f32 %v10050_v28, %v10198_v63 }
 0xbab   : > { %8043 = vpow.bf16 %v3183_v59  ;;  %v3109_v10 = vsub.f32 %v10062_v13, %v10198_v63  ;;  %v3111_v34 = vsub.f32 %v10066_v50, %v10198_v63  ;;  %v3152_v1 = vpack.c.bf16 %v3098_v36, %v3096_v43 }
 0xbac   : > { %8045 = vpow.bf16 %v3186_v42  ;;  %v3105_v53 = vsub.f32 %v10054_v37, %v10198_v63  ;;  %v3153_v60 = vpack.c.bf16 %v3099_v24, %v3097_v23  ;;  %v3195_v57 = vmul.bf16 1069105081, %v3150_v18 }
 0xbad   : > { %8047 = vpow.bf16 %v3189_v14  ;;  %v3107_v39 = vsub.f32 %v10058_v48, %v10198_v63  ;;  %v3154_v45 = vpack.c.bf16 %v3102_v51, %v3100_v31  ;;  %v3198_v28 = vmul.bf16 1069105081, %v3151_v62 }
 0xbae   : > { %8049 = vpow.bf16 %v3192_v0  ;;  %v3140_v13 = vsub.f32 %v10174_v38, %v10196_v9  ;;  %v3155_v44 = vpack.c.bf16 %v3103_v54, %v3101_v6  ;;  %v3142_v50 = vsub.f32 %v10186_v35, %v10196_v9 }
 0xbaf   : > { %v3104_v27 = vsub.f32 %v13368_v61, %v10196_v9  ;;  %v3159_v37 = vpack.c.bf16 %v3111_v34, %v3109_v10  ;;  %v3201_v32 = vmul.bf16 1069105081, %v3152_v1  ;;  %v3106_v4 = vsub.f32 %v13369_v17, %v10196_v9  ;;  %v13374_v17 = vld [vmem:[#allocation25_spill] sm:$0xff] }
 0xbb0   : > { %v3158_v55 = vpack.c.bf16 %v3110_v25, %v3108_v7  ;;  %8051 = vpow.bf16 %v3195_v57  ;;  %v3204_v48 = vmul.bf16 1069105081, %v3153_v60  ;;  %v3157_v20 = vpack.c.bf16 %v3107_v39, %v3105_v53 }
 0xbb1   : > { %8053 = vpow.bf16 %v3198_v28  ;;  %v3207_v30 = vmul.bf16 1069105081, %v3154_v45  ;;  %v3210_v15 = vmul.bf16 1069105081, %v3155_v44  ;;  %v3222_v38 = vmul.bf16 1069105081, %v3159_v37 }
 0xbb2   : > { %8055 = vpow.bf16 %v3201_v32  ;;  %v10286_v52 = vpack.c.bf16 %v3142_v50, %v3140_v13  ;;  %v3156_v35 = vpack.c.bf16 %v3106_v4, %v3104_v27  ;;  %v3219_v43 = vmul.bf16 1069105081, %v3158_v55  ;;  %v13373_v37 = vld [vmem:[#allocation24_spill] sm:$0xff] }
 0xbb3   : > { %8057 = vpow.bf16 %v3204_v48  ;;  %v3112_v21 = vsub.f32 %v10068_v58, %v10196_v9  ;;  %v3114_v3 = vsub.f32 %v13370_v2, %v10196_v9  ;;  %v3216_v47 = vmul.bf16 1069105081, %v3157_v20 }
 0xbb4   : > { %8059 = vpow.bf16 %v3207_v30  ;;  %v3116_v19 = vsub.f32 %v10076_v41, %v10196_v9  ;;  %v3118_v11 = vsub.f32 %v10080_v56, %v10196_v9  ;;  %v3120_v59 = vsub.f32 %v10084_v22, %v10196_v9 }
 0xbb5   : > { %8061 = vpow.bf16 %v3210_v15  ;;  %v3113_v58 = vsub.f32 %v10070_v33, %v10198_v63  ;;  %v3213_v41 = vmul.bf16 1069105081, %v3156_v35  ;;  %v3115_v24 = vsub.f32 %v13371_v40, %v10198_v63 }
 0xbb6   : > { %v10292_v36 = vpop.eup %8039  ;;  %8063 = vpow.bf16 %v3222_v38  ;;  %v3141_v62 = vsub.f32 %v10180_v12, %v10198_v63  ;;  %v3143_v0 = vsub.f32 %v10192_v8, %v10198_v63  ;;  %v3122_v10 = vsub.f32 %v10088_v29, %v10196_v9  ;;  %v13372_v8 = vld [vmem:[#allocation20_spill] sm:$0xff] }
 0xbb7   : > { %v10300_v31 = vpop.eup %8041  ;;  %v3272_v51 = vunpack.c.l.bf16 %v10292_v36  ;;  %v3274_v18 = vunpack.c.h.bf16 %v10292_v36  ;;  %8065 = vpow.bf16 %v3219_v43  ;;  %v3117_v34 = vsub.f32 %v10078_v5, %v10198_v63 }
 0xbb8   : > { %v3273_v56 = vunpack.c.l.bf16 %v10300_v31  ;;  %v3275_v23 = vunpack.c.h.bf16 %v10300_v31  ;;  %8067 = vpow.bf16 %v3216_v47  ;;  %v3160_v60 = vpack.c.bf16 %v3114_v3, %v3112_v21 }
 0xbb9   : > { %v10306_v42 = vpop.eup %8043  ;;  %v3336_v14 = vadd.f32 %v3274_v18, %v3272_v51  ;;  %8069 = vpow.bf16 %v3213_v41  ;;  %v3119_v39 = vsub.f32 %v13372_v8, %v10198_v63  ;;  %v3161_v45 = vpack.c.bf16 %v3115_v24, %v3113_v58  ;;  %v13375_v58 = vld [vmem:[#allocation26_spill] sm:$0xff]  ;;  %v13376_v18 = vld [vmem:[#allocation27_spill] sm:$0xff] }
 0xbba   : > { %v10310_v22 = vpop.eup %8045  ;;  %v3276_v33 = vunpack.c.l.bf16 %v10306_v42  ;;  %v3373_v6 = vadd.f32 %v3275_v23, %v3273_v56  ;;  %v3278_v1 = vunpack.c.h.bf16 %v10306_v42  ;;  %v3136_v5 = vsub.f32 %v10150_v49, %v10196_v9 }
 0xbbb   : > { %v10315_v7 = vpop.eup %8047  ;;  %v3277_v25 = vunpack.c.l.bf16 %v10310_v22  ;;  %v3279_v12 = vunpack.c.h.bf16 %v10310_v22  ;;  %v10337_v29 = vpack.c.bf16 %v3143_v0, %v3141_v62  ;;  %v3121_v32 = vsub.f32 %v13373_v37, %v10198_v63 }
 0xbbc   : > { %v10322_v54 = vpop.eup %8049  ;;  %v3337_v53 = vadd.f32 %v3336_v14, %v3276_v33  ;;  %v3280_v28 = vunpack.c.l.bf16 %v10315_v7  ;;  %v3123_v4 = vsub.f32 %v13374_v17, %v10198_v63  ;;  %v3282_v55 = vunpack.c.h.bf16 %v10315_v7 }
 0xbbd   : > { %v3374_v57 = vadd.f32 %v3373_v6, %v3277_v25  ;;  %v3281_v50 = vunpack.c.l.bf16 %v10322_v54  ;;  %v3162_v20 = vpack.c.bf16 %v3118_v11, %v3116_v19  ;;  %v3225_v30 = vmul.bf16 1069105081, %v3160_v60 }
 0xbbe   : > { %v3338_v13 = vadd.f32 %v3337_v53, %v3278_v1  ;;  %v10333_v44 = vpop.eup %8051  ;;  %v3283_v15 = vunpack.c.h.bf16 %v10322_v54  ;;  %v3163_v43 = vpack.c.bf16 %v3119_v39, %v3117_v34  ;;  %v3228_v21 = vmul.bf16 1069105081, %v3161_v45 }
 0xbbf   : > { %v3375_v61 = vadd.f32 %v3374_v57, %v3279_v12  ;;  %v10340_v27 = vpop.eup %8053  ;;  %v3284_v2 = vunpack.c.l.bf16 %v10333_v44  ;;  %v3125_v51 = vsub.f32 %v13375_v58, %v10198_v63  ;;  %v3127_v41 = vsub.f32 %v13376_v18, %v10198_v63  ;;  %v13378_v12 = vld [vmem:[#allocation21_spill] sm:$0xff]  ;;  %v13382_v58 = vld [vmem:[#allocation32_spill] sm:$0xff] }
 0xbc0   : > { %v3339_v48 = vadd.f32 %v3338_v13, %v3280_v28  ;;  %v10348_v35 = vpop.eup %8055  ;;  %v3285_v19 = vunpack.c.l.bf16 %v10340_v27  ;;  %v3164_v23 = vpack.c.bf16 %v3122_v10, %v3120_v59  ;;  %v3165_v40 = vpack.c.bf16 %v3123_v4, %v3121_v32  ;;  %v13377_v59 = vld [vmem:[#allocation28_spill] sm:$0xff]  ;;  %v13379_v28 = vld [vmem:[#allocation22_spill] sm:$0xff] }
 0xbc1   : > { %v3376_v38 = vadd.f32 %v3375_v61, %v3281_v50  ;;  %v10351_v47 = vpop.eup %8057  ;;  %v3286_v24 = vunpack.c.h.bf16 %v10333_v44  ;;  %8071 = vpow.bf16 %v3225_v30  ;;  %v3231_v62 = vmul.bf16 1069105081, %v3162_v20 }
 0xbc2   : > { %v3340_v3 = vadd.f32 %v3339_v48, %v3282_v55  ;;  %v10358_v56 = vpop.eup %8059  ;;  %v3287_v0 = vunpack.c.h.bf16 %v10340_v27  ;;  %8073 = vpow.bf16 %v3228_v21  ;;  %v3234_v34 = vmul.bf16 1069105081, %v3163_v43  ;;  %v13381_v43 = vld [vmem:[#allocation29_spill] sm:$0xff] }
 0xbc3   : > { %v3377_v11 = vadd.f32 %v3376_v38, %v3283_v15  ;;  %v8062_v14 = vpop.eup %8061  ;;  %v3288_v1 = vunpack.c.l.bf16 %v10348_v35  ;;  %v3129_v10 = vsub.f32 %v13377_v59, %v10198_v63  ;;  %v3131_v57 = vsub.f32 %v13378_v12, %v10198_v63  ;;  %v13380_v15 = vld [vmem:[#allocation23_spill] sm:$0xff] }
 0xbc4   : > { %v3341_v33 = vadd.f32 %v3340_v3, %v3284_v2  ;;  %v10362_v6 = vpop.eup %8063  ;;  %v3289_v8 = vunpack.c.l.bf16 %v10351_v47  ;;  %v3133_v13 = vsub.f32 %v13379_v28, %v10198_v63  ;;  %v3167_v50 = vpack.c.bf16 %v3127_v41, %v3125_v51 }
 0xbc5   : > { %v3378_v25 = vadd.f32 %v3377_v11, %v3285_v19  ;;  %v10365_v60 = vpop.eup %8065  ;;  %3417 = vmatprep.subr.bf16.mxu0 %v10362_v6  ;;  %v3290_v61 = vunpack.c.h.bf16 %v10348_v35  ;;  %8075 = vpow.bf16 %v3231_v62  ;;  %v3237_v32 = vmul.bf16 1069105081, %v3164_v23 }
 0xbc6   : > { %v3342_v53 = vadd.f32 %v3341_v33, %v3286_v24  ;;  %v8068_v45 = vpop.eup %8067  ;;  %3418 = vmatpush1.bf16.msra.mxu0 %v10365_v60  ;;  %v3291_v17 = vunpack.c.h.bf16 %v10351_v47  ;;  %8077 = vpow.bf16 %v3234_v34  ;;  %v3240_v55 = vmul.bf16 1069105081, %v3165_v40 }
 0xbc7   : > { %v3379_v39 = vadd.f32 %v3378_v25, %v3287_v0  ;;  %3419 = vmatprep.subr.bf16.mxu0 %v8068_v45  ;;  %v3292_v48 = vunpack.c.l.bf16 %v10358_v56  ;;  %v8070_v30 = vpop.eup %8069  ;;  %v3135_v38 = vsub.f32 %v13380_v15, %v10198_v63  ;;  %v3137_v21 = vsub.f32 %v13381_v43, %v10198_v63  ;;  %v13383_v0 = vld [vmem:[#allocation30_spill] sm:$0xff] }
 0xbc8   : > { %v3343_v37 = vadd.f32 %v3342_v53, %v3288_v1  ;;  %v3293_v2 = vunpack.c.l.bf16 %v8062_v14  ;;  %v3139_v51 = vsub.f32 %v13382_v58, %v10198_v63  ;;  %v3169_v18 = vpack.c.bf16 %v3131_v57, %v3129_v10 }
 0xbc9   : > { %v3380_v4 = vadd.f32 %v3379_v39, %v3289_v8  ;;  %v3294_v41 = vunpack.c.h.bf16 %v10358_v56  ;;  %8079 = vpow.bf16 %v3237_v32  ;;  %v3243_v11 = vmul.bf16 1069105081, %v10236_v26 }
 0xbca   : > { %v3344_v20 = vadd.f32 %v3343_v37, %v3290_v61  ;;  %3420 = vmatpush1.bf16.msra.mxu0 %v8070_v30  ;;  %v3295_v23 = vunpack.c.h.bf16 %v8062_v14  ;;  %8081 = vpow.bf16 %v3240_v55  ;;  %v3246_v24 = vmul.bf16 1069105081, %v3167_v50 }
 0xbcb   : > { %v3381_v3 = vadd.f32 %v3380_v4, %v3291_v17  ;;  %3421 = vmatprep.subr.bf16.mxu0 %v8062_v14  ;;  %v3296_v33 = vunpack.c.l.bf16 %v8070_v30  ;;  %v3138_v25 = vsub.f32 %v13383_v0, %v10196_v9  ;;  %v3270_v63 = vmul.bf16 1069105081, %v10337_v29 }
 0xbcc   : > { %v3345_v19 = vadd.f32 %v3344_v20, %v3292_v48  ;;  %v3297_v34 = vunpack.c.l.bf16 %v8068_v45  ;;  %v3171_v53 = vpack.c.bf16 %v3135_v38, %v3133_v13  ;;  %v3173_v59 = vpack.c.bf16 %v3139_v51, %v3137_v21 }
 0xbcd   : > { %v3382_v40 = vadd.f32 %v3381_v3, %v3293_v2  ;;  %v3298_v10 = vunpack.c.h.bf16 %v8070_v30  ;;  %8083 = vpow.bf16 %v3243_v11  ;;  %v3249_v26 = vmul.bf16 1069105081, %v10238_v46 }
 0xbce   : > { %v3346_v62 = vadd.f32 %v3345_v19, %v3294_v41  ;;  %3422 = vmatpush1.bf16.msra.mxu0 %v10358_v56  ;;  %v3299_v14 = vunpack.c.h.bf16 %v8068_v45  ;;  %8085 = vpow.bf16 %v3246_v24  ;;  %v3252_v8 = vmul.bf16 1069105081, %v3169_v18 }
 0xbcf   : > { %v3383_v1 = vadd.f32 %v3382_v40, %v3295_v23  ;;  %3423 = vmatprep.subr.bf16.mxu0 %v10351_v47  ;;  %v3300_v39 = vunpack.c.l.bf16 %v10365_v60  ;;  %v10394_v28 = vpop.eup %8071  ;;  %v3267_v13 = vmul.bf16 1069105081, %v10286_v52  ;;  %8087 = vpow.bf16 %v3270_v63 }
 0xbd0   : > { %v3347_v12 = vadd.f32 %v3346_v62, %v3296_v33  ;;  %v3301_v50 = vunpack.c.l.bf16 %v10362_v6  ;;  %v10398_v61 = vpop.eup %8073  ;;  %v3172_v46 = vpack.c.bf16 %v3138_v25, %v3136_v5  ;;  %v3255_v47 = vmul.bf16 1069105081, %v10240_v16 }
 0xbd1   : > { %v3384_v57 = vadd.f32 %v3383_v1, %v3297_v34  ;;  %v3302_v45 = vunpack.c.h.bf16 %v10365_v60  ;;  %8089 = vpow.bf16 %v3249_v26  ;;  %v3258_v32 = vmul.bf16 1069105081, %v3171_v53 }
 0xbd2   : > { %v3348_v29 = vadd.f32 %v3347_v12, %v3298_v10  ;;  %3424 = vmatpush1.bf16.msra.mxu0 %v10348_v35  ;;  %v3303_v52 = vunpack.c.h.bf16 %v10362_v6  ;;  %8091 = vpow.bf16 %v3252_v8  ;;  %v3264_v4 = vmul.bf16 1069105081, %v3173_v59 }
 0xbd3   : > { %v3385_v56 = vadd.f32 %v3384_v57, %v3299_v14  ;;  %3425 = vmatprep.subr.bf16.mxu0 %v10340_v27  ;;  %v3304_v55 = vunpack.c.l.bf16 %v10394_v28  ;;  %v10409_v49 = vpop.eup %8075  ;;  %8093 = vpow.bf16 %v3267_v13  ;;  %v3305_v16 = vunpack.c.l.bf16 %v10398_v61 }
 0xbd4   : > { %v3349_v37 = vadd.f32 %v3348_v29, %v3300_v39  ;;  %v10412_v60 = vpop.eup %8077  ;;  %8095 = vpow.bf16 %v3255_v47  ;;  %v3306_v35 = vunpack.c.h.bf16 %v10394_v28  ;;  %v3261_v27 = vmul.bf16 1069105081, %v3172_v46 }
 0xbd5   : > { %v3386_v17 = vadd.f32 %v3385_v56, %v3301_v50  ;;  %8097 = vpow.bf16 %v3258_v32  ;;  %v3307_v48 = vunpack.c.h.bf16 %v10398_v61  ;;  %v3308_v30 = vunpack.c.l.bf16 %v10409_v49 }
 0xbd6   : > { %v3350_v9 = vadd.f32 %v3349_v37, %v3302_v45  ;;  %3426 = vmatpush1.bf16.msra.mxu0 %v10333_v44  ;;  %8099 = vpow.bf16 %v3264_v4  ;;  %v3309_v43 = vunpack.c.l.bf16 %v10412_v60  ;;  %v3310_v44 = vunpack.c.h.bf16 %v10409_v49 }
 0xbd7   : > { %v3387_v5 = vadd.f32 %v3386_v17, %v3303_v52  ;;  %3427 = vmatprep.subr.bf16.mxu0 %v10322_v54  ;;  %v10419_v38 = vpop.eup %8079  ;;  %8101 = vpow.bf16 %v3261_v27  ;;  %v3311_v58 = vunpack.c.h.bf16 %v10412_v60 }
 0xbd8   : > { %v3351_v6 = vadd.f32 %v3350_v9, %v3304_v55  ;;  %v10422_v2 = vpop.eup %8081  ;;  %v3312_v51 = vunpack.c.l.bf16 %v10419_v38  ;;  %v3314_v40 = vunpack.c.h.bf16 %v10419_v38 }
 0xbd9   : > { %v3388_v20 = vadd.f32 %v3387_v5, %v3305_v16  ;;  %v3313_v19 = vunpack.c.l.bf16 %v10422_v2  ;;  %v3315_v33 = vunpack.c.h.bf16 %v10422_v2 }
 0xbda   : > { %v3352_v15 = vadd.f32 %v3351_v6, %v3306_v35  ;;  %3428 = vmatpush1.bf16.msra.mxu0 %v10315_v7 }
 0xbdb   : > { %v3389_v21 = vadd.f32 %v3388_v20, %v3307_v48  ;;  %3429 = vmatprep.subr.bf16.mxu0 %v10310_v22  ;;  %v10429_v41 = vpop.eup %8083 }
 0xbdc   : > { %v3353_v3 = vadd.f32 %v3352_v15, %v3308_v30  ;;  %v8086_v23 = vpop.eup %8085  ;;  %v3316_v22 = vunpack.c.l.bf16 %v10429_v41  ;;  %v3318_v53 = vunpack.c.h.bf16 %v10429_v41 }
 0xbdd   : > { %v3390_v54 = vadd.f32 %v3389_v21, %v3309_v43  ;;  %v10434_v7 = vpop.eup %8087  ;;  %v3317_v63 = vunpack.c.l.bf16 %v8086_v23  ;;  %v3319_v10 = vunpack.c.h.bf16 %v8086_v23 }
 0xbde   : > { %v3354_v18 = vadd.f32 %v3353_v3, %v3310_v44  ;;  %3430 = vmatpush1.bf16.msra.mxu0 %v10306_v42  ;;  %v3333_v43 = vunpack.c.l.bf16 %v10434_v7 }
 0xbdf   : > { %v3391_v11 = vadd.f32 %v3390_v54, %v3311_v58  ;;  %3431 = vmatprep.subr.bf16.mxu0 %v10300_v31  ;;  %v8090_v25 = vpop.eup %8089  ;;  %v3335_v58 = vunpack.c.h.bf16 %v10434_v7 }
 0xbe0   : > { %v3355_v24 = vadd.f32 %v3354_v18, %v3312_v51  ;;  %v8092_v1 = vpop.eup %8091  ;;  %v3320_v14 = vunpack.c.l.bf16 %v8090_v25  ;;  %v3322_v13 = vunpack.c.h.bf16 %v8090_v25 }
 0xbe1   : > { %v3392_v62 = vadd.f32 %v3391_v11, %v3313_v19  ;;  %v8094_v42 = vpop.eup %8093  ;;  %v3321_v8 = vunpack.c.l.bf16 %v8092_v1  ;;  %v3323_v56 = vunpack.c.h.bf16 %v8092_v1  ;;  %v13384_v19 = vld [vmem:[#allocation14_spill] sm:$0xff] }
 0xbe2   : > { %v3356_v0 = vadd.f32 %v3355_v24, %v3314_v40  ;;  %3432 = vmatpush1.bf16.msra.mxu0 %v10292_v36  ;;  %v8096_v26 = vpop.eup %8095  ;;  %v3332_v30 = vunpack.c.l.bf16 %v8094_v42  ;;  %v3334_v44 = vunpack.c.h.bf16 %v8094_v42  ;;  %v3508_v11 = vrot.slane %v13384_v19, 6  ;;  %v8448_v24 = vld [vmem:[#allocation4 + $0x20] sm:$0x33] }
 0xbe3   : > { %v3393_v34 = vadd.f32 %v3392_v62, %v3315_v33  ;;  %3433 = vmatprep.subr.bf16.mxu0 %v10434_v7  ;;  %v8098_v57 = vpop.eup %8097  ;;  %v3324_v36 = vunpack.c.l.bf16 %v8096_v26  ;;  %v3326_v52 = vunpack.c.h.bf16 %v8096_v26  ;;  %v7572_v7 = vcombine.low %v8448_v24, %v8448_v24 }
 0xbe4   : > { %v3357_v59 = vadd.f32 %v3356_v0, %v3316_v22  ;;  %v8100_v29 = vpop.eup %8099  ;;  %v3325_v37 = vunpack.c.l.bf16 %v8098_v57  ;;  %v3327_v4 = vunpack.c.h.bf16 %v8098_v57  ;;  %v3499_v0 = vpop.trf.xlu1 }
 0xbe5   : > { %v3394_v12 = vadd.f32 %v3393_v34, %v3317_v63  ;;  %v8102_v45 = vpop.eup %8101  ;;  %v3329_v5 = vunpack.c.l.bf16 %v8100_v29  ;;  %v3331_v48 = vunpack.c.h.bf16 %v8100_v29 }
 0xbe6   : > { %v3358_v31 = vadd.f32 %v3357_v59, %v3318_v53  ;;  %3434 = vmatpush2.bf16.msra.mxu0 %v8094_v42  ;;  %v3328_v9 = vunpack.c.l.bf16 %v8102_v45  ;;  %v3330_v6 = vunpack.c.h.bf16 %v8102_v45  ;;  %v4217_v42 = vld [vmem:[#allocation4 + $0x28] sm:$0x33] }
 0xbe7   : > { %v3395_v39 = vadd.f32 %v3394_v12, %v3319_v10  ;;  %3435 = vmatprep.subr.bf16.mxu0 %v8100_v29  ;;  %v7615_v12 = vcombine.high %v4217_v42, %v4217_v42 }
 0xbe8   : > { %v3359_v50 = vadd.f32 %v3358_v31, %v3320_v14 }
 0xbe9   : > { %v3396_v46 = vadd.f32 %v3395_v39, %v3321_v8 }
 0xbea   : > { %v3360_v47 = vadd.f32 %v3359_v50, %v3322_v13  ;;  %3436 = vmatpush2.bf16.msra.mxu0 %v8102_v45 }
 0xbeb   : > { %v3397_v32 = vadd.f32 %v3396_v46, %v3323_v56  ;;  %3437 = vmatprep.subr.bf16.mxu0 %v8098_v57 }
 0xbec   : > { %v3361_v17 = vadd.f32 %v3360_v47, %v3324_v36 }
 0xbed   : > { %v3398_v55 = vadd.f32 %v3397_v32, %v3325_v37 }
 0xbee   : > { %v3362_v16 = vadd.f32 %v3361_v17, %v3326_v52  ;;  %3438 = vmatpush2.bf16.msra.mxu0 %v8096_v26 }
 0xbef   : > { %v3399_v35 = vadd.f32 %v3398_v55, %v3327_v4  ;;  %3439 = vmatprep.subr.bf16.mxu0 %v8092_v1 }
 0xbf0   : > { %v3363_v27 = vadd.f32 %v3362_v16, %v3328_v9 }
 0xbf1   : > { %v3400_v20 = vadd.f32 %v3399_v35, %v3329_v5 }
 0xbf2   : > { %v3364_v15 = vadd.f32 %v3363_v27, %v3330_v6  ;;  %3440 = vmatpush2.bf16.msra.mxu0 %v8090_v25  ;;  %v3500_v25 = vpop.trf.xlu1 }
 0xbf3   : > { %v3401_v21 = vadd.f32 %v3400_v20, %v3331_v48  ;;  %3441 = vmatprep.subr.bf16.mxu0 %v8086_v23  ;;  %v13385_v23 = vld [vmem:[#allocation13_spill] sm:$0xff] }
 0xbf4   : > { %v3365_v3 = vadd.f32 %v3364_v15, %v3332_v30  ;;  %v3507_v40 = vrot.slane %v13385_v23, 6 }
 0xbf5   : > { %v3402_v54 = vadd.f32 %v3401_v21, %v3333_v43 }
 0xbf6   : > { %v10444_v51 = vadd.f32 %v3365_v3, %v3334_v44  ;;  %3442 = vmatpush2.bf16.msra.mxu0 %v10429_v41  ;;  %v3501_v63 = vpop.trf.xlu1 }
 0xbf7   : > { %v10446_v18 = vadd.f32 %v3402_v54, %v3335_v58  ;;  %3443 = vmatprep.subr.bf16.mxu0 %v10422_v2  ;;  %v3558_v2 = vsel %vm1304_vm2, %v3507_v40, 0 }
 0xbf8   : > { %v3367_v26 = vrot.slane %v10444_v51, 4 }
 0xbf9   : > { %v3404_v14 = vrot.slane %v10446_v18, 4 }
 0xbfa   : > { %3444 = vmatpush2.bf16.msra.mxu0 %v10419_v38  ;;  %v13386_v38 = vmov 0   ;;  %v3502_v34 = vpop.trf.xlu1  ;;  %v3368_v31 = vadd.f32 %v3367_v26, %v10444_v51 }
 0xbfb   : > { %3445 = vmatprep.subr.bf16.mxu0 %v10412_v60  ;;  %v3483_v60 = vpop.trf.xlu0  ;;  %v3405_v57 = vadd.f32 %v3404_v14, %v10446_v18 }
 0xbfc   : > { %v3369_v8 = vrot.slane %v3368_v31, 2 }
 0xbfd   : > { %v3406_v39 = vrot.slane %v3405_v57, 2 }
 0xbfe   : > { %3446 = vmatpush2.bf16.msra.mxu0 %v10409_v49  ;;  %v3503_v1 = vpop.trf.xlu1  ;;  %v3370_v29 = vadd.f32 %v3369_v8, %v3368_v31 }
 0xbff   : > { %3447 = vmatprep.subr.bf16.mxu0 %v10398_v61  ;;  %v3484_v61 = vpop.trf.xlu0  ;;  %v3407_v13 = vadd.f32 %v3406_v39, %v3405_v57 }
 0xc00   : > { %v3371_v50 = vrot.slane %v3370_v29, 1 }
 0xc01   : > { %v3408_v56 = vrot.slane %v3407_v13, 1 }
 0xc02   : > { %3448 = vmatpush2.bf16.msra.mxu0 %v10394_v28  ;;  %v3504_v53 = vpop.trf.xlu1  ;;  %v3372_v46 = vadd.f32 %v3371_v50, %v3370_v29 }
 0xc03   : > { %7576 = vmatprep.subr.msk.bf16.mxu0 %vm1304_vm2, %v3508_v11  ;;  %v3485_v28 = vpop.trf.xlu0  ;;  %v3409_v36 = vadd.f32 %v3408_v56, %v3407_v13 }
 0xc04   : > { %8103 = vrcp.f32 %v3372_v46 }
 0xc05   : > { %3450 = vmatmul.mubr.bf16.vlgmr.msra.gmra.mxu0 %v7572_v7  ;;  %8105 = vrcp.f32 %v3409_v36 }
 0xc06   : > { %3578 = vmatpush1.bf16.msra.mxu0 %v3558_v2  ;;  %3595 = vmatprep.mubr.bf16.mxu0 %v13386_v38  ;;  %v3505_v59 = vpop.trf.xlu1 }
 0xc07   : > { %v3486_v49 = vpop.trf.xlu0 }
 0xc0a   : > { %v3506_v10 = vpop.trf.xlu1 }
 0xc0b   : > { %v3487_v41 = vpop.trf.xlu0 }
 0xc0d   : > { %7577 = vmatmul.mubr.msk.bf16.vlgmr.msra.gmra.mxu0 %vm1255_vm3, %v3483_v60 }
 0xc0e   : > { %3605 = vmatprep.mubr.bf16.mxu0 %v13386_v38 }
 0xc0f   : > { %v3488_v33 = vpop.trf.xlu0 }
 0xc11   : > { %v8104_v47 = vpop.eup %8103 }
 0xc12   : > { %v8106_v32 = vpop.eup %8105 }
 0xc13   : > { %v3489_v62 = vpop.trf.xlu0 }
 0xc15   : > { %7578 = vmatmul.mubr.msk.bf16.gmra.mxu0 %vm1255_vm3, %v3484_v61 }
 0xc16   : > { %3615 = vmatprep.mubr.bf16.mxu0 %v13386_v38 }
 0xc17   : > { %v3490_v22 = vpop.trf.xlu0 }
 0xc1d   : > { %7579 = vmatmul.mubr.msk.bf16.gmra.mxu0 %vm1255_vm3, %v3485_v28 }
 0xc1e   : > { %3625 = vmatprep.mubr.bf16.mxu0 %v13386_v38 }
 0xc25   : > { %7580 = vmatmul.mubr.msk.bf16.gmra.mxu0 %vm1255_vm3, %v3486_v49 }
 0xc26   : > { %3635 = vmatprep.mubr.bf16.mxu0 %v13386_v38 }
 0xc2d   : > { %7581 = vmatmul.mubr.msk.bf16.gmra.mxu0 %vm1255_vm3, %v3487_v41 }
 0xc2e   : > { %3645 = vmatprep.mubr.bf16.mxu0 %v13386_v38 }
 0xc35   : > { %7582 = vmatmul.mubr.msk.bf16.gmra.mxu0 %vm1255_vm3, %v3488_v33 }
 0xc36   : > { %3655 = vmatprep.mubr.bf16.mxu0 %v13386_v38 }
 0xc3d   : > { %7583 = vmatmul.mubr.msk.bf16.gmra.mxu0 %vm1255_vm3, %v3489_v62 }
 0xc3e   : > { %3665 = vmatprep.mubr.bf16.mxu0 %v13386_v38 }
 0xc45   : > { %7584 = vmatmul.mubr.msk.bf16.gmra.mxu0 %vm1255_vm3, %v3490_v22 }
 0xc46   : > { %3675 = vmatprep.mubr.bf16.mxu0 %v13386_v38 }
 0xc4d   : > { %7585 = vmatmul.mubr.msk.bf16.gmra.mxu0 %vm1255_vm3, %v3499_v0  ;;  %v13393_v0 = vld [vmem:[#allocation44_spill] sm:$0xff] }
 0xc4e   : > { %3685 = vmatprep.mubr.bf16.mxu0 %v13386_v38 }
 0xc55   : > { %7586 = vmatmul.mubr.msk.bf16.gmra.mxu0 %vm1255_vm3, %v3500_v25 }
 0xc56   : > { %3695 = vmatprep.mubr.bf16.mxu0 %v13386_v38 }
 0xc5d   : > { %7587 = vmatmul.mubr.msk.bf16.gmra.mxu0 %vm1255_vm3, %v3501_v63 }
 0xc5e   : > { %3705 = vmatprep.mubr.bf16.mxu0 %v13386_v38 }
 0xc65   : > { %7588 = vmatmul.mubr.msk.bf16.gmra.mxu0 %vm1255_vm3, %v3502_v34  ;;  %v13395_v34 = vld [vmem:[#allocation46_spill] sm:$0xff] }
 0xc66   : > { %3715 = vmatprep.mubr.bf16.mxu0 %v13386_v38 }
 0xc6d   : > { %7589 = vmatmul.mubr.msk.bf16.gmra.mxu0 %vm1255_vm3, %v3503_v1 }
 0xc6e   : > { %3725 = vmatprep.mubr.bf16.mxu0 %v13386_v38 }
 0xc75   : > { %7590 = vmatmul.mubr.msk.bf16.gmra.mxu0 %vm1255_vm3, %v3504_v53 }
 0xc76   : > { %3735 = vmatprep.mubr.bf16.mxu0 %v13386_v38 }
 0xc7d   : > { %7591 = vmatmul.mubr.msk.bf16.gmra.mxu0 %vm1255_vm3, %v3505_v59 }
 0xc7e   : > { %3745 = vmatprep.mubr.bf16.mxu0 %v13386_v38 }
 0xc85   : > { %7592 = vmatmul.mubr.msk.bf16.gmra.mxu0 %vm1255_vm3, %v3506_v10 }
 0xc86   : > { %4947 = vmatprep.mubr.bf16.mxu0 %v7615_v12 }
 0xcc5   : > { %v3451_v45 = vpop.f32.mrf.mxu0 }
 0xcc6   : > { %v3460_v37 = vmul.f32 %v8104_v47, %v3451_v45 }
 0xcc7   : > { %v3453_v52 = vpop.f32.mrf.mxu0 }
 0xcc8   : > { %v3461_v17 = vmul.f32 %v8106_v32, %v3453_v52  ;;  %v3462_v2 = vpack.c.bf16 %v3460_v37, %v3460_v37 }
 0xcc9   : > { %v3455_v4 = vpop.f32.mrf.mxu0 }
 0xcca   : > { %v3463_v61 = vpack.c.bf16 %v3461_v17, %v3461_v17  ;;  %v7222_v49 = vrot.slane %v3462_v2, 4 }
 0xccb   : > { %v3456_v55 = vpop.f32.mrf.mxu0 }
 0xccc   : > { %v7223_v33 = vrot.slane %v3463_v61, 4  ;;  %v10555_v25 = vsel %vm7246_vm4, %v13393_v0, %v7222_v49 }
 0xccd   : > { %v10495_v9 = vpop.f32.mrf.mxu0  ;;  %13394 = vst [vmem:[#allocation42_spill] sm:$0xff] %v10555_v25 }
 0xcce   : > { %v10561_v1 = vsel %vm7246_vm4, %v13395_v34, %v7223_v33 }
 0xccf   : > { %v10497_v16 = vpop.f32.mrf.mxu0  ;;  %13396 = vst [vmem:[#allocation40_spill] sm:$0xff] %v10561_v1 }
 0xcd1   : > { %v10499_v5 = vpop.f32.mrf.mxu0 }
 0xcd3   : > { %v10501_v35 = vpop.f32.mrf.mxu0 }
 0xcd5   : > { %v10503_v6 = vpop.f32.mrf.mxu0 }
 0xcd6   : > { %v3756_v32 = vmax.f32 %v10495_v9, %v10503_v6 }
 0xcd7   : > { %v10505_v27 = vpop.f32.mrf.mxu0 }
 0xcd8   : > { %v3793_v55 = vmax.f32 %v10497_v16, %v10505_v27 }
 0xcd9   : > { %v10507_v48 = vpop.f32.mrf.mxu0 }
 0xcda   : > { %v3757_v37 = vmax.f32 %v10499_v5, %v10507_v48 }
 0xcdb   : > { %v10509_v20 = vpop.f32.mrf.mxu0 }
 0xcdc   : > { %v3794_v17 = vmax.f32 %v10501_v35, %v10509_v20 }
 0xcdd   : > { %v10511_v30 = vpop.f32.mrf.mxu0 }
 0xcde   : > { %v3758_v2 = vmax.f32 %v3756_v32, %v10511_v30 }
 0xcdf   : > { %v10513_v15 = vpop.f32.mrf.mxu0 }
 0xce0   : > { %v3795_v0 = vmax.f32 %v3793_v55, %v10513_v15 }
 0xce1   : > { %v10515_v43 = vpop.f32.mrf.mxu0 }
 0xce2   : > { %13387 = vst [vmem:[#allocation33_spill] sm:$0xff] %v10515_v43  ;;  %v3759_v4 = vmax.f32 %v3757_v37, %v10515_v43 }
 0xce3   : > { %v10517_v21 = vpop.f32.mrf.mxu0 }
 0xce4   : > { %v3796_v49 = vmax.f32 %v3794_v17, %v10517_v21 }
 0xce5   : > { %v10519_v44 = vpop.f32.mrf.mxu0 }
 0xce6   : > { %v3760_v34 = vmax.f32 %v3758_v2, %v10519_v44 }
 0xce7   : > { %v10521_v3 = vpop.f32.mrf.mxu0 }
 0xce8   : > { %v3797_v38 = vmax.f32 %v3795_v0, %v10521_v3 }
 0xce9   : > { %v10523_v58 = vpop.f32.mrf.mxu0 }
 0xcea   : > { %13388 = vst [vmem:[#allocation31_spill] sm:$0xff] %v10523_v58  ;;  %v3761_v33 = vmax.f32 %v3759_v4, %v10523_v58 }
 0xceb   : > { %v10525_v54 = vpop.f32.mrf.mxu0 }
 0xcec   : > { %v3798_v25 = vmax.f32 %v3796_v49, %v10525_v54 }
 0xced   : > { %v10527_v51 = vpop.f32.mrf.mxu0 }
 0xcee   : > { %v3762_v32 = vmax.f32 %v3760_v34, %v10527_v51 }
 0xcef   : > { %v10529_v18 = vpop.f32.mrf.mxu0 }
 0xcf0   : > { %v3799_v55 = vmax.f32 %v3797_v38, %v10529_v18 }
 0xcf1   : > { %v10531_v19 = vpop.f32.mrf.mxu0 }
 0xcf2   : > { %13389 = vst [vmem:[#allocation34_spill] sm:$0xff] %v10531_v19  ;;  %v3763_v37 = vmax.f32 %v3761_v33, %v10531_v19 }
 0xcf3   : > { %v10533_v11 = vpop.f32.mrf.mxu0 }
 0xcf4   : > { %13390 = vst [vmem:[#allocation35_spill] sm:$0xff] %v10533_v11  ;;  %v3800_v17 = vmax.f32 %v3798_v25, %v10533_v11 }
 0xcf5   : > { %v10535_v23 = vpop.f32.mrf.mxu0 }
 0xcf6   : > { %v3764_v2 = vmax.f32 %v3762_v32, %v10535_v23 }
 0xcf7   : > { %v10537_v40 = vpop.f32.mrf.mxu0 }
 0xcf8   : > { %v3801_v0 = vmax.f32 %v3799_v55, %v10537_v40 }
 0xcf9   : > { %v10539_v24 = vpop.f32.mrf.mxu0 }
 0xcfa   : > { %v3765_v4 = vmax.f32 %v3763_v37, %v10539_v24 }
 0xcfb   : > { %v10541_v7 = vpop.f32.mrf.mxu0 }
 0xcfc   : > { %v3802_v49 = vmax.f32 %v3800_v17, %v10541_v7 }
 0xcfd   : > { %v10543_v60 = vpop.f32.mrf.mxu0 }
 0xcfe   : > { %13391 = vst [vmem:[#allocation36_spill] sm:$0xff] %v10543_v60  ;;  %v3766_v34 = vmax.f32 %v3764_v2, %v10543_v60 }
 0xcff   : > { %v10545_v28 = vpop.f32.mrf.mxu0 }
 0xd00   : > { %v3803_v38 = vmax.f32 %v3801_v0, %v10545_v28 }
 0xd01   : > { %v10547_v41 = vpop.f32.mrf.mxu0 }
 0xd02   : > { %13392 = vst [vmem:[#allocation38_spill] sm:$0xff] %v10547_v41  ;;  %v3767_v33 = vmax.f32 %v3765_v4, %v10547_v41 }
 0xd03   : > { %v10549_v62 = vpop.f32.mrf.mxu0 }
 0xd04   : > { %v3804_v25 = vmax.f32 %v3802_v49, %v10549_v62 }
 0xd05   : > { %v10551_v22 = vpop.f32.mrf.mxu0 }
 0xd06   : > { %v3768_v32 = vmax.f32 %v3766_v34, %v10551_v22 }
 0xd07   : > { %v10557_v63 = vpop.f32.mrf.mxu0 }
 0xd08   : > { %v3805_v55 = vmax.f32 %v3803_v38, %v10557_v63 }
 0xd09   : > { %v10563_v53 = vpop.f32.mrf.mxu0 }
 0xd0a   : > { %v3769_v37 = vmax.f32 %v3767_v33, %v10563_v53 }
 0xd0b   : > { %v10565_v59 = vpop.f32.mrf.mxu0 }
 0xd0c   : > { %v3806_v17 = vmax.f32 %v3804_v25, %v10565_v59 }
 0xd0d   : > { %v10567_v42 = vpop.f32.mrf.mxu0 }
 0xd0e   : > { %v3770_v2 = vmax.f32 %v3768_v32, %v10567_v42 }
 0xd0f   : > { %v10569_v10 = vpop.f32.mrf.mxu0 }
 0xd10   : > { %v3807_v0 = vmax.f32 %v3805_v55, %v10569_v10 }
 0xd11   : > { %v10571_v12 = vpop.f32.mrf.mxu0 }
 0xd12   : > { %13397 = vst [vmem:[#allocation18_spill] sm:$0xff] %v10571_v12  ;;  %v3771_v4 = vmax.f32 %v3769_v37, %v10571_v12 }
 0xd13   : > { %v10573_v26 = vpop.f32.mrf.mxu0 }
 0xd14   : > { %13398 = vst [vmem:[#allocation19_spill] sm:$0xff] %v10573_v26  ;;  %v3808_v49 = vmax.f32 %v3806_v17, %v10573_v26 }
 0xd15   : > { %v10575_v14 = vpop.f32.mrf.mxu0 }
 0xd16   : > { %v3772_v34 = vmax.f32 %v3770_v2, %v10575_v14 }
 0xd17   : > { %v10577_v31 = vpop.f32.mrf.mxu0 }
 0xd18   : > { %v3809_v38 = vmax.f32 %v3807_v0, %v10577_v31 }
 0xd19   : > { %v10579_v57 = vpop.f32.mrf.mxu0 }
 0xd1a   : > { %v3773_v33 = vmax.f32 %v3771_v4, %v10579_v57 }
 0xd1b   : > { %v10581_v8 = vpop.f32.mrf.mxu0 }
 0xd1c   : > { %13399 = vst [vmem:[#allocation48_spill] sm:$0xff] %v10581_v8  ;;  %v3810_v25 = vmax.f32 %v3808_v49, %v10581_v8 }
 0xd1d   : > { %v10583_v39 = vpop.f32.mrf.mxu0 }
 0xd1e   : > { %v3774_v32 = vmax.f32 %v3772_v34, %v10583_v39 }
 0xd1f   : > { %v10585_v29 = vpop.f32.mrf.mxu0 }
 0xd20   : > { %13400 = vst [vmem:[#allocation37_spill] sm:$0xff] %v10585_v29  ;;  %v3811_v55 = vmax.f32 %v3809_v38, %v10585_v29 }
 0xd21   : > { %v10587_v13 = vpop.f32.mrf.mxu0 }
 0xd22   : > { %v3775_v37 = vmax.f32 %v3773_v33, %v10587_v13 }
 0xd23   : > { %v10589_v50 = vpop.f32.mrf.mxu0 }
 0xd24   : > { %13401 = vst [vmem:[#allocation39_spill] sm:$0xff] %v10589_v50  ;;  %v3812_v17 = vmax.f32 %v3810_v25, %v10589_v50 }
 0xd25   : > { %v10591_v56 = vpop.f32.mrf.mxu0 }
 0xd26   : > { %v3776_v2 = vmax.f32 %v3774_v32, %v10591_v56 }
 0xd27   : > { %v10593_v46 = vpop.f32.mrf.mxu0 }
 0xd28   : > { %13402 = vst [vmem:[#allocation41_spill] sm:$0xff] %v10593_v46  ;;  %v3813_v0 = vmax.f32 %v3811_v55, %v10593_v46 }
 0xd29   : > { %v10595_v36 = vpop.f32.mrf.mxu0 }
 0xd2a   : > { %v3777_v4 = vmax.f32 %v3775_v37, %v10595_v36 }
 0xd2b   : > { %v10597_v47 = vpop.f32.mrf.mxu0 }
 0xd2c   : > { %13403 = vst [vmem:[#allocation43_spill] sm:$0xff] %v10597_v47  ;;  %v3814_v49 = vmax.f32 %v3812_v17, %v10597_v47 }
 0xd2d   : > { %v10599_v45 = vpop.f32.mrf.mxu0 }
 0xd2e   : > { %v3778_v34 = vmax.f32 %v3776_v2, %v10599_v45 }
 0xd2f   : > { %v10605_v52 = vpop.f32.mrf.mxu0 }
 0xd30   : > { %13404 = vst [vmem:[#allocation45_spill] sm:$0xff] %v10605_v52  ;;  %v3815_v38 = vmax.f32 %v3813_v0, %v10605_v52 }
 0xd31   : > { %v10613_v61 = vpop.f32.mrf.mxu0 }
 0xd32   : > { %v3779_v33 = vmax.f32 %v3777_v4, %v10613_v61 }
 0xd33   : > { %v10619_v1 = vpop.f32.mrf.mxu0 }
 0xd34   : > { %13405 = vst [vmem:[#allocation47_spill] sm:$0xff] %v10619_v1  ;;  %v3816_v25 = vmax.f32 %v3814_v49, %v10619_v1 }
 0xd35   : > { %v10625_v43 = vpop.f32.mrf.mxu0 }
 0xd36   : > { %v3780_v32 = vmax.f32 %v3778_v34, %v10625_v43 }
 0xd37   : > { %v10631_v58 = vpop.f32.mrf.mxu0 }
 0xd38   : > { %13406 = vst [vmem:[#allocation49_spill] sm:$0xff] %v10631_v58  ;;  %v3817_v55 = vmax.f32 %v3815_v38, %v10631_v58 }
 0xd39   : > { %v10637_v19 = vpop.f32.mrf.mxu0 }
 0xd3a   : > { %v3781_v37 = vmax.f32 %v3779_v33, %v10637_v19 }
 0xd3b   : > { %v10643_v11 = vpop.f32.mrf.mxu0 }
 0xd3c   : > { %13407 = vst [vmem:[#allocation20_spill] sm:$0xff] %v10643_v11  ;;  %v3818_v17 = vmax.f32 %v3816_v25, %v10643_v11 }
 0xd3d   : > { %v10649_v41 = vpop.f32.mrf.mxu0 }
 0xd3e   : > { %v3782_v2 = vmax.f32 %v3780_v32, %v10649_v41 }
 0xd3f   : > { %v10655_v60 = vpop.f32.mrf.mxu0 }
 0xd40   : > { %13408 = vst [vmem:[#allocation24_spill] sm:$0xff] %v10655_v60  ;;  %v3819_v0 = vmax.f32 %v3817_v55, %v10655_v60 }
 0xd41   : > { %v10661_v12 = vpop.f32.mrf.mxu0 }
 0xd42   : > { %13409 = vst [vmem:[#allocation25_spill] sm:$0xff] %v10661_v12  ;;  %v3783_v4 = vmax.f32 %v3781_v37, %v10661_v12 }
 0xd43   : > { %v10667_v26 = vpop.f32.mrf.mxu0 }
 0xd44   : > { %13410 = vst [vmem:[#allocation26_spill] sm:$0xff] %v10667_v26  ;;  %v3820_v49 = vmax.f32 %v3818_v17, %v10667_v26 }
 0xd45   : > { %v10673_v8 = vpop.f32.mrf.mxu0 }
 0xd46   : > { %v3784_v34 = vmax.f32 %v3782_v2, %v10673_v8 }
 0xd47   : > { %v10679_v50 = vpop.f32.mrf.mxu0 }
 0xd48   : > { %v3821_v37 = vmax.f32 %v3819_v0, %v10679_v50 }
 0xd49   : > { %v10685_v47 = vpop.f32.mrf.mxu0 }
 0xd4a   : > { %v3785_v33 = vmax.f32 %v3783_v4, %v10685_v47 }
 0xd4b   : > { %v10691_v1 = vpop.f32.mrf.mxu0 }
 0xd4c   : > { %v3822_v25 = vmax.f32 %v3820_v49, %v10691_v1  ;;  %v3786_v12 = vmax.f32 %v3784_v34, %v3785_v33 }
 0xd4e   : > { %v3823_v38 = vmax.f32 %v3821_v37, %v3822_v25  ;;  %v3787_v11 = vrot.slane %v3786_v12, 4  ;;  %v13412_v25 = vld [vmem:[#allocation31_spill] sm:$0xff] }
 0xd50   : > { %v3824_v32 = vrot.slane %v3823_v38, 4  ;;  %v3788_v58 = vmax.f32 %v3786_v12, %v3787_v11 }
 0xd52   : > { %v3825_v52 = vmax.f32 %v3823_v38, %v3824_v32  ;;  %v3789_v46 = vrot.slane %v3788_v58, 2 }
 0xd54   : > { %v3826_v17 = vrot.slane %v3825_v52, 2  ;;  %v3790_v26 = vmax.f32 %v3788_v58, %v3789_v46 }
 0xd56   : > { %v3827_v4 = vmax.f32 %v3825_v52, %v3826_v17  ;;  %v3791_v29 = vrot.slane %v3790_v26, 1 }
 0xd58   : > { %v3828_v55 = vrot.slane %v3827_v4, 1  ;;  %v10695_v60 = vmax.f32 %v3790_v26, %v3791_v29 }
 0xd5a   : > { %v10697_v2 = vmax.f32 %v3827_v4, %v3828_v55  ;;  %v3830_v49 = vsub.f32 %v10495_v9, %v10695_v60  ;;  %v3832_v33 = vsub.f32 %v10499_v5, %v10695_v60  ;;  %v3834_v11 = vsub.f32 %v10503_v6, %v10695_v60  ;;  %v13413_v55 = vld [vmem:[#allocation34_spill] sm:$0xff] }
 0xd5b   : > { %v3836_v12 = vsub.f32 %v10507_v48, %v10695_v60  ;;  %v3874_v58 = vsub.f32 %v10591_v56, %v10695_v60  ;;  %v3876_v26 = vsub.f32 %v10595_v36, %v10695_v60  ;;  %v3878_v29 = vsub.f32 %v10599_v45, %v10695_v60 }
 0xd5c   : > { %v3880_v9 = vsub.f32 %v10613_v61, %v10695_v60  ;;  %v3882_v5 = vsub.f32 %v10625_v43, %v10695_v60  ;;  %v3884_v6 = vsub.f32 %v10637_v19, %v10695_v60  ;;  %v3831_v48 = vsub.f32 %v10497_v16, %v10697_v2  ;;  %v13411_v43 = vld [vmem:[#allocation33_spill] sm:$0xff] }
 0xd5d   : > { %v3833_v56 = vsub.f32 %v10501_v35, %v10697_v2  ;;  %v3835_v46 = vsub.f32 %v10505_v27, %v10697_v2  ;;  %v3837_v36 = vsub.f32 %v10509_v20, %v10697_v2  ;;  %v3838_v45 = vsub.f32 %v10511_v30, %v10695_v60 }
 0xd5e   : > { %v3840_v52 = vsub.f32 %v13411_v43, %v10695_v60  ;;  %v3839_v19 = vsub.f32 %v10513_v15, %v10697_v2  ;;  %v3841_v16 = vsub.f32 %v10517_v21, %v10697_v2  ;;  %v10735_v61 = vpack.c.bf16 %v3876_v26, %v3874_v58 }
 0xd5f   : > { %v10737_v35 = vpack.c.bf16 %v3880_v9, %v3878_v29  ;;  %v3894_v27 = vpack.c.bf16 %v3832_v33, %v3830_v49  ;;  %v3896_v0 = vpack.c.bf16 %v3836_v12, %v3834_v11  ;;  %v10739_v34 = vpack.c.bf16 %v3884_v6, %v3882_v5 }
 0xd60   : > { %v3895_v20 = vpack.c.bf16 %v3833_v56, %v3831_v48  ;;  %v3842_v30 = vsub.f32 %v10519_v44, %v10695_v60  ;;  %v3844_v37 = vsub.f32 %v13412_v25, %v10695_v60  ;;  %v3897_v38 = vpack.c.bf16 %v3837_v36, %v3835_v46 }
 0xd61   : > { %v3898_v15 = vpack.c.bf16 %v3840_v52, %v3838_v45  ;;  %v3846_v21 = vsub.f32 %v10527_v51, %v10695_v60  ;;  %v3843_v32 = vsub.f32 %v10521_v3, %v10697_v2  ;;  %v3845_v17 = vsub.f32 %v10525_v54, %v10697_v2  ;;  %v13414_v54 = vld [vmem:[#allocation35_spill] sm:$0xff] }
 0xd62   : > { %v3899_v4 = vpack.c.bf16 %v3841_v16, %v3839_v19  ;;  %v3848_v49 = vsub.f32 %v13413_v55, %v10695_v60  ;;  %v3927_v33 = vmul.bf16 1069105081, %v3894_v27  ;;  %v3930_v44 = vmul.bf16 1069105081, %v3895_v20  ;;  %v13415_v19 = vld [vmem:[#allocation36_spill] sm:$0xff] }
 0xd63   : > { %v3933_v11 = vmul.bf16 1069105081, %v3896_v0  ;;  %v3850_v12 = vsub.f32 %v10535_v23, %v10695_v60  ;;  %v3852_v58 = vsub.f32 %v10539_v24, %v10695_v60  ;;  %v3900_v51 = vpack.c.bf16 %v3844_v37, %v3842_v30  ;;  %v13416_v0 = vld [vmem:[#allocation38_spill] sm:$0xff] }
 0xd64   : > { %v3936_v26 = vmul.bf16 1069105081, %v3897_v38  ;;  %v3847_v3 = vsub.f32 %v10529_v18, %v10697_v2  ;;  %v3849_v29 = vsub.f32 %v13414_v54, %v10697_v2  ;;  %8107 = vpow.bf16 %v3927_v33  ;;  %v13418_v54 = vld [vmem:[#allocation19_spill] sm:$0xff] }
 0xd65   : > { %v3939_v9 = vmul.bf16 1069105081, %v3898_v15  ;;  %v3858_v5 = vsub.f32 %v10551_v22, %v10695_v60  ;;  %v3901_v6 = vpack.c.bf16 %v3845_v17, %v3843_v32  ;;  %8109 = vpow.bf16 %v3930_v44  ;;  %v13417_v17 = vld [vmem:[#allocation18_spill] sm:$0xff] }
 0xd66   : > { %v3942_v48 = vmul.bf16 1069105081, %v3899_v4  ;;  %v3860_v23 = vsub.f32 %v10563_v53, %v10695_v60  ;;  %v3851_v24 = vsub.f32 %v10537_v40, %v10697_v2  ;;  %v3853_v18 = vsub.f32 %v10541_v7, %v10697_v2 }
 0xd67   : > { %8111 = vpow.bf16 %v3933_v11  ;;  %v3859_v56 = vsub.f32 %v10557_v63, %v10697_v2  ;;  %v3861_v46 = vsub.f32 %v10565_v59, %v10697_v2  ;;  %v3902_v22 = vpack.c.bf16 %v3848_v49, %v3846_v21 }
 0xd68   : > { %8113 = vpow.bf16 %v3936_v26  ;;  %v3855_v36 = vsub.f32 %v10545_v28, %v10697_v2  ;;  %v3903_v45 = vpack.c.bf16 %v3849_v29, %v3847_v3  ;;  %v3945_v53 = vmul.bf16 1069105081, %v3900_v51 }
 0xd69   : > { %8115 = vpow.bf16 %v3939_v9  ;;  %v3857_v40 = vsub.f32 %v10549_v62, %v10697_v2  ;;  %v3904_v43 = vpack.c.bf16 %v3852_v58, %v3850_v12  ;;  %v3948_v7 = vmul.bf16 1069105081, %v3901_v6 }
 0xd6a   : > { %8117 = vpow.bf16 %v3942_v48  ;;  %v3890_v63 = vsub.f32 %v10673_v8, %v10695_v60  ;;  %v3905_v52 = vpack.c.bf16 %v3853_v18, %v3851_v24  ;;  %v3892_v59 = vsub.f32 %v10685_v47, %v10695_v60 }
 0xd6b   : > { %v3854_v16 = vsub.f32 %v13415_v19, %v10695_v60  ;;  %v3909_v28 = vpack.c.bf16 %v3861_v46, %v3859_v56  ;;  %v3951_v27 = vmul.bf16 1069105081, %v3902_v22  ;;  %v3856_v20 = vsub.f32 %v13416_v0, %v10695_v60  ;;  %v13421_v0 = vld [vmem:[#allocation39_spill] sm:$0xff] }
 0xd6c   : > { %v3908_v30 = vpack.c.bf16 %v3860_v23, %v3858_v5  ;;  %8119 = vpow.bf16 %v3945_v53  ;;  %v3954_v62 = vmul.bf16 1069105081, %v3903_v45  ;;  %v3907_v25 = vpack.c.bf16 %v3857_v40, %v3855_v36 }
 0xd6d   : > { %8121 = vpow.bf16 %v3948_v7  ;;  %v3957_v37 = vmul.bf16 1069105081, %v3904_v43  ;;  %v3960_v38 = vmul.bf16 1069105081, %v3905_v52  ;;  %v3972_v8 = vmul.bf16 1069105081, %v3909_v28 }
 0xd6e   : > { %8123 = vpow.bf16 %v3951_v27  ;;  %v10785_v15 = vpack.c.bf16 %v3892_v59, %v3890_v63  ;;  %v3906_v47 = vpack.c.bf16 %v3856_v20, %v3854_v16  ;;  %v3969_v21 = vmul.bf16 1069105081, %v3908_v30  ;;  %v13420_v28 = vld [vmem:[#allocation37_spill] sm:$0xff] }
 0xd6f   : > { %8125 = vpow.bf16 %v3954_v62  ;;  %v3862_v32 = vsub.f32 %v10567_v42, %v10695_v60  ;;  %v3864_v4 = vsub.f32 %v13417_v17, %v10695_v60  ;;  %v3966_v55 = vmul.bf16 1069105081, %v3907_v25 }
 0xd70   : > { %8127 = vpow.bf16 %v3957_v37  ;;  %v3866_v33 = vsub.f32 %v10575_v14, %v10695_v60  ;;  %v3868_v44 = vsub.f32 %v10579_v57, %v10695_v60  ;;  %v3870_v11 = vsub.f32 %v10583_v39, %v10695_v60 }
 0xd71   : > { %8129 = vpow.bf16 %v3960_v38  ;;  %v3863_v42 = vsub.f32 %v10569_v10, %v10697_v2  ;;  %v3963_v14 = vmul.bf16 1069105081, %v3906_v47  ;;  %v3865_v29 = vsub.f32 %v13418_v54, %v10697_v2 }
 0xd72   : > { %v10791_v49 = vpop.eup %8107  ;;  %8131 = vpow.bf16 %v3972_v8  ;;  %v3891_v6 = vsub.f32 %v10679_v50, %v10697_v2  ;;  %v3893_v48 = vsub.f32 %v10691_v1, %v10697_v2  ;;  %v3872_v56 = vsub.f32 %v10587_v13, %v10695_v60  ;;  %v13419_v1 = vld [vmem:[#allocation48_spill] sm:$0xff] }
 0xd73   : > { %v10799_v12 = vpop.eup %8109  ;;  %v4022_v58 = vunpack.c.l.bf16 %v10791_v49  ;;  %v4024_v51 = vunpack.c.h.bf16 %v10791_v49  ;;  %8133 = vpow.bf16 %v3969_v21  ;;  %v3867_v46 = vsub.f32 %v10577_v31, %v10697_v2 }
 0xd74   : > { %v4023_v57 = vunpack.c.l.bf16 %v10799_v12  ;;  %v4025_v3 = vunpack.c.h.bf16 %v10799_v12  ;;  %8135 = vpow.bf16 %v3966_v55  ;;  %v3910_v45 = vpack.c.bf16 %v3864_v4, %v3862_v32 }
 0xd75   : > { %v10805_v26 = vpop.eup %8111  ;;  %v4086_v9 = vadd.f32 %v4024_v51, %v4022_v58  ;;  %8137 = vpow.bf16 %v3963_v14  ;;  %v3869_v40 = vsub.f32 %v13419_v1, %v10697_v2  ;;  %v3911_v43 = vpack.c.bf16 %v3865_v29, %v3863_v42  ;;  %v13422_v42 = vld [vmem:[#allocation41_spill] sm:$0xff]  ;;  %v13423_v51 = vld [vmem:[#allocation43_spill] sm:$0xff] }
 0xd76   : > { %v10809_v39 = vpop.eup %8113  ;;  %v4026_v10 = vunpack.c.l.bf16 %v10805_v26  ;;  %v4123_v24 = vadd.f32 %v4025_v3, %v4023_v57  ;;  %v4028_v22 = vunpack.c.h.bf16 %v10805_v26  ;;  %v3886_v31 = vsub.f32 %v10649_v41, %v10695_v60 }
 0xd77   : > { %v10814_v5 = vpop.eup %8115  ;;  %v4027_v23 = vunpack.c.l.bf16 %v10809_v39  ;;  %v4029_v50 = vunpack.c.h.bf16 %v10809_v39  ;;  %v10836_v13 = vpack.c.bf16 %v3893_v48, %v3891_v6  ;;  %v3871_v27 = vsub.f32 %v13420_v28, %v10697_v2 }
 0xd78   : > { %v10821_v18 = vpop.eup %8117  ;;  %v4087_v36 = vadd.f32 %v4086_v9, %v4026_v10  ;;  %v4030_v7 = vunpack.c.l.bf16 %v10814_v5  ;;  %v3873_v20 = vsub.f32 %v13421_v0, %v10697_v2  ;;  %v4032_v30 = vunpack.c.h.bf16 %v10814_v5 }
 0xd79   : > { %v4124_v53 = vadd.f32 %v4123_v24, %v4027_v23  ;;  %v4031_v59 = vunpack.c.l.bf16 %v10821_v18  ;;  %v3912_v25 = vpack.c.bf16 %v3868_v44, %v3866_v33  ;;  %v3975_v37 = vmul.bf16 1069105081, %v3910_v45 }
 0xd7a   : > { %v4088_v63 = vadd.f32 %v4087_v36, %v4028_v22  ;;  %v10832_v52 = vpop.eup %8119  ;;  %v4033_v38 = vunpack.c.h.bf16 %v10821_v18  ;;  %v3913_v21 = vpack.c.bf16 %v3869_v40, %v3867_v46  ;;  %v3978_v32 = vmul.bf16 1069105081, %v3911_v43 }
 0xd7b   : > { %v4125_v19 = vadd.f32 %v4124_v53, %v4029_v50  ;;  %v10839_v16 = vpop.eup %8121  ;;  %v4034_v17 = vunpack.c.l.bf16 %v10832_v52  ;;  %v3875_v58 = vsub.f32 %v13422_v42, %v10697_v2  ;;  %v3877_v14 = vsub.f32 %v13423_v51, %v10697_v2  ;;  %v13425_v50 = vld [vmem:[#allocation47_spill] sm:$0xff]  ;;  %v13429_v42 = vld [vmem:[#allocation26_spill] sm:$0xff] }
 0xd7c   : > { %v4089_v62 = vadd.f32 %v4088_v63, %v4030_v7  ;;  %v10847_v47 = vpop.eup %8123  ;;  %v4035_v33 = vunpack.c.l.bf16 %v10839_v16  ;;  %v3914_v3 = vpack.c.bf16 %v3872_v56, %v3870_v11  ;;  %v3915_v54 = vpack.c.bf16 %v3873_v20, %v3871_v27  ;;  %v13424_v11 = vld [vmem:[#allocation45_spill] sm:$0xff] }
 0xd7d   : > { %v4126_v8 = vadd.f32 %v4125_v19, %v4031_v59  ;;  %v10850_v55 = vpop.eup %8125  ;;  %v4036_v29 = vunpack.c.h.bf16 %v10832_v52  ;;  %8139 = vpow.bf16 %v3975_v37  ;;  %v3981_v6 = vmul.bf16 1069105081, %v3912_v25  ;;  %v13426_v7 = vld [vmem:[#allocation49_spill] sm:$0xff] }
 0xd7e   : > { %v4090_v4 = vadd.f32 %v4089_v62, %v4032_v30  ;;  %v10857_v57 = vpop.eup %8127  ;;  %v4037_v48 = vunpack.c.h.bf16 %v10839_v16  ;;  %8141 = vpow.bf16 %v3978_v32  ;;  %v3984_v46 = vmul.bf16 1069105081, %v3913_v21  ;;  %v13428_v21 = vld [vmem:[#allocation24_spill] sm:$0xff] }
 0xd7f   : > { %v4127_v44 = vadd.f32 %v4126_v8, %v4033_v38  ;;  %v8130_v9 = vpop.eup %8129  ;;  %v4038_v22 = vunpack.c.l.bf16 %v10847_v47  ;;  %v3879_v56 = vsub.f32 %v13424_v11, %v10697_v2  ;;  %v3881_v53 = vsub.f32 %v13425_v50, %v10697_v2  ;;  %v13427_v38 = vld [vmem:[#allocation20_spill] sm:$0xff] }
 0xd80   : > { %v4091_v10 = vadd.f32 %v4090_v4, %v4034_v17  ;;  %v10861_v24 = vpop.eup %8131  ;;  %v4039_v1 = vunpack.c.l.bf16 %v10850_v55  ;;  %v3883_v63 = vsub.f32 %v13426_v7, %v10697_v2  ;;  %v3917_v59 = vpack.c.bf16 %v3877_v14, %v3875_v58 }
 0xd81   : > { %v4128_v23 = vadd.f32 %v4127_v44, %v4035_v33  ;;  %v10864_v45 = vpop.eup %8133  ;;  %4169 = vmatprep.subr.bf16.mxu1 %v10861_v24  ;;  %v4040_v19 = vunpack.c.h.bf16 %v10847_v47  ;;  %8143 = vpow.bf16 %v3981_v6  ;;  %v3987_v27 = vmul.bf16 1069105081, %v3914_v3 }
 0xd82   : > { %v4092_v36 = vadd.f32 %v4091_v10, %v4036_v29  ;;  %v8136_v43 = vpop.eup %8135  ;;  %4170 = vmatpush1.bf16.msra.mxu1 %v10864_v45  ;;  %v4041_v0 = vunpack.c.h.bf16 %v10850_v55  ;;  %8145 = vpow.bf16 %v3984_v46  ;;  %v3990_v30 = vmul.bf16 1069105081, %v3915_v54 }
 0xd83   : > { %v4129_v40 = vadd.f32 %v4128_v23, %v4037_v48  ;;  %4171 = vmatprep.subr.bf16.mxu1 %v8136_v43  ;;  %v4042_v62 = vunpack.c.l.bf16 %v10857_v57  ;;  %v8138_v37 = vpop.eup %8137  ;;  %v3885_v8 = vsub.f32 %v13427_v38, %v10697_v2  ;;  %v3887_v32 = vsub.f32 %v13428_v21, %v10697_v2  ;;  %v13430_v48 = vld [vmem:[#allocation25_spill] sm:$0xff] }
 0xd84   : > { %v4093_v28 = vadd.f32 %v4092_v36, %v4038_v22  ;;  %v4043_v17 = vunpack.c.l.bf16 %v8130_v9  ;;  %v3889_v58 = vsub.f32 %v13429_v42, %v10697_v2  ;;  %v3919_v51 = vpack.c.bf16 %v3881_v53, %v3879_v56 }
 0xd85   : > { %v4130_v20 = vadd.f32 %v4129_v40, %v4039_v1  ;;  %v4044_v14 = vunpack.c.h.bf16 %v10857_v57  ;;  %8147 = vpow.bf16 %v3987_v27  ;;  %v3993_v44 = vmul.bf16 1069105081, %v10735_v61 }
 0xd86   : > { %v4094_v25 = vadd.f32 %v4093_v28, %v4040_v19  ;;  %4172 = vmatpush1.bf16.msra.mxu1 %v8138_v37  ;;  %v4045_v3 = vunpack.c.h.bf16 %v8130_v9  ;;  %8149 = vpow.bf16 %v3990_v30  ;;  %v3996_v29 = vmul.bf16 1069105081, %v3917_v59 }
 0xd87   : > { %v4131_v4 = vadd.f32 %v4130_v20, %v4041_v0  ;;  %4173 = vmatprep.subr.bf16.mxu1 %v8130_v9  ;;  %v4046_v10 = vunpack.c.l.bf16 %v8138_v37  ;;  %v3888_v23 = vsub.f32 %v13430_v48, %v10695_v60  ;;  %v4020_v2 = vmul.bf16 1069105081, %v10836_v13 }
 0xd88   : > { %v4095_v33 = vadd.f32 %v4094_v25, %v4042_v62  ;;  %v4047_v46 = vunpack.c.l.bf16 %v8136_v43  ;;  %v3921_v36 = vpack.c.bf16 %v3885_v8, %v3883_v63  ;;  %v3923_v11 = vpack.c.bf16 %v3889_v58, %v3887_v32 }
 0xd89   : > { %v4132_v54 = vadd.f32 %v4131_v4, %v4043_v17  ;;  %v4048_v56 = vunpack.c.h.bf16 %v8138_v37  ;;  %8151 = vpow.bf16 %v3993_v44  ;;  %v3999_v61 = vmul.bf16 1069105081, %v10737_v35 }
 0xd8a   : > { %v4096_v6 = vadd.f32 %v4095_v33, %v4044_v14  ;;  %4174 = vmatpush1.bf16.msra.mxu1 %v10857_v57  ;;  %v4049_v9 = vunpack.c.h.bf16 %v8136_v43  ;;  %8153 = vpow.bf16 %v3996_v29  ;;  %v4002_v1 = vmul.bf16 1069105081, %v3919_v51 }
 0xd8b   : > { %v4133_v22 = vadd.f32 %v4132_v54, %v4045_v3  ;;  %4175 = vmatprep.subr.bf16.mxu1 %v10850_v55  ;;  %v4050_v40 = vunpack.c.l.bf16 %v10864_v45  ;;  %v10893_v7 = vpop.eup %8139  ;;  %v4017_v63 = vmul.bf16 1069105081, %v10785_v15  ;;  %8155 = vpow.bf16 %v4020_v2 }
 0xd8c   : > { %v4097_v50 = vadd.f32 %v4096_v6, %v4046_v10  ;;  %v4051_v59 = vunpack.c.l.bf16 %v10861_v24  ;;  %v10897_v19 = vpop.eup %8141  ;;  %v3922_v35 = vpack.c.bf16 %v3888_v23, %v3886_v31  ;;  %v4005_v55 = vmul.bf16 1069105081, %v10739_v34 }
 0xd8d   : > { %v4134_v53 = vadd.f32 %v4133_v22, %v4047_v46  ;;  %v4052_v43 = vunpack.c.h.bf16 %v10864_v45  ;;  %8157 = vpow.bf16 %v3999_v61  ;;  %v4008_v27 = vmul.bf16 1069105081, %v3921_v36 }
 0xd8e   : > { %v4098_v13 = vadd.f32 %v4097_v50, %v4048_v56  ;;  %4176 = vmatpush1.bf16.msra.mxu1 %v10847_v47  ;;  %v4053_v15 = vunpack.c.h.bf16 %v10861_v24  ;;  %8159 = vpow.bf16 %v4002_v1  ;;  %v4014_v20 = vmul.bf16 1069105081, %v3923_v11 }
 0xd8f   : > { %v4135_v57 = vadd.f32 %v4134_v53, %v4049_v9  ;;  %4177 = vmatprep.subr.bf16.mxu1 %v10839_v16  ;;  %v4054_v30 = vunpack.c.l.bf16 %v10893_v7  ;;  %v10908_v41 = vpop.eup %8143  ;;  %8161 = vpow.bf16 %v4017_v63  ;;  %v4055_v34 = vunpack.c.l.bf16 %v10897_v19 }
 0xd90   : > { %v4099_v28 = vadd.f32 %v4098_v13, %v4050_v40  ;;  %v10911_v45 = vpop.eup %8145  ;;  %8163 = vpow.bf16 %v4005_v55  ;;  %v4056_v47 = vunpack.c.h.bf16 %v10893_v7  ;;  %v4011_v16 = vmul.bf16 1069105081, %v3922_v35 }
 0xd91   : > { %v4136_v0 = vadd.f32 %v4135_v57, %v4051_v59  ;;  %8165 = vpow.bf16 %v4008_v27  ;;  %v4057_v62 = vunpack.c.h.bf16 %v10897_v19  ;;  %v4058_v37 = vunpack.c.l.bf16 %v10908_v41 }
 0xd92   : > { %v4100_v60 = vadd.f32 %v4099_v28, %v4052_v43  ;;  %4178 = vmatpush1.bf16.msra.mxu1 %v10832_v52  ;;  %8167 = vpow.bf16 %v4014_v20  ;;  %v4059_v21 = vunpack.c.l.bf16 %v10911_v45  ;;  %v4060_v52 = vunpack.c.h.bf16 %v10908_v41 }
 0xd93   : > { %v4137_v31 = vadd.f32 %v4136_v0, %v4053_v15  ;;  %4179 = vmatprep.subr.bf16.mxu1 %v10821_v18  ;;  %v10918_v8 = vpop.eup %8147  ;;  %8169 = vpow.bf16 %v4011_v16  ;;  %v4061_v42 = vunpack.c.h.bf16 %v10911_v45 }
 0xd94   : > { %v4101_v24 = vadd.f32 %v4100_v60, %v4054_v30  ;;  %v10921_v17 = vpop.eup %8149  ;;  %v4062_v58 = vunpack.c.l.bf16 %v10918_v8  ;;  %v4064_v54 = vunpack.c.h.bf16 %v10918_v8 }
 0xd95   : > { %v4138_v25 = vadd.f32 %v4137_v31, %v4055_v34  ;;  %v4063_v33 = vunpack.c.l.bf16 %v10921_v17  ;;  %v4065_v10 = vunpack.c.h.bf16 %v10921_v17 }
 0xd96   : > { %v4102_v38 = vadd.f32 %v4101_v24, %v4056_v47  ;;  %4180 = vmatpush1.bf16.msra.mxu1 %v10814_v5 }
 0xd97   : > { %v4139_v32 = vadd.f32 %v4138_v25, %v4057_v62  ;;  %4181 = vmatprep.subr.bf16.mxu1 %v10809_v39  ;;  %v10928_v14 = vpop.eup %8151 }
 0xd98   : > { %v4103_v4 = vadd.f32 %v4102_v38, %v4058_v37  ;;  %v8154_v3 = vpop.eup %8153  ;;  %v4066_v39 = vunpack.c.l.bf16 %v10928_v14  ;;  %v4068_v36 = vunpack.c.h.bf16 %v10928_v14 }
 0xd99   : > { %v4140_v18 = vadd.f32 %v4139_v32, %v4059_v21  ;;  %v10933_v5 = vpop.eup %8155  ;;  %v4067_v2 = vunpack.c.l.bf16 %v8154_v3  ;;  %v4069_v56 = vunpack.c.h.bf16 %v8154_v3 }
 0xd9a   : > { %v4104_v51 = vadd.f32 %v4103_v4, %v4060_v52  ;;  %4182 = vmatpush1.bf16.msra.mxu1 %v10805_v26  ;;  %v4083_v21 = vunpack.c.l.bf16 %v10933_v5 }
 0xd9b   : > { %v4141_v44 = vadd.f32 %v4140_v18, %v4061_v42  ;;  %4183 = vmatprep.subr.bf16.mxu1 %v10799_v12  ;;  %v8158_v23 = vpop.eup %8157  ;;  %v4085_v42 = vunpack.c.h.bf16 %v10933_v5 }
 0xd9c   : > { %v4105_v29 = vadd.f32 %v4104_v51, %v4062_v58  ;;  %v8160_v22 = vpop.eup %8159  ;;  %v4070_v9 = vunpack.c.l.bf16 %v8158_v23  ;;  %v4072_v63 = vunpack.c.h.bf16 %v8158_v23 }
 0xd9d   : > { %v4142_v6 = vadd.f32 %v4141_v44, %v4063_v33  ;;  %v8162_v26 = vpop.eup %8161  ;;  %v4071_v1 = vunpack.c.l.bf16 %v8160_v22  ;;  %v4073_v57 = vunpack.c.h.bf16 %v8160_v22  ;;  %v13431_v33 = vld [vmem:[#allocation15_spill] sm:$0xff] }
 0xd9e   : > { %v4106_v48 = vadd.f32 %v4105_v29, %v4064_v54  ;;  %4184 = vmatpush1.bf16.msra.mxu1 %v10791_v49  ;;  %v8164_v61 = vpop.eup %8163  ;;  %v4082_v37 = vunpack.c.l.bf16 %v8162_v26  ;;  %v4084_v52 = vunpack.c.h.bf16 %v8162_v26  ;;  %v1207_v44 = vmul.f32 0.5, %v13431_v33  ;;  %v13432_v54 = vld [vmem:[#allocation17_spill] sm:$0xff] }
 0xd9f   : > { %v4143_v46 = vadd.f32 %v4142_v6, %v4065_v10  ;;  %4185 = vmatprep.subr.bf16.mxu1 %v10933_v5  ;;  %v8166_v53 = vpop.eup %8165  ;;  %v4074_v49 = vunpack.c.l.bf16 %v8164_v61  ;;  %v4076_v15 = vunpack.c.h.bf16 %v8164_v61  ;;  %v1209_v29 = vmul.f32 0.5, %v13432_v54  ;;  %v13437_v54 = vld [vmem:[#allocation42_spill] sm:$0xff] }
 0xda0   : > { %v4107_v11 = vadd.f32 %v4106_v48, %v4066_v39  ;;  %v8168_v13 = vpop.eup %8167  ;;  %v4075_v28 = vunpack.c.l.bf16 %v8166_v53  ;;  %v4077_v20 = vunpack.c.h.bf16 %v8166_v53 }
 0xda1   : > { %v4144_v50 = vadd.f32 %v4143_v46, %v4067_v2  ;;  %v8170_v43 = vpop.eup %8169  ;;  %v4079_v31 = vunpack.c.l.bf16 %v8168_v13  ;;  %v4081_v62 = vunpack.c.h.bf16 %v8168_v13  ;;  %v10955_v10 = vpack.c.bf16 %v1209_v29, %v1207_v44  ;;  %v4249_v46 = vpop.trf.xlu1 }
 0xda2   : > { %v4108_v12 = vadd.f32 %v4107_v11, %v4068_v36  ;;  %4186 = vmatpush2.bf16.msra.mxu1 %v8162_v26  ;;  %v4078_v60 = vunpack.c.l.bf16 %v8170_v43  ;;  %v4080_v24 = vunpack.c.h.bf16 %v8170_v43 }
 0xda3   : > { %v4145_v40 = vadd.f32 %v4144_v50, %v4069_v56  ;;  %4187 = vmatprep.subr.bf16.mxu1 %v8168_v13  ;;  %13433 = vst [vmem:[#allocation27_spill] sm:$0xff] %v10955_v10 }
 0xda4   : > { %v4109_v59 = vadd.f32 %v4108_v12, %v4070_v9 }
 0xda5   : > { %v4146_v35 = vadd.f32 %v4145_v40, %v4071_v1 }
 0xda6   : > { %v4110_v55 = vadd.f32 %v4109_v59, %v4072_v63  ;;  %4188 = vmatpush2.bf16.msra.mxu1 %v8170_v43 }
 0xda7   : > { %v4147_v27 = vadd.f32 %v4146_v35, %v4073_v57  ;;  %4189 = vmatprep.subr.bf16.mxu1 %v8166_v53 }
 0xda8   : > { %v4111_v0 = vadd.f32 %v4110_v55, %v4074_v49 }
 0xda9   : > { %v4148_v30 = vadd.f32 %v4147_v27, %v4075_v28 }
 0xdaa   : > { %v4112_v34 = vadd.f32 %v4111_v0, %v4076_v15  ;;  %4190 = vmatpush2.bf16.msra.mxu1 %v8164_v61  ;;  %v4963_v61 = vld [vmem:[#allocation4 + $0x28] sm:$0xcc] }
 0xdab   : > { %v4149_v47 = vadd.f32 %v4148_v30, %v4077_v20  ;;  %4191 = vmatprep.subr.bf16.mxu1 %v8160_v22  ;;  %v4250_v22 = vpop.trf.xlu1  ;;  %v7636_v9 = vcombine.high %v4963_v61, %v4963_v61 }
 0xdac   : > { %v4113_v16 = vadd.f32 %v4112_v34, %v4078_v60 }
 0xdad   : > { %v4150_v25 = vadd.f32 %v4149_v47, %v4079_v31  ;;  %v5666_v53 = vrot.slane %v7636_v9, 2 }
 0xdae   : > { %v4114_v38 = vadd.f32 %v4113_v16, %v4080_v24  ;;  %4192 = vmatpush2.bf16.msra.mxu1 %v8158_v23 }
 0xdaf   : > { %v4151_v32 = vadd.f32 %v4150_v25, %v4081_v62  ;;  %4193 = vmatprep.subr.bf16.mxu1 %v8154_v3  ;;  %v8449_v3 = vld [vmem:[#allocation4 + $0x20] sm:$0xcc]  ;;  %v4251_v36 = vpop.trf.xlu1 }
 0xdb0   : > { %v4115_v4 = vadd.f32 %v4114_v38, %v4082_v37  ;;  %v7593_v5 = vcombine.low %v8449_v3, %v8449_v3 }
 0xdb1   : > { %v4152_v18 = vadd.f32 %v4151_v32, %v4083_v21 }
 0xdb2   : > { %v10943_v58 = vadd.f32 %v4115_v4, %v4084_v52  ;;  %4194 = vmatpush2.bf16.msra.mxu1 %v10928_v14  ;;  %v4165_v14 = vrot.slane %v7593_v5, 2  ;;  %v13439_v5 = vld [vmem:[#allocation40_spill] sm:$0xff] }
 0xdb3   : > { %v10945_v51 = vadd.f32 %v4152_v18, %v4085_v42  ;;  %4195 = vmatprep.subr.bf16.mxu1 %v10921_v17  ;;  %v13435_v17 = vmov 0   ;;  %v4252_v11 = vpop.trf.xlu1 }
 0xdb4   : > { %v4117_v1 = vrot.slane %v10943_v58, 4 }
 0xdb5   : > { %v4154_v40 = vrot.slane %v10945_v51, 4 }
 0xdb6   : > { %4196 = vmatpush2.bf16.msra.mxu1 %v10918_v8  ;;  %v4118_v13 = vadd.f32 %v4117_v1, %v10943_v58 }
 0xdb7   : > { %4197 = vmatprep.subr.bf16.mxu1 %v10911_v45  ;;  %v13434_v45 = vld [vmem:[#allocation16_spill] sm:$0xff]  ;;  %v4253_v26 = vpop.trf.xlu1  ;;  %v4155_v63 = vadd.f32 %v4154_v40, %v10945_v51 }
 0xdb8   : > { %v4306_v8 = vsel %vm1304_vm2, %v13434_v45, 0  ;;  %v4119_v59 = vrot.slane %v4118_v13, 2 }
 0xdb9   : > { %v4156_v57 = vrot.slane %v4155_v63, 2 }
 0xdba   : > { %4198 = vmatpush2.bf16.msra.mxu1 %v10908_v41  ;;  %v4233_v41 = vpop.trf.xlu0  ;;  %v4120_v35 = vadd.f32 %v4119_v59, %v4118_v13 }
 0xdbb   : > { %4199 = vmatprep.subr.bf16.mxu1 %v10897_v19  ;;  %v4254_v56 = vpop.trf.xlu1  ;;  %v4157_v49 = vadd.f32 %v4156_v57, %v4155_v63 }
 0xdbc   : > { %v4121_v55 = vrot.slane %v4120_v35, 1 }
 0xdbd   : > { %v4158_v43 = vrot.slane %v4157_v49, 1 }
 0xdbe   : > { %4200 = vmatpush2.bf16.msra.mxu1 %v10893_v7  ;;  %v4234_v19 = vpop.trf.xlu0  ;;  %v4122_v28 = vadd.f32 %v4121_v55, %v4120_v35 }
 0xdbf   : > { %7597 = vmatprep.subr.msk.bf16.mxu1 %vm1304_vm2, %v10955_v10  ;;  %v4255_v50 = vpop.trf.xlu1  ;;  %v4159_v27 = vadd.f32 %v4158_v43, %v4157_v49 }
 0xdc0   : > { %8171 = vrcp.f32 %v4122_v28 }
 0xdc1   : > { %4202 = vmatmul.mubr.bf16.vlgmr.msra.gmra.mxu1 %v4165_v14  ;;  %8173 = vrcp.f32 %v4159_v27 }
 0xdc2   : > { %4326 = vmatpush1.bf16.msra.mxu1 %v4306_v8  ;;  %4343 = vmatprep.mubr.bf16.mxu1 %v13435_v17  ;;  %v4235_v7 = vpop.trf.xlu0 }
 0xdc3   : > { %v4256_v12 = vpop.trf.xlu1 }
 0xdc6   : > { %v4236_v6 = vpop.trf.xlu0 }
 0xdc9   : > { %7598 = vmatmul.mubr.msk.bf16.vlgmr.msra.gmra.mxu1 %vm1255_vm3, %v4233_v41 }
 0xdca   : > { %4353 = vmatprep.mubr.bf16.mxu1 %v13435_v17  ;;  %v4237_v39 = vpop.trf.xlu0 }
 0xdcd   : > { %v8172_v15 = vpop.eup %8171 }
 0xdce   : > { %v4238_v48 = vpop.trf.xlu0  ;;  %v8174_v30 = vpop.eup %8173 }
 0xdd1   : > { %7599 = vmatmul.mubr.msk.bf16.gmra.mxu1 %vm1255_vm3, %v4234_v19 }
 0xdd2   : > { %4363 = vmatprep.mubr.bf16.mxu1 %v13435_v17  ;;  %v4239_v23 = vpop.trf.xlu0 }
 0xdd6   : > { %v4240_v2 = vpop.trf.xlu0 }
 0xdd9   : > { %7600 = vmatmul.mubr.msk.bf16.gmra.mxu1 %vm1255_vm3, %v4235_v7 }
 0xdda   : > { %4373 = vmatprep.mubr.bf16.mxu1 %v13435_v17 }
 0xde1   : > { %7601 = vmatmul.mubr.msk.bf16.gmra.mxu1 %vm1255_vm3, %v4236_v6 }
 0xde2   : > { %4383 = vmatprep.mubr.bf16.mxu1 %v13435_v17 }
 0xde9   : > { %7602 = vmatmul.mubr.msk.bf16.gmra.mxu1 %vm1255_vm3, %v4237_v39 }
 0xdea   : > { %4393 = vmatprep.mubr.bf16.mxu1 %v13435_v17 }
 0xdf1   : > { %7603 = vmatmul.mubr.msk.bf16.gmra.mxu1 %vm1255_vm3, %v4238_v48 }
 0xdf2   : > { %4403 = vmatprep.mubr.bf16.mxu1 %v13435_v17 }
 0xdf9   : > { %7604 = vmatmul.mubr.msk.bf16.gmra.mxu1 %vm1255_vm3, %v4239_v23 }
 0xdfa   : > { %4413 = vmatprep.mubr.bf16.mxu1 %v13435_v17 }
 0xe01   : > { %7605 = vmatmul.mubr.msk.bf16.gmra.mxu1 %vm1255_vm3, %v4240_v2 }
 0xe02   : > { %4423 = vmatprep.mubr.bf16.mxu1 %v13435_v17 }
 0xe09   : > { %7606 = vmatmul.mubr.msk.bf16.gmra.mxu1 %vm1255_vm3, %v4249_v46 }
 0xe0a   : > { %4433 = vmatprep.mubr.bf16.mxu1 %v13435_v17 }
 0xe11   : > { %7607 = vmatmul.mubr.msk.bf16.gmra.mxu1 %vm1255_vm3, %v4250_v22 }
 0xe12   : > { %4443 = vmatprep.mubr.bf16.mxu1 %v13435_v17 }
 0xe19   : > { %7608 = vmatmul.mubr.msk.bf16.gmra.mxu1 %vm1255_vm3, %v4251_v36 }
 0xe1a   : > { %4453 = vmatprep.mubr.bf16.mxu1 %v13435_v17 }
 0xe21   : > { %7609 = vmatmul.mubr.msk.bf16.gmra.mxu1 %vm1255_vm3, %v4252_v11 }
 0xe22   : > { %4463 = vmatprep.mubr.bf16.mxu1 %v13435_v17 }
 0xe29   : > { %7610 = vmatmul.mubr.msk.bf16.gmra.mxu1 %vm1255_vm3, %v4253_v26 }
 0xe2a   : > { %4473 = vmatprep.mubr.bf16.mxu1 %v13435_v17 }
 0xe31   : > { %7611 = vmatmul.mubr.msk.bf16.gmra.mxu1 %vm1255_vm3, %v4254_v56 }
 0xe32   : > { %4483 = vmatprep.mubr.bf16.mxu1 %v13435_v17 }
 0xe39   : > { %7612 = vmatmul.mubr.msk.bf16.gmra.mxu1 %vm1255_vm3, %v4255_v50 }
 0xe3a   : > { %4493 = vmatprep.mubr.bf16.mxu1 %v13435_v17 }
 0xe41   : > { %7613 = vmatmul.mubr.msk.bf16.gmra.mxu1 %vm1255_vm3, %v4256_v12 }
 0xe42   : > { %5701 = vmatprep.mubr.bf16.mxu1 %v5666_v53 }
 0xe81   : > { %v4203_v0 = vpop.f32.mrf.mxu1 }
 0xe82   : > { %v4212_v20 = vmul.f32 %v8172_v15, %v4203_v0 }
 0xe83   : > { %v4205_v60 = vpop.f32.mrf.mxu1 }
 0xe84   : > { %v4213_v34 = vmul.f32 %v8174_v30, %v4205_v60  ;;  %v4214_v32 = vpack.c.bf16 %v4212_v20, %v4212_v20 }
 0xe85   : > { %v4207_v31 = vpop.f32.mrf.mxu1 }
 0xe86   : > { %v4215_v4 = vpack.c.bf16 %v4213_v34, %v4213_v34  ;;  %v7226_v18 = vrot.slane %v4214_v32, 2 }
 0xe87   : > { %v4208_v47 = vpop.f32.mrf.mxu1 }
 0xe88   : > { %v7227_v51 = vrot.slane %v4215_v4, 2  ;;  %v11024_v29 = vsel %vm7251_vm5, %v13437_v54, %v7226_v18 }
 0xe89   : > { %v10998_v24 = vpop.f32.mrf.mxu1  ;;  %13438 = vst [vmem:[#allocation21_spill] sm:$0xff] %v11024_v29 }
 0xe8a   : > { %v11030_v14 = vsel %vm7251_vm5, %v13439_v5, %v7227_v51 }
 0xe8b   : > { %v11000_v16 = vpop.f32.mrf.mxu1  ;;  %13440 = vst [vmem:[#allocation22_spill] sm:$0xff] %v11030_v14 }
 0xe8d   : > { %v11002_v62 = vpop.f32.mrf.mxu1 }
 0xe8f   : > { %v11004_v25 = vpop.f32.mrf.mxu1 }
 0xe91   : > { %v11006_v37 = vpop.f32.mrf.mxu1 }
 0xe92   : > { %v4504_v34 = vmax.f32 %v10998_v24, %v11006_v37 }
 0xe93   : > { %v11008_v38 = vpop.f32.mrf.mxu1 }
 0xe94   : > { %v4541_v4 = vmax.f32 %v11000_v16, %v11008_v38 }
 0xe95   : > { %v11010_v21 = vpop.f32.mrf.mxu1 }
 0xe96   : > { %v4505_v60 = vmax.f32 %v11002_v62, %v11010_v21 }
 0xe97   : > { %v11012_v52 = vpop.f32.mrf.mxu1 }
 0xe98   : > { %13436 = vst [vmem:[#allocation28_spill] sm:$0xff] %v11012_v52  ;;  %v4542_v47 = vmax.f32 %v11004_v25, %v11012_v52 }
 0xe99   : > { %v11014_v42 = vpop.f32.mrf.mxu1 }
 0xe9a   : > { %v4506_v18 = vmax.f32 %v4504_v34, %v11014_v42 }
 0xe9b   : > { %v11016_v58 = vpop.f32.mrf.mxu1 }
 0xe9c   : > { %v4543_v29 = vmax.f32 %v4541_v4, %v11016_v58 }
 0xe9d   : > { %v11018_v33 = vpop.f32.mrf.mxu1 }
 0xe9e   : > { %v4507_v32 = vmax.f32 %v4505_v60, %v11018_v33 }
 0xe9f   : > { %v11020_v44 = vpop.f32.mrf.mxu1 }
 0xea0   : > { %v4544_v54 = vmax.f32 %v4542_v47, %v11020_v44 }
 0xea1   : > { %v11026_v3 = vpop.f32.mrf.mxu1 }
 0xea2   : > { %v4508_v14 = vmax.f32 %v4506_v18, %v11026_v3 }
 0xea3   : > { %v11032_v8 = vpop.f32.mrf.mxu1 }
 0xea4   : > { %v4545_v10 = vmax.f32 %v4543_v29, %v11032_v8 }
 0xea5   : > { %v11034_v41 = vpop.f32.mrf.mxu1 }
 0xea6   : > { %13441 = vst [vmem:[#allocation23_spill] sm:$0xff] %v11034_v41  ;;  %v4509_v5 = vmax.f32 %v4507_v32, %v11034_v41 }
 0xea7   : > { %v11036_v19 = vpop.f32.mrf.mxu1 }
 0xea8   : > { %v4546_v45 = vmax.f32 %v4544_v54, %v11036_v19 }
 0xea9   : > { %v11038_v7 = vpop.f32.mrf.mxu1 }
 0xeaa   : > { %v4510_v34 = vmax.f32 %v4508_v14, %v11038_v7 }
 0xeab   : > { %v11040_v6 = vpop.f32.mrf.mxu1 }
 0xeac   : > { %v4547_v4 = vmax.f32 %v4545_v10, %v11040_v6 }
 0xead   : > { %v11042_v39 = vpop.f32.mrf.mxu1 }
 0xeae   : > { %13442 = vst [vmem:[#allocation29_spill] sm:$0xff] %v11042_v39  ;;  %v4511_v60 = vmax.f32 %v4509_v5, %v11042_v39 }
 0xeaf   : > { %v11044_v48 = vpop.f32.mrf.mxu1 }
 0xeb0   : > { %13443 = vst [vmem:[#allocation32_spill] sm:$0xff] %v11044_v48  ;;  %v4548_v47 = vmax.f32 %v4546_v45, %v11044_v48 }
 0xeb1   : > { %v11046_v23 = vpop.f32.mrf.mxu1 }
 0xeb2   : > { %v4512_v18 = vmax.f32 %v4510_v34, %v11046_v23 }
 0xeb3   : > { %v11048_v2 = vpop.f32.mrf.mxu1 }
 0xeb4   : > { %v4549_v29 = vmax.f32 %v4547_v4, %v11048_v2 }
 0xeb5   : > { %v11050_v46 = vpop.f32.mrf.mxu1 }
 0xeb6   : > { %v4513_v32 = vmax.f32 %v4511_v60, %v11050_v46 }
 0xeb7   : > { %v11052_v22 = vpop.f32.mrf.mxu1 }
 0xeb8   : > { %v4550_v54 = vmax.f32 %v4548_v47, %v11052_v22 }
 0xeb9   : > { %v11054_v36 = vpop.f32.mrf.mxu1 }
 0xeba   : > { %13444 = vst [vmem:[#allocation30_spill] sm:$0xff] %v11054_v36  ;;  %v4514_v14 = vmax.f32 %v4512_v18, %v11054_v36 }
 0xebb   : > { %v11056_v11 = vpop.f32.mrf.mxu1 }
 0xebc   : > { %v4551_v10 = vmax.f32 %v4549_v29, %v11056_v11 }
 0xebd   : > { %v11058_v26 = vpop.f32.mrf.mxu1 }
 0xebe   : > { %13445 = vst [vmem:[#allocation14_spill] sm:$0xff] %v11058_v26  ;;  %v4515_v5 = vmax.f32 %v4513_v32, %v11058_v26 }
 0xebf   : > { %v11060_v56 = vpop.f32.mrf.mxu1 }
 0xec0   : > { %v4552_v45 = vmax.f32 %v4550_v54, %v11060_v56 }
 0xec1   : > { %v11062_v50 = vpop.f32.mrf.mxu1 }
 0xec2   : > { %v4516_v34 = vmax.f32 %v4514_v14, %v11062_v50 }
 0xec3   : > { %v11064_v61 = vpop.f32.mrf.mxu1 }
 0xec4   : > { %v4553_v4 = vmax.f32 %v4551_v10, %v11064_v61 }
 0xec5   : > { %v11066_v9 = vpop.f32.mrf.mxu1 }
 0xec6   : > { %v4517_v60 = vmax.f32 %v4515_v5, %v11066_v9 }
 0xec7   : > { %v11068_v12 = vpop.f32.mrf.mxu1 }
 0xec8   : > { %v4554_v47 = vmax.f32 %v4552_v45, %v11068_v12 }
 0xec9   : > { %v11070_v53 = vpop.f32.mrf.mxu1 }
 0xeca   : > { %v4518_v18 = vmax.f32 %v4516_v34, %v11070_v53 }
 0xecb   : > { %v11072_v1 = vpop.f32.mrf.mxu1 }
 0xecc   : > { %v4555_v29 = vmax.f32 %v4553_v4, %v11072_v1 }
 0xecd   : > { %v11074_v40 = vpop.f32.mrf.mxu1 }
 0xece   : > { %13446 = vst [vmem:[#allocation13_spill] sm:$0xff] %v11074_v40  ;;  %v4519_v32 = vmax.f32 %v4517_v60, %v11074_v40 }
 0xecf   : > { %v11076_v13 = vpop.f32.mrf.mxu1 }
 0xed0   : > { %v4556_v54 = vmax.f32 %v4554_v47, %v11076_v13 }
 0xed1   : > { %v11078_v63 = vpop.f32.mrf.mxu1 }
 0xed2   : > { %v4520_v14 = vmax.f32 %v4518_v18, %v11078_v63 }
 0xed3   : > { %v11080_v59 = vpop.f32.mrf.mxu1 }
 0xed4   : > { %13447 = vst [vmem:[#allocation44_spill] sm:$0xff] %v11080_v59  ;;  %v4557_v10 = vmax.f32 %v4555_v29, %v11080_v59 }
 0xed5   : > { %v11082_v57 = vpop.f32.mrf.mxu1 }
 0xed6   : > { %13448 = vst [vmem:[#allocation46_spill] sm:$0xff] %v11082_v57  ;;  %v4521_v5 = vmax.f32 %v4519_v32, %v11082_v57 }
 0xed7   : > { %v11084_v35 = vpop.f32.mrf.mxu1 }
 0xed8   : > { %13449 = vst [vmem:[#allocation33_spill] sm:$0xff] %v11084_v35  ;;  %v4558_v45 = vmax.f32 %v4556_v54, %v11084_v35 }
 0xed9   : > { %v11086_v49 = vpop.f32.mrf.mxu1 }
 0xeda   : > { %13450 = vst [vmem:[#allocation31_spill] sm:$0xff] %v11086_v49  ;;  %v4522_v34 = vmax.f32 %v4520_v14, %v11086_v49 }
 0xedb   : > { %v11088_v55 = vpop.f32.mrf.mxu1 }
 0xedc   : > { %13451 = vst [vmem:[#allocation34_spill] sm:$0xff] %v11088_v55  ;;  %v4559_v4 = vmax.f32 %v4557_v10, %v11088_v55 }
 0xedd   : > { %v11090_v43 = vpop.f32.mrf.mxu1 }
 0xede   : > { %13452 = vst [vmem:[#allocation35_spill] sm:$0xff] %v11090_v43  ;;  %v4523_v60 = vmax.f32 %v4521_v5, %v11090_v43 }
 0xedf   : > { %v11092_v28 = vpop.f32.mrf.mxu1 }
 0xee0   : > { %13453 = vst [vmem:[#allocation36_spill] sm:$0xff] %v11092_v28  ;;  %v4560_v47 = vmax.f32 %v4558_v45, %v11092_v28 }
 0xee1   : > { %v11094_v27 = vpop.f32.mrf.mxu1 }
 0xee2   : > { %v4524_v18 = vmax.f32 %v4522_v34, %v11094_v27 }
 0xee3   : > { %v11096_v15 = vpop.f32.mrf.mxu1 }
 0xee4   : > { %13454 = vst [vmem:[#allocation38_spill] sm:$0xff] %v11096_v15  ;;  %v4561_v29 = vmax.f32 %v4559_v4, %v11096_v15 }
 0xee5   : > { %v11098_v0 = vpop.f32.mrf.mxu1 }
 0xee6   : > { %v4525_v32 = vmax.f32 %v4523_v60, %v11098_v0 }
 0xee7   : > { %v11100_v20 = vpop.f32.mrf.mxu1 }
 0xee8   : > { %13455 = vst [vmem:[#allocation18_spill] sm:$0xff] %v11100_v20  ;;  %v4562_v54 = vmax.f32 %v4560_v47, %v11100_v20 }
 0xee9   : > { %v11102_v30 = vpop.f32.mrf.mxu1 }
 0xeea   : > { %v4526_v14 = vmax.f32 %v4524_v18, %v11102_v30 }
 0xeeb   : > { %v11108_v31 = vpop.f32.mrf.mxu1 }
 0xeec   : > { %v4563_v10 = vmax.f32 %v4561_v29, %v11108_v31 }
 0xeed   : > { %v11116_v51 = vpop.f32.mrf.mxu1 }
 0xeee   : > { %v4527_v5 = vmax.f32 %v4525_v32, %v11116_v51 }
 0xeef   : > { %v11122_v17 = vpop.f32.mrf.mxu1 }
 0xef0   : > { %v4564_v45 = vmax.f32 %v4562_v54, %v11122_v17 }
 0xef1   : > { %v11128_v52 = vpop.f32.mrf.mxu1 }
 0xef2   : > { %v4528_v34 = vmax.f32 %v4526_v14, %v11128_v52 }
 0xef3   : > { %v11134_v41 = vpop.f32.mrf.mxu1 }
 0xef4   : > { %v4565_v4 = vmax.f32 %v4563_v10, %v11134_v41 }
 0xef5   : > { %v11140_v39 = vpop.f32.mrf.mxu1 }
 0xef6   : > { %v4529_v60 = vmax.f32 %v4527_v5, %v11140_v39 }
 0xef7   : > { %v11146_v48 = vpop.f32.mrf.mxu1 }
 0xef8   : > { %v4566_v47 = vmax.f32 %v4564_v45, %v11146_v48 }
 0xef9   : > { %v11152_v26 = vpop.f32.mrf.mxu1 }
 0xefa   : > { %13456 = vst [vmem:[#allocation19_spill] sm:$0xff] %v11152_v26  ;;  %v4530_v18 = vmax.f32 %v4528_v34, %v11152_v26 }
 0xefb   : > { %v11158_v36 = vpop.f32.mrf.mxu1 }
 0xefc   : > { %13457 = vst [vmem:[#allocation48_spill] sm:$0xff] %v11158_v36  ;;  %v4567_v29 = vmax.f32 %v4565_v4, %v11158_v36 }
 0xefd   : > { %v11164_v40 = vpop.f32.mrf.mxu1 }
 0xefe   : > { %13458 = vst [vmem:[#allocation37_spill] sm:$0xff] %v11164_v40  ;;  %v4531_v32 = vmax.f32 %v4529_v60, %v11164_v40 }
 0xeff   : > { %v11170_v57 = vpop.f32.mrf.mxu1 }
 0xf00   : > { %13459 = vst [vmem:[#allocation39_spill] sm:$0xff] %v11170_v57  ;;  %v4568_v54 = vmax.f32 %v4566_v47, %v11170_v57 }
 0xf01   : > { %v11176_v43 = vpop.f32.mrf.mxu1 }
 0xf02   : > { %v4532_v14 = vmax.f32 %v4530_v18, %v11176_v43 }
 0xf03   : > { %v11182_v28 = vpop.f32.mrf.mxu1 }
 0xf04   : > { %v4569_v60 = vmax.f32 %v4567_v29, %v11182_v28 }
 0xf05   : > { %v11188_v20 = vpop.f32.mrf.mxu1 }
 0xf06   : > { %v4533_v5 = vmax.f32 %v4531_v32, %v11188_v20 }
 0xf07   : > { %v11194_v15 = vpop.f32.mrf.mxu1 }
 0xf08   : > { %v4570_v45 = vmax.f32 %v4568_v54, %v11194_v15  ;;  %v4534_v40 = vmax.f32 %v4532_v14, %v4533_v5 }
 0xf0a   : > { %v4571_v10 = vmax.f32 %v4569_v60, %v4570_v45  ;;  %v4535_v55 = vrot.slane %v4534_v40, 4 }
 0xf0c   : > { %v4572_v34 = vrot.slane %v4571_v10, 4  ;;  %v4536_v26 = vmax.f32 %v4534_v40, %v4535_v55 }
 0xf0e   : > { %v4573_v49 = vmax.f32 %v4571_v10, %v4572_v34  ;;  %v4537_v35 = vrot.slane %v4536_v26, 2 }
 0xf10   : > { %v4574_v47 = vrot.slane %v4573_v49, 2  ;;  %v4538_v57 = vmax.f32 %v4536_v26, %v4537_v35 }
 0xf12   : > { %v4575_v32 = vmax.f32 %v4573_v49, %v4574_v47  ;;  %v4539_v59 = vrot.slane %v4538_v57, 1 }
 0xf14   : > { %v4576_v4 = vrot.slane %v4575_v32, 1  ;;  %v11198_v36 = vmax.f32 %v4538_v57, %v4539_v59 }
 0xf16   : > { %v11200_v18 = vmax.f32 %v4575_v32, %v4576_v4  ;;  %v4578_v54 = vsub.f32 %v10998_v24, %v11198_v36  ;;  %v4580_v5 = vsub.f32 %v11002_v62, %v11198_v36  ;;  %v4582_v40 = vsub.f32 %v11006_v37, %v11198_v36 }
 0xf17   : > { %v4584_v55 = vsub.f32 %v11010_v21, %v11198_v36  ;;  %v4622_v26 = vsub.f32 %v11094_v27, %v11198_v36  ;;  %v4624_v59 = vsub.f32 %v11098_v0, %v11198_v36  ;;  %v4626_v57 = vsub.f32 %v11102_v30, %v11198_v36 }
 0xf18   : > { %v4628_v24 = vsub.f32 %v11116_v51, %v11198_v36  ;;  %v4630_v62 = vsub.f32 %v11128_v52, %v11198_v36  ;;  %v4632_v37 = vsub.f32 %v11140_v39, %v11198_v36  ;;  %v4579_v21 = vsub.f32 %v11000_v16, %v11200_v18  ;;  %v13460_v52 = vld [vmem:[#allocation28_spill] sm:$0xff] }
 0xf19   : > { %v4581_v35 = vsub.f32 %v11004_v25, %v11200_v18  ;;  %v4586_v49 = vsub.f32 %v11014_v42, %v11198_v36  ;;  %v4588_v27 = vsub.f32 %v11018_v33, %v11198_v36  ;;  %v4583_v0 = vsub.f32 %v11008_v38, %v11200_v18 }
 0xf1a   : > { %v4585_v30 = vsub.f32 %v13460_v52, %v11200_v18  ;;  %v4587_v39 = vsub.f32 %v11016_v58, %v11200_v18  ;;  %v4589_v16 = vsub.f32 %v11020_v44, %v11200_v18  ;;  %v4627_v25 = vsub.f32 %v11108_v31, %v11200_v18 }
 0xf1b   : > { %v4629_v42 = vsub.f32 %v11122_v17, %v11200_v18  ;;  %v4631_v33 = vsub.f32 %v11134_v41, %v11200_v18  ;;  %v4633_v38 = vsub.f32 %v11146_v48, %v11200_v18  ;;  %v11246_v51 = vpack.c.bf16 %v4624_v59, %v4622_v26  ;;  %v13461_v17 = vld [vmem:[#allocation23_spill] sm:$0xff] }
 0xf1c   : > { %v11248_v29 = vpack.c.bf16 %v4628_v24, %v4626_v57  ;;  %v4642_v58 = vpack.c.bf16 %v4580_v5, %v4578_v54  ;;  %v4644_v14 = vpack.c.bf16 %v4584_v55, %v4582_v40  ;;  %v11250_v45 = vpack.c.bf16 %v4632_v37, %v4630_v62  ;;  %v13463_v24 = vld [vmem:[#allocation32_spill] sm:$0xff] }
 0xf1d   : > { %v4643_v44 = vpack.c.bf16 %v4581_v35, %v4579_v21  ;;  %v4590_v31 = vsub.f32 %v11026_v3, %v11198_v36  ;;  %v4592_v60 = vsub.f32 %v13461_v17, %v11198_v36  ;;  %v4645_v10 = vpack.c.bf16 %v4585_v30, %v4583_v0  ;;  %v13462_v3 = vld [vmem:[#allocation29_spill] sm:$0xff] }
 0xf1e   : > { %v4594_v41 = vsub.f32 %v11038_v7, %v11198_v36  ;;  %v4591_v48 = vsub.f32 %v11032_v8, %v11200_v18  ;;  %v4646_v34 = vpack.c.bf16 %v4588_v27, %v4586_v49  ;;  %v4593_v47 = vsub.f32 %v11036_v19, %v11200_v18 }
 0xf1f   : > { %v4647_v32 = vpack.c.bf16 %v4589_v16, %v4587_v39  ;;  %v11262_v4 = vpack.c.bf16 %v4629_v42, %v4627_v25  ;;  %v11264_v54 = vpack.c.bf16 %v4633_v38, %v4631_v33  ;;  %v4596_v5 = vsub.f32 %v13462_v3, %v11198_v36  ;;  %v13465_v33 = vld [vmem:[#allocation14_spill] sm:$0xff] }
 0xf20   : > { %v4675_v40 = vmul.bf16 1069105081, %v4642_v58  ;;  %v4678_v55 = vmul.bf16 1069105081, %v4643_v44  ;;  %v4681_v26 = vmul.bf16 1069105081, %v4644_v14  ;;  %v4598_v7 = vsub.f32 %v11046_v23, %v11198_v36 }
 0xf21   : > { %v4600_v8 = vsub.f32 %v11050_v46, %v11198_v36  ;;  %v4648_v59 = vpack.c.bf16 %v4592_v60, %v4590_v31  ;;  %v4684_v57 = vmul.bf16 1069105081, %v4645_v10  ;;  %v4595_v19 = vsub.f32 %v11040_v6, %v11200_v18 }
 0xf22   : > { %v4597_v62 = vsub.f32 %v13463_v24, %v11200_v18  ;;  %8175 = vpow.bf16 %v4675_v40  ;;  %v4687_v37 = vmul.bf16 1069105081, %v4646_v34  ;;  %v4606_v21 = vsub.f32 %v11062_v50, %v11198_v36 }
 0xf23   : > { %v4649_v35 = vpack.c.bf16 %v4593_v47, %v4591_v48  ;;  %8177 = vpow.bf16 %v4678_v55  ;;  %v4690_v49 = vmul.bf16 1069105081, %v4647_v32  ;;  %v4608_v23 = vsub.f32 %v11066_v9, %v11198_v36  ;;  %v13466_v47 = vld [vmem:[#allocation13_spill] sm:$0xff] }
 0xf24   : > { %v4599_v46 = vsub.f32 %v11048_v2, %v11200_v18  ;;  %v4601_v6 = vsub.f32 %v11052_v22, %v11200_v18  ;;  %8179 = vpow.bf16 %v4681_v26  ;;  %v4607_v27 = vsub.f32 %v11064_v61, %v11200_v18  ;;  %v13464_v61 = vld [vmem:[#allocation30_spill] sm:$0xff] }
 0xf25   : > { %v4609_v0 = vsub.f32 %v11068_v12, %v11200_v18  ;;  %v4650_v50 = vpack.c.bf16 %v4596_v5, %v4594_v41  ;;  %8181 = vpow.bf16 %v4684_v57  ;;  %v4603_v52 = vsub.f32 %v11056_v11, %v11200_v18 }
 0xf26   : > { %v4651_v30 = vpack.c.bf16 %v4597_v62, %v4595_v19  ;;  %8183 = vpow.bf16 %v4687_v37  ;;  %v4693_v9 = vmul.bf16 1069105081, %v4648_v59  ;;  %v4605_v2 = vsub.f32 %v11060_v56, %v11200_v18 }
 0xf27   : > { %v4652_v39 = vpack.c.bf16 %v4600_v8, %v4598_v7  ;;  %8185 = vpow.bf16 %v4690_v49  ;;  %v4696_v22 = vmul.bf16 1069105081, %v4649_v35  ;;  %v4653_v16 = vpack.c.bf16 %v4601_v6, %v4599_v46  ;;  %v13468_v46 = vld [vmem:[#allocation44_spill] sm:$0xff] }
 0xf28   : > { %v4602_v25 = vsub.f32 %v13464_v61, %v11198_v36  ;;  %v4657_v42 = vpack.c.bf16 %v4609_v0, %v4607_v27  ;;  %v4699_v12 = vmul.bf16 1069105081, %v4650_v50  ;;  %v4604_v38 = vsub.f32 %v13465_v33, %v11198_v36  ;;  %v13470_v61 = vld [vmem:[#allocation31_spill] sm:$0xff] }
 0xf29   : > { %v4656_v58 = vpack.c.bf16 %v4608_v23, %v4606_v21  ;;  %8187 = vpow.bf16 %v4693_v9  ;;  %v4702_v11 = vmul.bf16 1069105081, %v4651_v30  ;;  %v4655_v14 = vpack.c.bf16 %v4605_v2, %v4603_v52  ;;  %v13467_v23 = vld [vmem:[#allocation46_spill] sm:$0xff] }
 0xf2a   : > { %8189 = vpow.bf16 %v4696_v22  ;;  %v4705_v44 = vmul.bf16 1069105081, %v4652_v39  ;;  %v4708_v31 = vmul.bf16 1069105081, %v4653_v16  ;;  %v4720_v56 = vmul.bf16 1069105081, %v4657_v42 }
 0xf2b   : > { %8191 = vpow.bf16 %v4699_v12  ;;  %v4654_v17 = vpack.c.bf16 %v4604_v38, %v4602_v25  ;;  %v4717_v60 = vmul.bf16 1069105081, %v4656_v58  ;;  %v4714_v10 = vmul.bf16 1069105081, %v4655_v14  ;;  %v13471_v42 = vld [vmem:[#allocation35_spill] sm:$0xff] }
 0xf2c   : > { %8193 = vpow.bf16 %v4702_v11  ;;  %v4638_v48 = vsub.f32 %v11176_v43, %v11198_v36  ;;  %v4610_v34 = vsub.f32 %v11070_v53, %v11198_v36  ;;  %v4612_v32 = vsub.f32 %v13466_v47, %v11198_v36  ;;  %v13472_v11 = vld [vmem:[#allocation34_spill] sm:$0xff] }
 0xf2d   : > { %8195 = vpow.bf16 %v4705_v44  ;;  %v4611_v5 = vsub.f32 %v11072_v1, %v11200_v18  ;;  %v4711_v7 = vmul.bf16 1069105081, %v4654_v17  ;;  %v4613_v57 = vsub.f32 %v11076_v13, %v11200_v18  ;;  %v13473_v44 = vld [vmem:[#allocation36_spill] sm:$0xff] }
 0xf2e   : > { %8197 = vpow.bf16 %v4708_v31  ;;  %v4640_v62 = vsub.f32 %v11188_v20, %v11198_v36  ;;  %v4614_v37 = vsub.f32 %v11078_v63, %v11198_v36  ;;  %v4616_v13 = vsub.f32 %v13467_v23, %v11198_v36  ;;  %v13469_v63 = vld [vmem:[#allocation33_spill] sm:$0xff] }
 0xf2f   : > { %8199 = vpow.bf16 %v4720_v56  ;;  %v4615_v6 = vsub.f32 %v13468_v46, %v11200_v18  ;;  %v4658_v50 = vpack.c.bf16 %v4612_v32, %v4610_v34  ;;  %v4617_v9 = vsub.f32 %v13469_v63, %v11200_v18 }
 0xf30   : > { %v11296_v41 = vpop.eup %8175  ;;  %8201 = vpow.bf16 %v4717_v60  ;;  %v4659_v2 = vpack.c.bf16 %v4613_v57, %v4611_v5  ;;  %v4618_v25 = vsub.f32 %v13470_v61, %v11198_v36  ;;  %v4620_v12 = vsub.f32 %v13471_v42, %v11198_v36 }
 0xf31   : > { %v11304_v3 = vpop.eup %8177  ;;  %v4770_v40 = vunpack.c.l.bf16 %v11296_v41  ;;  %v4772_v55 = vunpack.c.h.bf16 %v11296_v41  ;;  %8203 = vpow.bf16 %v4714_v10  ;;  %v4619_v14 = vsub.f32 %v13472_v11, %v11200_v18 }
 0xf32   : > { %v11310_v26 = vpop.eup %8179  ;;  %v4771_v53 = vunpack.c.l.bf16 %v11304_v3  ;;  %v4773_v8 = vunpack.c.h.bf16 %v11304_v3  ;;  %8205 = vpow.bf16 %v4711_v7  ;;  %v4621_v31 = vsub.f32 %v13473_v44, %v11200_v18 }
 0xf33   : > { %v11314_v59 = vpop.eup %8181  ;;  %v4774_v1 = vunpack.c.l.bf16 %v11310_v26  ;;  %v4834_v19 = vadd.f32 %v4772_v55, %v4770_v40  ;;  %v4776_v27 = vunpack.c.h.bf16 %v11310_v26  ;;  %v4660_v60 = vpack.c.bf16 %v4616_v13, %v4614_v37 }
 0xf34   : > { %v11319_v24 = vpop.eup %8183  ;;  %v4775_v21 = vunpack.c.l.bf16 %v11314_v59  ;;  %v4871_v35 = vadd.f32 %v4773_v8, %v4771_v53  ;;  %v4777_v52 = vunpack.c.h.bf16 %v11314_v59  ;;  %v4723_v10 = vmul.bf16 1069105081, %v4658_v50  ;;  %v13474_v8 = vld [vmem:[#allocation38_spill] sm:$0xff] }
 0xf35   : > { %v11326_v49 = vpop.eup %8185  ;;  %v4835_v0 = vadd.f32 %v4834_v19, %v4774_v1  ;;  %v4778_v39 = vunpack.c.l.bf16 %v11319_v24  ;;  %v4780_v56 = vunpack.c.h.bf16 %v11319_v24  ;;  %v4661_v5 = vpack.c.bf16 %v4617_v9, %v4615_v6  ;;  %v13475_v1 = vld [vmem:[#allocation18_spill] sm:$0xff] }
 0xf36   : > { %v4872_v30 = vadd.f32 %v4871_v35, %v4775_v21  ;;  %v4779_v33 = vunpack.c.l.bf16 %v11326_v49  ;;  %v4781_v34 = vunpack.c.h.bf16 %v11326_v49  ;;  %v4726_v40 = vmul.bf16 1069105081, %v4659_v2 }
 0xf37   : > { %v4836_v22 = vadd.f32 %v4835_v0, %v4776_v27  ;;  %v11337_v16 = vpop.eup %8187  ;;  %v4623_v57 = vsub.f32 %v13474_v8, %v11200_v18  ;;  %v4625_v19 = vsub.f32 %v13475_v1, %v11200_v18  ;;  %v4662_v23 = vpack.c.bf16 %v4620_v12, %v4618_v25 }
 0xf38   : > { %v4873_v38 = vadd.f32 %v4872_v30, %v4777_v52  ;;  %v11344_v58 = vpop.eup %8189  ;;  %v4782_v55 = vunpack.c.l.bf16 %v11337_v16  ;;  %v4663_v13 = vpack.c.bf16 %v4621_v31, %v4619_v14  ;;  %v4784_v46 = vunpack.c.h.bf16 %v11337_v16 }
 0xf39   : > { %v4837_v17 = vadd.f32 %v4836_v22, %v4778_v39  ;;  %v11352_v32 = vpop.eup %8191  ;;  %v4783_v37 = vunpack.c.l.bf16 %v11344_v58  ;;  %8207 = vpow.bf16 %v4723_v10  ;;  %v4729_v0 = vmul.bf16 1069105081, %v4660_v60 }
 0xf3a   : > { %v4874_v47 = vadd.f32 %v4873_v38, %v4779_v33  ;;  %v11355_v53 = vpop.eup %8193  ;;  %v4785_v50 = vunpack.c.h.bf16 %v11344_v58  ;;  %8209 = vpow.bf16 %v4726_v40  ;;  %v4732_v63 = vmul.bf16 1069105081, %v4661_v5  ;;  %v13476_v5 = vld [vmem:[#allocation48_spill] sm:$0xff] }
 0xf3b   : > { %v4838_v7 = vadd.f32 %v4837_v17, %v4780_v56  ;;  %v8196_v35 = vpop.eup %8195  ;;  %v4786_v9 = vunpack.c.l.bf16 %v11352_v32  ;;  %v4639_v22 = vsub.f32 %v11182_v28, %v11200_v18  ;;  %v4641_v61 = vsub.f32 %v11194_v15, %v11200_v18 }
 0xf3c   : > { %v4875_v21 = vadd.f32 %v4874_v47, %v4781_v34  ;;  %v8198_v27 = vpop.eup %8197  ;;  %v4787_v25 = vunpack.c.l.bf16 %v11355_v53  ;;  %v4665_v33 = vpack.c.bf16 %v4625_v19, %v4623_v57  ;;  %v4788_v38 = vunpack.c.h.bf16 %v11352_v32 }
 0xf3d   : > { %v4839_v6 = vadd.f32 %v4838_v7, %v4782_v55  ;;  %v11364_v30 = vpop.eup %8199  ;;  %8211 = vpow.bf16 %v4729_v0  ;;  %v4735_v14 = vmul.bf16 1069105081, %v4662_v23  ;;  %v4789_v44 = vunpack.c.h.bf16 %v11355_v53  ;;  %v13477_v55 = vld [vmem:[#allocation39_spill] sm:$0xff] }
 0xf3e   : > { %v4876_v52 = vadd.f32 %v4875_v21, %v4783_v37  ;;  %v11367_v39 = vpop.eup %8201  ;;  %4915 = vmatprep.subr.bf16.mxu0 %v11364_v30  ;;  %8213 = vpow.bf16 %v4732_v63  ;;  %v4738_v15 = vmul.bf16 1069105081, %v4663_v13  ;;  %v4790_v31 = vunpack.c.l.bf16 %v8196_v35  ;;  %v13478_v37 = vld [vmem:[#allocation19_spill] sm:$0xff] }
 0xf3f   : > { %v4840_v2 = vadd.f32 %v4839_v6, %v4784_v46  ;;  %v8204_v12 = vpop.eup %8203  ;;  %4916 = vmatpush1.bf16.msra.mxu0 %v11367_v39  ;;  %v4672_v60 = vpack.c.bf16 %v4640_v62, %v4638_v48  ;;  %v4673_v10 = vpack.c.bf16 %v4641_v61, %v4639_v22  ;;  %v4791_v34 = vunpack.c.l.bf16 %v8198_v27 }
 0xf40   : > { %v4877_v42 = vadd.f32 %v4876_v52, %v4785_v50  ;;  %4917 = vmatprep.subr.bf16.mxu0 %v8204_v12  ;;  %v8206_v17 = vpop.eup %8205  ;;  %v4635_v40 = vsub.f32 %v13476_v5, %v11200_v18  ;;  %v4637_v7 = vsub.f32 %v13477_v55, %v11200_v18  ;;  %v4792_v8 = vunpack.c.h.bf16 %v8196_v35  ;;  %v13479_v18 = vld [vmem:[#allocation37_spill] sm:$0xff] }
 0xf41   : > { %v4841_v11 = vadd.f32 %v4840_v2, %v4786_v9  ;;  %8215 = vpow.bf16 %v4735_v14  ;;  %v4741_v1 = vmul.bf16 1069105081, %v11246_v51  ;;  %v4793_v43 = vunpack.c.h.bf16 %v8198_v27 }
 0xf42   : > { %v4878_v28 = vadd.f32 %v4877_v42, %v4787_v25  ;;  %8217 = vpow.bf16 %v4738_v15  ;;  %v4744_v20 = vmul.bf16 1069105081, %v4665_v33  ;;  %v4794_v48 = vunpack.c.l.bf16 %v8206_v17 }
 0xf43   : > { %v4842_v56 = vadd.f32 %v4841_v11, %v4788_v38  ;;  %4918 = vmatpush1.bf16.msra.mxu0 %v8206_v17  ;;  %v4634_v21 = vsub.f32 %v13478_v37, %v11198_v36  ;;  %v4768_v23 = vmul.bf16 1069105081, %v4673_v10  ;;  %v4795_v13 = vunpack.c.l.bf16 %v8204_v12 }
 0xf44   : > { %v4879_v47 = vadd.f32 %v4878_v28, %v4789_v44  ;;  %4919 = vmatprep.subr.bf16.mxu0 %v8198_v27  ;;  %v4636_v6 = vsub.f32 %v13479_v18, %v11198_v36  ;;  %v4671_v0 = vpack.c.bf16 %v4637_v7, %v4635_v40  ;;  %v4796_v50 = vunpack.c.h.bf16 %v8206_v17 }
 0xf45   : > { %v4843_v57 = vadd.f32 %v4842_v56, %v4790_v31  ;;  %8219 = vpow.bf16 %v4741_v1  ;;  %v4747_v51 = vmul.bf16 1069105081, %v11248_v29  ;;  %v4797_v27 = vunpack.c.h.bf16 %v8204_v12 }
 0xf46   : > { %v4880_v19 = vadd.f32 %v4879_v47, %v4791_v34  ;;  %8221 = vpow.bf16 %v4744_v20  ;;  %v4750_v9 = vmul.bf16 1069105081, %v11262_v4  ;;  %v4798_v2 = vunpack.c.l.bf16 %v11367_v39 }
 0xf47   : > { %v4844_v62 = vadd.f32 %v4843_v57, %v4792_v8  ;;  %4920 = vmatpush1.bf16.msra.mxu0 %v8196_v35  ;;  %v11397_v61 = vpop.eup %8207  ;;  %v4765_v36 = vmul.bf16 1069105081, %v4672_v60  ;;  %8223 = vpow.bf16 %v4768_v23  ;;  %v4799_v25 = vunpack.c.l.bf16 %v11364_v30 }
 0xf48   : > { %v4881_v46 = vadd.f32 %v4880_v19, %v4793_v43  ;;  %4921 = vmatprep.subr.bf16.mxu0 %v11355_v53  ;;  %v11400_v42 = vpop.eup %8209  ;;  %v4670_v29 = vpack.c.bf16 %v4636_v6, %v4634_v21  ;;  %v4753_v12 = vmul.bf16 1069105081, %v11250_v45  ;;  %v4800_v53 = vunpack.c.h.bf16 %v11367_v39 }
 0xf49   : > { %v4845_v52 = vadd.f32 %v4844_v62, %v4794_v48  ;;  %8225 = vpow.bf16 %v4747_v51  ;;  %v4756_v4 = vmul.bf16 1069105081, %v11264_v54  ;;  %v4801_v38 = vunpack.c.h.bf16 %v11364_v30 }
 0xf4a   : > { %v4882_v63 = vadd.f32 %v4881_v46, %v4795_v13  ;;  %8227 = vpow.bf16 %v4750_v9  ;;  %v4762_v14 = vmul.bf16 1069105081, %v4671_v0  ;;  %v4802_v44 = vunpack.c.l.bf16 %v11397_v61 }
 0xf4b   : > { %v4846_v22 = vadd.f32 %v4845_v52, %v4796_v50  ;;  %4922 = vmatpush1.bf16.msra.mxu0 %v11352_v32  ;;  %v11409_v15 = vpop.eup %8211  ;;  %8229 = vpow.bf16 %v4765_v36  ;;  %v4803_v45 = vunpack.c.l.bf16 %v11400_v42  ;;  %v4804_v54 = vunpack.c.h.bf16 %v11397_v61 }
 0xf4c   : > { %v4883_v35 = vadd.f32 %v4882_v63, %v4797_v27  ;;  %4923 = vmatprep.subr.bf16.mxu0 %v11344_v58  ;;  %v11412_v32 = vpop.eup %8213  ;;  %8231 = vpow.bf16 %v4753_v12  ;;  %v4759_v58 = vmul.bf16 1069105081, %v4670_v29  ;;  %v4805_v31 = vunpack.c.h.bf16 %v11400_v42 }
 0xf4d   : > { %v4847_v33 = vadd.f32 %v4846_v22, %v4798_v2  ;;  %8233 = vpow.bf16 %v4756_v4  ;;  %v4806_v17 = vunpack.c.l.bf16 %v11409_v15  ;;  %v4807_v34 = vunpack.c.l.bf16 %v11412_v32 }
 0xf4e   : > { %v4884_v11 = vadd.f32 %v4883_v35, %v4799_v25  ;;  %8235 = vpow.bf16 %v4762_v14  ;;  %v4809_v55 = vunpack.c.h.bf16 %v11412_v32 }
 0xf4f   : > { %v4848_v28 = vadd.f32 %v4847_v33, %v4800_v53  ;;  %4924 = vmatpush1.bf16.msra.mxu0 %v11337_v16  ;;  %v11419_v10 = vpop.eup %8215  ;;  %v4808_v16 = vunpack.c.h.bf16 %v11409_v15  ;;  %8237 = vpow.bf16 %v4759_v58 }
 0xf50   : > { %v4885_v39 = vadd.f32 %v4884_v11, %v4801_v38  ;;  %4925 = vmatprep.subr.bf16.mxu0 %v11326_v49  ;;  %v11422_v5 = vpop.eup %8217  ;;  %v4810_v7 = vunpack.c.l.bf16 %v11419_v10  ;;  %v4812_v20 = vunpack.c.h.bf16 %v11419_v10 }
 0xf51   : > { %v4849_v30 = vadd.f32 %v4848_v28, %v4802_v44  ;;  %v4811_v1 = vunpack.c.l.bf16 %v11422_v5  ;;  %v4813_v62 = vunpack.c.h.bf16 %v11422_v5 }
 0xf52   : > { %v4886_v56 = vadd.f32 %v4885_v39, %v4803_v45 }
 0xf53   : > { %v4850_v60 = vadd.f32 %v4849_v30, %v4804_v54  ;;  %4926 = vmatpush1.bf16.msra.mxu0 %v11319_v24  ;;  %v11429_v57 = vpop.eup %8219 }
 0xf54   : > { %v4887_v47 = vadd.f32 %v4886_v56, %v4805_v31  ;;  %4927 = vmatprep.subr.bf16.mxu0 %v11314_v59  ;;  %v8222_v19 = vpop.eup %8221  ;;  %v4814_v59 = vunpack.c.l.bf16 %v11429_v57  ;;  %v4816_v6 = vunpack.c.h.bf16 %v11429_v57 }
 0xf55   : > { %v4851_v40 = vadd.f32 %v4850_v60, %v4806_v17  ;;  %v11434_v24 = vpop.eup %8223  ;;  %v4815_v13 = vunpack.c.l.bf16 %v8222_v19  ;;  %v4817_v50 = vunpack.c.h.bf16 %v8222_v19 }
 0xf56   : > { %v4888_v49 = vadd.f32 %v4887_v47, %v4807_v34  ;;  %v4831_v34 = vunpack.c.l.bf16 %v11434_v24 }
 0xf57   : > { %v4852_v8 = vadd.f32 %v4851_v40, %v4808_v16  ;;  %4928 = vmatpush1.bf16.msra.mxu0 %v11310_v26  ;;  %v8226_v23 = vpop.eup %8225 }
 0xf58   : > { %v4889_v43 = vadd.f32 %v4888_v49, %v4809_v55  ;;  %4929 = vmatprep.subr.bf16.mxu0 %v11304_v3  ;;  %v8228_v18 = vpop.eup %8227  ;;  %v4818_v27 = vunpack.c.l.bf16 %v8226_v23  ;;  %v4820_v36 = vunpack.c.h.bf16 %v8226_v23  ;;  %v4833_v55 = vunpack.c.h.bf16 %v11434_v24 }
 0xf59   : > { %v4853_v48 = vadd.f32 %v4852_v8, %v4810_v7  ;;  %v8230_v26 = vpop.eup %8229  ;;  %v4819_v9 = vunpack.c.l.bf16 %v8228_v18  ;;  %v4821_v35 = vunpack.c.h.bf16 %v8228_v18 }
 0xf5a   : > { %v4890_v37 = vadd.f32 %v4889_v43, %v4811_v1  ;;  %v8232_v51 = vpop.eup %8231  ;;  %v4830_v17 = vunpack.c.l.bf16 %v8230_v26  ;;  %v4832_v16 = vunpack.c.h.bf16 %v8230_v26  ;;  %v13480_v1 = vld [vmem:[#allocation27_spill] sm:$0xff] }
 0xf5b   : > { %v4854_v21 = vadd.f32 %v4853_v48, %v4812_v20  ;;  %4930 = vmatpush1.bf16.msra.mxu0 %v11296_v41  ;;  %v8234_v63 = vpop.eup %8233  ;;  %v4822_v41 = vunpack.c.l.bf16 %v8232_v51  ;;  %v4824_v38 = vunpack.c.h.bf16 %v8232_v51  ;;  %v5008_v43 = vrot.slane %v13480_v1, 2  ;;  %v8450_v48 = vld [vmem:[#allocation4 + $0x28] sm:$0x33] }
 0xf5c   : > { %v4891_v46 = vadd.f32 %v4890_v37, %v4813_v62  ;;  %4931 = vmatprep.subr.bf16.mxu0 %v11434_v24  ;;  %v8236_v22 = vpop.eup %8235  ;;  %v4823_v33 = vunpack.c.l.bf16 %v8234_v63  ;;  %v4825_v14 = vunpack.c.h.bf16 %v8234_v63  ;;  %v7614_v24 = vcombine.low %v8450_v48, %v8450_v48 }
 0xf5d   : > { %v4855_v0 = vadd.f32 %v4854_v21, %v4814_v59  ;;  %v8238_v53 = vpop.eup %8237  ;;  %v4827_v39 = vunpack.c.l.bf16 %v8236_v22  ;;  %v4829_v31 = vunpack.c.h.bf16 %v8236_v22  ;;  %v4997_v21 = vpop.trf.xlu1 }
 0xf5e   : > { %v4892_v52 = vadd.f32 %v4891_v46, %v4815_v13  ;;  %v4826_v28 = vunpack.c.l.bf16 %v8238_v53  ;;  %v4828_v30 = vunpack.c.h.bf16 %v8238_v53 }
 0xf5f   : > { %v4856_v3 = vadd.f32 %v4855_v0, %v4816_v6  ;;  %4932 = vmatpush2.bf16.msra.mxu0 %v8230_v26  ;;  %v5717_v26 = vld [vmem:[#allocation4 + $0x38] sm:$0x33] }
 0xf60   : > { %v4893_v2 = vadd.f32 %v4892_v52, %v4817_v50  ;;  %4933 = vmatprep.subr.bf16.mxu0 %v8236_v22  ;;  %v7657_v52 = vcombine.high %v5717_v26, %v5717_v26 }
 0xf61   : > { %v4857_v25 = vadd.f32 %v4856_v3, %v4818_v27 }
 0xf62   : > { %v4894_v29 = vadd.f32 %v4893_v2, %v4819_v9 }
 0xf63   : > { %v4858_v12 = vadd.f32 %v4857_v25, %v4820_v36  ;;  %4934 = vmatpush2.bf16.msra.mxu0 %v8238_v53 }
 0xf64   : > { %v4895_v4 = vadd.f32 %v4894_v29, %v4821_v35  ;;  %4935 = vmatprep.subr.bf16.mxu0 %v8234_v63 }
 0xf65   : > { %v4859_v11 = vadd.f32 %v4858_v12, %v4822_v41 }
 0xf66   : > { %v4896_v44 = vadd.f32 %v4895_v4, %v4823_v33 }
 0xf67   : > { %v4860_v45 = vadd.f32 %v4859_v11, %v4824_v38  ;;  %4936 = vmatpush2.bf16.msra.mxu0 %v8232_v51 }
 0xf68   : > { %v4897_v54 = vadd.f32 %v4896_v44, %v4825_v14  ;;  %4937 = vmatprep.subr.bf16.mxu0 %v8228_v18 }
 0xf69   : > { %v4861_v58 = vadd.f32 %v4860_v45, %v4826_v28 }
 0xf6a   : > { %v4898_v56 = vadd.f32 %v4897_v54, %v4827_v39 }
 0xf6b   : > { %v4862_v60 = vadd.f32 %v4861_v58, %v4828_v30  ;;  %4938 = vmatpush2.bf16.msra.mxu0 %v8226_v23  ;;  %v4998_v23 = vpop.trf.xlu1 }
 0xf6c   : > { %v4899_v47 = vadd.f32 %v4898_v56, %v4829_v31  ;;  %4939 = vmatprep.subr.bf16.mxu0 %v8222_v19  ;;  %v13481_v19 = vld [vmem:[#allocation16_spill] sm:$0xff] }
 0xf6d   : > { %v4863_v40 = vadd.f32 %v4862_v60, %v4830_v17  ;;  %v5007_v20 = vrot.slane %v13481_v19, 2 }
 0xf6e   : > { %v4900_v49 = vadd.f32 %v4899_v47, %v4831_v34 }
 0xf6f   : > { %v11444_v7 = vadd.f32 %v4863_v40, %v4832_v16  ;;  %4940 = vmatpush2.bf16.msra.mxu0 %v11429_v57  ;;  %v4999_v13 = vpop.trf.xlu1 }
 0xf70   : > { %v11446_v8 = vadd.f32 %v4900_v49, %v4833_v55  ;;  %4941 = vmatprep.subr.bf16.mxu0 %v11422_v5  ;;  %v5058_v5 = vsel %vm1304_vm2, %v5007_v20, 0 }
 0xf71   : > { %v4865_v51 = vrot.slane %v11444_v7, 4 }
 0xf72   : > { %v4902_v27 = vrot.slane %v11446_v8, 4 }
 0xf73   : > { %4942 = vmatpush2.bf16.msra.mxu0 %v11419_v10  ;;  %v13482_v10 = vmov 0   ;;  %v5000_v46 = vpop.trf.xlu1  ;;  %v4866_v3 = vadd.f32 %v4865_v51, %v11444_v7 }
 0xf74   : > { %4943 = vmatprep.subr.bf16.mxu0 %v11412_v32  ;;  %v4981_v32 = vpop.trf.xlu0  ;;  %v4903_v63 = vadd.f32 %v4902_v27, %v11446_v8 }
 0xf75   : > { %v4867_v9 = vrot.slane %v4866_v3, 2 }
 0xf76   : > { %v4904_v2 = vrot.slane %v4903_v63, 2 }
 0xf77   : > { %4944 = vmatpush2.bf16.msra.mxu0 %v11409_v15  ;;  %v5001_v18 = vpop.trf.xlu1  ;;  %v4868_v22 = vadd.f32 %v4867_v9, %v4866_v3 }
 0xf78   : > { %4945 = vmatprep.subr.bf16.mxu0 %v11400_v42  ;;  %v4982_v42 = vpop.trf.xlu0  ;;  %v4905_v36 = vadd.f32 %v4904_v2, %v4903_v63 }
 0xf79   : > { %v4869_v25 = vrot.slane %v4868_v22, 1 }
 0xf7a   : > { %v4906_v35 = vrot.slane %v4905_v36, 1 }
 0xf7b   : > { %4946 = vmatpush2.bf16.msra.mxu0 %v11397_v61  ;;  %v5002_v6 = vpop.trf.xlu1  ;;  %v4870_v29 = vadd.f32 %v4869_v25, %v4868_v22 }
 0xf7c   : > { %7618 = vmatprep.subr.msk.bf16.mxu0 %vm1304_vm2, %v5008_v43  ;;  %v4983_v61 = vpop.trf.xlu0  ;;  %v4907_v41 = vadd.f32 %v4906_v35, %v4905_v36 }
 0xf7d   : > { %8239 = vrcp.f32 %v4870_v29 }
 0xf7e   : > { %4948 = vmatmul.mubr.bf16.vlgmr.msra.gmra.mxu0 %v7614_v24  ;;  %8241 = vrcp.f32 %v4907_v41 }
 0xf7f   : > { %5078 = vmatpush1.bf16.msra.mxu0 %v5058_v5  ;;  %5095 = vmatprep.mubr.bf16.mxu0 %v13482_v10  ;;  %v5003_v0 = vpop.trf.xlu1 }
 0xf80   : > { %v4984_v15 = vpop.trf.xlu0 }
 0xf83   : > { %v5004_v50 = vpop.trf.xlu1 }
 0xf84   : > { %v4985_v57 = vpop.trf.xlu0 }
 0xf86   : > { %7619 = vmatmul.mubr.msk.bf16.vlgmr.msra.gmra.mxu0 %vm1255_vm3, %v4981_v32 }
 0xf87   : > { %5105 = vmatprep.mubr.bf16.mxu0 %v13482_v10 }
 0xf88   : > { %v4986_v62 = vpop.trf.xlu0 }
 0xf8a   : > { %v8240_v12 = vpop.eup %8239 }
 0xf8b   : > { %v8242_v4 = vpop.eup %8241 }
 0xf8c   : > { %v4987_v37 = vpop.trf.xlu0 }
 0xf8e   : > { %7620 = vmatmul.mubr.msk.bf16.gmra.mxu0 %vm1255_vm3, %v4982_v42 }
 0xf8f   : > { %5115 = vmatprep.mubr.bf16.mxu0 %v13482_v10 }
 0xf90   : > { %v4988_v59 = vpop.trf.xlu0 }
 0xf96   : > { %7621 = vmatmul.mubr.msk.bf16.gmra.mxu0 %vm1255_vm3, %v4983_v61 }
 0xf97   : > { %5125 = vmatprep.mubr.bf16.mxu0 %v13482_v10 }
 0xf9e   : > { %7622 = vmatmul.mubr.msk.bf16.gmra.mxu0 %vm1255_vm3, %v4984_v15 }
 0xf9f   : > { %5135 = vmatprep.mubr.bf16.mxu0 %v13482_v10 }
 0xfa6   : > { %7623 = vmatmul.mubr.msk.bf16.gmra.mxu0 %vm1255_vm3, %v4985_v57 }
 0xfa7   : > { %5145 = vmatprep.mubr.bf16.mxu0 %v13482_v10 }
 0xfae   : > { %7624 = vmatmul.mubr.msk.bf16.gmra.mxu0 %vm1255_vm3, %v4986_v62 }
 0xfaf   : > { %5155 = vmatprep.mubr.bf16.mxu0 %v13482_v10 }
 0xfb6   : > { %7625 = vmatmul.mubr.msk.bf16.gmra.mxu0 %vm1255_vm3, %v4987_v37 }
 0xfb7   : > { %5165 = vmatprep.mubr.bf16.mxu0 %v13482_v10 }
 0xfbe   : > { %7626 = vmatmul.mubr.msk.bf16.gmra.mxu0 %vm1255_vm3, %v4988_v59 }
 0xfbf   : > { %5175 = vmatprep.mubr.bf16.mxu0 %v13482_v10 }
 0xfc6   : > { %7627 = vmatmul.mubr.msk.bf16.gmra.mxu0 %vm1255_vm3, %v4997_v21 }
 0xfc7   : > { %5185 = vmatprep.mubr.bf16.mxu0 %v13482_v10 }
 0xfce   : > { %7628 = vmatmul.mubr.msk.bf16.gmra.mxu0 %vm1255_vm3, %v4998_v23 }
 0xfcf   : > { %5195 = vmatprep.mubr.bf16.mxu0 %v13482_v10 }
 0xfd6   : > { %7629 = vmatmul.mubr.msk.bf16.gmra.mxu0 %vm1255_vm3, %v4999_v13 }
 0xfd7   : > { %5205 = vmatprep.mubr.bf16.mxu0 %v13482_v10 }
 0xfde   : > { %7630 = vmatmul.mubr.msk.bf16.gmra.mxu0 %vm1255_vm3, %v5000_v46 }
 0xfdf   : > { %5215 = vmatprep.mubr.bf16.mxu0 %v13482_v10 }
 0xfe6   : > { %7631 = vmatmul.mubr.msk.bf16.gmra.mxu0 %vm1255_vm3, %v5001_v18 }
 0xfe7   : > { %5225 = vmatprep.mubr.bf16.mxu0 %v13482_v10 }
 0xfee   : > { %7632 = vmatmul.mubr.msk.bf16.gmra.mxu0 %vm1255_vm3, %v5002_v6 }
 0xfef   : > { %5235 = vmatprep.mubr.bf16.mxu0 %v13482_v10 }
 0xff6   : > { %7633 = vmatmul.mubr.msk.bf16.gmra.mxu0 %vm1255_vm3, %v5003_v0 }
 0xff7   : > { %5245 = vmatprep.mubr.bf16.mxu0 %v13482_v10 }
 0xffe   : > { %7634 = vmatmul.mubr.msk.bf16.gmra.mxu0 %vm1255_vm3, %v5004_v50 }
 0xfff   : > { %6449 = vmatprep.mubr.bf16.mxu0 %v7657_v52 }
0x103e   : > { %v4949_v53 = vpop.f32.mrf.mxu0 }
0x103f   : > { %v11495_v33 = vmul.f32 %v8240_v12, %v4949_v53 }
0x1040   : > { %v4951_v38 = vpop.f32.mrf.mxu0 }
0x1041   : > { %13483 = vst [vmem:[#allocation41_spill] sm:$0xff] %v11495_v33  ;;  %v11497_v11 = vmul.f32 %v8242_v4, %v4951_v38 }
0x1042   : > { %v4953_v14 = vpop.f32.mrf.mxu0 }
0x1043   : > { %13484 = vst [vmem:[#allocation43_spill] sm:$0xff] %v11497_v11 }
0x1044   : > { %v4954_v44 = vpop.f32.mrf.mxu0 }
0x1046   : > { %v11499_v28 = vpop.f32.mrf.mxu0 }
0x1048   : > { %v11501_v45 = vpop.f32.mrf.mxu0 }
0x104a   : > { %v11503_v39 = vpop.f32.mrf.mxu0 }
0x104c   : > { %v11505_v54 = vpop.f32.mrf.mxu0 }
0x104e   : > { %v11507_v30 = vpop.f32.mrf.mxu0 }
0x104f   : > { %v5256_v35 = vmax.f32 %v11499_v28, %v11507_v30 }
0x1050   : > { %v11509_v58 = vpop.f32.mrf.mxu0 }
0x1051   : > { %v5293_v53 = vmax.f32 %v11501_v45, %v11509_v58 }
0x1052   : > { %v11511_v31 = vpop.f32.mrf.mxu0 }
0x1053   : > { %v5257_v25 = vmax.f32 %v11503_v39, %v11511_v31 }
0x1054   : > { %v11513_v56 = vpop.f32.mrf.mxu0 }
0x1055   : > { %13485 = vst [vmem:[#allocation45_spill] sm:$0xff] %v11513_v56  ;;  %v5294_v41 = vmax.f32 %v11505_v54, %v11513_v56 }
0x1056   : > { %v11515_v17 = vpop.f32.mrf.mxu0 }
0x1057   : > { %v5258_v4 = vmax.f32 %v5256_v35, %v11515_v17 }
0x1058   : > { %v11517_v60 = vpop.f32.mrf.mxu0 }
0x1059   : > { %v5295_v11 = vmax.f32 %v5293_v53, %v11517_v60 }
0x105a   : > { %v11519_v34 = vpop.f32.mrf.mxu0 }
0x105b   : > { %v5259_v12 = vmax.f32 %v5257_v25, %v11519_v34 }
0x105c   : > { %v11521_v47 = vpop.f32.mrf.mxu0 }
0x105d   : > { %v5296_v14 = vmax.f32 %v5294_v41, %v11521_v47 }
0x105e   : > { %v11523_v16 = vpop.f32.mrf.mxu0 }
0x105f   : > { %v5260_v33 = vmax.f32 %v5258_v4, %v11523_v16 }
0x1060   : > { %v11525_v40 = vpop.f32.mrf.mxu0 }
0x1061   : > { %v5297_v1 = vmax.f32 %v5295_v11, %v11525_v40 }
0x1062   : > { %v11527_v55 = vpop.f32.mrf.mxu0 }
0x1063   : > { %13486 = vst [vmem:[#allocation47_spill] sm:$0xff] %v11527_v55  ;;  %v5261_v44 = vmax.f32 %v5259_v12, %v11527_v55 }
0x1064   : > { %v11529_v49 = vpop.f32.mrf.mxu0 }
0x1065   : > { %v5298_v19 = vmax.f32 %v5296_v14, %v11529_v49 }
0x1066   : > { %v11531_v7 = vpop.f32.mrf.mxu0 }
0x1067   : > { %v5262_v35 = vmax.f32 %v5260_v33, %v11531_v7 }
0x1068   : > { %v11533_v8 = vpop.f32.mrf.mxu0 }
0x1069   : > { %v5299_v53 = vmax.f32 %v5297_v1, %v11533_v8 }
0x106a   : > { %v11535_v43 = vpop.f32.mrf.mxu0 }
0x106b   : > { %13487 = vst [vmem:[#allocation49_spill] sm:$0xff] %v11535_v43  ;;  %v5263_v25 = vmax.f32 %v5261_v44, %v11535_v43 }
0x106c   : > { %v11537_v20 = vpop.f32.mrf.mxu0 }
0x106d   : > { %13488 = vst [vmem:[#allocation20_spill] sm:$0xff] %v11537_v20  ;;  %v5300_v41 = vmax.f32 %v5298_v19, %v11537_v20 }
0x106e   : > { %v11539_v48 = vpop.f32.mrf.mxu0 }
0x106f   : > { %v5264_v4 = vmax.f32 %v5262_v35, %v11539_v48 }
0x1070   : > { %v11541_v24 = vpop.f32.mrf.mxu0 }
0x1071   : > { %v5301_v11 = vmax.f32 %v5299_v53, %v11541_v24 }
0x1072   : > { %v11543_v5 = vpop.f32.mrf.mxu0 }
0x1073   : > { %v5265_v12 = vmax.f32 %v5263_v25, %v11543_v5 }
0x1074   : > { %v11545_v32 = vpop.f32.mrf.mxu0 }
0x1075   : > { %v5302_v14 = vmax.f32 %v5300_v41, %v11545_v32 }
0x1076   : > { %v11547_v42 = vpop.f32.mrf.mxu0 }
0x1077   : > { %13489 = vst [vmem:[#allocation24_spill] sm:$0xff] %v11547_v42  ;;  %v5266_v33 = vmax.f32 %v5264_v4, %v11547_v42 }
0x1078   : > { %v11549_v61 = vpop.f32.mrf.mxu0 }
0x1079   : > { %v5303_v1 = vmax.f32 %v5301_v11, %v11549_v61 }
0x107a   : > { %v11551_v15 = vpop.f32.mrf.mxu0 }
0x107b   : > { %13490 = vst [vmem:[#allocation26_spill] sm:$0xff] %v11551_v15  ;;  %v5267_v44 = vmax.f32 %v5265_v12, %v11551_v15 }
0x107c   : > { %v11553_v57 = vpop.f32.mrf.mxu0 }
0x107d   : > { %v5304_v19 = vmax.f32 %v5302_v14, %v11553_v57 }
0x107e   : > { %v11555_v62 = vpop.f32.mrf.mxu0 }
0x107f   : > { %v5268_v35 = vmax.f32 %v5266_v33, %v11555_v62 }
0x1080   : > { %v11557_v37 = vpop.f32.mrf.mxu0 }
0x1081   : > { %v5305_v53 = vmax.f32 %v5303_v1, %v11557_v37 }
0x1082   : > { %v11559_v59 = vpop.f32.mrf.mxu0 }
0x1083   : > { %v5269_v25 = vmax.f32 %v5267_v44, %v11559_v59 }
0x1084   : > { %v11561_v21 = vpop.f32.mrf.mxu0 }
0x1085   : > { %v5306_v41 = vmax.f32 %v5304_v19, %v11561_v21 }
0x1086   : > { %v11563_v23 = vpop.f32.mrf.mxu0 }
0x1087   : > { %v5270_v4 = vmax.f32 %v5268_v35, %v11563_v23 }
0x1088   : > { %v11565_v13 = vpop.f32.mrf.mxu0 }
0x1089   : > { %v5307_v11 = vmax.f32 %v5305_v53, %v11565_v13 }
0x108a   : > { %v11567_v46 = vpop.f32.mrf.mxu0 }
0x108b   : > { %13491 = vst [vmem:[#allocation25_spill] sm:$0xff] %v11567_v46  ;;  %v5271_v12 = vmax.f32 %v5269_v25, %v11567_v46 }
0x108c   : > { %v11569_v18 = vpop.f32.mrf.mxu0 }
0x108d   : > { %v5308_v14 = vmax.f32 %v5306_v41, %v11569_v18 }
0x108e   : > { %v11571_v6 = vpop.f32.mrf.mxu0 }
0x108f   : > { %v5272_v33 = vmax.f32 %v5270_v4, %v11571_v6 }
0x1090   : > { %v11573_v0 = vpop.f32.mrf.mxu0 }
0x1091   : > { %13492 = vst [vmem:[#allocation15_spill] sm:$0xff] %v11573_v0  ;;  %v5309_v1 = vmax.f32 %v5307_v11, %v11573_v0 }
0x1092   : > { %v11575_v26 = vpop.f32.mrf.mxu0 }
0x1093   : > { %13493 = vst [vmem:[#allocation17_spill] sm:$0xff] %v11575_v26  ;;  %v5273_v44 = vmax.f32 %v5271_v12, %v11575_v26 }
0x1094   : > { %v11577_v50 = vpop.f32.mrf.mxu0 }
0x1095   : > { %13494 = vst [vmem:[#allocation42_spill] sm:$0xff] %v11577_v50  ;;  %v5310_v19 = vmax.f32 %v5308_v14, %v11577_v50 }
0x1096   : > { %v11579_v52 = vpop.f32.mrf.mxu0 }
0x1097   : > { %13495 = vst [vmem:[#allocation40_spill] sm:$0xff] %v11579_v52  ;;  %v5274_v35 = vmax.f32 %v5272_v33, %v11579_v52 }
0x1098   : > { %v11581_v51 = vpop.f32.mrf.mxu0 }
0x1099   : > { %13496 = vst [vmem:[#allocation28_spill] sm:$0xff] %v11581_v51  ;;  %v5311_v53 = vmax.f32 %v5309_v1, %v11581_v51 }
0x109a   : > { %v11583_v27 = vpop.f32.mrf.mxu0 }
0x109b   : > { %13497 = vst [vmem:[#allocation23_spill] sm:$0xff] %v11583_v27  ;;  %v5275_v25 = vmax.f32 %v5273_v44, %v11583_v27 }
0x109c   : > { %v11585_v3 = vpop.f32.mrf.mxu0 }
0x109d   : > { %13498 = vst [vmem:[#allocation29_spill] sm:$0xff] %v11585_v3  ;;  %v5312_v41 = vmax.f32 %v5310_v19, %v11585_v3 }
0x109e   : > { %v11587_v63 = vpop.f32.mrf.mxu0 }
0x109f   : > { %v5276_v4 = vmax.f32 %v5274_v35, %v11587_v63 }
0x10a0   : > { %v11589_v9 = vpop.f32.mrf.mxu0 }
0x10a1   : > { %13499 = vst [vmem:[#allocation32_spill] sm:$0xff] %v11589_v9  ;;  %v5313_v11 = vmax.f32 %v5311_v53, %v11589_v9 }
0x10a2   : > { %v11591_v2 = vpop.f32.mrf.mxu0 }
0x10a3   : > { %v5277_v12 = vmax.f32 %v5275_v25, %v11591_v2 }
0x10a4   : > { %v11593_v22 = vpop.f32.mrf.mxu0 }
0x10a5   : > { %13500 = vst [vmem:[#allocation30_spill] sm:$0xff] %v11593_v22  ;;  %v5314_v14 = vmax.f32 %v5312_v41, %v11593_v22 }
0x10a6   : > { %v11595_v36 = vpop.f32.mrf.mxu0 }
0x10a7   : > { %v5278_v33 = vmax.f32 %v5276_v4, %v11595_v36 }
0x10a8   : > { %v11601_v29 = vpop.f32.mrf.mxu0 }
0x10a9   : > { %v5315_v1 = vmax.f32 %v5313_v11, %v11601_v29 }
0x10aa   : > { %v11609_v38 = vpop.f32.mrf.mxu0 }
0x10ab   : > { %v5279_v44 = vmax.f32 %v5277_v12, %v11609_v38 }
0x10ac   : > { %v11615_v10 = vpop.f32.mrf.mxu0 }
0x10ad   : > { %v5316_v19 = vmax.f32 %v5314_v14, %v11615_v10 }
0x10ae   : > { %v11621_v56 = vpop.f32.mrf.mxu0 }
0x10af   : > { %v5280_v35 = vmax.f32 %v5278_v33, %v11621_v56 }
0x10b0   : > { %v11627_v55 = vpop.f32.mrf.mxu0 }
0x10b1   : > { %v5317_v53 = vmax.f32 %v5315_v1, %v11627_v55 }
0x10b2   : > { %v11633_v43 = vpop.f32.mrf.mxu0 }
0x10b3   : > { %v5281_v25 = vmax.f32 %v5279_v44, %v11633_v43 }
0x10b4   : > { %v11639_v20 = vpop.f32.mrf.mxu0 }
0x10b5   : > { %v5318_v41 = vmax.f32 %v5316_v19, %v11639_v20 }
0x10b6   : > { %v11645_v15 = vpop.f32.mrf.mxu0 }
0x10b7   : > { %13501 = vst [vmem:[#allocation14_spill] sm:$0xff] %v11645_v15  ;;  %v5282_v4 = vmax.f32 %v5280_v35, %v11645_v15 }
0x10b8   : > { %v11651_v42 = vpop.f32.mrf.mxu0 }
0x10b9   : > { %13502 = vst [vmem:[#allocation13_spill] sm:$0xff] %v11651_v42  ;;  %v5319_v11 = vmax.f32 %v5317_v53, %v11651_v42 }
0x10ba   : > { %v11657_v46 = vpop.f32.mrf.mxu0 }
0x10bb   : > { %13503 = vst [vmem:[#allocation46_spill] sm:$0xff] %v11657_v46  ;;  %v5283_v12 = vmax.f32 %v5281_v25, %v11657_v46 }
0x10bc   : > { %v11663_v26 = vpop.f32.mrf.mxu0 }
0x10bd   : > { %13504 = vst [vmem:[#allocation44_spill] sm:$0xff] %v11663_v26  ;;  %v5320_v14 = vmax.f32 %v5318_v41, %v11663_v26 }
0x10be   : > { %v11669_v27 = vpop.f32.mrf.mxu0 }
0x10bf   : > { %v5284_v33 = vmax.f32 %v5282_v4, %v11669_v27 }
0x10c0   : > { %v11675_v3 = vpop.f32.mrf.mxu0 }
0x10c1   : > { %v5321_v25 = vmax.f32 %v5319_v11, %v11675_v3 }
0x10c2   : > { %v11681_v22 = vpop.f32.mrf.mxu0 }
0x10c3   : > { %v5285_v44 = vmax.f32 %v5283_v12, %v11681_v22 }
0x10c4   : > { %v11687_v9 = vpop.f32.mrf.mxu0 }
0x10c5   : > { %v5322_v19 = vmax.f32 %v5320_v14, %v11687_v9  ;;  %v5286_v46 = vmax.f32 %v5284_v33, %v5285_v44 }
0x10c7   : > { %v5323_v1 = vmax.f32 %v5321_v25, %v5322_v19  ;;  %v5287_v51 = vrot.slane %v5286_v46, 4 }
0x10c9   : > { %v5324_v35 = vrot.slane %v5323_v1, 4  ;;  %v5288_v15 = vmax.f32 %v5286_v46, %v5287_v51 }
0x10cb   : > { %v5325_v52 = vmax.f32 %v5323_v1, %v5324_v35  ;;  %v5289_v50 = vrot.slane %v5288_v15, 2 }
0x10cd   : > { %v5326_v41 = vrot.slane %v5325_v52, 2  ;;  %v5290_v26 = vmax.f32 %v5288_v15, %v5289_v50 }
0x10cf   : > { %v5327_v12 = vmax.f32 %v5325_v52, %v5326_v41  ;;  %v5291_v0 = vrot.slane %v5290_v26, 1 }
0x10d1   : > { %v5328_v53 = vrot.slane %v5327_v12, 1  ;;  %v11691_v42 = vmax.f32 %v5290_v26, %v5291_v0 }
0x10d3   : > { %v11693_v4 = vmax.f32 %v5327_v12, %v5328_v53  ;;  %v5330_v14 = vsub.f32 %v11499_v28, %v11691_v42  ;;  %v5332_v44 = vsub.f32 %v11503_v39, %v11691_v42  ;;  %v5334_v46 = vsub.f32 %v11507_v30, %v11691_v42 }
0x10d4   : > { %v5336_v51 = vsub.f32 %v11511_v31, %v11691_v42  ;;  %v5374_v15 = vsub.f32 %v11587_v63, %v11691_v42  ;;  %v5376_v0 = vsub.f32 %v11591_v2, %v11691_v42  ;;  %v5378_v26 = vsub.f32 %v11595_v36, %v11691_v42 }
0x10d5   : > { %v5380_v28 = vsub.f32 %v11609_v38, %v11691_v42  ;;  %v5382_v39 = vsub.f32 %v11621_v56, %v11691_v42  ;;  %v5384_v30 = vsub.f32 %v11633_v43, %v11691_v42  ;;  %v5331_v31 = vsub.f32 %v11501_v45, %v11693_v4  ;;  %v13505_v56 = vld [vmem:[#allocation45_spill] sm:$0xff] }
0x10d6   : > { %v5333_v50 = vsub.f32 %v11505_v54, %v11693_v4  ;;  %v5338_v52 = vsub.f32 %v11515_v17, %v11691_v42  ;;  %v5340_v63 = vsub.f32 %v11519_v34, %v11691_v42  ;;  %v5335_v2 = vsub.f32 %v11509_v58, %v11693_v4 }
0x10d7   : > { %v5337_v36 = vsub.f32 %v13505_v56, %v11693_v4  ;;  %v5339_v43 = vsub.f32 %v11517_v60, %v11693_v4  ;;  %v5341_v45 = vsub.f32 %v11521_v47, %v11693_v4  ;;  %v5379_v54 = vsub.f32 %v11601_v29, %v11693_v4 }
0x10d8   : > { %v5381_v17 = vsub.f32 %v11615_v10, %v11693_v4  ;;  %v5383_v34 = vsub.f32 %v11627_v55, %v11693_v4  ;;  %v5385_v58 = vsub.f32 %v11639_v20, %v11693_v4  ;;  %v11739_v38 = vpack.c.bf16 %v5376_v0, %v5374_v15  ;;  %v13506_v10 = vld [vmem:[#allocation47_spill] sm:$0xff] }
0x10d9   : > { %v11741_v11 = vpack.c.bf16 %v5380_v28, %v5378_v26  ;;  %v5394_v60 = vpack.c.bf16 %v5332_v44, %v5330_v14  ;;  %v5396_v33 = vpack.c.bf16 %v5336_v51, %v5334_v46  ;;  %v11743_v19 = vpack.c.bf16 %v5384_v30, %v5382_v39  ;;  %v13508_v28 = vld [vmem:[#allocation20_spill] sm:$0xff] }
0x10da   : > { %v5395_v47 = vpack.c.bf16 %v5333_v50, %v5331_v31  ;;  %v5342_v29 = vsub.f32 %v11523_v16, %v11691_v42  ;;  %v5344_v25 = vsub.f32 %v13506_v10, %v11691_v42  ;;  %v5397_v1 = vpack.c.bf16 %v5337_v36, %v5335_v2  ;;  %v13507_v16 = vld [vmem:[#allocation49_spill] sm:$0xff] }
0x10db   : > { %v5346_v55 = vsub.f32 %v11531_v7, %v11691_v42  ;;  %v5343_v20 = vsub.f32 %v11525_v40, %v11693_v4  ;;  %v5398_v35 = vpack.c.bf16 %v5340_v63, %v5338_v52  ;;  %v5345_v41 = vsub.f32 %v11529_v49, %v11693_v4 }
0x10dc   : > { %v5399_v12 = vpack.c.bf16 %v5341_v45, %v5339_v43  ;;  %v11755_v53 = vpack.c.bf16 %v5381_v17, %v5379_v54  ;;  %v11757_v14 = vpack.c.bf16 %v5385_v58, %v5383_v34  ;;  %v5348_v44 = vsub.f32 %v13507_v16, %v11691_v42  ;;  %v13510_v34 = vld [vmem:[#allocation26_spill] sm:$0xff] }
0x10dd   : > { %v5427_v46 = vmul.bf16 1069105081, %v5394_v60  ;;  %v5430_v51 = vmul.bf16 1069105081, %v5395_v47  ;;  %v5433_v15 = vmul.bf16 1069105081, %v5396_v33  ;;  %v5350_v7 = vsub.f32 %v11539_v48, %v11691_v42 }
0x10de   : > { %v5352_v40 = vsub.f32 %v11543_v5, %v11691_v42  ;;  %v5400_v0 = vpack.c.bf16 %v5344_v25, %v5342_v29  ;;  %v5436_v26 = vmul.bf16 1069105081, %v5397_v1  ;;  %v5347_v49 = vsub.f32 %v11533_v8, %v11693_v4 }
0x10df   : > { %v5349_v39 = vsub.f32 %v13508_v28, %v11693_v4  ;;  %8243 = vpow.bf16 %v5427_v46  ;;  %v5439_v30 = vmul.bf16 1069105081, %v5398_v35  ;;  %v5358_v31 = vsub.f32 %v11555_v62, %v11691_v42 }
0x10e0   : > { %v5401_v50 = vpack.c.bf16 %v5345_v41, %v5343_v20  ;;  %8245 = vpow.bf16 %v5430_v51  ;;  %v5442_v52 = vmul.bf16 1069105081, %v5399_v12  ;;  %v5360_v48 = vsub.f32 %v11559_v59, %v11691_v42  ;;  %v13511_v41 = vld [vmem:[#allocation25_spill] sm:$0xff] }
0x10e1   : > { %v5351_v5 = vsub.f32 %v11541_v24, %v11693_v4  ;;  %v5353_v8 = vsub.f32 %v11545_v32, %v11693_v4  ;;  %8247 = vpow.bf16 %v5433_v15  ;;  %v5359_v63 = vsub.f32 %v11557_v37, %v11693_v4  ;;  %v13509_v37 = vld [vmem:[#allocation24_spill] sm:$0xff] }
0x10e2   : > { %v5361_v2 = vsub.f32 %v11561_v21, %v11693_v4  ;;  %v5402_v62 = vpack.c.bf16 %v5348_v44, %v5346_v55  ;;  %8249 = vpow.bf16 %v5436_v26  ;;  %v5355_v56 = vsub.f32 %v11549_v61, %v11693_v4 }
0x10e3   : > { %v5403_v36 = vpack.c.bf16 %v5349_v39, %v5347_v49  ;;  %8251 = vpow.bf16 %v5439_v30  ;;  %v5445_v59 = vmul.bf16 1069105081, %v5400_v0  ;;  %v5357_v24 = vsub.f32 %v11553_v57, %v11693_v4 }
0x10e4   : > { %v5404_v43 = vpack.c.bf16 %v5352_v40, %v5350_v7  ;;  %8253 = vpow.bf16 %v5442_v52  ;;  %v5448_v32 = vmul.bf16 1069105081, %v5401_v50  ;;  %v5405_v45 = vpack.c.bf16 %v5353_v8, %v5351_v5  ;;  %v13513_v5 = vld [vmem:[#allocation15_spill] sm:$0xff] }
0x10e5   : > { %v5354_v54 = vsub.f32 %v13509_v37, %v11691_v42  ;;  %v5409_v17 = vpack.c.bf16 %v5361_v2, %v5359_v63  ;;  %v5451_v21 = vmul.bf16 1069105081, %v5402_v62  ;;  %v5356_v58 = vsub.f32 %v13510_v34, %v11691_v42  ;;  %v13515_v37 = vld [vmem:[#allocation40_spill] sm:$0xff] }
0x10e6   : > { %v5408_v60 = vpack.c.bf16 %v5360_v48, %v5358_v31  ;;  %8255 = vpow.bf16 %v5445_v59  ;;  %v5454_v61 = vmul.bf16 1069105081, %v5403_v36  ;;  %v5407_v33 = vpack.c.bf16 %v5357_v24, %v5355_v56  ;;  %v13512_v48 = vld [vmem:[#allocation17_spill] sm:$0xff] }
0x10e7   : > { %8257 = vpow.bf16 %v5448_v32  ;;  %v5457_v47 = vmul.bf16 1069105081, %v5404_v43  ;;  %v5460_v29 = vmul.bf16 1069105081, %v5405_v45  ;;  %v5472_v57 = vmul.bf16 1069105081, %v5409_v17 }
0x10e8   : > { %8259 = vpow.bf16 %v5451_v21  ;;  %v5406_v10 = vpack.c.bf16 %v5356_v58, %v5354_v54  ;;  %v5469_v25 = vmul.bf16 1069105081, %v5408_v60  ;;  %v5466_v1 = vmul.bf16 1069105081, %v5407_v33  ;;  %v13516_v17 = vld [vmem:[#allocation23_spill] sm:$0xff] }
0x10e9   : > { %8261 = vpow.bf16 %v5454_v61  ;;  %v5390_v20 = vsub.f32 %v11669_v27, %v11691_v42  ;;  %v5362_v35 = vsub.f32 %v11563_v23, %v11691_v42  ;;  %v5364_v12 = vsub.f32 %v13511_v41, %v11691_v42  ;;  %v13517_v61 = vld [vmem:[#allocation28_spill] sm:$0xff] }
0x10ea   : > { %8263 = vpow.bf16 %v5457_v47  ;;  %v5363_v44 = vsub.f32 %v11565_v13, %v11693_v4  ;;  %v5463_v7 = vmul.bf16 1069105081, %v5406_v10  ;;  %v5365_v26 = vsub.f32 %v11569_v18, %v11693_v4  ;;  %v13518_v47 = vld [vmem:[#allocation29_spill] sm:$0xff] }
0x10eb   : > { %8265 = vpow.bf16 %v5460_v29  ;;  %v5392_v39 = vsub.f32 %v11681_v22, %v11691_v42  ;;  %v5366_v30 = vsub.f32 %v11571_v6, %v11691_v42  ;;  %v5368_v18 = vsub.f32 %v13512_v48, %v11691_v42  ;;  %v13514_v6 = vld [vmem:[#allocation42_spill] sm:$0xff] }
0x10ec   : > { %8267 = vpow.bf16 %v5472_v57  ;;  %v5367_v8 = vsub.f32 %v13513_v5, %v11693_v4  ;;  %v5410_v62 = vpack.c.bf16 %v5364_v12, %v5362_v35  ;;  %v5369_v59 = vsub.f32 %v13514_v6, %v11693_v4 }
0x10ed   : > { %v11789_v55 = vpop.eup %8243  ;;  %8269 = vpow.bf16 %v5469_v25  ;;  %v5411_v24 = vpack.c.bf16 %v5365_v26, %v5363_v44  ;;  %v5370_v54 = vsub.f32 %v13515_v37, %v11691_v42  ;;  %v5372_v21 = vsub.f32 %v13516_v17, %v11691_v42 }
0x10ee   : > { %v11797_v16 = vpop.eup %8245  ;;  %v5522_v46 = vunpack.c.l.bf16 %v11789_v55  ;;  %v5524_v51 = vunpack.c.h.bf16 %v11789_v55  ;;  %8271 = vpow.bf16 %v5466_v1  ;;  %v5371_v33 = vsub.f32 %v13517_v61, %v11693_v4 }
0x10ef   : > { %v11803_v15 = vpop.eup %8247  ;;  %v5523_v23 = vunpack.c.l.bf16 %v11797_v16  ;;  %v5525_v40 = vunpack.c.h.bf16 %v11797_v16  ;;  %8273 = vpow.bf16 %v5463_v7  ;;  %v5373_v29 = vsub.f32 %v13518_v47, %v11693_v4 }
0x10f0   : > { %v11807_v0 = vpop.eup %8249  ;;  %v5526_v13 = vunpack.c.l.bf16 %v11803_v15  ;;  %v5586_v49 = vadd.f32 %v5524_v51, %v5522_v46  ;;  %v5528_v63 = vunpack.c.h.bf16 %v11803_v15  ;;  %v5412_v25 = vpack.c.bf16 %v5368_v18, %v5366_v30 }
0x10f1   : > { %v11812_v28 = vpop.eup %8251  ;;  %v5527_v31 = vunpack.c.l.bf16 %v11807_v0  ;;  %v5623_v50 = vadd.f32 %v5525_v40, %v5523_v23  ;;  %v5529_v56 = vunpack.c.h.bf16 %v11807_v0  ;;  %v5475_v1 = vmul.bf16 1069105081, %v5410_v62  ;;  %v13519_v40 = vld [vmem:[#allocation32_spill] sm:$0xff] }
0x10f2   : > { %v11819_v52 = vpop.eup %8253  ;;  %v5587_v2 = vadd.f32 %v5586_v49, %v5526_v13  ;;  %v5530_v43 = vunpack.c.l.bf16 %v11812_v28  ;;  %v5532_v57 = vunpack.c.h.bf16 %v11812_v28  ;;  %v5413_v44 = vpack.c.bf16 %v5369_v59, %v5367_v8  ;;  %v13520_v13 = vld [vmem:[#allocation30_spill] sm:$0xff] }
0x10f3   : > { %v5624_v36 = vadd.f32 %v5623_v50, %v5527_v31  ;;  %v5531_v34 = vunpack.c.l.bf16 %v11819_v52  ;;  %v5533_v35 = vunpack.c.h.bf16 %v11819_v52  ;;  %v5478_v46 = vmul.bf16 1069105081, %v5411_v24 }
0x10f4   : > { %v5588_v32 = vadd.f32 %v5587_v2, %v5528_v63  ;;  %v11830_v45 = vpop.eup %8255  ;;  %v5375_v26 = vsub.f32 %v13519_v40, %v11693_v4  ;;  %v5377_v49 = vsub.f32 %v13520_v13, %v11693_v4  ;;  %v5414_v48 = vpack.c.bf16 %v5372_v21, %v5370_v54 }
0x10f5   : > { %v5625_v58 = vadd.f32 %v5624_v36, %v5529_v56  ;;  %v11837_v60 = vpop.eup %8257  ;;  %v5534_v51 = vunpack.c.l.bf16 %v11830_v45  ;;  %v5415_v18 = vpack.c.bf16 %v5373_v29, %v5371_v33  ;;  %v5536_v5 = vunpack.c.h.bf16 %v11830_v45 }
0x10f6   : > { %v5589_v10 = vadd.f32 %v5588_v32, %v5530_v43  ;;  %v11845_v12 = vpop.eup %8259  ;;  %v5535_v30 = vunpack.c.l.bf16 %v11837_v60  ;;  %8275 = vpow.bf16 %v5475_v1  ;;  %v5481_v2 = vmul.bf16 1069105081, %v5412_v25 }
0x10f7   : > { %v5626_v41 = vadd.f32 %v5625_v58, %v5531_v34  ;;  %v11848_v23 = vpop.eup %8261  ;;  %v5537_v62 = vunpack.c.h.bf16 %v11837_v60  ;;  %8277 = vpow.bf16 %v5478_v46  ;;  %v5484_v6 = vmul.bf16 1069105081, %v5413_v44  ;;  %v13521_v44 = vld [vmem:[#allocation13_spill] sm:$0xff] }
0x10f8   : > { %v5590_v7 = vadd.f32 %v5589_v10, %v5532_v57  ;;  %v8264_v50 = vpop.eup %8263  ;;  %v5538_v59 = vunpack.c.l.bf16 %v11845_v12  ;;  %v5391_v32 = vsub.f32 %v11675_v3, %v11693_v4  ;;  %v5393_v37 = vsub.f32 %v11687_v9, %v11693_v4 }
0x10f9   : > { %v5627_v31 = vadd.f32 %v5626_v41, %v5533_v35  ;;  %v8266_v63 = vpop.eup %8265  ;;  %v5539_v54 = vunpack.c.l.bf16 %v11848_v23  ;;  %v5417_v34 = vpack.c.bf16 %v5377_v49, %v5375_v26  ;;  %v5540_v58 = vunpack.c.h.bf16 %v11845_v12 }
0x10fa   : > { %v5591_v8 = vadd.f32 %v5590_v7, %v5534_v51  ;;  %v11857_v36 = vpop.eup %8267  ;;  %8279 = vpow.bf16 %v5481_v2  ;;  %v5487_v33 = vmul.bf16 1069105081, %v5414_v48  ;;  %v5541_v47 = vunpack.c.h.bf16 %v11848_v23  ;;  %v13522_v51 = vld [vmem:[#allocation44_spill] sm:$0xff] }
0x10fb   : > { %v5628_v56 = vadd.f32 %v5627_v31, %v5535_v30  ;;  %v11860_v43 = vpop.eup %8269  ;;  %5669 = vmatprep.subr.bf16.mxu1 %v11857_v36  ;;  %8281 = vpow.bf16 %v5484_v6  ;;  %v5490_v9 = vmul.bf16 1069105081, %v5415_v18  ;;  %v5542_v29 = vunpack.c.l.bf16 %v8264_v50  ;;  %v13523_v30 = vld [vmem:[#allocation14_spill] sm:$0xff] }
0x10fc   : > { %v5592_v24 = vadd.f32 %v5591_v8, %v5536_v5  ;;  %v8272_v21 = vpop.eup %8271  ;;  %5670 = vmatpush1.bf16.msra.mxu1 %v11860_v43  ;;  %v5424_v25 = vpack.c.bf16 %v5392_v39, %v5390_v20  ;;  %v5425_v1 = vpack.c.bf16 %v5393_v37, %v5391_v32  ;;  %v5543_v35 = vunpack.c.l.bf16 %v8266_v63 }
0x10fd   : > { %v5629_v17 = vadd.f32 %v5628_v56, %v5537_v62  ;;  %5671 = vmatprep.subr.bf16.mxu1 %v8272_v21  ;;  %v8274_v10 = vpop.eup %8273  ;;  %v5387_v46 = vsub.f32 %v13521_v44, %v11693_v4  ;;  %v5389_v7 = vsub.f32 %v13522_v51, %v11693_v4  ;;  %v5544_v40 = vunpack.c.h.bf16 %v8264_v50  ;;  %v13524_v4 = vld [vmem:[#allocation46_spill] sm:$0xff] }
0x10fe   : > { %v5593_v61 = vadd.f32 %v5592_v24, %v5538_v59  ;;  %8283 = vpow.bf16 %v5487_v33  ;;  %v5493_v13 = vmul.bf16 1069105081, %v11739_v38  ;;  %v5545_v27 = vunpack.c.h.bf16 %v8266_v63 }
0x10ff   : > { %v5630_v3 = vadd.f32 %v5629_v17, %v5539_v54  ;;  %8285 = vpow.bf16 %v5490_v9  ;;  %v5496_v22 = vmul.bf16 1069105081, %v5417_v34  ;;  %v5546_v20 = vunpack.c.l.bf16 %v8274_v10 }
0x1100   : > { %v5594_v57 = vadd.f32 %v5593_v61, %v5540_v58  ;;  %5672 = vmatpush1.bf16.msra.mxu1 %v8274_v10  ;;  %v5386_v31 = vsub.f32 %v13523_v30, %v11691_v42  ;;  %v5520_v48 = vmul.bf16 1069105081, %v5425_v1  ;;  %v5547_v18 = vunpack.c.l.bf16 %v8272_v21 }
0x1101   : > { %v5631_v41 = vadd.f32 %v5630_v3, %v5541_v47  ;;  %5673 = vmatprep.subr.bf16.mxu1 %v8266_v63  ;;  %v5388_v8 = vsub.f32 %v13524_v4, %v11691_v42  ;;  %v5423_v2 = vpack.c.bf16 %v5389_v7, %v5387_v46  ;;  %v5548_v62 = vunpack.c.h.bf16 %v8274_v10 }
0x1102   : > { %v5595_v26 = vadd.f32 %v5594_v57, %v5542_v29  ;;  %8287 = vpow.bf16 %v5493_v13  ;;  %v5499_v38 = vmul.bf16 1069105081, %v11741_v11  ;;  %v5549_v63 = vunpack.c.h.bf16 %v8272_v21 }
0x1103   : > { %v5632_v49 = vadd.f32 %v5631_v41, %v5543_v35  ;;  %8289 = vpow.bf16 %v5496_v22  ;;  %v5502_v59 = vmul.bf16 1069105081, %v11755_v53  ;;  %v5550_v24 = vunpack.c.l.bf16 %v11860_v43 }
0x1104   : > { %v5596_v39 = vadd.f32 %v5595_v26, %v5544_v40  ;;  %5674 = vmatpush1.bf16.msra.mxu1 %v8264_v50  ;;  %v11890_v37 = vpop.eup %8275  ;;  %v5517_v42 = vmul.bf16 1069105081, %v5424_v25  ;;  %8291 = vpow.bf16 %v5520_v48  ;;  %v5551_v54 = vunpack.c.l.bf16 %v11857_v36 }
0x1105   : > { %v5633_v5 = vadd.f32 %v5632_v49, %v5545_v27  ;;  %5675 = vmatprep.subr.bf16.mxu1 %v11848_v23  ;;  %v11893_v17 = vpop.eup %8277  ;;  %v5422_v11 = vpack.c.bf16 %v5388_v8, %v5386_v31  ;;  %v5505_v21 = vmul.bf16 1069105081, %v11743_v19  ;;  %v5552_v23 = vunpack.c.h.bf16 %v11860_v43 }
0x1106   : > { %v5597_v56 = vadd.f32 %v5596_v39, %v5546_v20  ;;  %8293 = vpow.bf16 %v5499_v38  ;;  %v5508_v53 = vmul.bf16 1069105081, %v11757_v14  ;;  %v5553_v58 = vunpack.c.h.bf16 %v11857_v36 }
0x1107   : > { %v5634_v6 = vadd.f32 %v5633_v5, %v5547_v18  ;;  %8295 = vpow.bf16 %v5502_v59  ;;  %v5514_v33 = vmul.bf16 1069105081, %v5423_v2  ;;  %v5554_v47 = vunpack.c.l.bf16 %v11890_v37 }
0x1108   : > { %v5598_v32 = vadd.f32 %v5597_v56, %v5548_v62  ;;  %5676 = vmatpush1.bf16.msra.mxu1 %v11845_v12  ;;  %v11902_v9 = vpop.eup %8279  ;;  %8297 = vpow.bf16 %v5517_v42  ;;  %v5555_v19 = vunpack.c.l.bf16 %v11893_v17  ;;  %v5556_v14 = vunpack.c.h.bf16 %v11890_v37 }
0x1109   : > { %v5635_v50 = vadd.f32 %v5634_v6, %v5549_v63  ;;  %5677 = vmatprep.subr.bf16.mxu1 %v11837_v60  ;;  %v11905_v12 = vpop.eup %8281  ;;  %8299 = vpow.bf16 %v5505_v21  ;;  %v5511_v60 = vmul.bf16 1069105081, %v5422_v11  ;;  %v5557_v29 = vunpack.c.h.bf16 %v11893_v17 }
0x110a   : > { %v5599_v34 = vadd.f32 %v5598_v32, %v5550_v24  ;;  %8301 = vpow.bf16 %v5508_v53  ;;  %v5558_v10 = vunpack.c.l.bf16 %v11902_v9  ;;  %v5559_v35 = vunpack.c.l.bf16 %v11905_v12 }
0x110b   : > { %v5636_v61 = vadd.f32 %v5635_v50, %v5551_v54  ;;  %8303 = vpow.bf16 %v5514_v33  ;;  %v5561_v51 = vunpack.c.h.bf16 %v11905_v12 }
0x110c   : > { %v5600_v3 = vadd.f32 %v5599_v34, %v5552_v23  ;;  %5678 = vmatpush1.bf16.msra.mxu1 %v11830_v45  ;;  %v11912_v1 = vpop.eup %8283  ;;  %v5560_v45 = vunpack.c.h.bf16 %v11902_v9  ;;  %8305 = vpow.bf16 %v5511_v60 }
0x110d   : > { %v5637_v43 = vadd.f32 %v5636_v61, %v5553_v58  ;;  %5679 = vmatprep.subr.bf16.mxu1 %v11819_v52  ;;  %v11915_v44 = vpop.eup %8285  ;;  %v5562_v7 = vunpack.c.l.bf16 %v11912_v1  ;;  %v5564_v22 = vunpack.c.h.bf16 %v11912_v1 }
0x110e   : > { %v5601_v36 = vadd.f32 %v5600_v3, %v5554_v47  ;;  %v5563_v13 = vunpack.c.l.bf16 %v11915_v44  ;;  %v5565_v39 = vunpack.c.h.bf16 %v11915_v44 }
0x110f   : > { %v5638_v57 = vadd.f32 %v5637_v43, %v5555_v19 }
0x1110   : > { %v5602_v25 = vadd.f32 %v5601_v36, %v5556_v14  ;;  %5680 = vmatpush1.bf16.msra.mxu1 %v11812_v28  ;;  %v11922_v26 = vpop.eup %8287 }
0x1111   : > { %v5639_v41 = vadd.f32 %v5638_v57, %v5557_v29  ;;  %5681 = vmatprep.subr.bf16.mxu1 %v11807_v0  ;;  %v8290_v49 = vpop.eup %8289  ;;  %v5566_v0 = vunpack.c.l.bf16 %v11922_v26  ;;  %v5568_v8 = vunpack.c.h.bf16 %v11922_v26 }
0x1112   : > { %v5603_v46 = vadd.f32 %v5602_v25, %v5558_v10  ;;  %v11927_v28 = vpop.eup %8291  ;;  %v5567_v18 = vunpack.c.l.bf16 %v8290_v49  ;;  %v5569_v62 = vunpack.c.h.bf16 %v8290_v49 }
0x1113   : > { %v5640_v52 = vadd.f32 %v5639_v41, %v5559_v35  ;;  %v5583_v35 = vunpack.c.l.bf16 %v11927_v28 }
0x1114   : > { %v5604_v40 = vadd.f32 %v5603_v46, %v5560_v45  ;;  %5682 = vmatpush1.bf16.msra.mxu1 %v11803_v15  ;;  %v8294_v48 = vpop.eup %8293 }
0x1115   : > { %v5641_v27 = vadd.f32 %v5640_v52, %v5561_v51  ;;  %5683 = vmatprep.subr.bf16.mxu1 %v11797_v16  ;;  %v8296_v4 = vpop.eup %8295  ;;  %v5570_v63 = vunpack.c.l.bf16 %v8294_v48  ;;  %v5572_v42 = vunpack.c.h.bf16 %v8294_v48  ;;  %v5585_v51 = vunpack.c.h.bf16 %v11927_v28 }
0x1116   : > { %v5605_v20 = vadd.f32 %v5604_v40, %v5562_v7  ;;  %v8298_v15 = vpop.eup %8297  ;;  %v5571_v59 = vunpack.c.l.bf16 %v8296_v4  ;;  %v5573_v50 = vunpack.c.h.bf16 %v8296_v4 }
0x1117   : > { %v5642_v30 = vadd.f32 %v5641_v27, %v5563_v13  ;;  %v8300_v38 = vpop.eup %8299  ;;  %v5582_v10 = vunpack.c.l.bf16 %v8298_v15  ;;  %v5584_v45 = vunpack.c.h.bf16 %v8298_v15  ;;  %v8451_v13 = vld [vmem:[#allocation4 + $0x28] sm:$0xcc] }
0x1118   : > { %v5606_v31 = vadd.f32 %v5605_v20, %v5564_v22  ;;  %5684 = vmatpush1.bf16.msra.mxu1 %v11789_v55  ;;  %v8302_v6 = vpop.eup %8301  ;;  %v5574_v55 = vunpack.c.l.bf16 %v8300_v38  ;;  %v5576_v58 = vunpack.c.h.bf16 %v8300_v38  ;;  %v7635_v27 = vcombine.low %v8451_v13, %v8451_v13  ;;  %v13526_v20 = vld [vmem:[#allocation16_spill] sm:$0xff] }
0x1119   : > { %v5643_v5 = vadd.f32 %v5642_v30, %v5565_v39  ;;  %5685 = vmatprep.subr.bf16.mxu1 %v11927_v28  ;;  %v8304_v32 = vpop.eup %8303  ;;  %v5575_v34 = vunpack.c.l.bf16 %v8302_v6  ;;  %v5577_v33 = vunpack.c.h.bf16 %v8302_v6  ;;  %v5757_v28 = vrot.slane %v13526_v20, 4 }
0x111a   : > { %v5607_v2 = vadd.f32 %v5606_v31, %v5566_v0  ;;  %v8306_v23 = vpop.eup %8305  ;;  %v5579_v43 = vunpack.c.l.bf16 %v8304_v32  ;;  %v5581_v29 = vunpack.c.h.bf16 %v8304_v32  ;;  %v5665_v39 = vrot.slane %v7635_v27, 2 }
0x111b   : > { %v5644_v56 = vadd.f32 %v5643_v5, %v5567_v18  ;;  %v5578_v3 = vunpack.c.l.bf16 %v8306_v23  ;;  %v5580_v36 = vunpack.c.h.bf16 %v8306_v23 }
0x111c   : > { %v5608_v16 = vadd.f32 %v5607_v2, %v5568_v8  ;;  %5686 = vmatpush2.bf16.msra.mxu1 %v8298_v15 }
0x111d   : > { %v5645_v24 = vadd.f32 %v5644_v56, %v5569_v62  ;;  %5687 = vmatprep.subr.bf16.mxu1 %v8304_v32  ;;  %v6465_v62 = vld [vmem:[#allocation4 + $0x38] sm:$0xcc] }
0x111e   : > { %v5609_v54 = vadd.f32 %v5608_v16, %v5570_v63  ;;  %v7678_v56 = vcombine.high %v6465_v62, %v6465_v62 }
0x111f   : > { %v5646_v11 = vadd.f32 %v5645_v24, %v5571_v59 }
0x1120   : > { %v5610_v21 = vadd.f32 %v5609_v54, %v5572_v42  ;;  %5688 = vmatpush2.bf16.msra.mxu1 %v8306_v23  ;;  %v7166_v63 = vrot.slane %v7678_v56, 2 }
0x1121   : > { %v5647_v53 = vadd.f32 %v5646_v11, %v5573_v50  ;;  %5689 = vmatprep.subr.bf16.mxu1 %v8302_v6 }
0x1122   : > { %v5611_v61 = vadd.f32 %v5610_v21, %v5574_v55 }
0x1123   : > { %v5648_v47 = vadd.f32 %v5647_v53, %v5575_v34 }
0x1124   : > { %v5612_v19 = vadd.f32 %v5611_v61, %v5576_v58  ;;  %5690 = vmatpush2.bf16.msra.mxu1 %v8300_v38 }
0x1125   : > { %v5649_v14 = vadd.f32 %v5648_v47, %v5577_v33  ;;  %5691 = vmatprep.subr.bf16.mxu1 %v8296_v4 }
0x1126   : > { %v5613_v60 = vadd.f32 %v5612_v19, %v5578_v3 }
0x1127   : > { %v5650_v57 = vadd.f32 %v5649_v14, %v5579_v43  ;;  %v13528_v43 = vld [vmem:[#allocation41_spill] sm:$0xff] }
0x1128   : > { %v5614_v25 = vadd.f32 %v5613_v60, %v5580_v36  ;;  %5692 = vmatpush2.bf16.msra.mxu1 %v8294_v48  ;;  %v5749_v48 = vpop.trf.xlu1  ;;  %v4960_v14 = vpack.c.bf16 %v13528_v43, %v13528_v43 }
0x1129   : > { %v5651_v41 = vadd.f32 %v5650_v57, %v5581_v29  ;;  %5693 = vmatprep.subr.bf16.mxu1 %v8290_v49  ;;  %v13525_v49 = vld [vmem:[#allocation27_spill] sm:$0xff] }
0x112a   : > { %v5615_v46 = vadd.f32 %v5614_v25, %v5582_v10  ;;  %v5758_v22 = vrot.slane %v13525_v49, 4  ;;  %v13529_v57 = vld [vmem:[#allocation43_spill] sm:$0xff] }
0x112b   : > { %v5652_v52 = vadd.f32 %v5651_v41, %v5583_v35  ;;  %v4961_v10 = vpack.c.bf16 %v13529_v57, %v13529_v57 }
0x112c   : > { %v11937_v7 = vadd.f32 %v5615_v46, %v5584_v45  ;;  %5694 = vmatpush2.bf16.msra.mxu1 %v11922_v26  ;;  %v5750_v18 = vpop.trf.xlu1 }
0x112d   : > { %v11939_v40 = vadd.f32 %v5652_v52, %v5585_v51  ;;  %5695 = vmatprep.subr.bf16.mxu1 %v11915_v44 }
0x112e   : > { %v5617_v16 = vrot.slane %v11937_v7, 4 }
0x112f   : > { %v5654_v6 = vrot.slane %v11939_v40, 4 }
0x1130   : > { %5696 = vmatpush2.bf16.msra.mxu1 %v11912_v1  ;;  %v5808_v1 = vsel %vm1304_vm2, %v5757_v28, 0  ;;  %v5751_v5 = vpop.trf.xlu1  ;;  %v5618_v59 = vadd.f32 %v5617_v16, %v11937_v7 }
0x1131   : > { %5697 = vmatprep.subr.bf16.mxu1 %v11905_v12  ;;  %v13527_v12 = vmov 0   ;;  %v5655_v24 = vadd.f32 %v5654_v6, %v11939_v40 }
0x1132   : > { %v5619_v32 = vrot.slane %v5618_v59, 2 }
0x1133   : > { %v5656_v42 = vrot.slane %v5655_v24, 2 }
0x1134   : > { %5698 = vmatpush2.bf16.msra.mxu1 %v11902_v9  ;;  %v5733_v9 = vpop.trf.xlu0  ;;  %v5752_v4 = vpop.trf.xlu1  ;;  %v5620_v54 = vadd.f32 %v5619_v32, %v5618_v59 }
0x1135   : > { %5699 = vmatprep.subr.bf16.mxu1 %v11893_v17  ;;  %v5657_v50 = vadd.f32 %v5656_v42, %v5655_v24 }
0x1136   : > { %v5621_v11 = vrot.slane %v5620_v54, 1 }
0x1137   : > { %v5658_v55 = vrot.slane %v5657_v50, 1 }
0x1138   : > { %5700 = vmatpush2.bf16.msra.mxu1 %v11890_v37  ;;  %v5734_v17 = vpop.trf.xlu0  ;;  %v5753_v8 = vpop.trf.xlu1  ;;  %v5622_v21 = vadd.f32 %v5621_v11, %v5620_v54 }
0x1139   : > { %7639 = vmatprep.subr.msk.bf16.mxu1 %vm1304_vm2, %v5758_v22  ;;  %v5659_v23 = vadd.f32 %v5658_v55, %v5657_v50 }
0x113a   : > { %8307 = vrcp.f32 %v5622_v21 }
0x113b   : > { %5702 = vmatmul.mubr.bf16.vlgmr.msra.gmra.mxu1 %v5665_v39  ;;  %8309 = vrcp.f32 %v5659_v23 }
0x113c   : > { %5828 = vmatpush1.bf16.msra.mxu1 %v5808_v1  ;;  %5845 = vmatprep.mubr.bf16.mxu1 %v13527_v12  ;;  %v5735_v37 = vpop.trf.xlu0  ;;  %v5754_v2 = vpop.trf.xlu1 }
0x1140   : > { %v5736_v44 = vpop.trf.xlu0  ;;  %v5755_v15 = vpop.trf.xlu1 }
0x1143   : > { %7640 = vmatmul.mubr.msk.bf16.vlgmr.msra.gmra.mxu1 %vm1255_vm3, %v5733_v9 }
0x1144   : > { %5855 = vmatprep.mubr.bf16.mxu1 %v13527_v12  ;;  %v5737_v26 = vpop.trf.xlu0  ;;  %v5756_v38 = vpop.trf.xlu1 }
0x1147   : > { %v8308_v34 = vpop.eup %8307 }
0x1148   : > { %v5738_v30 = vpop.trf.xlu0  ;;  %v8310_v61 = vpop.eup %8309 }
0x114b   : > { %7641 = vmatmul.mubr.msk.bf16.gmra.mxu1 %vm1255_vm3, %v5734_v17 }
0x114c   : > { %5865 = vmatprep.mubr.bf16.mxu1 %v13527_v12  ;;  %v5739_v0 = vpop.trf.xlu0 }
0x1150   : > { %v5740_v31 = vpop.trf.xlu0 }
0x1153   : > { %7642 = vmatmul.mubr.msk.bf16.gmra.mxu1 %vm1255_vm3, %v5735_v37 }
0x1154   : > { %5875 = vmatprep.mubr.bf16.mxu1 %v13527_v12 }
0x115b   : > { %7643 = vmatmul.mubr.msk.bf16.gmra.mxu1 %vm1255_vm3, %v5736_v44 }
0x115c   : > { %5885 = vmatprep.mubr.bf16.mxu1 %v13527_v12 }
0x1163   : > { %7644 = vmatmul.mubr.msk.bf16.gmra.mxu1 %vm1255_vm3, %v5737_v26 }
0x1164   : > { %5895 = vmatprep.mubr.bf16.mxu1 %v13527_v12 }
0x116b   : > { %7645 = vmatmul.mubr.msk.bf16.gmra.mxu1 %vm1255_vm3, %v5738_v30 }
0x116c   : > { %5905 = vmatprep.mubr.bf16.mxu1 %v13527_v12 }
0x1173   : > { %7646 = vmatmul.mubr.msk.bf16.gmra.mxu1 %vm1255_vm3, %v5739_v0 }
0x1174   : > { %5915 = vmatprep.mubr.bf16.mxu1 %v13527_v12 }
0x117b   : > { %7647 = vmatmul.mubr.msk.bf16.gmra.mxu1 %vm1255_vm3, %v5740_v31 }
0x117c   : > { %5925 = vmatprep.mubr.bf16.mxu1 %v13527_v12 }
0x1183   : > { %7648 = vmatmul.mubr.msk.bf16.gmra.mxu1 %vm1255_vm3, %v5749_v48 }
0x1184   : > { %5935 = vmatprep.mubr.bf16.mxu1 %v13527_v12 }
0x118b   : > { %7649 = vmatmul.mubr.msk.bf16.gmra.mxu1 %vm1255_vm3, %v5750_v18 }
0x118c   : > { %5945 = vmatprep.mubr.bf16.mxu1 %v13527_v12 }
0x1193   : > { %7650 = vmatmul.mubr.msk.bf16.gmra.mxu1 %vm1255_vm3, %v5751_v5 }
0x1194   : > { %5955 = vmatprep.mubr.bf16.mxu1 %v13527_v12 }
0x119b   : > { %7651 = vmatmul.mubr.msk.bf16.gmra.mxu1 %vm1255_vm3, %v5752_v4 }
0x119c   : > { %5965 = vmatprep.mubr.bf16.mxu1 %v13527_v12 }
0x11a3   : > { %7652 = vmatmul.mubr.msk.bf16.gmra.mxu1 %vm1255_vm3, %v5753_v8 }
0x11a4   : > { %5975 = vmatprep.mubr.bf16.mxu1 %v13527_v12 }
0x11ab   : > { %7653 = vmatmul.mubr.msk.bf16.gmra.mxu1 %vm1255_vm3, %v5754_v2 }
0x11ac   : > { %5985 = vmatprep.mubr.bf16.mxu1 %v13527_v12 }
0x11b3   : > { %7654 = vmatmul.mubr.msk.bf16.gmra.mxu1 %vm1255_vm3, %v5755_v15 }
0x11b4   : > { %5995 = vmatprep.mubr.bf16.mxu1 %v13527_v12 }
0x11bb   : > { %7655 = vmatmul.mubr.msk.bf16.gmra.mxu1 %vm1255_vm3, %v5756_v38 }
0x11bc   : > { %7201 = vmatprep.mubr.bf16.mxu1 %v7166_v63 }
0x11fb   : > { %v5703_v53 = vpop.f32.mrf.mxu1 }
0x11fc   : > { %v5712_v58 = vmul.f32 %v8308_v34, %v5703_v53 }
0x11fd   : > { %v5705_v33 = vpop.f32.mrf.mxu1 }
0x11fe   : > { %v5714_v47 = vpack.c.bf16 %v5712_v58, %v5712_v58  ;;  %v5713_v3 = vmul.f32 %v8310_v61, %v5705_v33 }
0x11ff   : > { %v5707_v19 = vpop.f32.mrf.mxu1 }
0x1200   : > { %v7230_v36 = vrot.slane %v5714_v47, 6  ;;  %v5715_v60 = vpack.c.bf16 %v5713_v3, %v5713_v3 }
0x1201   : > { %v5708_v29 = vpop.f32.mrf.mxu1 }
0x1202   : > { %v11993_v25 = vsel %vm1304_vm2, %v4960_v14, %v7230_v36  ;;  %v7231_v35 = vrot.slane %v5715_v60, 6 }
0x1203   : > { %13530 = vst [vmem:[#allocation33_spill] sm:$0xff] %v11993_v25  ;;  %v11995_v41 = vpop.f32.mrf.mxu1 }
0x1204   : > { %v11998_v45 = vsel %vm1304_vm2, %v4961_v10, %v7231_v35 }
0x1205   : > { %13531 = vst [vmem:[#allocation31_spill] sm:$0xff] %v11998_v45  ;;  %v12000_v46 = vpop.f32.mrf.mxu1 }
0x1207   : > { %v12002_v51 = vpop.f32.mrf.mxu1 }
0x1209   : > { %v12004_v52 = vpop.f32.mrf.mxu1 }
0x120b   : > { %v12006_v7 = vpop.f32.mrf.mxu1 }
0x120c   : > { %v6006_v19 = vmax.f32 %v11995_v41, %v12006_v7 }
0x120d   : > { %v12008_v40 = vpop.f32.mrf.mxu1 }
0x120e   : > { %v6043_v60 = vmax.f32 %v12000_v46, %v12008_v40 }
0x120f   : > { %v12010_v13 = vpop.f32.mrf.mxu1 }
0x1210   : > { %v6007_v3 = vmax.f32 %v12002_v51, %v12010_v13 }
0x1211   : > { %v12012_v27 = vpop.f32.mrf.mxu1 }
0x1212   : > { %13532 = vst [vmem:[#allocation35_spill] sm:$0xff] %v12012_v27  ;;  %v6044_v14 = vmax.f32 %v12004_v52, %v12012_v27 }
0x1213   : > { %v12014_v22 = vpop.f32.mrf.mxu1 }
0x1214   : > { %v6008_v29 = vmax.f32 %v6006_v19, %v12014_v22 }
0x1215   : > { %v12016_v28 = vpop.f32.mrf.mxu1 }
0x1216   : > { %v6045_v45 = vmax.f32 %v6043_v60, %v12016_v28 }
0x1217   : > { %v12018_v39 = vpop.f32.mrf.mxu1 }
0x1218   : > { %v6009_v36 = vmax.f32 %v6007_v3, %v12018_v39 }
0x1219   : > { %v12020_v1 = vpop.f32.mrf.mxu1 }
0x121a   : > { %v6046_v10 = vmax.f32 %v6044_v14, %v12020_v1 }
0x121b   : > { %v12022_v9 = vpop.f32.mrf.mxu1 }
0x121c   : > { %v6010_v25 = vmax.f32 %v6008_v29, %v12022_v9 }
0x121d   : > { %v12024_v17 = vpop.f32.mrf.mxu1 }
0x121e   : > { %v6047_v49 = vmax.f32 %v6045_v45, %v12024_v17 }
0x121f   : > { %v12026_v37 = vpop.f32.mrf.mxu1 }
0x1220   : > { %13533 = vst [vmem:[#allocation34_spill] sm:$0xff] %v12026_v37  ;;  %v6011_v35 = vmax.f32 %v6009_v36, %v12026_v37 }
0x1221   : > { %v12028_v44 = vpop.f32.mrf.mxu1 }
0x1222   : > { %v6048_v20 = vmax.f32 %v6046_v10, %v12028_v44 }
0x1223   : > { %v12030_v26 = vpop.f32.mrf.mxu1 }
0x1224   : > { %v6012_v19 = vmax.f32 %v6010_v25, %v12030_v26 }
0x1225   : > { %v12032_v30 = vpop.f32.mrf.mxu1 }
0x1226   : > { %v6049_v60 = vmax.f32 %v6047_v49, %v12032_v30 }
0x1227   : > { %v12034_v0 = vpop.f32.mrf.mxu1 }
0x1228   : > { %13534 = vst [vmem:[#allocation36_spill] sm:$0xff] %v12034_v0  ;;  %v6013_v3 = vmax.f32 %v6011_v35, %v12034_v0 }
0x1229   : > { %v12036_v31 = vpop.f32.mrf.mxu1 }
0x122a   : > { %13535 = vst [vmem:[#allocation38_spill] sm:$0xff] %v12036_v31  ;;  %v6050_v14 = vmax.f32 %v6048_v20, %v12036_v31 }
0x122b   : > { %v12038_v48 = vpop.f32.mrf.mxu1 }
0x122c   : > { %v6014_v29 = vmax.f32 %v6012_v19, %v12038_v48 }
0x122d   : > { %v12040_v18 = vpop.f32.mrf.mxu1 }
0x122e   : > { %v6051_v45 = vmax.f32 %v6049_v60, %v12040_v18 }
0x122f   : > { %v12042_v5 = vpop.f32.mrf.mxu1 }
0x1230   : > { %v6015_v36 = vmax.f32 %v6013_v3, %v12042_v5 }
0x1231   : > { %v12044_v4 = vpop.f32.mrf.mxu1 }
0x1232   : > { %v6052_v10 = vmax.f32 %v6050_v14, %v12044_v4 }
0x1233   : > { %v12046_v8 = vpop.f32.mrf.mxu1 }
0x1234   : > { %13536 = vst [vmem:[#allocation18_spill] sm:$0xff] %v12046_v8  ;;  %v6016_v25 = vmax.f32 %v6014_v29, %v12046_v8 }
0x1235   : > { %v12048_v2 = vpop.f32.mrf.mxu1 }
0x1236   : > { %v6053_v49 = vmax.f32 %v6051_v45, %v12048_v2 }
0x1237   : > { %v12050_v15 = vpop.f32.mrf.mxu1 }
0x1238   : > { %13537 = vst [vmem:[#allocation48_spill] sm:$0xff] %v12050_v15  ;;  %v6017_v35 = vmax.f32 %v6015_v36, %v12050_v15 }
0x1239   : > { %v12052_v62 = vpop.f32.mrf.mxu1 }
0x123a   : > { %v6054_v20 = vmax.f32 %v6052_v10, %v12052_v62 }
0x123b   : > { %v12054_v56 = vpop.f32.mrf.mxu1 }
0x123c   : > { %v6018_v19 = vmax.f32 %v6016_v25, %v12054_v56 }
0x123d   : > { %v12056_v38 = vpop.f32.mrf.mxu1 }
0x123e   : > { %v6055_v60 = vmax.f32 %v6053_v49, %v12056_v38 }
0x123f   : > { %v12058_v63 = vpop.f32.mrf.mxu1 }
0x1240   : > { %v6019_v3 = vmax.f32 %v6017_v35, %v12058_v63 }
0x1241   : > { %v12060_v16 = vpop.f32.mrf.mxu1 }
0x1242   : > { %v6056_v14 = vmax.f32 %v6054_v20, %v12060_v16 }
0x1243   : > { %v12062_v6 = vpop.f32.mrf.mxu1 }
0x1244   : > { %v6020_v29 = vmax.f32 %v6018_v19, %v12062_v6 }
0x1245   : > { %v12064_v59 = vpop.f32.mrf.mxu1 }
0x1246   : > { %v6057_v45 = vmax.f32 %v6055_v60, %v12064_v59 }
0x1247   : > { %v12066_v24 = vpop.f32.mrf.mxu1 }
0x1248   : > { %13538 = vst [vmem:[#allocation39_spill] sm:$0xff] %v12066_v24  ;;  %v6021_v36 = vmax.f32 %v6019_v3, %v12066_v24 }
0x1249   : > { %v12068_v32 = vpop.f32.mrf.mxu1 }
0x124a   : > { %v6058_v10 = vmax.f32 %v6056_v14, %v12068_v32 }
0x124b   : > { %v12070_v42 = vpop.f32.mrf.mxu1 }
0x124c   : > { %v6022_v25 = vmax.f32 %v6020_v29, %v12070_v42 }
0x124d   : > { %v12072_v54 = vpop.f32.mrf.mxu1 }
0x124e   : > { %13539 = vst [vmem:[#allocation19_spill] sm:$0xff] %v12072_v54  ;;  %v6059_v49 = vmax.f32 %v6057_v45, %v12072_v54 }
0x124f   : > { %v12074_v50 = vpop.f32.mrf.mxu1 }
0x1250   : > { %13540 = vst [vmem:[#allocation37_spill] sm:$0xff] %v12074_v50  ;;  %v6023_v35 = vmax.f32 %v6021_v36, %v12074_v50 }
0x1251   : > { %v12076_v11 = vpop.f32.mrf.mxu1 }
0x1252   : > { %13541 = vst [vmem:[#allocation45_spill] sm:$0xff] %v12076_v11  ;;  %v6060_v20 = vmax.f32 %v6058_v10, %v12076_v11 }
0x1253   : > { %v12078_v55 = vpop.f32.mrf.mxu1 }
0x1254   : > { %13542 = vst [vmem:[#allocation47_spill] sm:$0xff] %v12078_v55  ;;  %v6024_v19 = vmax.f32 %v6022_v25, %v12078_v55 }
0x1255   : > { %v12080_v21 = vpop.f32.mrf.mxu1 }
0x1256   : > { %13543 = vst [vmem:[#allocation49_spill] sm:$0xff] %v12080_v21  ;;  %v6061_v60 = vmax.f32 %v6059_v49, %v12080_v21 }
0x1257   : > { %v12082_v23 = vpop.f32.mrf.mxu1 }
0x1258   : > { %13544 = vst [vmem:[#allocation20_spill] sm:$0xff] %v12082_v23  ;;  %v6025_v3 = vmax.f32 %v6023_v35, %v12082_v23 }
0x1259   : > { %v12084_v34 = vpop.f32.mrf.mxu1 }
0x125a   : > { %13545 = vst [vmem:[#allocation24_spill] sm:$0xff] %v12084_v34  ;;  %v6062_v14 = vmax.f32 %v6060_v20, %v12084_v34 }
0x125b   : > { %v12086_v53 = vpop.f32.mrf.mxu1 }
0x125c   : > { %v6026_v29 = vmax.f32 %v6024_v19, %v12086_v53 }
0x125d   : > { %v12088_v58 = vpop.f32.mrf.mxu1 }
0x125e   : > { %13546 = vst [vmem:[#allocation26_spill] sm:$0xff] %v12088_v58  ;;  %v6063_v45 = vmax.f32 %v6061_v60, %v12088_v58 }
0x125f   : > { %v12090_v61 = vpop.f32.mrf.mxu1 }
0x1260   : > { %v6027_v36 = vmax.f32 %v6025_v3, %v12090_v61 }
0x1261   : > { %v12092_v33 = vpop.f32.mrf.mxu1 }
0x1262   : > { %13547 = vst [vmem:[#allocation25_spill] sm:$0xff] %v12092_v33  ;;  %v6064_v10 = vmax.f32 %v6062_v14, %v12092_v33 }
0x1263   : > { %v12094_v47 = vpop.f32.mrf.mxu1 }
0x1264   : > { %v6028_v25 = vmax.f32 %v6026_v29, %v12094_v47 }
0x1265   : > { %v12100_v43 = vpop.f32.mrf.mxu1 }
0x1266   : > { %v6065_v49 = vmax.f32 %v6063_v45, %v12100_v43 }
0x1267   : > { %v12108_v57 = vpop.f32.mrf.mxu1 }
0x1268   : > { %v6029_v35 = vmax.f32 %v6027_v36, %v12108_v57 }
0x1269   : > { %v12114_v12 = vpop.f32.mrf.mxu1 }
0x126a   : > { %v6066_v20 = vmax.f32 %v6064_v10, %v12114_v12 }
0x126b   : > { %v12120_v27 = vpop.f32.mrf.mxu1 }
0x126c   : > { %v6030_v19 = vmax.f32 %v6028_v25, %v12120_v27 }
0x126d   : > { %v12126_v37 = vpop.f32.mrf.mxu1 }
0x126e   : > { %v6067_v60 = vmax.f32 %v6065_v49, %v12126_v37 }
0x126f   : > { %v12132_v0 = vpop.f32.mrf.mxu1 }
0x1270   : > { %v6031_v3 = vmax.f32 %v6029_v35, %v12132_v0 }
0x1271   : > { %v12138_v31 = vpop.f32.mrf.mxu1 }
0x1272   : > { %v6068_v14 = vmax.f32 %v6066_v20, %v12138_v31 }
0x1273   : > { %v12144_v15 = vpop.f32.mrf.mxu1 }
0x1274   : > { %13548 = vst [vmem:[#allocation17_spill] sm:$0xff] %v12144_v15  ;;  %v6032_v29 = vmax.f32 %v6030_v19, %v12144_v15 }
0x1275   : > { %v12150_v8 = vpop.f32.mrf.mxu1 }
0x1276   : > { %13549 = vst [vmem:[#allocation15_spill] sm:$0xff] %v12150_v8  ;;  %v6069_v45 = vmax.f32 %v6067_v60, %v12150_v8 }
0x1277   : > { %v12156_v24 = vpop.f32.mrf.mxu1 }
0x1278   : > { %13550 = vst [vmem:[#allocation42_spill] sm:$0xff] %v12156_v24  ;;  %v6033_v36 = vmax.f32 %v6031_v3, %v12156_v24 }
0x1279   : > { %v12162_v50 = vpop.f32.mrf.mxu1 }
0x127a   : > { %13551 = vst [vmem:[#allocation40_spill] sm:$0xff] %v12162_v50  ;;  %v6070_v10 = vmax.f32 %v6068_v14, %v12162_v50 }
0x127b   : > { %v12168_v23 = vpop.f32.mrf.mxu1 }
0x127c   : > { %v6034_v25 = vmax.f32 %v6032_v29, %v12168_v23 }
0x127d   : > { %v12174_v34 = vpop.f32.mrf.mxu1 }
0x127e   : > { %v6071_v3 = vmax.f32 %v6069_v45, %v12174_v34 }
0x127f   : > { %v12180_v33 = vpop.f32.mrf.mxu1 }
0x1280   : > { %v6035_v35 = vmax.f32 %v6033_v36, %v12180_v33 }
0x1281   : > { %v12186_v58 = vpop.f32.mrf.mxu1 }
0x1282   : > { %v6072_v20 = vmax.f32 %v6070_v10, %v12186_v58  ;;  %v6036_v24 = vmax.f32 %v6034_v25, %v6035_v35 }
0x1284   : > { %v6073_v49 = vmax.f32 %v6071_v3, %v6072_v20  ;;  %v6037_v21 = vrot.slane %v6036_v24, 4 }
0x1286   : > { %v6074_v19 = vrot.slane %v6073_v49, 4  ;;  %v6038_v15 = vmax.f32 %v6036_v24, %v6037_v21 }
0x1288   : > { %v6075_v55 = vmax.f32 %v6073_v49, %v6074_v19  ;;  %v6039_v11 = vrot.slane %v6038_v15, 2 }
0x128a   : > { %v6076_v14 = vrot.slane %v6075_v55, 2  ;;  %v6040_v50 = vmax.f32 %v6038_v15, %v6039_v11 }
0x128c   : > { %v6077_v36 = vmax.f32 %v6075_v55, %v6076_v14  ;;  %v6041_v54 = vrot.slane %v6040_v50, 1 }
0x128e   : > { %v6078_v60 = vrot.slane %v6077_v36, 1  ;;  %v12190_v8 = vmax.f32 %v6040_v50, %v6041_v54 }
0x1290   : > { %v12192_v29 = vmax.f32 %v6077_v36, %v6078_v60  ;;  %v6080_v10 = vsub.f32 %v11995_v41, %v12190_v8  ;;  %v6082_v35 = vsub.f32 %v12002_v51, %v12190_v8  ;;  %v6084_v24 = vsub.f32 %v12006_v7, %v12190_v8 }
0x1291   : > { %v6086_v21 = vsub.f32 %v12010_v13, %v12190_v8  ;;  %v6124_v15 = vsub.f32 %v12086_v53, %v12190_v8  ;;  %v6126_v54 = vsub.f32 %v12090_v61, %v12190_v8  ;;  %v6128_v50 = vsub.f32 %v12094_v47, %v12190_v8 }
0x1292   : > { %v6130_v41 = vsub.f32 %v12108_v57, %v12190_v8  ;;  %v6132_v51 = vsub.f32 %v12120_v27, %v12190_v8  ;;  %v6134_v7 = vsub.f32 %v12132_v0, %v12190_v8  ;;  %v6081_v13 = vsub.f32 %v12000_v46, %v12192_v29  ;;  %v13552_v27 = vld [vmem:[#allocation35_spill] sm:$0xff] }
0x1293   : > { %v6083_v11 = vsub.f32 %v12004_v52, %v12192_v29  ;;  %v6088_v55 = vsub.f32 %v12014_v22, %v12190_v8  ;;  %v6090_v53 = vsub.f32 %v12018_v39, %v12190_v8  ;;  %v6085_v61 = vsub.f32 %v12008_v40, %v12192_v29 }
0x1294   : > { %v6087_v47 = vsub.f32 %v13552_v27, %v12192_v29  ;;  %v6089_v0 = vsub.f32 %v12016_v28, %v12192_v29  ;;  %v6091_v46 = vsub.f32 %v12020_v1, %v12192_v29  ;;  %v6129_v52 = vsub.f32 %v12100_v43, %v12192_v29 }
0x1295   : > { %v6131_v22 = vsub.f32 %v12114_v12, %v12192_v29  ;;  %v6133_v39 = vsub.f32 %v12126_v37, %v12192_v29  ;;  %v6135_v40 = vsub.f32 %v12138_v31, %v12192_v29  ;;  %v12238_v57 = vpack.c.bf16 %v6126_v54, %v6124_v15  ;;  %v13553_v12 = vld [vmem:[#allocation34_spill] sm:$0xff] }
0x1296   : > { %v12240_v45 = vpack.c.bf16 %v6130_v41, %v6128_v50  ;;  %v6144_v28 = vpack.c.bf16 %v6082_v35, %v6080_v10  ;;  %v6146_v25 = vpack.c.bf16 %v6086_v21, %v6084_v24  ;;  %v12242_v20 = vpack.c.bf16 %v6134_v7, %v6132_v51  ;;  %v13555_v41 = vld [vmem:[#allocation38_spill] sm:$0xff] }
0x1297   : > { %v6145_v1 = vpack.c.bf16 %v6083_v11, %v6081_v13  ;;  %v6092_v43 = vsub.f32 %v12022_v9, %v12190_v8  ;;  %v6094_v3 = vsub.f32 %v13553_v12, %v12190_v8  ;;  %v6147_v49 = vpack.c.bf16 %v6087_v47, %v6085_v61  ;;  %v13554_v9 = vld [vmem:[#allocation36_spill] sm:$0xff] }
0x1298   : > { %v6096_v37 = vsub.f32 %v12030_v26, %v12190_v8  ;;  %v6093_v31 = vsub.f32 %v12024_v17, %v12192_v29  ;;  %v6148_v19 = vpack.c.bf16 %v6090_v53, %v6088_v55  ;;  %v6095_v14 = vsub.f32 %v12028_v44, %v12192_v29 }
0x1299   : > { %v6149_v36 = vpack.c.bf16 %v6091_v46, %v6089_v0  ;;  %v12254_v60 = vpack.c.bf16 %v6131_v22, %v6129_v52  ;;  %v12256_v10 = vpack.c.bf16 %v6135_v40, %v6133_v39  ;;  %v6098_v35 = vsub.f32 %v13554_v9, %v12190_v8  ;;  %v13557_v39 = vld [vmem:[#allocation48_spill] sm:$0xff] }
0x129a   : > { %v6177_v24 = vmul.bf16 1069105081, %v6144_v28  ;;  %v6180_v21 = vmul.bf16 1069105081, %v6145_v1  ;;  %v6183_v15 = vmul.bf16 1069105081, %v6146_v25  ;;  %v6100_v26 = vsub.f32 %v12038_v48, %v12190_v8 }
0x129b   : > { %v6102_v17 = vsub.f32 %v12042_v5, %v12190_v8  ;;  %v6150_v54 = vpack.c.bf16 %v6094_v3, %v6092_v43  ;;  %v6186_v50 = vmul.bf16 1069105081, %v6147_v49  ;;  %v6097_v44 = vsub.f32 %v12032_v30, %v12192_v29 }
0x129c   : > { %v6099_v51 = vsub.f32 %v13555_v41, %v12192_v29  ;;  %8311 = vpow.bf16 %v6177_v24  ;;  %v6189_v7 = vmul.bf16 1069105081, %v6148_v19  ;;  %v6108_v13 = vsub.f32 %v12054_v56, %v12190_v8 }
0x129d   : > { %v6151_v11 = vpack.c.bf16 %v6095_v14, %v6093_v31  ;;  %8313 = vpow.bf16 %v6180_v21  ;;  %v6192_v55 = vmul.bf16 1069105081, %v6149_v36  ;;  %v6110_v48 = vsub.f32 %v12058_v63, %v12190_v8  ;;  %v13558_v14 = vld [vmem:[#allocation39_spill] sm:$0xff] }
0x129e   : > { %v6101_v5 = vsub.f32 %v12040_v18, %v12192_v29  ;;  %v6103_v30 = vsub.f32 %v12044_v4, %v12192_v29  ;;  %8315 = vpow.bf16 %v6183_v15  ;;  %v6109_v53 = vsub.f32 %v12056_v38, %v12192_v29  ;;  %v13556_v38 = vld [vmem:[#allocation18_spill] sm:$0xff] }
0x129f   : > { %v6111_v61 = vsub.f32 %v12060_v16, %v12192_v29  ;;  %v6152_v56 = vpack.c.bf16 %v6098_v35, %v6096_v37  ;;  %8317 = vpow.bf16 %v6186_v50  ;;  %v6105_v27 = vsub.f32 %v12048_v2, %v12192_v29 }
0x12a0   : > { %v6153_v47 = vpack.c.bf16 %v6099_v51, %v6097_v44  ;;  %8319 = vpow.bf16 %v6189_v7  ;;  %v6195_v63 = vmul.bf16 1069105081, %v6150_v54  ;;  %v6107_v18 = vsub.f32 %v12052_v62, %v12192_v29 }
0x12a1   : > { %v6154_v0 = vpack.c.bf16 %v6102_v17, %v6100_v26  ;;  %8321 = vpow.bf16 %v6192_v55  ;;  %v6198_v4 = vmul.bf16 1069105081, %v6151_v11  ;;  %v6155_v46 = vpack.c.bf16 %v6103_v30, %v6101_v5  ;;  %v13560_v5 = vld [vmem:[#allocation19_spill] sm:$0xff] }
0x12a2   : > { %v6104_v52 = vsub.f32 %v13556_v38, %v12190_v8  ;;  %v6159_v22 = vpack.c.bf16 %v6111_v61, %v6109_v53  ;;  %v6201_v16 = vmul.bf16 1069105081, %v6152_v56  ;;  %v6106_v40 = vsub.f32 %v13557_v39, %v12190_v8  ;;  %v13562_v38 = vld [vmem:[#allocation47_spill] sm:$0xff] }
0x12a3   : > { %v6158_v28 = vpack.c.bf16 %v6110_v48, %v6108_v13  ;;  %8323 = vpow.bf16 %v6195_v63  ;;  %v6204_v2 = vmul.bf16 1069105081, %v6153_v47  ;;  %v6157_v25 = vpack.c.bf16 %v6107_v18, %v6105_v27  ;;  %v13559_v48 = vld [vmem:[#allocation37_spill] sm:$0xff] }
0x12a4   : > { %8325 = vpow.bf16 %v6198_v4  ;;  %v6207_v1 = vmul.bf16 1069105081, %v6154_v0  ;;  %v6210_v43 = vmul.bf16 1069105081, %v6155_v46  ;;  %v6222_v62 = vmul.bf16 1069105081, %v6159_v22 }
0x12a5   : > { %8327 = vpow.bf16 %v6201_v16  ;;  %v6156_v12 = vpack.c.bf16 %v6106_v40, %v6104_v52  ;;  %v6219_v3 = vmul.bf16 1069105081, %v6158_v28  ;;  %v6216_v49 = vmul.bf16 1069105081, %v6157_v25  ;;  %v13563_v22 = vld [vmem:[#allocation20_spill] sm:$0xff] }
0x12a6   : > { %8329 = vpow.bf16 %v6204_v2  ;;  %v6140_v31 = vsub.f32 %v12168_v23, %v12190_v8  ;;  %v6112_v19 = vsub.f32 %v12062_v6, %v12190_v8  ;;  %v6114_v36 = vsub.f32 %v13558_v14, %v12190_v8  ;;  %v13564_v2 = vld [vmem:[#allocation49_spill] sm:$0xff] }
0x12a7   : > { %8331 = vpow.bf16 %v6207_v1  ;;  %v6113_v35 = vsub.f32 %v12064_v59, %v12192_v29  ;;  %v6213_v26 = vmul.bf16 1069105081, %v6156_v12  ;;  %v6115_v50 = vsub.f32 %v12068_v32, %v12192_v29  ;;  %v13565_v1 = vld [vmem:[#allocation24_spill] sm:$0xff] }
0x12a8   : > { %8333 = vpow.bf16 %v6210_v43  ;;  %v6142_v51 = vsub.f32 %v12180_v33, %v12190_v8  ;;  %v6116_v7 = vsub.f32 %v12070_v42, %v12190_v8  ;;  %v6118_v32 = vsub.f32 %v13559_v48, %v12190_v8  ;;  %v13561_v42 = vld [vmem:[#allocation45_spill] sm:$0xff] }
0x12a9   : > { %8335 = vpow.bf16 %v6222_v62  ;;  %v6117_v30 = vsub.f32 %v13560_v5, %v12192_v29  ;;  %v6160_v56 = vpack.c.bf16 %v6114_v36, %v6112_v19  ;;  %v6119_v63 = vsub.f32 %v13561_v42, %v12192_v29 }
0x12aa   : > { %v12288_v37 = vpop.eup %8311  ;;  %8337 = vpow.bf16 %v6219_v3  ;;  %v6161_v18 = vpack.c.bf16 %v6115_v50, %v6113_v35  ;;  %v6120_v52 = vsub.f32 %v13562_v38, %v12190_v8  ;;  %v6122_v16 = vsub.f32 %v13563_v22, %v12190_v8 }
0x12ab   : > { %v12296_v9 = vpop.eup %8313  ;;  %v6272_v24 = vunpack.c.l.bf16 %v12288_v37  ;;  %v6274_v21 = vunpack.c.h.bf16 %v12288_v37  ;;  %8339 = vpow.bf16 %v6216_v49  ;;  %v6121_v25 = vsub.f32 %v13564_v2, %v12192_v29 }
0x12ac   : > { %v12302_v15 = vpop.eup %8315  ;;  %v6273_v6 = vunpack.c.l.bf16 %v12296_v9  ;;  %v6275_v17 = vunpack.c.h.bf16 %v12296_v9  ;;  %8341 = vpow.bf16 %v6213_v26  ;;  %v6123_v43 = vsub.f32 %v13565_v1, %v12192_v29 }
0x12ad   : > { %v12306_v54 = vpop.eup %8317  ;;  %v6276_v59 = vunpack.c.l.bf16 %v12302_v15  ;;  %v6336_v44 = vadd.f32 %v6274_v21, %v6272_v24  ;;  %v6278_v53 = vunpack.c.h.bf16 %v12302_v15  ;;  %v6162_v3 = vpack.c.bf16 %v6118_v32, %v6116_v7 }
0x12ae   : > { %v12311_v41 = vpop.eup %8319  ;;  %v6277_v13 = vunpack.c.l.bf16 %v12306_v54  ;;  %v6373_v11 = vadd.f32 %v6275_v17, %v6273_v6  ;;  %v6279_v27 = vunpack.c.h.bf16 %v12306_v54  ;;  %v6225_v49 = vmul.bf16 1069105081, %v6160_v56  ;;  %v13566_v17 = vld [vmem:[#allocation26_spill] sm:$0xff] }
0x12af   : > { %v12318_v55 = vpop.eup %8321  ;;  %v6337_v61 = vadd.f32 %v6336_v44, %v6276_v59  ;;  %v6280_v0 = vunpack.c.l.bf16 %v12311_v41  ;;  %v6282_v62 = vunpack.c.h.bf16 %v12311_v41  ;;  %v6163_v35 = vpack.c.bf16 %v6119_v63, %v6117_v30  ;;  %v13567_v59 = vld [vmem:[#allocation25_spill] sm:$0xff] }
0x12b0   : > { %v6374_v47 = vadd.f32 %v6373_v11, %v6277_v13  ;;  %v6281_v39 = vunpack.c.l.bf16 %v12318_v55  ;;  %v6283_v19 = vunpack.c.h.bf16 %v12318_v55  ;;  %v6228_v24 = vmul.bf16 1069105081, %v6161_v18 }
0x12b1   : > { %v6338_v4 = vadd.f32 %v6337_v61, %v6278_v53  ;;  %v12329_v46 = vpop.eup %8323  ;;  %v6125_v50 = vsub.f32 %v13566_v17, %v12192_v29  ;;  %v6127_v44 = vsub.f32 %v13567_v59, %v12192_v29  ;;  %v6164_v48 = vpack.c.bf16 %v6122_v16, %v6120_v52 }
0x12b2   : > { %v6375_v40 = vadd.f32 %v6374_v47, %v6279_v27  ;;  %v12336_v28 = vpop.eup %8325  ;;  %v6284_v21 = vunpack.c.l.bf16 %v12329_v46  ;;  %v6165_v32 = vpack.c.bf16 %v6123_v43, %v6121_v25  ;;  %v6286_v5 = vunpack.c.h.bf16 %v12329_v46 }
0x12b3   : > { %v6339_v12 = vadd.f32 %v6338_v4, %v6280_v0  ;;  %v12344_v36 = vpop.eup %8327  ;;  %v6285_v7 = vunpack.c.l.bf16 %v12336_v28  ;;  %8343 = vpow.bf16 %v6225_v49  ;;  %v6231_v61 = vmul.bf16 1069105081, %v6162_v3 }
0x12b4   : > { %v6376_v14 = vadd.f32 %v6375_v40, %v6281_v39  ;;  %v12347_v6 = vpop.eup %8329  ;;  %v6287_v56 = vunpack.c.h.bf16 %v12336_v28  ;;  %8345 = vpow.bf16 %v6228_v24  ;;  %v6234_v42 = vmul.bf16 1069105081, %v6163_v35  ;;  %v13568_v35 = vld [vmem:[#allocation15_spill] sm:$0xff] }
0x12b5   : > { %v6340_v26 = vadd.f32 %v6339_v12, %v6282_v62  ;;  %v8332_v11 = vpop.eup %8331  ;;  %v6288_v63 = vunpack.c.l.bf16 %v12344_v36  ;;  %v6141_v4 = vsub.f32 %v12174_v34, %v12192_v29  ;;  %v6143_v38 = vsub.f32 %v12186_v58, %v12192_v29 }
0x12b6   : > { %v6377_v13 = vadd.f32 %v6376_v14, %v6283_v19  ;;  %v8334_v53 = vpop.eup %8333  ;;  %v6289_v52 = vunpack.c.l.bf16 %v12347_v6  ;;  %v6167_v39 = vpack.c.bf16 %v6127_v44, %v6125_v50  ;;  %v6290_v40 = vunpack.c.h.bf16 %v12344_v36 }
0x12b7   : > { %v6341_v30 = vadd.f32 %v6340_v26, %v6284_v21  ;;  %v12356_v47 = vpop.eup %8335  ;;  %8347 = vpow.bf16 %v6231_v61  ;;  %v6237_v25 = vmul.bf16 1069105081, %v6164_v48  ;;  %v6291_v1 = vunpack.c.h.bf16 %v12347_v6  ;;  %v13569_v21 = vld [vmem:[#allocation40_spill] sm:$0xff] }
0x12b8   : > { %v6378_v27 = vadd.f32 %v6377_v13, %v6285_v7  ;;  %v12359_v0 = vpop.eup %8337  ;;  %6417 = vmatprep.subr.bf16.mxu0 %v12356_v47  ;;  %8349 = vpow.bf16 %v6234_v42  ;;  %v6240_v58 = vmul.bf16 1069105081, %v6165_v32  ;;  %v6292_v43 = vunpack.c.l.bf16 %v8332_v11  ;;  %v13570_v7 = vld [vmem:[#allocation17_spill] sm:$0xff] }
0x12b9   : > { %v6342_v18 = vadd.f32 %v6341_v30, %v6286_v5  ;;  %v8340_v16 = vpop.eup %8339  ;;  %6418 = vmatpush1.bf16.msra.mxu0 %v12359_v0  ;;  %v6174_v3 = vpack.c.bf16 %v6142_v51, %v6140_v31  ;;  %v6175_v49 = vpack.c.bf16 %v6143_v38, %v6141_v4  ;;  %v6293_v19 = vunpack.c.l.bf16 %v8334_v53 }
0x12ba   : > { %v6379_v22 = vadd.f32 %v6378_v27, %v6287_v56  ;;  %6419 = vmatprep.subr.bf16.mxu0 %v8340_v16  ;;  %v8342_v12 = vpop.eup %8341  ;;  %v6137_v24 = vsub.f32 %v13568_v35, %v12192_v29  ;;  %v6139_v26 = vsub.f32 %v13569_v21, %v12192_v29  ;;  %v6294_v17 = vunpack.c.h.bf16 %v8332_v11  ;;  %v13571_v29 = vld [vmem:[#allocation42_spill] sm:$0xff] }
0x12bb   : > { %v6343_v2 = vadd.f32 %v6342_v18, %v6288_v63  ;;  %8351 = vpow.bf16 %v6237_v25  ;;  %v6243_v59 = vmul.bf16 1069105081, %v12238_v57  ;;  %v6295_v23 = vunpack.c.h.bf16 %v8334_v53 }
0x12bc   : > { %v6380_v34 = vadd.f32 %v6379_v22, %v6289_v52  ;;  %8353 = vpow.bf16 %v6240_v58  ;;  %v6246_v33 = vmul.bf16 1069105081, %v6167_v39  ;;  %v6296_v31 = vunpack.c.l.bf16 %v8342_v12 }
0x12bd   : > { %v6344_v62 = vadd.f32 %v6343_v2, %v6290_v40  ;;  %6420 = vmatpush1.bf16.msra.mxu0 %v8342_v12  ;;  %v6136_v13 = vsub.f32 %v13570_v7, %v12190_v8  ;;  %v6270_v48 = vmul.bf16 1069105081, %v6175_v49  ;;  %v6297_v32 = vunpack.c.l.bf16 %v8340_v16 }
0x12be   : > { %v6381_v14 = vadd.f32 %v6380_v34, %v6291_v1  ;;  %6421 = vmatprep.subr.bf16.mxu0 %v8334_v53  ;;  %v6138_v30 = vsub.f32 %v13571_v29, %v12190_v8  ;;  %v6173_v61 = vpack.c.bf16 %v6139_v26, %v6137_v24  ;;  %v6298_v56 = vunpack.c.h.bf16 %v8342_v12 }
0x12bf   : > { %v6345_v50 = vadd.f32 %v6344_v62, %v6292_v43  ;;  %8355 = vpow.bf16 %v6243_v59  ;;  %v6249_v57 = vmul.bf16 1069105081, %v12240_v45  ;;  %v6299_v53 = vunpack.c.h.bf16 %v8340_v16 }
0x12c0   : > { %v6382_v44 = vadd.f32 %v6381_v14, %v6293_v19  ;;  %8357 = vpow.bf16 %v6246_v33  ;;  %v6252_v63 = vmul.bf16 1069105081, %v12254_v60  ;;  %v6300_v18 = vunpack.c.l.bf16 %v12359_v0 }
0x12c1   : > { %v6346_v51 = vadd.f32 %v6345_v50, %v6294_v17  ;;  %6422 = vmatpush1.bf16.msra.mxu0 %v8332_v11  ;;  %v12389_v38 = vpop.eup %8343  ;;  %v6267_v8 = vmul.bf16 1069105081, %v6174_v3  ;;  %8359 = vpow.bf16 %v6270_v48  ;;  %v6301_v52 = vunpack.c.l.bf16 %v12356_v47 }
0x12c2   : > { %v6383_v5 = vadd.f32 %v6382_v44, %v6295_v23  ;;  %6423 = vmatprep.subr.bf16.mxu0 %v12347_v6  ;;  %v12392_v22 = vpop.eup %8345  ;;  %v6172_v45 = vpack.c.bf16 %v6138_v30, %v6136_v13  ;;  %v6255_v16 = vmul.bf16 1069105081, %v12242_v20  ;;  %v6302_v6 = vunpack.c.h.bf16 %v12359_v0 }
0x12c3   : > { %v6347_v27 = vadd.f32 %v6346_v51, %v6296_v31  ;;  %8361 = vpow.bf16 %v6249_v57  ;;  %v6258_v60 = vmul.bf16 1069105081, %v12256_v10  ;;  %v6303_v40 = vunpack.c.h.bf16 %v12356_v47 }
0x12c4   : > { %v6384_v42 = vadd.f32 %v6383_v5, %v6297_v32  ;;  %8363 = vpow.bf16 %v6252_v63  ;;  %v6264_v25 = vmul.bf16 1069105081, %v6173_v61  ;;  %v6304_v1 = vunpack.c.l.bf16 %v12389_v38 }
0x12c5   : > { %v6348_v4 = vadd.f32 %v6347_v27, %v6298_v56  ;;  %6424 = vmatpush1.bf16.msra.mxu0 %v12344_v36  ;;  %v12401_v58 = vpop.eup %8347  ;;  %8365 = vpow.bf16 %v6267_v8  ;;  %v6305_v20 = vunpack.c.l.bf16 %v12392_v22  ;;  %v6306_v10 = vunpack.c.h.bf16 %v12389_v38 }
0x12c6   : > { %v6385_v11 = vadd.f32 %v6384_v42, %v6299_v53  ;;  %6425 = vmatprep.subr.bf16.mxu0 %v12336_v28  ;;  %v12404_v36 = vpop.eup %8349  ;;  %8367 = vpow.bf16 %v6255_v16  ;;  %v6261_v28 = vmul.bf16 1069105081, %v6172_v45  ;;  %v6307_v43 = vunpack.c.h.bf16 %v12392_v22 }
0x12c7   : > { %v6349_v39 = vadd.f32 %v6348_v4, %v6300_v18  ;;  %8369 = vpow.bf16 %v6258_v60  ;;  %v6308_v12 = vunpack.c.l.bf16 %v12401_v58  ;;  %v6309_v19 = vunpack.c.l.bf16 %v12404_v36 }
0x12c8   : > { %v6386_v2 = vadd.f32 %v6385_v11, %v6301_v52  ;;  %8371 = vpow.bf16 %v6264_v25  ;;  %v6311_v21 = vunpack.c.h.bf16 %v12404_v36 }
0x12c9   : > { %v6350_v34 = vadd.f32 %v6349_v39, %v6302_v6  ;;  %6426 = vmatpush1.bf16.msra.mxu0 %v12329_v46  ;;  %v12411_v49 = vpop.eup %8351  ;;  %v6310_v46 = vunpack.c.h.bf16 %v12401_v58  ;;  %8373 = vpow.bf16 %v6261_v28 }
0x12ca   : > { %v6387_v0 = vadd.f32 %v6386_v2, %v6303_v40  ;;  %6427 = vmatprep.subr.bf16.mxu0 %v12318_v55  ;;  %v12414_v35 = vpop.eup %8353  ;;  %v6312_v26 = vunpack.c.l.bf16 %v12411_v49  ;;  %v6314_v33 = vunpack.c.h.bf16 %v12411_v49 }
0x12cb   : > { %v6351_v47 = vadd.f32 %v6350_v34, %v6304_v1  ;;  %v6313_v59 = vunpack.c.l.bf16 %v12414_v35  ;;  %v6315_v51 = vunpack.c.h.bf16 %v12414_v35 }
0x12cc   : > { %v6388_v62 = vadd.f32 %v6387_v0, %v6305_v20 }
0x12cd   : > { %v6352_v3 = vadd.f32 %v6351_v47, %v6306_v10  ;;  %6428 = vmatpush1.bf16.msra.mxu0 %v12311_v41  ;;  %v12421_v50 = vpop.eup %8355 }
0x12ce   : > { %v6389_v14 = vadd.f32 %v6388_v62, %v6307_v43  ;;  %6429 = vmatprep.subr.bf16.mxu0 %v12306_v54  ;;  %v8358_v44 = vpop.eup %8357  ;;  %v6316_v54 = vunpack.c.l.bf16 %v12421_v50  ;;  %v6318_v30 = vunpack.c.h.bf16 %v12421_v50 }
0x12cf   : > { %v6353_v24 = vadd.f32 %v6352_v3, %v6308_v12  ;;  %v12426_v41 = vpop.eup %8359  ;;  %v6317_v32 = vunpack.c.l.bf16 %v8358_v44  ;;  %v6319_v56 = vunpack.c.h.bf16 %v8358_v44 }
0x12d0   : > { %v6390_v55 = vadd.f32 %v6389_v14, %v6309_v19  ;;  %v6333_v19 = vunpack.c.l.bf16 %v12426_v41 }
0x12d1   : > { %v6354_v17 = vadd.f32 %v6353_v24, %v6310_v46  ;;  %6430 = vmatpush1.bf16.msra.mxu0 %v12302_v15  ;;  %v8362_v48 = vpop.eup %8361 }
0x12d2   : > { %v6391_v23 = vadd.f32 %v6390_v55, %v6311_v21  ;;  %6431 = vmatprep.subr.bf16.mxu0 %v12296_v9  ;;  %v8364_v29 = vpop.eup %8363  ;;  %v6320_v53 = vunpack.c.l.bf16 %v8362_v48  ;;  %v6322_v8 = vunpack.c.h.bf16 %v8362_v48  ;;  %v6335_v21 = vunpack.c.h.bf16 %v12426_v41 }
0x12d3   : > { %v6355_v31 = vadd.f32 %v6354_v17, %v6312_v26  ;;  %v8366_v15 = vpop.eup %8365  ;;  %v6321_v63 = vunpack.c.l.bf16 %v8364_v29  ;;  %v6323_v11 = vunpack.c.h.bf16 %v8364_v29 }
0x12d4   : > { %v6392_v7 = vadd.f32 %v6391_v23, %v6313_v59  ;;  %v8368_v57 = vpop.eup %8367  ;;  %v6332_v12 = vunpack.c.l.bf16 %v8366_v15  ;;  %v6334_v46 = vunpack.c.h.bf16 %v8366_v15  ;;  %v13572_v59 = vld [vmem:[#allocation27_spill] sm:$0xff] }
0x12d5   : > { %v6356_v13 = vadd.f32 %v6355_v31, %v6314_v33  ;;  %6432 = vmatpush1.bf16.msra.mxu0 %v12288_v37  ;;  %v8370_v42 = vpop.eup %8369  ;;  %v6324_v37 = vunpack.c.l.bf16 %v8368_v57  ;;  %v6326_v40 = vunpack.c.h.bf16 %v8368_v57  ;;  %v6508_v23 = vrot.slane %v13572_v59, 6  ;;  %v8452_v31 = vld [vmem:[#allocation4 + $0x38] sm:$0x33] }
0x12d6   : > { %v6393_v5 = vadd.f32 %v6392_v7, %v6315_v51  ;;  %6433 = vmatprep.subr.bf16.mxu0 %v12426_v41  ;;  %v8372_v4 = vpop.eup %8371  ;;  %v6325_v39 = vunpack.c.l.bf16 %v8370_v42  ;;  %v6327_v25 = vunpack.c.h.bf16 %v8370_v42  ;;  %v7656_v41 = vcombine.low %v8452_v31, %v8452_v31 }
0x12d7   : > { %v6357_v61 = vadd.f32 %v6356_v13, %v6316_v54  ;;  %v8374_v6 = vpop.eup %8373  ;;  %v6329_v0 = vunpack.c.l.bf16 %v8372_v4  ;;  %v6331_v43 = vunpack.c.h.bf16 %v8372_v4  ;;  %v6499_v13 = vpop.trf.xlu1 }
0x12d8   : > { %v6394_v27 = vadd.f32 %v6393_v5, %v6317_v32  ;;  %v6328_v34 = vunpack.c.l.bf16 %v8374_v6  ;;  %v6330_v47 = vunpack.c.h.bf16 %v8374_v6 }
0x12d9   : > { %v6358_v9 = vadd.f32 %v6357_v61, %v6318_v30  ;;  %6434 = vmatpush2.bf16.msra.mxu0 %v8366_v15 }
0x12da   : > { %v6395_v18 = vadd.f32 %v6394_v27, %v6319_v56  ;;  %6435 = vmatprep.subr.bf16.mxu0 %v8372_v4 }
0x12db   : > { %v6359_v52 = vadd.f32 %v6358_v9, %v6320_v53 }
0x12dc   : > { %v6396_v45 = vadd.f32 %v6395_v18, %v6321_v63 }
0x12dd   : > { %v6360_v16 = vadd.f32 %v6359_v52, %v6322_v8  ;;  %6436 = vmatpush2.bf16.msra.mxu0 %v8374_v6 }
0x12de   : > { %v6397_v60 = vadd.f32 %v6396_v45, %v6323_v11  ;;  %6437 = vmatprep.subr.bf16.mxu0 %v8370_v42 }
0x12df   : > { %v6361_v2 = vadd.f32 %v6360_v16, %v6324_v37 }
0x12e0   : > { %v6398_v1 = vadd.f32 %v6397_v60, %v6325_v39 }
0x12e1   : > { %v6362_v20 = vadd.f32 %v6361_v2, %v6326_v40  ;;  %6438 = vmatpush2.bf16.msra.mxu0 %v8368_v57 }
0x12e2   : > { %v6399_v10 = vadd.f32 %v6398_v1, %v6327_v25  ;;  %6439 = vmatprep.subr.bf16.mxu0 %v8364_v29 }
0x12e3   : > { %v6363_v28 = vadd.f32 %v6362_v20, %v6328_v34 }
0x12e4   : > { %v6400_v62 = vadd.f32 %v6399_v10, %v6329_v0  ;;  %v13575_v0 = vld [vmem:[#allocation33_spill] sm:$0xff] }
0x12e5   : > { %v6364_v3 = vadd.f32 %v6363_v28, %v6330_v47  ;;  %6440 = vmatpush2.bf16.msra.mxu0 %v8362_v48  ;;  %v6500_v48 = vpop.trf.xlu1  ;;  %v13577_v28 = vld [vmem:[#allocation31_spill] sm:$0xff] }
0x12e6   : > { %v6401_v14 = vadd.f32 %v6400_v62, %v6331_v43  ;;  %6441 = vmatprep.subr.bf16.mxu0 %v8358_v44  ;;  %v13573_v44 = vld [vmem:[#allocation16_spill] sm:$0xff] }
0x12e7   : > { %v6365_v24 = vadd.f32 %v6364_v3, %v6332_v12  ;;  %v6507_v33 = vrot.slane %v13573_v44, 6 }
0x12e8   : > { %v6402_v55 = vadd.f32 %v6401_v14, %v6333_v19 }
0x12e9   : > { %v12436_v26 = vadd.f32 %v6365_v24, %v6334_v46  ;;  %6442 = vmatpush2.bf16.msra.mxu0 %v12421_v50  ;;  %v6501_v32 = vpop.trf.xlu1 }
0x12ea   : > { %v12438_v17 = vadd.f32 %v6402_v55, %v6335_v21  ;;  %6443 = vmatprep.subr.bf16.mxu0 %v12414_v35  ;;  %v6558_v35 = vsel %vm1304_vm2, %v6507_v33, 0 }
0x12eb   : > { %v6367_v56 = vrot.slane %v12436_v26, 4 }
0x12ec   : > { %v6404_v27 = vrot.slane %v12438_v17, 4 }
0x12ed   : > { %6444 = vmatpush2.bf16.msra.mxu0 %v12411_v49  ;;  %v13574_v49 = vmov 0   ;;  %v6502_v5 = vpop.trf.xlu1  ;;  %v6368_v57 = vadd.f32 %v6367_v56, %v12436_v26 }
0x12ee   : > { %6445 = vmatprep.subr.bf16.mxu0 %v12404_v36  ;;  %v6483_v36 = vpop.trf.xlu0  ;;  %v6405_v53 = vadd.f32 %v6404_v27, %v12438_v17 }
0x12ef   : > { %v6369_v9 = vrot.slane %v6368_v57, 2 }
0x12f0   : > { %v6406_v42 = vrot.slane %v6405_v53, 2 }
0x12f1   : > { %6446 = vmatpush2.bf16.msra.mxu0 %v12401_v58  ;;  %v6503_v29 = vpop.trf.xlu1  ;;  %v6370_v63 = vadd.f32 %v6369_v9, %v6368_v57 }
0x12f2   : > { %6447 = vmatprep.subr.bf16.mxu0 %v12392_v22  ;;  %v6484_v22 = vpop.trf.xlu0  ;;  %v6407_v18 = vadd.f32 %v6406_v42, %v6405_v53 }
0x12f3   : > { %v6371_v4 = vrot.slane %v6370_v63, 1 }
0x12f4   : > { %v6408_v8 = vrot.slane %v6407_v18, 1 }
0x12f5   : > { %6448 = vmatpush2.bf16.msra.mxu0 %v12389_v38  ;;  %v6504_v30 = vpop.trf.xlu1  ;;  %v6372_v52 = vadd.f32 %v6371_v4, %v6370_v63 }
0x12f6   : > { %7660 = vmatprep.subr.msk.bf16.mxu0 %vm1304_vm2, %v6508_v23  ;;  %v6485_v38 = vpop.trf.xlu0  ;;  %v6409_v11 = vadd.f32 %v6408_v8, %v6407_v18 }
0x12f7   : > { %8375 = vrcp.f32 %v6372_v52 }
0x12f8   : > { %6450 = vmatmul.mubr.bf16.vlgmr.msra.gmra.mxu0 %v7656_v41  ;;  %8377 = vrcp.f32 %v6409_v11 }
0x12f9   : > { %6578 = vmatpush1.bf16.msra.mxu0 %v6558_v35  ;;  %6595 = vmatprep.mubr.bf16.mxu0 %v13574_v49  ;;  %v6505_v61 = vpop.trf.xlu1 }
0x12fa   : > { %v6486_v58 = vpop.trf.xlu0 }
0x12fd   : > { %v6506_v15 = vpop.trf.xlu1 }
0x12fe   : > { %v6487_v50 = vpop.trf.xlu0 }
0x1300   : > { %7661 = vmatmul.mubr.msk.bf16.vlgmr.msra.gmra.mxu0 %vm1255_vm3, %v6483_v36 }
0x1301   : > { %6605 = vmatprep.mubr.bf16.mxu0 %v13574_v49 }
0x1302   : > { %v6488_v51 = vpop.trf.xlu0 }
0x1304   : > { %v8376_v45 = vpop.eup %8375 }
0x1305   : > { %v8378_v6 = vpop.eup %8377 }
0x1306   : > { %v6489_v7 = vpop.trf.xlu0 }
0x1308   : > { %7662 = vmatmul.mubr.msk.bf16.gmra.mxu0 %vm1255_vm3, %v6484_v22 }
0x1309   : > { %6615 = vmatprep.mubr.bf16.mxu0 %v13574_v49 }
0x130a   : > { %v6490_v54 = vpop.trf.xlu0 }
0x1310   : > { %7663 = vmatmul.mubr.msk.bf16.gmra.mxu0 %vm1255_vm3, %v6485_v38 }
0x1311   : > { %6625 = vmatprep.mubr.bf16.mxu0 %v13574_v49 }
0x1318   : > { %7664 = vmatmul.mubr.msk.bf16.gmra.mxu0 %vm1255_vm3, %v6486_v58 }
0x1319   : > { %6635 = vmatprep.mubr.bf16.mxu0 %v13574_v49 }
0x1320   : > { %7665 = vmatmul.mubr.msk.bf16.gmra.mxu0 %vm1255_vm3, %v6487_v50 }
0x1321   : > { %6645 = vmatprep.mubr.bf16.mxu0 %v13574_v49 }
0x1328   : > { %7666 = vmatmul.mubr.msk.bf16.gmra.mxu0 %vm1255_vm3, %v6488_v51 }
0x1329   : > { %6655 = vmatprep.mubr.bf16.mxu0 %v13574_v49 }
0x1330   : > { %7667 = vmatmul.mubr.msk.bf16.gmra.mxu0 %vm1255_vm3, %v6489_v7 }
0x1331   : > { %6665 = vmatprep.mubr.bf16.mxu0 %v13574_v49 }
0x1338   : > { %7668 = vmatmul.mubr.msk.bf16.gmra.mxu0 %vm1255_vm3, %v6490_v54 }
0x1339   : > { %6675 = vmatprep.mubr.bf16.mxu0 %v13574_v49 }
0x1340   : > { %7669 = vmatmul.mubr.msk.bf16.gmra.mxu0 %vm1255_vm3, %v6499_v13 }
0x1341   : > { %6685 = vmatprep.mubr.bf16.mxu0 %v13574_v49 }
0x1348   : > { %7670 = vmatmul.mubr.msk.bf16.gmra.mxu0 %vm1255_vm3, %v6500_v48 }
0x1349   : > { %6695 = vmatprep.mubr.bf16.mxu0 %v13574_v49 }
0x1350   : > { %7671 = vmatmul.mubr.msk.bf16.gmra.mxu0 %vm1255_vm3, %v6501_v32 }
0x1351   : > { %6705 = vmatprep.mubr.bf16.mxu0 %v13574_v49 }
0x1358   : > { %7672 = vmatmul.mubr.msk.bf16.gmra.mxu0 %vm1255_vm3, %v6502_v5 }
0x1359   : > { %6715 = vmatprep.mubr.bf16.mxu0 %v13574_v49 }
0x1360   : > { %7673 = vmatmul.mubr.msk.bf16.gmra.mxu0 %vm1255_vm3, %v6503_v29 }
0x1361   : > { %6725 = vmatprep.mubr.bf16.mxu0 %v13574_v49 }
0x1368   : > { %7674 = vmatmul.mubr.msk.bf16.gmra.mxu0 %vm1255_vm3, %v6504_v30 }
0x1369   : > { %6735 = vmatprep.mubr.bf16.mxu0 %v13574_v49 }
0x1370   : > { %7675 = vmatmul.mubr.msk.bf16.gmra.mxu0 %vm1255_vm3, %v6505_v61 }
0x1371   : > { %6745 = vmatprep.mubr.bf16.mxu0 %v13574_v49 }
0x1378   : > { %7676 = vmatmul.mubr.msk.bf16.gmra.mxu0 %vm1255_vm3, %v6506_v15 }
0x13b8   : > { %v6451_v37 = vpop.f32.mrf.mxu0 }
0x13b9   : > { %v6460_v16 = vmul.f32 %v8376_v45, %v6451_v37 }
0x13ba   : > { %v6453_v39 = vpop.f32.mrf.mxu0 }
0x13bb   : > { %v6462_v60 = vpack.c.bf16 %v6460_v16, %v6460_v16  ;;  %v6461_v40 = vmul.f32 %v8378_v6, %v6453_v39 }
0x13bc   : > { %v6455_v2 = vpop.f32.mrf.mxu0 }
0x13bd   : > { %v7234_v25 = vrot.slane %v6462_v60, 4  ;;  %v6463_v1 = vpack.c.bf16 %v6461_v40, %v6461_v40 }
0x13be   : > { %v6456_v34 = vpop.f32.mrf.mxu0 }
0x13bf   : > { %v7235_v20 = vrot.slane %v6463_v1, 4  ;;  %v12489_v10 = vsel %vm7246_vm4, %v13575_v0, %v7234_v25 }
0x13c0   : > { %13576 = vst [vmem:[#allocation23_spill] sm:$0xff] %v12489_v10  ;;  %v12491_v47 = vpop.f32.mrf.mxu0 }
0x13c1   : > { %v12495_v43 = vsel %vm7246_vm4, %v13577_v28, %v7235_v20 }
0x13c2   : > { %13578 = vst [vmem:[#allocation28_spill] sm:$0xff] %v12495_v43  ;;  %v12497_v62 = vpop.f32.mrf.mxu0 }
0x13c4   : > { %v12499_v12 = vpop.f32.mrf.mxu0 }
0x13c6   : > { %v12501_v3 = vpop.f32.mrf.mxu0 }
0x13c8   : > { %v12503_v19 = vpop.f32.mrf.mxu0 }
0x13c9   : > { %v6756_v6 = vmax.f32 %v12491_v47, %v12503_v19 }
0x13ca   : > { %v12505_v14 = vpop.f32.mrf.mxu0 }
0x13cb   : > { %v6793_v2 = vmax.f32 %v12497_v62, %v12505_v14 }
0x13cc   : > { %v12507_v46 = vpop.f32.mrf.mxu0 }
0x13cd   : > { %v6757_v16 = vmax.f32 %v12499_v12, %v12507_v46 }
0x13ce   : > { %v12509_v24 = vpop.f32.mrf.mxu0 }
0x13cf   : > { %13579 = vst [vmem:[#allocation29_spill] sm:$0xff] %v12509_v24  ;;  %v6794_v60 = vmax.f32 %v12501_v3, %v12509_v24 }
0x13d0   : > { %v12511_v21 = vpop.f32.mrf.mxu0 }
0x13d1   : > { %v6758_v25 = vmax.f32 %v6756_v6, %v12511_v21 }
0x13d2   : > { %v12513_v55 = vpop.f32.mrf.mxu0 }
0x13d3   : > { %v6795_v0 = vmax.f32 %v6793_v2, %v12513_v55 }
0x13d4   : > { %v12515_v26 = vpop.f32.mrf.mxu0 }
0x13d5   : > { %v6759_v40 = vmax.f32 %v6757_v16, %v12515_v26 }
0x13d6   : > { %v12517_v17 = vpop.f32.mrf.mxu0 }
0x13d7   : > { %v6796_v34 = vmax.f32 %v6794_v60, %v12517_v17 }
0x13d8   : > { %v12519_v59 = vpop.f32.mrf.mxu0 }
0x13d9   : > { %v6760_v28 = vmax.f32 %v6758_v25, %v12519_v59 }
0x13da   : > { %v12521_v23 = vpop.f32.mrf.mxu0 }
0x13db   : > { %v6797_v49 = vmax.f32 %v6795_v0, %v12521_v23 }
0x13dc   : > { %v12523_v44 = vpop.f32.mrf.mxu0 }
0x13dd   : > { %13580 = vst [vmem:[#allocation32_spill] sm:$0xff] %v12523_v44  ;;  %v6761_v20 = vmax.f32 %v6759_v40, %v12523_v44 }
0x13de   : > { %v12525_v33 = vpop.f32.mrf.mxu0 }
0x13df   : > { %v6798_v10 = vmax.f32 %v6796_v34, %v12525_v33 }
0x13e0   : > { %v12527_v31 = vpop.f32.mrf.mxu0 }
0x13e1   : > { %v6762_v6 = vmax.f32 %v6760_v28, %v12527_v31 }
0x13e2   : > { %v12529_v41 = vpop.f32.mrf.mxu0 }
0x13e3   : > { %v6799_v2 = vmax.f32 %v6797_v49, %v12529_v41 }
0x13e4   : > { %v12531_v35 = vpop.f32.mrf.mxu0 }
0x13e5   : > { %13581 = vst [vmem:[#allocation30_spill] sm:$0xff] %v12531_v35  ;;  %v6763_v16 = vmax.f32 %v6761_v20, %v12531_v35 }
0x13e6   : > { %v12533_v36 = vpop.f32.mrf.mxu0 }
0x13e7   : > { %13582 = vst [vmem:[#allocation13_spill] sm:$0xff] %v12533_v36  ;;  %v6800_v60 = vmax.f32 %v6798_v10, %v12533_v36 }
0x13e8   : > { %v12535_v22 = vpop.f32.mrf.mxu0 }
0x13e9   : > { %v6764_v25 = vmax.f32 %v6762_v6, %v12535_v22 }
0x13ea   : > { %v12537_v38 = vpop.f32.mrf.mxu0 }
0x13eb   : > { %v6801_v0 = vmax.f32 %v6799_v2, %v12537_v38 }
0x13ec   : > { %v12539_v58 = vpop.f32.mrf.mxu0 }
0x13ed   : > { %v6765_v40 = vmax.f32 %v6763_v16, %v12539_v58 }
0x13ee   : > { %v12541_v50 = vpop.f32.mrf.mxu0 }
0x13ef   : > { %v6802_v34 = vmax.f32 %v6800_v60, %v12541_v50 }
0x13f0   : > { %v12543_v51 = vpop.f32.mrf.mxu0 }
0x13f1   : > { %13583 = vst [vmem:[#allocation44_spill] sm:$0xff] %v12543_v51  ;;  %v6766_v28 = vmax.f32 %v6764_v25, %v12543_v51 }
0x13f2   : > { %v12545_v7 = vpop.f32.mrf.mxu0 }
0x13f3   : > { %v6803_v49 = vmax.f32 %v6801_v0, %v12545_v7 }
0x13f4   : > { %v12547_v54 = vpop.f32.mrf.mxu0 }
0x13f5   : > { %13584 = vst [vmem:[#allocation14_spill] sm:$0xff] %v12547_v54  ;;  %v6767_v20 = vmax.f32 %v6765_v40, %v12547_v54 }
0x13f6   : > { %v12549_v13 = vpop.f32.mrf.mxu0 }
0x13f7   : > { %v6804_v10 = vmax.f32 %v6802_v34, %v12549_v13 }
0x13f8   : > { %v12551_v48 = vpop.f32.mrf.mxu0 }
0x13f9   : > { %v6768_v6 = vmax.f32 %v6766_v28, %v12551_v48 }
0x13fa   : > { %v12553_v32 = vpop.f32.mrf.mxu0 }
0x13fb   : > { %v6805_v2 = vmax.f32 %v6803_v49, %v12553_v32 }
0x13fc   : > { %v12555_v5 = vpop.f32.mrf.mxu0 }
0x13fd   : > { %v6769_v16 = vmax.f32 %v6767_v20, %v12555_v5 }
0x13fe   : > { %v12557_v29 = vpop.f32.mrf.mxu0 }
0x13ff   : > { %v6806_v60 = vmax.f32 %v6804_v10, %v12557_v29 }
0x1400   : > { %v12559_v30 = vpop.f32.mrf.mxu0 }
0x1401   : > { %v6770_v25 = vmax.f32 %v6768_v6, %v12559_v30 }
0x1402   : > { %v12561_v61 = vpop.f32.mrf.mxu0 }
0x1403   : > { %v6807_v0 = vmax.f32 %v6805_v2, %v12561_v61 }
0x1404   : > { %v12563_v15 = vpop.f32.mrf.mxu0 }
0x1405   : > { %13585 = vst [vmem:[#allocation46_spill] sm:$0xff] %v12563_v15  ;;  %v6771_v40 = vmax.f32 %v6769_v16, %v12563_v15 }
0x1406   : > { %v12565_v56 = vpop.f32.mrf.mxu0 }
0x1407   : > { %v6808_v34 = vmax.f32 %v6806_v60, %v12565_v56 }
0x1408   : > { %v12567_v27 = vpop.f32.mrf.mxu0 }
0x1409   : > { %v6772_v28 = vmax.f32 %v6770_v25, %v12567_v27 }
0x140a   : > { %v12569_v57 = vpop.f32.mrf.mxu0 }
0x140b   : > { %13586 = vst [vmem:[#allocation41_spill] sm:$0xff] %v12569_v57  ;;  %v6809_v49 = vmax.f32 %v6807_v0, %v12569_v57 }
0x140c   : > { %v12571_v53 = vpop.f32.mrf.mxu0 }
0x140d   : > { %13587 = vst [vmem:[#allocation43_spill] sm:$0xff] %v12571_v53  ;;  %v6773_v20 = vmax.f32 %v6771_v40, %v12571_v53 }
0x140e   : > { %v12573_v9 = vpop.f32.mrf.mxu0 }
0x140f   : > { %13588 = vst [vmem:[#allocation35_spill] sm:$0xff] %v12573_v9  ;;  %v6810_v10 = vmax.f32 %v6808_v34, %v12573_v9 }
0x1410   : > { %v12575_v42 = vpop.f32.mrf.mxu0 }
0x1411   : > { %13589 = vst [vmem:[#allocation34_spill] sm:$0xff] %v12575_v42  ;;  %v6774_v6 = vmax.f32 %v6772_v28, %v12575_v42 }
0x1412   : > { %v12577_v63 = vpop.f32.mrf.mxu0 }
0x1413   : > { %13590 = vst [vmem:[#allocation36_spill] sm:$0xff] %v12577_v63  ;;  %v6811_v2 = vmax.f32 %v6809_v49, %v12577_v63 }
0x1414   : > { %v12579_v18 = vpop.f32.mrf.mxu0 }
0x1415   : > { %13591 = vst [vmem:[#allocation38_spill] sm:$0xff] %v12579_v18  ;;  %v6775_v16 = vmax.f32 %v6773_v20, %v12579_v18 }
0x1416   : > { %v12581_v4 = vpop.f32.mrf.mxu0 }
0x1417   : > { %13592 = vst [vmem:[#allocation18_spill] sm:$0xff] %v12581_v4  ;;  %v6812_v60 = vmax.f32 %v6810_v10, %v12581_v4 }
0x1418   : > { %v12583_v8 = vpop.f32.mrf.mxu0 }
0x1419   : > { %v6776_v25 = vmax.f32 %v6774_v6, %v12583_v8 }
0x141a   : > { %v12585_v52 = vpop.f32.mrf.mxu0 }
0x141b   : > { %13593 = vst [vmem:[#allocation48_spill] sm:$0xff] %v12585_v52  ;;  %v6813_v0 = vmax.f32 %v6811_v2, %v12585_v52 }
0x141c   : > { %v12587_v11 = vpop.f32.mrf.mxu0 }
0x141d   : > { %v6777_v40 = vmax.f32 %v6775_v16, %v12587_v11 }
0x141e   : > { %v12589_v45 = vpop.f32.mrf.mxu0 }
0x141f   : > { %13594 = vst [vmem:[#allocation39_spill] sm:$0xff] %v12589_v45  ;;  %v6814_v34 = vmax.f32 %v6812_v60, %v12589_v45 }
0x1420   : > { %v12591_v37 = vpop.f32.mrf.mxu0 }
0x1421   : > { %v6778_v28 = vmax.f32 %v6776_v25, %v12591_v37 }
0x1422   : > { %v12597_v39 = vpop.f32.mrf.mxu0 }
0x1423   : > { %v6815_v49 = vmax.f32 %v6813_v0, %v12597_v39 }
0x1424   : > { %v12605_v1 = vpop.f32.mrf.mxu0 }
0x1425   : > { %v6779_v20 = vmax.f32 %v6777_v40, %v12605_v1 }
0x1426   : > { %v12611_v43 = vpop.f32.mrf.mxu0 }
0x1427   : > { %v6816_v10 = vmax.f32 %v6814_v34, %v12611_v43 }
0x1428   : > { %v12617_v24 = vpop.f32.mrf.mxu0 }
0x1429   : > { %v6780_v6 = vmax.f32 %v6778_v28, %v12617_v24 }
0x142a   : > { %v12623_v44 = vpop.f32.mrf.mxu0 }
0x142b   : > { %v6817_v2 = vmax.f32 %v6815_v49, %v12623_v44 }
0x142c   : > { %v12629_v35 = vpop.f32.mrf.mxu0 }
0x142d   : > { %v6781_v16 = vmax.f32 %v6779_v20, %v12629_v35 }
0x142e   : > { %v12635_v36 = vpop.f32.mrf.mxu0 }
0x142f   : > { %v6818_v60 = vmax.f32 %v6816_v10, %v12635_v36 }
0x1430   : > { %v12641_v54 = vpop.f32.mrf.mxu0 }
0x1431   : > { %13595 = vst [vmem:[#allocation37_spill] sm:$0xff] %v12641_v54  ;;  %v6782_v25 = vmax.f32 %v6780_v6, %v12641_v54 }
0x1432   : > { %v12647_v51 = vpop.f32.mrf.mxu0 }
0x1433   : > { %13596 = vst [vmem:[#allocation19_spill] sm:$0xff] %v12647_v51  ;;  %v6819_v0 = vmax.f32 %v6817_v2, %v12647_v51 }
0x1434   : > { %v12653_v15 = vpop.f32.mrf.mxu0 }
0x1435   : > { %13597 = vst [vmem:[#allocation45_spill] sm:$0xff] %v12653_v15  ;;  %v6783_v40 = vmax.f32 %v6781_v16, %v12653_v15 }
0x1436   : > { %v12659_v53 = vpop.f32.mrf.mxu0 }
0x1437   : > { %13598 = vst [vmem:[#allocation47_spill] sm:$0xff] %v12659_v53  ;;  %v6820_v34 = vmax.f32 %v6818_v60, %v12659_v53 }
0x1438   : > { %v12665_v18 = vpop.f32.mrf.mxu0 }
0x1439   : > { %v6784_v28 = vmax.f32 %v6782_v25, %v12665_v18 }
0x143a   : > { %v12671_v4 = vpop.f32.mrf.mxu0 }
0x143b   : > { %v6821_v16 = vmax.f32 %v6819_v0, %v12671_v4 }
0x143c   : > { %v12677_v45 = vpop.f32.mrf.mxu0 }
0x143d   : > { %v6785_v20 = vmax.f32 %v6783_v40, %v12677_v45 }
0x143e   : > { %v12683_v52 = vpop.f32.mrf.mxu0 }
0x143f   : > { %v6822_v10 = vmax.f32 %v6820_v34, %v12683_v52  ;;  %v6786_v15 = vmax.f32 %v6784_v28, %v6785_v20 }
0x1441   : > { %v6823_v49 = vmax.f32 %v6821_v16, %v6822_v10  ;;  %v6787_v63 = vrot.slane %v6786_v15, 4 }
0x1443   : > { %v6824_v6 = vrot.slane %v6823_v49, 4  ;;  %v6788_v54 = vmax.f32 %v6786_v15, %v6787_v63 }
0x1445   : > { %v6825_v42 = vmax.f32 %v6823_v49, %v6824_v6  ;;  %v6789_v9 = vrot.slane %v6788_v54, 2 }
0x1447   : > { %v6826_v60 = vrot.slane %v6825_v42, 2  ;;  %v6790_v53 = vmax.f32 %v6788_v54, %v6789_v9 }
0x1449   : > { %v6827_v40 = vmax.f32 %v6825_v42, %v6826_v60  ;;  %v6791_v57 = vrot.slane %v6790_v53, 1 }
0x144b   : > { %v6828_v2 = vrot.slane %v6827_v40, 1  ;;  %v12687_v51 = vmax.f32 %v6790_v53, %v6791_v57 }
0x144d   : > { %v12689_v25 = vmax.f32 %v6827_v40, %v6828_v2  ;;  %v6830_v34 = vsub.f32 %v12491_v47, %v12687_v51  ;;  %v6832_v20 = vsub.f32 %v12499_v12, %v12687_v51  ;;  %v6834_v15 = vsub.f32 %v12503_v19, %v12687_v51 }
0x144e   : > { %v6836_v63 = vsub.f32 %v12507_v46, %v12687_v51  ;;  %v6874_v54 = vsub.f32 %v12583_v8, %v12687_v51  ;;  %v6876_v57 = vsub.f32 %v12587_v11, %v12687_v51  ;;  %v6878_v53 = vsub.f32 %v12591_v37, %v12687_v51 }
0x144f   : > { %v6880_v47 = vsub.f32 %v12605_v1, %v12687_v51  ;;  %v6882_v12 = vsub.f32 %v12617_v24, %v12687_v51  ;;  %v6884_v19 = vsub.f32 %v12629_v35, %v12687_v51  ;;  %v6831_v46 = vsub.f32 %v12497_v62, %v12689_v25  ;;  %v13599_v24 = vld [vmem:[#allocation29_spill] sm:$0xff] }
0x1450   : > { %v6833_v9 = vsub.f32 %v12501_v3, %v12689_v25  ;;  %v6838_v42 = vsub.f32 %v12511_v21, %v12687_v51  ;;  %v6840_v8 = vsub.f32 %v12515_v26, %v12687_v51  ;;  %v6835_v11 = vsub.f32 %v12505_v14, %v12689_v25 }
0x1451   : > { %v6837_v37 = vsub.f32 %v13599_v24, %v12689_v25  ;;  %v6839_v35 = vsub.f32 %v12513_v55, %v12689_v25  ;;  %v6841_v62 = vsub.f32 %v12517_v17, %v12689_v25  ;;  %v6879_v3 = vsub.f32 %v12597_v39, %v12689_v25 }
0x1452   : > { %v6881_v21 = vsub.f32 %v12611_v43, %v12689_v25  ;;  %v6883_v26 = vsub.f32 %v12623_v44, %v12689_v25  ;;  %v6885_v14 = vsub.f32 %v12635_v36, %v12689_v25  ;;  %v12735_v1 = vpack.c.bf16 %v6876_v57, %v6874_v54  ;;  %v13600_v43 = vld [vmem:[#allocation32_spill] sm:$0xff] }
0x1453   : > { %v12737_v0 = vpack.c.bf16 %v6880_v47, %v6878_v53  ;;  %v6894_v55 = vpack.c.bf16 %v6832_v20, %v6830_v34  ;;  %v6896_v28 = vpack.c.bf16 %v6836_v63, %v6834_v15  ;;  %v12739_v10 = vpack.c.bf16 %v6884_v19, %v6882_v12  ;;  %v13602_v47 = vld [vmem:[#allocation13_spill] sm:$0xff] }
0x1454   : > { %v6895_v17 = vpack.c.bf16 %v6833_v9, %v6831_v46  ;;  %v6842_v39 = vsub.f32 %v12519_v59, %v12687_v51  ;;  %v6844_v16 = vsub.f32 %v13600_v43, %v12687_v51  ;;  %v6897_v49 = vpack.c.bf16 %v6837_v37, %v6835_v11  ;;  %v13601_v59 = vld [vmem:[#allocation30_spill] sm:$0xff] }
0x1455   : > { %v6846_v44 = vsub.f32 %v12527_v31, %v12687_v51  ;;  %v6843_v36 = vsub.f32 %v12521_v23, %v12689_v25  ;;  %v6898_v6 = vpack.c.bf16 %v6840_v8, %v6838_v42  ;;  %v6845_v60 = vsub.f32 %v12525_v33, %v12689_v25 }
0x1456   : > { %v6899_v40 = vpack.c.bf16 %v6841_v62, %v6839_v35  ;;  %v12751_v2 = vpack.c.bf16 %v6881_v21, %v6879_v3  ;;  %v12753_v34 = vpack.c.bf16 %v6885_v14, %v6883_v26  ;;  %v6848_v20 = vsub.f32 %v13601_v59, %v12687_v51  ;;  %v13604_v26 = vld [vmem:[#allocation14_spill] sm:$0xff] }
0x1457   : > { %v6927_v15 = vmul.bf16 1069105081, %v6894_v55  ;;  %v6930_v63 = vmul.bf16 1069105081, %v6895_v17  ;;  %v6933_v54 = vmul.bf16 1069105081, %v6896_v28  ;;  %v6850_v31 = vsub.f32 %v12535_v22, %v12687_v51 }
0x1458   : > { %v6852_v23 = vsub.f32 %v12539_v58, %v12687_v51  ;;  %v6900_v57 = vpack.c.bf16 %v6844_v16, %v6842_v39  ;;  %v6936_v53 = vmul.bf16 1069105081, %v6897_v49  ;;  %v6847_v33 = vsub.f32 %v12529_v41, %v12689_v25 }
0x1459   : > { %v6849_v12 = vsub.f32 %v13602_v47, %v12689_v25  ;;  %8379 = vpow.bf16 %v6927_v15  ;;  %v6939_v19 = vmul.bf16 1069105081, %v6898_v6  ;;  %v6858_v46 = vsub.f32 %v12551_v48, %v12687_v51 }
0x145a   : > { %v6901_v9 = vpack.c.bf16 %v6845_v60, %v6843_v36  ;;  %8381 = vpow.bf16 %v6930_v63  ;;  %v6942_v42 = vmul.bf16 1069105081, %v6899_v40  ;;  %v6860_v22 = vsub.f32 %v12555_v5, %v12687_v51  ;;  %v13605_v60 = vld [vmem:[#allocation46_spill] sm:$0xff] }
0x145b   : > { %v6851_v58 = vsub.f32 %v12537_v38, %v12689_v25  ;;  %v6853_v41 = vsub.f32 %v12541_v50, %v12689_v25  ;;  %8383 = vpow.bf16 %v6933_v54  ;;  %v6859_v8 = vsub.f32 %v12553_v32, %v12689_v25  ;;  %v13603_v32 = vld [vmem:[#allocation44_spill] sm:$0xff] }
0x145c   : > { %v6861_v11 = vsub.f32 %v12557_v29, %v12689_v25  ;;  %v6902_v48 = vpack.c.bf16 %v6848_v20, %v6846_v44  ;;  %8385 = vpow.bf16 %v6936_v53  ;;  %v6855_v24 = vsub.f32 %v12545_v7, %v12689_v25 }
0x145d   : > { %v6903_v37 = vpack.c.bf16 %v6849_v12, %v6847_v33  ;;  %8387 = vpow.bf16 %v6939_v19  ;;  %v6945_v5 = vmul.bf16 1069105081, %v6900_v57  ;;  %v6857_v38 = vsub.f32 %v12549_v13, %v12689_v25 }
0x145e   : > { %v6904_v35 = vpack.c.bf16 %v6852_v23, %v6850_v31  ;;  %8389 = vpow.bf16 %v6942_v42  ;;  %v6948_v50 = vmul.bf16 1069105081, %v6901_v9  ;;  %v6905_v62 = vpack.c.bf16 %v6853_v41, %v6851_v58  ;;  %v13607_v58 = vld [vmem:[#allocation41_spill] sm:$0xff] }
0x145f   : > { %v6854_v3 = vsub.f32 %v13603_v32, %v12687_v51  ;;  %v6909_v21 = vpack.c.bf16 %v6861_v11, %v6859_v8  ;;  %v6951_v29 = vmul.bf16 1069105081, %v6902_v48  ;;  %v6856_v14 = vsub.f32 %v13604_v26, %v12687_v51  ;;  %v13609_v32 = vld [vmem:[#allocation34_spill] sm:$0xff] }
0x1460   : > { %v6908_v55 = vpack.c.bf16 %v6860_v22, %v6858_v46  ;;  %8391 = vpow.bf16 %v6945_v5  ;;  %v6954_v7 = vmul.bf16 1069105081, %v6903_v37  ;;  %v6907_v28 = vpack.c.bf16 %v6857_v38, %v6855_v24  ;;  %v13606_v22 = vld [vmem:[#allocation43_spill] sm:$0xff] }
0x1461   : > { %8393 = vpow.bf16 %v6948_v50  ;;  %v6957_v17 = vmul.bf16 1069105081, %v6904_v35  ;;  %v6960_v39 = vmul.bf16 1069105081, %v6905_v62  ;;  %v6972_v13 = vmul.bf16 1069105081, %v6909_v21 }
0x1462   : > { %8395 = vpow.bf16 %v6951_v29  ;;  %v6906_v43 = vpack.c.bf16 %v6856_v14, %v6854_v3  ;;  %v6969_v16 = vmul.bf16 1069105081, %v6908_v55  ;;  %v6966_v49 = vmul.bf16 1069105081, %v6907_v28  ;;  %v13610_v21 = vld [vmem:[#allocation38_spill] sm:$0xff] }
0x1463   : > { %8397 = vpow.bf16 %v6954_v7  ;;  %v6890_v36 = vsub.f32 %v12665_v18, %v12687_v51  ;;  %v6862_v6 = vsub.f32 %v12559_v30, %v12687_v51  ;;  %v6864_v40 = vsub.f32 %v13605_v60, %v12687_v51  ;;  %v13611_v7 = vld [vmem:[#allocation36_spill] sm:$0xff] }
0x1464   : > { %8399 = vpow.bf16 %v6957_v17  ;;  %v6863_v20 = vsub.f32 %v12561_v61, %v12689_v25  ;;  %v6963_v31 = vmul.bf16 1069105081, %v6906_v43  ;;  %v6865_v53 = vsub.f32 %v12565_v56, %v12689_v25  ;;  %v13612_v17 = vld [vmem:[#allocation18_spill] sm:$0xff] }
0x1465   : > { %8401 = vpow.bf16 %v6960_v39  ;;  %v6892_v12 = vsub.f32 %v12677_v45, %v12687_v51  ;;  %v6866_v19 = vsub.f32 %v12567_v27, %v12687_v51  ;;  %v6868_v56 = vsub.f32 %v13606_v22, %v12687_v51  ;;  %v13608_v27 = vld [vmem:[#allocation35_spill] sm:$0xff] }
0x1466   : > { %8403 = vpow.bf16 %v6972_v13  ;;  %v6867_v41 = vsub.f32 %v13607_v58, %v12689_v25  ;;  %v6910_v48 = vpack.c.bf16 %v6864_v40, %v6862_v6  ;;  %v6869_v5 = vsub.f32 %v13608_v27, %v12689_v25 }
0x1467   : > { %v12785_v44 = vpop.eup %8379  ;;  %8405 = vpow.bf16 %v6969_v16  ;;  %v6911_v38 = vpack.c.bf16 %v6865_v53, %v6863_v20  ;;  %v6870_v3 = vsub.f32 %v13609_v32, %v12687_v51  ;;  %v6872_v29 = vsub.f32 %v13610_v21, %v12687_v51 }
0x1468   : > { %v12793_v59 = vpop.eup %8381  ;;  %v7022_v15 = vunpack.c.l.bf16 %v12785_v44  ;;  %v7024_v63 = vunpack.c.h.bf16 %v12785_v44  ;;  %8407 = vpow.bf16 %v6966_v49  ;;  %v6871_v28 = vsub.f32 %v13611_v7, %v12689_v25 }
0x1469   : > { %v12799_v54 = vpop.eup %8383  ;;  %v7023_v30 = vunpack.c.l.bf16 %v12793_v59  ;;  %v7025_v23 = vunpack.c.h.bf16 %v12793_v59  ;;  %8409 = vpow.bf16 %v6963_v31  ;;  %v6873_v39 = vsub.f32 %v13612_v17, %v12689_v25 }
0x146a   : > { %v12803_v57 = vpop.eup %8385  ;;  %v7026_v61 = vunpack.c.l.bf16 %v12799_v54  ;;  %v7086_v33 = vadd.f32 %v7024_v63, %v7022_v15  ;;  %v7028_v8 = vunpack.c.h.bf16 %v12799_v54  ;;  %v6912_v16 = vpack.c.bf16 %v6868_v56, %v6866_v19 }
0x146b   : > { %v12808_v47 = vpop.eup %8387  ;;  %v7027_v46 = vunpack.c.l.bf16 %v12803_v57  ;;  %v7123_v9 = vadd.f32 %v7025_v23, %v7023_v30  ;;  %v7029_v24 = vunpack.c.h.bf16 %v12803_v57  ;;  %v6975_v49 = vmul.bf16 1069105081, %v6910_v48  ;;  %v13613_v23 = vld [vmem:[#allocation48_spill] sm:$0xff] }
0x146c   : > { %v12815_v42 = vpop.eup %8389  ;;  %v7087_v11 = vadd.f32 %v7086_v33, %v7026_v61  ;;  %v7030_v35 = vunpack.c.l.bf16 %v12808_v47  ;;  %v7032_v13 = vunpack.c.h.bf16 %v12808_v47  ;;  %v6913_v20 = vpack.c.bf16 %v6869_v5, %v6867_v41  ;;  %v13614_v61 = vld [vmem:[#allocation39_spill] sm:$0xff] }
0x146d   : > { %v7124_v37 = vadd.f32 %v7123_v9, %v7027_v46  ;;  %v7031_v26 = vunpack.c.l.bf16 %v12815_v42  ;;  %v7033_v6 = vunpack.c.h.bf16 %v12815_v42  ;;  %v6978_v15 = vmul.bf16 1069105081, %v6911_v38 }
0x146e   : > { %v7088_v50 = vadd.f32 %v7087_v11, %v7028_v8  ;;  %v12826_v62 = vpop.eup %8391  ;;  %v6875_v53 = vsub.f32 %v13613_v23, %v12689_v25  ;;  %v6877_v33 = vsub.f32 %v13614_v61, %v12689_v25  ;;  %v6914_v22 = vpack.c.bf16 %v6872_v29, %v6870_v3 }
0x146f   : > { %v7125_v14 = vadd.f32 %v7124_v37, %v7029_v24  ;;  %v12833_v55 = vpop.eup %8393  ;;  %v7034_v63 = vunpack.c.l.bf16 %v12826_v62  ;;  %v6915_v56 = vpack.c.bf16 %v6873_v39, %v6871_v28  ;;  %v7036_v58 = vunpack.c.h.bf16 %v12826_v62 }
0x1470   : > { %v7089_v43 = vadd.f32 %v7088_v50, %v7030_v35  ;;  %v12841_v40 = vpop.eup %8395  ;;  %v7035_v19 = vunpack.c.l.bf16 %v12833_v55  ;;  %8411 = vpow.bf16 %v6975_v49  ;;  %v6981_v11 = vmul.bf16 1069105081, %v6912_v16 }
0x1471   : > { %v7126_v60 = vadd.f32 %v7125_v14, %v7031_v26  ;;  %v12844_v30 = vpop.eup %8397  ;;  %v7037_v48 = vunpack.c.h.bf16 %v12833_v55  ;;  %8413 = vpow.bf16 %v6978_v15  ;;  %v6984_v27 = vmul.bf16 1069105081, %v6913_v20  ;;  %v13615_v20 = vld [vmem:[#allocation19_spill] sm:$0xff] }
0x1472   : > { %v7090_v31 = vadd.f32 %v7089_v43, %v7032_v13  ;;  %v8400_v9 = vpop.eup %8399  ;;  %v7038_v5 = vunpack.c.l.bf16 %v12841_v40  ;;  %v6891_v50 = vsub.f32 %v12671_v4, %v12689_v25  ;;  %v6893_v32 = vsub.f32 %v12683_v52, %v12689_v25 }
0x1473   : > { %v7127_v46 = vadd.f32 %v7126_v60, %v7033_v6  ;;  %v8402_v8 = vpop.eup %8401  ;;  %v7039_v3 = vunpack.c.l.bf16 %v12844_v30  ;;  %v6917_v26 = vpack.c.bf16 %v6877_v33, %v6875_v53  ;;  %v7040_v14 = vunpack.c.h.bf16 %v12841_v40 }
0x1474   : > { %v7091_v41 = vadd.f32 %v7090_v31, %v7034_v63  ;;  %v12853_v37 = vpop.eup %8403  ;;  %8415 = vpow.bf16 %v6981_v11  ;;  %v6987_v28 = vmul.bf16 1069105081, %v6914_v22  ;;  %v7041_v17 = vunpack.c.h.bf16 %v12844_v30  ;;  %v13616_v63 = vld [vmem:[#allocation47_spill] sm:$0xff] }
0x1475   : > { %v7128_v24 = vadd.f32 %v7127_v46, %v7035_v19  ;;  %v12856_v35 = vpop.eup %8405  ;;  %7169 = vmatprep.subr.bf16.mxu1 %v12853_v37  ;;  %8417 = vpow.bf16 %v6984_v27  ;;  %v6990_v52 = vmul.bf16 1069105081, %v6915_v56  ;;  %v7042_v39 = vunpack.c.l.bf16 %v8400_v9  ;;  %v13617_v19 = vld [vmem:[#allocation37_spill] sm:$0xff] }
0x1476   : > { %v7092_v38 = vadd.f32 %v7091_v41, %v7036_v58  ;;  %v8408_v29 = vpop.eup %8407  ;;  %7170 = vmatpush1.bf16.msra.mxu1 %v12856_v35  ;;  %v6924_v16 = vpack.c.bf16 %v6892_v12, %v6890_v36  ;;  %v6925_v49 = vpack.c.bf16 %v6893_v32, %v6891_v50  ;;  %v7043_v6 = vunpack.c.l.bf16 %v8402_v8 }
0x1477   : > { %v7129_v21 = vadd.f32 %v7128_v24, %v7037_v48  ;;  %7171 = vmatprep.subr.bf16.mxu1 %v8408_v29  ;;  %v8410_v43 = vpop.eup %8409  ;;  %v6887_v15 = vsub.f32 %v13615_v20, %v12689_v25  ;;  %v6889_v31 = vsub.f32 %v13616_v63, %v12689_v25  ;;  %v7044_v23 = vunpack.c.h.bf16 %v8400_v9  ;;  %v13618_v25 = vld [vmem:[#allocation45_spill] sm:$0xff] }
0x1478   : > { %v7093_v7 = vadd.f32 %v7092_v38, %v7038_v5  ;;  %8419 = vpow.bf16 %v6987_v28  ;;  %v6993_v61 = vmul.bf16 1069105081, %v12735_v1  ;;  %v7045_v18 = vunpack.c.h.bf16 %v8402_v8 }
0x1479   : > { %v7130_v4 = vadd.f32 %v7129_v21, %v7039_v3  ;;  %8421 = vpow.bf16 %v6990_v52  ;;  %v6996_v45 = vmul.bf16 1069105081, %v6917_v26  ;;  %v7046_v36 = vunpack.c.l.bf16 %v8410_v43 }
0x147a   : > { %v7094_v13 = vadd.f32 %v7093_v7, %v7040_v14  ;;  %7172 = vmatpush1.bf16.msra.mxu1 %v8410_v43  ;;  %v6886_v46 = vsub.f32 %v13617_v19, %v12687_v51  ;;  %v7020_v22 = vmul.bf16 1069105081, %v6925_v49  ;;  %v7047_v56 = vunpack.c.l.bf16 %v8408_v29 }
0x147b   : > { %v7131_v60 = vadd.f32 %v7130_v4, %v7041_v17  ;;  %7173 = vmatprep.subr.bf16.mxu1 %v8402_v8  ;;  %v6888_v41 = vsub.f32 %v13618_v25, %v12687_v51  ;;  %v6923_v11 = vpack.c.bf16 %v6889_v31, %v6887_v15  ;;  %v7048_v48 = vunpack.c.h.bf16 %v8410_v43 }
0x147c   : > { %v7095_v53 = vadd.f32 %v7094_v13, %v7042_v39  ;;  %8423 = vpow.bf16 %v6993_v61  ;;  %v6999_v1 = vmul.bf16 1069105081, %v12737_v0  ;;  %v7049_v8 = vunpack.c.h.bf16 %v8408_v29 }
0x147d   : > { %v7132_v33 = vadd.f32 %v7131_v60, %v7043_v6  ;;  %8425 = vpow.bf16 %v6996_v45  ;;  %v7002_v5 = vmul.bf16 1069105081, %v12751_v2  ;;  %v7050_v38 = vunpack.c.l.bf16 %v12856_v35 }
0x147e   : > { %v7096_v12 = vadd.f32 %v7095_v53, %v7044_v23  ;;  %7174 = vmatpush1.bf16.msra.mxu1 %v8400_v9  ;;  %v12886_v32 = vpop.eup %8411  ;;  %v7017_v51 = vmul.bf16 1069105081, %v6924_v16  ;;  %8427 = vpow.bf16 %v7020_v22  ;;  %v7051_v3 = vunpack.c.l.bf16 %v12853_v37 }
0x147f   : > { %v7133_v58 = vadd.f32 %v7132_v33, %v7045_v18  ;;  %7175 = vmatprep.subr.bf16.mxu1 %v12844_v30  ;;  %v12889_v21 = vpop.eup %8413  ;;  %v6922_v0 = vpack.c.bf16 %v6888_v41, %v6886_v46  ;;  %v7005_v29 = vmul.bf16 1069105081, %v12739_v10  ;;  %v7052_v30 = vunpack.c.h.bf16 %v12856_v35 }
0x1480   : > { %v7097_v24 = vadd.f32 %v7096_v12, %v7046_v36  ;;  %8429 = vpow.bf16 %v6999_v1  ;;  %v7008_v2 = vmul.bf16 1069105081, %v12753_v34  ;;  %v7053_v14 = vunpack.c.h.bf16 %v12853_v37 }
0x1481   : > { %v7134_v27 = vadd.f32 %v7133_v58, %v7047_v56  ;;  %8431 = vpow.bf16 %v7002_v5  ;;  %v7014_v28 = vmul.bf16 1069105081, %v6923_v11  ;;  %v7054_v17 = vunpack.c.l.bf16 %v12886_v32 }
0x1482   : > { %v7098_v50 = vadd.f32 %v7097_v24, %v7048_v48  ;;  %7176 = vmatpush1.bf16.msra.mxu1 %v12841_v40  ;;  %v12898_v52 = vpop.eup %8415  ;;  %8433 = vpow.bf16 %v7017_v51  ;;  %v7055_v10 = vunpack.c.l.bf16 %v12889_v21  ;;  %v7056_v34 = vunpack.c.h.bf16 %v12886_v32 }
0x1483   : > { %v7135_v9 = vadd.f32 %v7134_v27, %v7049_v8  ;;  %7177 = vmatprep.subr.bf16.mxu1 %v12833_v55  ;;  %v12901_v40 = vpop.eup %8417  ;;  %8435 = vpow.bf16 %v7005_v29  ;;  %v7011_v55 = vmul.bf16 1069105081, %v6922_v0  ;;  %v7057_v39 = vunpack.c.h.bf16 %v12889_v21 }
0x1484   : > { %v7099_v26 = vadd.f32 %v7098_v50, %v7050_v38  ;;  %8437 = vpow.bf16 %v7008_v2  ;;  %v7058_v43 = vunpack.c.l.bf16 %v12898_v52  ;;  %v7059_v6 = vunpack.c.l.bf16 %v12901_v40 }
0x1485   : > { %v7136_v7 = vadd.f32 %v7135_v9, %v7051_v3  ;;  %8439 = vpow.bf16 %v7014_v28  ;;  %v7061_v63 = vunpack.c.h.bf16 %v12901_v40 }
0x1486   : > { %v7100_v4 = vadd.f32 %v7099_v26, %v7052_v30  ;;  %7178 = vmatpush1.bf16.msra.mxu1 %v12826_v62  ;;  %v12908_v49 = vpop.eup %8419  ;;  %v7060_v62 = vunpack.c.h.bf16 %v12898_v52  ;;  %8441 = vpow.bf16 %v7011_v55 }
0x1487   : > { %v7137_v35 = vadd.f32 %v7136_v7, %v7053_v14  ;;  %7179 = vmatprep.subr.bf16.mxu1 %v12815_v42  ;;  %v12911_v20 = vpop.eup %8421  ;;  %v7062_v31 = vunpack.c.l.bf16 %v12908_v49  ;;  %v7064_v45 = vunpack.c.h.bf16 %v12908_v49 }
0x1488   : > { %v7101_v37 = vadd.f32 %v7100_v4, %v7054_v17  ;;  %v7063_v61 = vunpack.c.l.bf16 %v12911_v20  ;;  %v7065_v12 = vunpack.c.h.bf16 %v12911_v20 }
0x1489   : > { %v7138_v13 = vadd.f32 %v7137_v35, %v7055_v10 }
0x148a   : > { %v7102_v16 = vadd.f32 %v7101_v37, %v7056_v34  ;;  %7180 = vmatpush1.bf16.msra.mxu1 %v12808_v47  ;;  %v12918_v53 = vpop.eup %8423 }
0x148b   : > { %v7139_v60 = vadd.f32 %v7138_v13, %v7057_v39  ;;  %7181 = vmatprep.subr.bf16.mxu1 %v12803_v57  ;;  %v8426_v33 = vpop.eup %8425  ;;  %v7066_v57 = vunpack.c.l.bf16 %v12918_v53  ;;  %v7068_v41 = vunpack.c.h.bf16 %v12918_v53 }
0x148c   : > { %v7103_v15 = vadd.f32 %v7102_v16, %v7058_v43  ;;  %v12923_v47 = vpop.eup %8427  ;;  %v7067_v56 = vunpack.c.l.bf16 %v8426_v33  ;;  %v7069_v48 = vunpack.c.h.bf16 %v8426_v33 }
0x148d   : > { %v7140_v42 = vadd.f32 %v7139_v60, %v7059_v6  ;;  %v7083_v6 = vunpack.c.l.bf16 %v12923_v47 }
0x148e   : > { %v7104_v23 = vadd.f32 %v7103_v15, %v7060_v62  ;;  %7182 = vmatpush1.bf16.msra.mxu1 %v12799_v54  ;;  %v8430_v22 = vpop.eup %8429 }
0x148f   : > { %v7141_v18 = vadd.f32 %v7140_v42, %v7061_v63  ;;  %7183 = vmatprep.subr.bf16.mxu1 %v12793_v59  ;;  %v8432_v25 = vpop.eup %8431  ;;  %v7070_v8 = vunpack.c.l.bf16 %v8430_v22  ;;  %v7072_v51 = vunpack.c.h.bf16 %v8430_v22  ;;  %v7085_v63 = vunpack.c.h.bf16 %v12923_v47 }
0x1490   : > { %v7105_v36 = vadd.f32 %v7104_v23, %v7062_v31  ;;  %v8434_v54 = vpop.eup %8433  ;;  %v7071_v5 = vunpack.c.l.bf16 %v8432_v25  ;;  %v7073_v9 = vunpack.c.h.bf16 %v8432_v25 }
0x1491   : > { %v7142_v19 = vadd.f32 %v7141_v18, %v7063_v61  ;;  %v8436_v1 = vpop.eup %8435  ;;  %v7082_v43 = vunpack.c.l.bf16 %v8434_v54  ;;  %v7084_v62 = vunpack.c.h.bf16 %v8434_v54  ;;  %v8453_v61 = vld [vmem:[#allocation4 + $0x38] sm:$0xcc] }
0x1492   : > { %v7106_v46 = vadd.f32 %v7105_v36, %v7064_v45  ;;  %7184 = vmatpush1.bf16.msra.mxu1 %v12785_v44  ;;  %v8438_v27 = vpop.eup %8437  ;;  %v7074_v44 = vunpack.c.l.bf16 %v8436_v1  ;;  %v7076_v14 = vunpack.c.h.bf16 %v8436_v1  ;;  %v7677_v18 = vcombine.low %v8453_v61, %v8453_v61 }
0x1493   : > { %v7143_v58 = vadd.f32 %v7142_v19, %v7065_v12  ;;  %7185 = vmatprep.subr.bf16.mxu1 %v12923_v47  ;;  %v8440_v50 = vpop.eup %8439  ;;  %v7075_v26 = vunpack.c.l.bf16 %v8438_v27  ;;  %v7077_v28 = vunpack.c.h.bf16 %v8438_v27  ;;  %v13619_v45 = vmov 0  }
0x1494   : > { %v7107_v11 = vadd.f32 %v7106_v46, %v7066_v57  ;;  %v8442_v30 = vpop.eup %8441  ;;  %v7079_v35 = vunpack.c.l.bf16 %v8440_v50  ;;  %v7081_v39 = vunpack.c.h.bf16 %v8440_v50 }
0x1495   : > { %v7144_v24 = vadd.f32 %v7143_v58, %v7067_v56  ;;  %v7078_v4 = vunpack.c.l.bf16 %v8442_v30  ;;  %v7080_v37 = vunpack.c.h.bf16 %v8442_v30 }
0x1496   : > { %v7108_v59 = vadd.f32 %v7107_v11, %v7068_v41  ;;  %7186 = vmatpush2.bf16.msra.mxu1 %v8434_v54 }
0x1497   : > { %v7145_v38 = vadd.f32 %v7144_v24, %v7069_v48  ;;  %7187 = vmatprep.subr.bf16.mxu1 %v8440_v50  ;;  %v13622_v50 = vld [vmem:[#allocation22_spill] sm:$0xff] }
0x1498   : > { %v7109_v3 = vadd.f32 %v7108_v59, %v7070_v8  ;;  %v13620_v59 = vld [vmem:[#allocation23_spill] sm:$0xff] }
0x1499   : > { %v7146_v0 = vadd.f32 %v7145_v38, %v7071_v5  ;;  %v13621_v5 = vld [vmem:[#allocation28_spill] sm:$0xff] }
0x149a   : > { %v7110_v29 = vadd.f32 %v7109_v3, %v7072_v51  ;;  %7188 = vmatpush2.bf16.msra.mxu1 %v8442_v30  ;;  %v7893_v51 = vld [vmem:[%s13038_s7] sm:$0xff]  }
0x149b   : > { %v7147_v2 = vadd.f32 %v7146_v0, %v7073_v9  ;;  %7189 = vmatprep.subr.bf16.mxu1 %v8438_v27  ;;  %v13623_v3 = vld [vmem:[#allocation21_spill] sm:$0xff]  ;;  %v7894_v9 = vld [vmem:[%s13038_s7 + $0x8] sm:$0xff]  }
0x149c   : > { %v7111_v7 = vadd.f32 %v7110_v29, %v7074_v44  ;;  %v8454_v44 = vld [vmem:[%s8714_s25] sm:$0xff] }
0x149d   : > { %v7148_v17 = vadd.f32 %v7147_v2, %v7075_v26  ;;  %v8455_v26 = vld [vmem:[%s8714_s25 + $0x8] sm:$0xff] }
0x149e   : > { %v7112_v10 = vadd.f32 %v7111_v7, %v7076_v14  ;;  %7190 = vmatpush2.bf16.msra.mxu1 %v8436_v1  ;;  %v8456_v7 = vld [vmem:[%s8714_s25 + $0x10] sm:$0xff] }
0x149f   : > { %v7149_v34 = vadd.f32 %v7148_v17, %v7077_v28  ;;  %7191 = vmatprep.subr.bf16.mxu1 %v8432_v25 }
0x14a0   : > { %v7113_v55 = vadd.f32 %v7112_v10, %v7078_v4  ;;  %v8457_v4 = vld [vmem:[%s8714_s25 + $0x18] sm:$0xff] }
0x14a1   : > { %v7150_v13 = vadd.f32 %v7149_v34, %v7079_v35  ;;  %v8458_v34 = vld [vmem:[%s8714_s25 + $0x20] sm:$0xff] }
0x14a2   : > { %v7114_v16 = vadd.f32 %v7113_v55, %v7080_v37  ;;  %7192 = vmatpush2.bf16.msra.mxu1 %v8430_v22 }
0x14a3   : > { %v7151_v60 = vadd.f32 %v7150_v13, %v7081_v39  ;;  %7193 = vmatprep.subr.bf16.mxu1 %v8426_v33  ;;  %v7165_v33 = vrot.slane %v7677_v18, 2  ;;  %v8459_v39 = vld [vmem:[%s8714_s25 + $0x28] sm:$0xff] }
0x14a4   : > { %v7115_v15 = vadd.f32 %v7114_v16, %v7082_v43  ;;  %v8460_v16 = vld [vmem:[%s8714_s25 + $0x30] sm:$0xff] }
0x14a5   : > { %v7152_v42 = vadd.f32 %v7151_v60, %v7083_v6 }
0x14a6   : > { %v7116_v31 = vadd.f32 %v7115_v15, %v7084_v62  ;;  %7194 = vmatpush2.bf16.msra.mxu1 %v12918_v53  ;;  %v8461_v62 = vld [vmem:[%s8714_s25 + $0x38] sm:$0xff] }
0x14a7   : > { %v7153_v23 = vadd.f32 %v7152_v42, %v7085_v63  ;;  %7195 = vmatprep.subr.bf16.mxu1 %v12911_v20 }
0x14a8   : > { %v7117_v36 = vrot.slane %v7116_v31, 4 }
0x14a9   : > { %v7154_v53 = vrot.slane %v7153_v23, 4 }
0x14aa   : > { %7196 = vmatpush2.bf16.msra.mxu1 %v12908_v49  ;;  %v7118_v47 = vadd.f32 %v7117_v36, %v7116_v31 }
0x14ab   : > { %7197 = vmatprep.subr.bf16.mxu1 %v12901_v40  ;;  %v7155_v20 = vadd.f32 %v7154_v53, %v7153_v23 }
0x14ac   : > { %v7119_v12 = vrot.slane %v7118_v47, 2 }
0x14ad   : > { %v7156_v49 = vrot.slane %v7155_v20, 2 }
0x14ae   : > { %7198 = vmatpush2.bf16.msra.mxu1 %v12898_v52  ;;  %v7120_v19 = vadd.f32 %v7119_v12, %v7118_v47 }
0x14af   : > { %7199 = vmatprep.subr.bf16.mxu1 %v12889_v21  ;;  %v7157_v40 = vadd.f32 %v7156_v49, %v7155_v20 }
0x14b0   : > { %v7121_v57 = vrot.slane %v7120_v19, 1 }
0x14b1   : > { %v7158_v52 = vrot.slane %v7157_v40, 1 }
0x14b2   : > { %7200 = vmatpush2.bf16.msra.mxu1 %v12886_v32  ;;  %v7122_v46 = vadd.f32 %v7121_v57, %v7120_v19 }
0x14b3   : > { %v7159_v22 = vadd.f32 %v7158_v52, %v7157_v40 }
0x14b4   : > { %8443 = vrcp.f32 %v7122_v46 }
0x14b5   : > { %7202 = vmatmul.mubr.bf16.vlgmr.msra.gmra.mxu1 %v7165_v33  ;;  %8445 = vrcp.f32 %v7159_v22 }
0x14b6   : > { %7326 = vmatprep.mubr.bf16.mxu1 %v13619_v45 }
0x14c1   : > { %v8444_v21 = vpop.eup %8443 }
0x14c2   : > { %v8446_v58 = vpop.eup %8445 }
0x1575   : > { %v7203_v32 = vpop.f32.mrf.mxu1 }
0x1576   : > { %v7212_v56 = vmul.f32 %v8444_v21, %v7203_v32 }
0x1577   : > { %v7205_v25 = vpop.f32.mrf.mxu1 }
0x1578   : > { %v7214_v41 = vpack.c.bf16 %v7212_v56, %v7212_v56  ;;  %v7213_v11 = vmul.f32 %v8446_v58, %v7205_v25 }
0x1579   : > { %v7207_v54 = vpop.f32.mrf.mxu1 }
0x157a   : > { %v7238_v48 = vrot.slane %v7214_v41, 2  ;;  %v7215_v24 = vpack.c.bf16 %v7213_v11, %v7213_v11 }
0x157b   : > { %v7208_v1 = vpop.f32.mrf.mxu1 }
0x157c   : > { %v7239_v8 = vrot.slane %v7215_v24, 2  ;;  %v7269_v27 = vsel %vm7251_vm5, %v13620_v59, %v7238_v48 }
0x157e   : > { %v7272_v38 = vsel %vm7251_vm5, %v13621_v5, %v7239_v8 }
0x157f   : > { %7306 = vmatprep.subr.bf16.mxu1 %v7272_v38 }
0x1580   : > { %7307 = vmatpush1.bf16.msra.mxu1 %v7269_v27 }
0x1581   : > { %7308 = vmatprep.subr.bf16.mxu1 %v13622_v50 }
0x1584   : > { %7309 = vmatpush1.bf16.msra.mxu1 %v13623_v3 }
0x1587   : > { %7681 = vmatmul.mubr.msk.bf16.vlgmr.msra.gmra.mxu1 %vm368_vm0, %v7893_v51 }
0x1588   : > { %7336 = vmatprep.mubr.bf16.mxu1 %v13619_v45 }
0x158f   : > { %7682 = vmatmul.mubr.msk.bf16.gmra.mxu1 %vm368_vm0, %v7894_v9 }
0x1647   : > { %v7328_v0 = vpop.f32.mrf.mxu1 }
0x1648   : > { %v7347_v29 = vadd.f32 %v8454_v44, %v7328_v0 }
0x1649   : > { %v7330_v30 = vpop.f32.mrf.mxu1 }
0x164a   : > { %7355 = vst [vmem:[%s12959_s12] sm:$0xff] %v7347_v29  ;;  %v7348_v2 = vadd.f32 %v8455_v26, %v7330_v30 }
0x164b   : > { %v7332_v14 = vpop.f32.mrf.mxu1 }
0x164c   : > { %7356 = vst [vmem:[%s12959_s12 + $0x8] sm:$0xff] %v7348_v2  ;;  %v7349_v28 = vadd.f32 %v8456_v7, %v7332_v14 }
0x164d   : > { %v7334_v17 = vpop.f32.mrf.mxu1 }
0x164e   : > { %7357 = vst [vmem:[%s12959_s12 + $0x10] sm:$0xff] %v7349_v28  ;;  %v7350_v10 = vadd.f32 %v8457_v4, %v7334_v17 }
0x164f   : > { %v7338_v35 = vpop.f32.mrf.mxu1 }
0x1650   : > { %7358 = vst [vmem:[%s12959_s12 + $0x18] sm:$0xff] %v7350_v10  ;;  %v7351_v37 = vadd.f32 %v8458_v34, %v7338_v35 }
0x1651   : > { %v7340_v55 = vpop.f32.mrf.mxu1 }
0x1652   : > { %7359 = vst [vmem:[%s12959_s12 + $0x20] sm:$0xff] %v7351_v37  ;;  %v7352_v13 = vadd.f32 %v8459_v39, %v7340_v55 }
0x1653   : > { %v7342_v43 = vpop.f32.mrf.mxu1 }
0x1654   : > { %7360 = vst [vmem:[%s12959_s12 + $0x28] sm:$0xff] %v7352_v13  ;;  %v7353_v6 = vadd.f32 %v8460_v16, %v7342_v43 }
0x1655   : > { %v7344_v60 = vpop.f32.mrf.mxu1 }
0x1656   : > { %7361 = vst [vmem:[%s12959_s12 + $0x30] sm:$0xff] %v7353_v6  ;;  %v7354_v15 = vadd.f32 %v8461_v62, %v7344_v60 }
0x1658   : > { %7362 = vst [vmem:[%s12959_s12 + $0x38] sm:$0xff] %v7354_v15 }
0x1659   : > { %8503 = shalt.err (!%p8500_p6)
}
0x165a   : > { %s8504_s25 = scalar_lea.hbm %s12980_s15, 1024  ;;  %s8508_s12 = scalar_lea.hbm %s13039_s8, 2048 }
0x165b   : > { %p8505_p7 = scmp.ne.s32.totalorder %s12980_s15, %s8504_s25  ;;  %p8509_p13 = scmp.lt.s32.totalorder %s12980_s15, %s13039_s8 }
0x165c   : > { %p8510_p2 = scmp.lt.s32.totalorder %s8508_s12, %s8504_s25 }
0x165d   : > { %p8506_p10 = pnand %p8505_p7, %p8675_p9 }
0x165e   : > { %p8511_p8 = por %p8510_p2, %p8509_p13 }
0x165f   : > { %p8507_p4 = pneg %p8506_p10 }
0x1661   : > { %p8512_p12 = pnand %p8511_p8, %p8507_p4 }
0x1663   : > { %8515 = shalt.err (!%p8512_p12)
}
0x1664   : > { %s8577_s22 = smov 256   ;;  %s8578_s21 = smov 16  }
0x1665   : > { %7788 = dma.vmem_to_hbm [thread:$0]  (%p8675_p9), %s12973_s13, 1024, %s12980_s15, %s7364_s30, %s8577_s22, %s8577_s22, %s8578_s21  }
0x1666 PF: > { %s7394_s23 = sand.u32 1, %s8550_s27   ;;  %p13624_p0 = scmp.ge.s32.totalorder %s8570_s10, 2 }
0x1667   : > { %s7395_s17 = scalar_lea.sflag [#allocation7], %s7394_s23 }
0x1668   : > { %p7795_p1 = pnand %p13624_p0, %p8682_p11 }
0x166a   : > { %p7796_p3 = pneg %p7795_p1 }
0x166c   : > { %8545 = dma.done.wait (%p7796_p3), %s7395_s17, 1024  }
0x166d   : > { %8547 = vsyncadd (%p7796_p3), %s7395_s17, 4294966272  ;;  %s24_s10 = sadd.s32 1, %s8570_s10   ;;  %s13625_s30 = sld [smem:[#allocation11_spill]] }
0x166e   : > { %p21_p5 = scmp.ge.s32.totalorder %s24_s10, 4   ;;  %s13626_s9 = sld [smem:[#allocation12_spill]] }
0x166f   : > { %s13627_s27 = smov %s8554_s28  ;;  %s13628_s28 = smov %s8558_s29 }
0x1670   : > { %s13629_s29 = smov %s8680_s19  ;;  %23 = sbr.rel (!%p21_p5) target bundleno = 6 (0x6), region = 102 }
0x1675   :  { %7400 = vsyncpa [#allocation6], 1 }
0x1676   :  { %7402 = vsyncpa [#allocation6 + $0x1], 1 }
0x1677   :  { %7403 = vsyncpa [#allocation7], 1 }
0x1678   :  { %7405 = vsyncpa [#allocation7 + $0x1], 1 }

</bundles_post_ra>
